<compile_context>
chip_gen: v7x
topology: tpu7x:2x2x1
jax: 0.10.0
libtpu: 0.0.40
codegen_flags: <defaults>
</compile_context>

<pallas_src>
import jax
import jax.numpy as jnp
from jax import lax
from jax.experimental import pallas as pl
from jax.experimental.pallas import tpu as pltpu


CONV_BATCH_TILE = 32                 # per-step VMEM (weights + transients) ~25 MiB at TB=32
VMEM_LIMIT_BYTES = 48 * 1024 * 1024  # fits v7x's 64 MiB physical VMEM; can be raised on v5e/v6e


# ---------------------------------------------------------------------------
# Weight preparation (wrapper side, cheap)
# ---------------------------------------------------------------------------

def _fold_conv_weight(w):
    """(3,3,Cin,Cout) HWIO conv weight -> (3, 3*Cin, 3*Cout) per-H-tap matrices.

    Per tap kh, entry [w_in*Cin+ci, w_out*Cout+co] = W[kh, w_in-w_out+1, ci, co]
    when |w_in - w_out| <= 1, else 0 (the W zero-padding folded into the weight).
    """
    _, _, cin, cout = w.shape
    m = jnp.zeros((3, 3, cin, 3, cout), w.dtype)      # (kh, w_in, ci, w_out, co)
    for w_out in range(3):
        for kw in range(3):
            w_in = w_out + kw - 1
            if 0 <= w_in <= 2:
                m = m.at[:, w_in, :, w_out, :].set(w[:, kw, :, :])
    return m.reshape(3, 3 * cin, 3 * cout)


# ---------------------------------------------------------------------------
# The fused kernel
# ---------------------------------------------------------------------------

def _make_wisdm_kernel(h0, ho1, ho2, ho3):
    def _conv_block(xp_ref, w_ref, s_ref, b_ref, h, ho):
        # xp_ref: (TB, h+2, 3*Cin) bf16, H zero-padded (border rows are zero)
        # w_ref : (3, 3*Cin, 3*Cout) bf16 per-H-tap folded weight
        # s_ref, b_ref: (1, 3*Cout) f32 fused BN scale / bias (conv bias folded in)
        tb = xp_ref.shape[0]
        k = xp_ref.shape[2]
        n_out = w_ref.shape[2]
        acc = None
        for kh in range(3):                               # 3 H-taps, f32 accumulation
            xk = xp_ref[:, kh:kh + h, :].reshape(tb * h, k)
            part = jnp.dot(xk, w_ref[kh], preferred_element_type=jnp.float32)
            acc = part if acc is None else acc + part
        y = jnp.maximum(acc * s_ref[...] + b_ref[...], 0.0)          # BN + ReLU (f32)
        y = y.reshape(tb, h, n_out)[:, :ho * 3, :].reshape(tb, ho, 3, n_out)
        return jnp.max(y, axis=2)                                    # MaxPool (3,1), floor

    def kernel(x_ref, w1_ref, s1_ref, b1_ref, w2_ref, s2_ref, b2_ref,
               w3_ref, s3_ref, b3_ref, fcw_ref, fcb_ref, o_ref, p1_ref, p2_ref):
        tb = x_ref.shape[0]
        c1l = p1_ref.shape[2]
        c2l = p2_ref.shape[2]

        # ----- layer 1 (H: h0 -> ho1); write H-padded bf16 result into VMEM scratch.
        # Borders are rewritten every step so grid iterations stay independent
        # (safe for the "parallel" batch axis on v7x's two TensorCores).
        pooled1 = _conv_block(x_ref, w1_ref, s1_ref, b1_ref, h0, ho1)
        p1_ref[:, 0:1, :] = jnp.zeros((tb, 1, c1l), p1_ref.dtype)
        p1_ref[:, ho1 + 1:ho1 + 2, :] = jnp.zeros((tb, 1, c1l), p1_ref.dtype)
        p1_ref[:, 1:ho1 + 1, :] = pooled1.astype(p1_ref.dtype)

        # ----- layer 2 (ho1 -> ho2)
        pooled2 = _conv_block(p1_ref, w2_ref, s2_ref, b2_ref, ho1, ho2)
        p2_ref[:, 0:1, :] = jnp.zeros((tb, 1, c2l), p2_ref.dtype)
        p2_ref[:, ho2 + 1:ho2 + 2, :] = jnp.zeros((tb, 1, c2l), p2_ref.dtype)
        p2_ref[:, 1:ho2 + 1, :] = pooled2.astype(p2_ref.dtype)

        # ----- layer 3 (ho2 -> ho3); result stays in VMEM values, no HBM round trip.
        pooled3 = _conv_block(p2_ref, w3_ref, s3_ref, b3_ref, ho2, ho3)  # (TB, ho3, 3*C3) f32

        # ----- fc + F.normalize: per-h matmuls avoid a (TB, ho3*3*C3) lane relayout.
        x3 = pooled3.astype(fcw_ref.dtype)
        acc = None
        for hh in range(ho3):
            part = jnp.dot(x3[:, hh, :], fcw_ref[hh],
                           preferred_element_type=jnp.float32)
            acc = part if acc is None else acc + part
        y = acc + fcb_ref[...]                              # padded cols stay exactly 0
        ssq = jnp.sum(y * y, axis=-1, keepdims=True)
        ynorm = y * lax.rsqrt(jnp.maximum(ssq, 1e-24))      # rsqrt runs on the EUP
        o_ref[...] = ynorm.reshape(tb, 1, y.shape[-1])

    return kernel


# ---------------------------------------------------------------------------
# Wrapper
# ---------------------------------------------------------------------------

@jax.jit
def wisdm_forward(x_nchw, params):
    # x_nchw: (N, 1, H0=200, W=3) float32
    n, cin, h0, w0 = x_nchw.shape
    assert cin == 1 and w0 == 3, (cin, w0)
    ho1, ho2, ho3 = h0 // 3, (h0 // 3) // 3, ((h0 // 3) // 3) // 3
    convs = params["convs"]
    c1 = convs[0]["w"].shape[-1]
    c2 = convs[1]["w"].shape[-1]
    c3 = convs[2]["w"].shape[-1]
    k = params["fc_w"].shape[-1]
    kpad = ((k + 127) // 128) * 128                     # lane-dense, unmasked output store
    assert params["fc_w"].shape[0] == ho3 * 3 * c3

    # Batch tiling; keep grid length >= 2 so both v7x TensorCores get work.
    tb = min(CONV_BATCH_TILE, n)
    if n >= 2:
        tb = min(tb, (n + 1) // 2)
    n_pad = ((n + tb - 1) // tb) * tb

    # Layer-1 input: Cin=1 so NCHW -> (N, H, W) directly; pad H by 1 each side once
    # (tiny tensor), cast to bf16 for the MXU.
    x = x_nchw.reshape(n, h0, 3)
    xp = jnp.pad(x, ((0, n_pad - n), (1, 1), (0, 0))).astype(jnp.bfloat16)

    # Pre-cast folded weights to bf16 in the wrapper (no per-step in-kernel casts).
    w1 = _fold_conv_weight(convs[0]["w"]).astype(jnp.bfloat16)
    w2 = _fold_conv_weight(convs[1]["w"]).astype(jnp.bfloat16)
    w3 = _fold_conv_weight(convs[2]["w"]).astype(jnp.bfloat16)
    s1 = jnp.tile(convs[0]["scale"], 3).reshape(1, 3 * c1).astype(jnp.float32)
    b1 = jnp.tile(convs[0]["bias"], 3).reshape(1, 3 * c1).astype(jnp.float32)
    s2 = jnp.tile(convs[1]["scale"], 3).reshape(1, 3 * c2).astype(jnp.float32)
    b2 = jnp.tile(convs[1]["bias"], 3).reshape(1, 3 * c2).astype(jnp.float32)
    s3 = jnp.tile(convs[2]["scale"], 3).reshape(1, 3 * c3).astype(jnp.float32)
    b3 = jnp.tile(convs[2]["bias"], 3).reshape(1, 3 * c3).astype(jnp.float32)

    # fc weight: torch (C,H,W) row order -> per-h (W,C) matrices matching the
    # conv output lane layout (w_out*Cout + co); pad num_class 6 -> 128.
    fcw = params["fc_w"].reshape(c3, ho3, 3, k).transpose(1, 2, 0, 3).reshape(ho3, 3 * c3, k)
    fcw = jnp.pad(fcw, ((0, 0), (0, 0), (0, kpad - k))).astype(jnp.bfloat16)
    fcb = jnp.pad(params["fc_b"], (0, kpad - k)).reshape(1, kpad).astype(jnp.float32)

    kernel = _make_wisdm_kernel(h0, ho1, ho2, ho3)
    out = pl.pallas_call(
        kernel,
        out_shape=jax.ShapeDtypeStruct((n_pad, 1, kpad), jnp.float32),
        grid=(n_pad // tb,),
        in_specs=[
            pl.BlockSpec((tb, h0 + 2, 3), lambda i: (i, 0, 0)),
            pl.BlockSpec((3, 3, 3 * c1), lambda i: (0, 0, 0)),       # weights stay resident
            pl.BlockSpec((1, 3 * c1), lambda i: (0, 0)),
            pl.BlockSpec((1, 3 * c1), lambda i: (0, 0)),
            pl.BlockSpec((3, 3 * c1, 3 * c2), lambda i: (0, 0, 0)),
            pl.BlockSpec((1, 3 * c2), lambda i: (0, 0)),
            pl.BlockSpec((1, 3 * c2), lambda i: (0, 0)),
            pl.BlockSpec((3, 3 * c2, 3 * c3), lambda i: (0, 0, 0)),
            pl.BlockSpec((1, 3 * c3), lambda i: (0, 0)),
            pl.BlockSpec((1, 3 * c3), lambda i: (0, 0)),
            pl.BlockSpec((ho3, 3 * c3, kpad), lambda i: (0, 0, 0)),
            pl.BlockSpec((1, kpad), lambda i: (0, 0)),
        ],
        out_specs=pl.BlockSpec((tb, 1, kpad), lambda i: (i, 0, 0)),
        scratch_shapes=[
            pltpu.VMEM((tb, ho1 + 2, 3 * c1), jnp.bfloat16),   # H-padded layer-1 output
            pltpu.VMEM((tb, ho2 + 2, 3 * c2), jnp.bfloat16),   # H-padded layer-2 output
        ],
        compiler_params=pltpu.CompilerParams(
            dimension_semantics=("parallel",),                  # batch axis -> v7x megacore
            vmem_limit_bytes=VMEM_LIMIT_BYTES),
    )(xp, w1, s1, b1, w2, s2, b2, w3, s3, b3, fcw, fcb)
    return out[:n, 0, :k]
    # TODO(synk): `.cuda(0)` in the reference is a device move; a no-op on TPU.


# ---------------------------------------------------------------------------
# Parameters (synthetic, deterministic; eval-mode BatchNorm folded to scale/bias)
# ---------------------------------------------------------------------------

def init_params(key, num_class=6):
    cfgs = [(1, 64), (64, 128), (128, 256)]
    params = {"convs": []}
    eps = 1e-5
    for (cin, cout) in cfgs:
        key, k1, k2, k3, k4, k5, k6 = jax.random.split(key, 7)
        w = jax.random.normal(k1, (3, 3, cin, cout), jnp.float32) / jnp.sqrt(9.0 * cin)
        b_conv = 0.01 * jax.random.normal(k2, (cout,), jnp.float32)
        gamma = 1.0 + 0.1 * jax.random.normal(k3, (cout,), jnp.float32)
        beta = 0.1 * jax.random.normal(k4, (cout,), jnp.float32)
        r_mean = 0.1 * jax.random.normal(k5, (cout,), jnp.float32)
        r_var = jax.random.uniform(k6, (cout,), jnp.float32, 0.5, 1.5)
        scale = gamma / jnp.sqrt(r_var + eps)
        bias = (b_conv - r_mean) * scale + beta      # BN(conv(x)+b) == conv(x)*scale + bias
        params["convs"].append({"w": w, "scale": scale, "bias": bias})
    key, kw, kb = jax.random.split(key, 3)
    f_in = 256 * 7 * 3                               # fc rows in torch (C, H, W) order
    params["fc_w"] = jax.random.normal(kw, (f_in, num_class), jnp.float32) / jnp.sqrt(float(f_in))
    params["fc_b"] = 0.01 * jax.random.normal(kb, (num_class,), jnp.float32)
    return params


# ---------------------------------------------------------------------------
# Pure-JAX/XLA golden of the same forward pass (independent code path)
# ---------------------------------------------------------------------------

def reference_forward(x_nchw, params):
    x = jnp.transpose(x_nchw, (0, 2, 3, 1)).astype(jnp.float32)
    for layer in params["convs"]:
        x = lax.conv_general_dilated(
            x, layer["w"], window_strides=(1, 1), padding=((1, 1), (1, 1)),
            dimension_numbers=("NHWC", "HWIO", "NHWC"),
            precision=lax.Precision.HIGHEST)
        x = jnp.maximum(x * layer["scale"] + layer["bias"], 0.0)
        n, h, w, c = x.shape
        x = jnp.max(x[:, :(h // 3) * 3].reshape(n, h // 3, 3, w, c), axis=2)
    n, h, w, c = x.shape
    flat = jnp.transpose(x, (0, 3, 1, 2)).reshape(n, -1)          # torch (C,H,W) order
    y = jnp.dot(flat, params["fc_w"], precision=lax.Precision.HIGHEST) + params["fc_b"]
    nrm = jnp.sqrt(jnp.sum(y * y, axis=-1, keepdims=True))
    return y / jnp.maximum(nrm, 1e-12)


if __name__ == "__main__":
    x = jax.random.normal(jax.random.PRNGKey(0), (2, 1, 200, 3), jnp.float32)
    params = init_params(jax.random.PRNGKey(42), num_class=6)
    out = jax.block_until_ready(wisdm_forward(x, params))
    assert out.shape == (2, 6), out.shape
    # rows must be unit L2 norm after F.normalize (normalization done in f32)
    assert bool(jnp.all(jnp.abs(jnp.sum(out * out, axis=-1) - 1.0) < 1e-3))
    # cross-check against the pure-JAX reference (bf16 MXU operands / activations)
    ref = reference_forward(x, params)
    max_err = float(jnp.max(jnp.abs(out - ref)))
    assert max_err < 5e-2, max_err
    print("KERNEL_OK")
</pallas_src>

<mosaic_0001>
module attributes {stable_mosaic.version = 11 : i64} {
  func.func @kernel(%arg0: i32, %arg1: memref<1x202x3xbf16, #tpu.memory_space<vmem>>, %arg2: memref<3x3x192xbf16, #tpu.memory_space<vmem>>, %arg3: memref<1x192xf32, #tpu.memory_space<vmem>>, %arg4: memref<1x192xf32, #tpu.memory_space<vmem>>, %arg5: memref<3x192x384xbf16, #tpu.memory_space<vmem>>, %arg6: memref<1x384xf32, #tpu.memory_space<vmem>>, %arg7: memref<1x384xf32, #tpu.memory_space<vmem>>, %arg8: memref<3x384x768xbf16, #tpu.memory_space<vmem>>, %arg9: memref<1x768xf32, #tpu.memory_space<vmem>>, %arg10: memref<1x768xf32, #tpu.memory_space<vmem>>, %arg11: memref<7x768x128xbf16, #tpu.memory_space<vmem>>, %arg12: memref<1x128xf32, #tpu.memory_space<vmem>>, %arg13: memref<1x1x128xf32, #tpu.memory_space<vmem>>, %arg14: memref<1x68x192xbf16, #tpu.memory_space<vmem>>, %arg15: memref<1x24x384xbf16, #tpu.memory_space<vmem>>) attributes {dimension_semantics = [#tpu.dimension_semantics<parallel>], iteration_bounds = array<i64: 2>, scalar_prefetch = 0 : i64, scratch_operands = 2 : i64, tpu.core_type = #tpu.core_type<tc>, window_params = [{transform_indices = @transform_0, window_bounds = array<i64: 1, 202, 3>}, {pipeline_mode = #tpu.pipeline_mode<synchronous>, transform_indices = @transform_1, window_bounds = array<i64: 3, 3, 192>}, {pipeline_mode = #tpu.pipeline_mode<synchronous>, transform_indices = @transform_2, window_bounds = array<i64: 1, 192>}, {pipeline_mode = #tpu.pipeline_mode<synchronous>, transform_indices = @transform_3, window_bounds = array<i64: 1, 192>}, {pipeline_mode = #tpu.pipeline_mode<synchronous>, transform_indices = @transform_4, window_bounds = array<i64: 3, 192, 384>}, {pipeline_mode = #tpu.pipeline_mode<synchronous>, transform_indices = @transform_5, window_bounds = array<i64: 1, 384>}, {pipeline_mode = #tpu.pipeline_mode<synchronous>, transform_indices = @transform_6, window_bounds = array<i64: 1, 384>}, {pipeline_mode = #tpu.pipeline_mode<synchronous>, transform_indices = @transform_7, window_bounds = array<i64: 3, 384, 768>}, {pipeline_mode = #tpu.pipeline_mode<synchronous>, transform_indices = @transform_8, window_bounds = array<i64: 1, 768>}, {pipeline_mode = #tpu.pipeline_mode<synchronous>, transform_indices = @transform_9, window_bounds = array<i64: 1, 768>}, {pipeline_mode = #tpu.pipeline_mode<synchronous>, transform_indices = @transform_10, window_bounds = array<i64: 7, 768, 128>}, {pipeline_mode = #tpu.pipeline_mode<synchronous>, transform_indices = @transform_11, window_bounds = array<i64: 1, 128>}, {transform_indices = @transform_12, window_bounds = array<i64: 1, 1, 128>}]} {
    %c0 = arith.constant 0 : index
    %c0_0 = arith.constant 0 : index
    %c0_1 = arith.constant 0 : index
    %0 = vector.load %arg1[%c0, %c0_0, %c0_1] : memref<1x202x3xbf16, #tpu.memory_space<vmem>>, vector<1x200x3xbf16>
    %1 = vector.shape_cast %0 : vector<1x200x3xbf16> to vector<200x3xbf16>
    %c0_2 = arith.constant 0 : index
    %c0_3 = arith.constant 0 : index
    %c0_4 = arith.constant 0 : index
    %2 = vector.load %arg2[%c0_2, %c0_3, %c0_4] : memref<3x3x192xbf16, #tpu.memory_space<vmem>>, vector<1x3x192xbf16>
    %3 = vector.shape_cast %2 : vector<1x3x192xbf16> to vector<3x192xbf16>
    %cst = arith.constant dense<0.000000e+00> : vector<200x192xf32>
    %4 = tpu.matmul %1, %3, %cst {dimension_numbers = #tpu.dot_dimension_numbers<[1], [0], [0], [1], [0, 0, 1, 1], [], []>} : vector<200x3xbf16>, vector<3x192xbf16>, vector<200x192xf32> -> vector<200x192xf32>
    %c0_5 = arith.constant 0 : index
    %c1 = arith.constant 1 : index
    %c0_6 = arith.constant 0 : index
    %5 = vector.load %arg1[%c0_5, %c1, %c0_6] : memref<1x202x3xbf16, #tpu.memory_space<vmem>>, vector<1x200x3xbf16>
    %6 = vector.shape_cast %5 : vector<1x200x3xbf16> to vector<200x3xbf16>
    %c1_7 = arith.constant 1 : index
    %c0_8 = arith.constant 0 : index
    %c0_9 = arith.constant 0 : index
    %7 = vector.load %arg2[%c1_7, %c0_8, %c0_9] : memref<3x3x192xbf16, #tpu.memory_space<vmem>>, vector<1x3x192xbf16>
    %8 = vector.shape_cast %7 : vector<1x3x192xbf16> to vector<3x192xbf16>
    %cst_10 = arith.constant dense<0.000000e+00> : vector<200x192xf32>
    %9 = tpu.matmul %6, %8, %cst_10 {dimension_numbers = #tpu.dot_dimension_numbers<[1], [0], [0], [1], [0, 0, 1, 1], [], []>} : vector<200x3xbf16>, vector<3x192xbf16>, vector<200x192xf32> -> vector<200x192xf32>
    %10 = arith.addf %4, %9 : vector<200x192xf32>
    %c0_11 = arith.constant 0 : index
    %c2 = arith.constant 2 : index
    %c0_12 = arith.constant 0 : index
    %11 = vector.load %arg1[%c0_11, %c2, %c0_12] : memref<1x202x3xbf16, #tpu.memory_space<vmem>>, vector<1x200x3xbf16>
    %12 = vector.shape_cast %11 : vector<1x200x3xbf16> to vector<200x3xbf16>
    %c2_13 = arith.constant 2 : index
    %c0_14 = arith.constant 0 : index
    %c0_15 = arith.constant 0 : index
    %13 = vector.load %arg2[%c2_13, %c0_14, %c0_15] : memref<3x3x192xbf16, #tpu.memory_space<vmem>>, vector<1x3x192xbf16>
    %14 = vector.shape_cast %13 : vector<1x3x192xbf16> to vector<3x192xbf16>
    %cst_16 = arith.constant dense<0.000000e+00> : vector<200x192xf32>
    %15 = tpu.matmul %12, %14, %cst_16 {dimension_numbers = #tpu.dot_dimension_numbers<[1], [0], [0], [1], [0, 0, 1, 1], [], []>} : vector<200x3xbf16>, vector<3x192xbf16>, vector<200x192xf32> -> vector<200x192xf32>
    %16 = arith.addf %10, %15 : vector<200x192xf32>
    %c0_17 = arith.constant 0 : index
    %c0_18 = arith.constant 0 : index
    %17 = vector.load %arg3[%c0_17, %c0_18] : memref<1x192xf32, #tpu.memory_space<vmem>>, vector<1x192xf32>
    %18 = vector.broadcast %17 : vector<1x192xf32> to vector<200x192xf32>
    %19 = arith.mulf %16, %18 : vector<200x192xf32>
    %c0_19 = arith.constant 0 : index
    %c0_20 = arith.constant 0 : index
    %20 = vector.load %arg4[%c0_19, %c0_20] : memref<1x192xf32, #tpu.memory_space<vmem>>, vector<1x192xf32>
    %21 = vector.broadcast %20 : vector<1x192xf32> to vector<200x192xf32>
    %22 = arith.addf %19, %21 : vector<200x192xf32>
    %cst_21 = arith.constant 0.000000e+00 : f32
    %23 = vector.broadcast %cst_21 : f32 to vector<200x192xf32>
    %24 = arith.maximumf %22, %23 : vector<200x192xf32>
    %25 = vector.shape_cast %24 : vector<200x192xf32> to vector<1x200x192xf32>
    %26 = vector.extract_strided_slice %25 {offsets = [0, 0, 0], sizes = [1, 198, 192], strides = [1, 1, 1]} : vector<1x200x192xf32> to vector<1x198x192xf32>
    %27 = vector.shape_cast %26 : vector<1x198x192xf32> to vector<1x66x3x192xf32>
    %cst_22 = arith.constant dense<0xFF800000> : vector<1x66x192xf32>
    %28 = vector.multi_reduction <maximumf>, %27, %cst_22 [2] : vector<1x66x3x192xf32> to vector<1x66x192xf32>
    %cst_23 = arith.constant 0.000000e+00 : bf16
    %29 = vector.broadcast %cst_23 : bf16 to vector<1x1x192xbf16>
    %c0_24 = arith.constant 0 : index
    %c0_25 = arith.constant 0 : index
    %c0_26 = arith.constant 0 : index
    %30 = vector.load %arg14[%c0_24, %c0_25, %c0_26] : memref<1x68x192xbf16, #tpu.memory_space<vmem>>, vector<1x1x192xbf16>
    tpu.vector_store %arg14[%c0_24, %c0_25, %c0_26], %29 {strides = array<i32>} : memref<1x68x192xbf16, #tpu.memory_space<vmem>>, vector<1x1x192xbf16>,
    %cst_27 = arith.constant 0.000000e+00 : bf16
    %31 = vector.broadcast %cst_27 : bf16 to vector<1x1x192xbf16>
    %c0_28 = arith.constant 0 : index
    %c67 = arith.constant 67 : index
    %c0_29 = arith.constant 0 : index
    %32 = vector.load %arg14[%c0_28, %c67, %c0_29] : memref<1x68x192xbf16, #tpu.memory_space<vmem>>, vector<1x1x192xbf16>
    tpu.vector_store %arg14[%c0_28, %c67, %c0_29], %31 {strides = array<i32>} : memref<1x68x192xbf16, #tpu.memory_space<vmem>>, vector<1x1x192xbf16>,
    %33 = arith.truncf %28 : vector<1x66x192xf32> to vector<1x66x192xbf16>
    %c0_30 = arith.constant 0 : index
    %c1_31 = arith.constant 1 : index
    %c0_32 = arith.constant 0 : index
    %34 = vector.load %arg14[%c0_30, %c1_31, %c0_32] : memref<1x68x192xbf16, #tpu.memory_space<vmem>>, vector<1x66x192xbf16>
    tpu.vector_store %arg14[%c0_30, %c1_31, %c0_32], %33 {strides = array<i32>} : memref<1x68x192xbf16, #tpu.memory_space<vmem>>, vector<1x66x192xbf16>,
    %c0_33 = arith.constant 0 : index
    %c0_34 = arith.constant 0 : index
    %c0_35 = arith.constant 0 : index
    %35 = vector.load %arg14[%c0_33, %c0_34, %c0_35] : memref<1x68x192xbf16, #tpu.memory_space<vmem>>, vector<1x66x192xbf16>
    %36 = vector.shape_cast %35 : vector<1x66x192xbf16> to vector<66x192xbf16>
    %c0_36 = arith.constant 0 : index
    %c0_37 = arith.constant 0 : index
    %c0_38 = arith.constant 0 : index
    %37 = vector.load %arg5[%c0_36, %c0_37, %c0_38] : memref<3x192x384xbf16, #tpu.memory_space<vmem>>, vector<1x192x384xbf16>
    %38 = vector.shape_cast %37 : vector<1x192x384xbf16> to vector<192x384xbf16>
    %cst_39 = arith.constant dense<0.000000e+00> : vector<66x384xf32>
    %39 = tpu.matmul %36, %38, %cst_39 {dimension_numbers = #tpu.dot_dimension_numbers<[1], [0], [0], [1], [0, 0, 1, 1], [], []>} : vector<66x192xbf16>, vector<192x384xbf16>, vector<66x384xf32> -> vector<66x384xf32>
    %c0_40 = arith.constant 0 : index
    %c1_41 = arith.constant 1 : index
    %c0_42 = arith.constant 0 : index
    %40 = vector.load %arg14[%c0_40, %c1_41, %c0_42] : memref<1x68x192xbf16, #tpu.memory_space<vmem>>, vector<1x66x192xbf16>
    %41 = vector.shape_cast %40 : vector<1x66x192xbf16> to vector<66x192xbf16>
    %c1_43 = arith.constant 1 : index
    %c0_44 = arith.constant 0 : index
    %c0_45 = arith.constant 0 : index
    %42 = vector.load %arg5[%c1_43, %c0_44, %c0_45] : memref<3x192x384xbf16, #tpu.memory_space<vmem>>, vector<1x192x384xbf16>
    %43 = vector.shape_cast %42 : vector<1x192x384xbf16> to vector<192x384xbf16>
    %cst_46 = arith.constant dense<0.000000e+00> : vector<66x384xf32>
    %44 = tpu.matmul %41, %43, %cst_46 {dimension_numbers = #tpu.dot_dimension_numbers<[1], [0], [0], [1], [0, 0, 1, 1], [], []>} : vector<66x192xbf16>, vector<192x384xbf16>, vector<66x384xf32> -> vector<66x384xf32>
    %45 = arith.addf %39, %44 : vector<66x384xf32>
    %c0_47 = arith.constant 0 : index
    %c2_48 = arith.constant 2 : index
    %c0_49 = arith.constant 0 : index
    %46 = vector.load %arg14[%c0_47, %c2_48, %c0_49] : memref<1x68x192xbf16, #tpu.memory_space<vmem>>, vector<1x66x192xbf16>
    %47 = vector.shape_cast %46 : vector<1x66x192xbf16> to vector<66x192xbf16>
    %c2_50 = arith.constant 2 : index
    %c0_51 = arith.constant 0 : index
    %c0_52 = arith.constant 0 : index
    %48 = vector.load %arg5[%c2_50, %c0_51, %c0_52] : memref<3x192x384xbf16, #tpu.memory_space<vmem>>, vector<1x192x384xbf16>
    %49 = vector.shape_cast %48 : vector<1x192x384xbf16> to vector<192x384xbf16>
    %cst_53 = arith.constant dense<0.000000e+00> : vector<66x384xf32>
    %50 = tpu.matmul %47, %49, %cst_53 {dimension_numbers = #tpu.dot_dimension_numbers<[1], [0], [0], [1], [0, 0, 1, 1], [], []>} : vector<66x192xbf16>, vector<192x384xbf16>, vector<66x384xf32> -> vector<66x384xf32>
    %51 = arith.addf %45, %50 : vector<66x384xf32>
    %c0_54 = arith.constant 0 : index
    %c0_55 = arith.constant 0 : index
    %52 = vector.load %arg6[%c0_54, %c0_55] : memref<1x384xf32, #tpu.memory_space<vmem>>, vector<1x384xf32>
    %53 = vector.broadcast %52 : vector<1x384xf32> to vector<66x384xf32>
    %54 = arith.mulf %51, %53 : vector<66x384xf32>
    %c0_56 = arith.constant 0 : index
    %c0_57 = arith.constant 0 : index
    %55 = vector.load %arg7[%c0_56, %c0_57] : memref<1x384xf32, #tpu.memory_space<vmem>>, vector<1x384xf32>
    %56 = vector.broadcast %55 : vector<1x384xf32> to vector<66x384xf32>
    %57 = arith.addf %54, %56 : vector<66x384xf32>
    %cst_58 = arith.constant 0.000000e+00 : f32
    %58 = vector.broadcast %cst_58 : f32 to vector<66x384xf32>
    %59 = arith.maximumf %57, %58 : vector<66x384xf32>
    %60 = vector.shape_cast %59 : vector<66x384xf32> to vector<1x66x384xf32>
    %61 = vector.shape_cast %60 : vector<1x66x384xf32> to vector<1x22x3x384xf32>
    %cst_59 = arith.constant dense<0xFF800000> : vector<1x22x384xf32>
    %62 = vector.multi_reduction <maximumf>, %61, %cst_59 [2] : vector<1x22x3x384xf32> to vector<1x22x384xf32>
    %cst_60 = arith.constant 0.000000e+00 : bf16
    %63 = vector.broadcast %cst_60 : bf16 to vector<1x1x384xbf16>
    %c0_61 = arith.constant 0 : index
    %c0_62 = arith.constant 0 : index
    %c0_63 = arith.constant 0 : index
    %64 = vector.load %arg15[%c0_61, %c0_62, %c0_63] : memref<1x24x384xbf16, #tpu.memory_space<vmem>>, vector<1x1x384xbf16>
    tpu.vector_store %arg15[%c0_61, %c0_62, %c0_63], %63 {strides = array<i32>} : memref<1x24x384xbf16, #tpu.memory_space<vmem>>, vector<1x1x384xbf16>,
    %cst_64 = arith.constant 0.000000e+00 : bf16
    %65 = vector.broadcast %cst_64 : bf16 to vector<1x1x384xbf16>
    %c0_65 = arith.constant 0 : index
    %c23 = arith.constant 23 : index
    %c0_66 = arith.constant 0 : index
    %66 = vector.load %arg15[%c0_65, %c23, %c0_66] : memref<1x24x384xbf16, #tpu.memory_space<vmem>>, vector<1x1x384xbf16>
    tpu.vector_store %arg15[%c0_65, %c23, %c0_66], %65 {strides = array<i32>} : memref<1x24x384xbf16, #tpu.memory_space<vmem>>, vector<1x1x384xbf16>,
    %67 = arith.truncf %62 : vector<1x22x384xf32> to vector<1x22x384xbf16>
    %c0_67 = arith.constant 0 : index
    %c1_68 = arith.constant 1 : index
    %c0_69 = arith.constant 0 : index
    %68 = vector.load %arg15[%c0_67, %c1_68, %c0_69] : memref<1x24x384xbf16, #tpu.memory_space<vmem>>, vector<1x22x384xbf16>
    tpu.vector_store %arg15[%c0_67, %c1_68, %c0_69], %67 {strides = array<i32>} : memref<1x24x384xbf16, #tpu.memory_space<vmem>>, vector<1x22x384xbf16>,
    %c0_70 = arith.constant 0 : index
    %c0_71 = arith.constant 0 : index
    %c0_72 = arith.constant 0 : index
    %69 = vector.load %arg15[%c0_70, %c0_71, %c0_72] : memref<1x24x384xbf16, #tpu.memory_space<vmem>>, vector<1x22x384xbf16>
    %70 = vector.shape_cast %69 : vector<1x22x384xbf16> to vector<22x384xbf16>
    %c0_73 = arith.constant 0 : index
    %c0_74 = arith.constant 0 : index
    %c0_75 = arith.constant 0 : index
    %71 = vector.load %arg8[%c0_73, %c0_74, %c0_75] : memref<3x384x768xbf16, #tpu.memory_space<vmem>>, vector<1x384x768xbf16>
    %72 = vector.shape_cast %71 : vector<1x384x768xbf16> to vector<384x768xbf16>
    %cst_76 = arith.constant dense<0.000000e+00> : vector<22x768xf32>
    %73 = tpu.matmul %70, %72, %cst_76 {dimension_numbers = #tpu.dot_dimension_numbers<[1], [0], [0], [1], [0, 0, 1, 1], [], []>} : vector<22x384xbf16>, vector<384x768xbf16>, vector<22x768xf32> -> vector<22x768xf32>
    %c0_77 = arith.constant 0 : index
    %c1_78 = arith.constant 1 : index
    %c0_79 = arith.constant 0 : index
    %74 = vector.load %arg15[%c0_77, %c1_78, %c0_79] : memref<1x24x384xbf16, #tpu.memory_space<vmem>>, vector<1x22x384xbf16>
    %75 = vector.shape_cast %74 : vector<1x22x384xbf16> to vector<22x384xbf16>
    %c1_80 = arith.constant 1 : index
    %c0_81 = arith.constant 0 : index
    %c0_82 = arith.constant 0 : index
    %76 = vector.load %arg8[%c1_80, %c0_81, %c0_82] : memref<3x384x768xbf16, #tpu.memory_space<vmem>>, vector<1x384x768xbf16>
    %77 = vector.shape_cast %76 : vector<1x384x768xbf16> to vector<384x768xbf16>
    %cst_83 = arith.constant dense<0.000000e+00> : vector<22x768xf32>
    %78 = tpu.matmul %75, %77, %cst_83 {dimension_numbers = #tpu.dot_dimension_numbers<[1], [0], [0], [1], [0, 0, 1, 1], [], []>} : vector<22x384xbf16>, vector<384x768xbf16>, vector<22x768xf32> -> vector<22x768xf32>
    %79 = arith.addf %73, %78 : vector<22x768xf32>
    %c0_84 = arith.constant 0 : index
    %c2_85 = arith.constant 2 : index
    %c0_86 = arith.constant 0 : index
    %80 = vector.load %arg15[%c0_84, %c2_85, %c0_86] : memref<1x24x384xbf16, #tpu.memory_space<vmem>>, vector<1x22x384xbf16>
    %81 = vector.shape_cast %80 : vector<1x22x384xbf16> to vector<22x384xbf16>
    %c2_87 = arith.constant 2 : index
    %c0_88 = arith.constant 0 : index
    %c0_89 = arith.constant 0 : index
    %82 = vector.load %arg8[%c2_87, %c0_88, %c0_89] : memref<3x384x768xbf16, #tpu.memory_space<vmem>>, vector<1x384x768xbf16>
    %83 = vector.shape_cast %82 : vector<1x384x768xbf16> to vector<384x768xbf16>
    %cst_90 = arith.constant dense<0.000000e+00> : vector<22x768xf32>
    %84 = tpu.matmul %81, %83, %cst_90 {dimension_numbers = #tpu.dot_dimension_numbers<[1], [0], [0], [1], [0, 0, 1, 1], [], []>} : vector<22x384xbf16>, vector<384x768xbf16>, vector<22x768xf32> -> vector<22x768xf32>
    %85 = arith.addf %79, %84 : vector<22x768xf32>
    %c0_91 = arith.constant 0 : index
    %c0_92 = arith.constant 0 : index
    %86 = vector.load %arg9[%c0_91, %c0_92] : memref<1x768xf32, #tpu.memory_space<vmem>>, vector<1x768xf32>
    %87 = vector.broadcast %86 : vector<1x768xf32> to vector<22x768xf32>
    %88 = arith.mulf %85, %87 : vector<22x768xf32>
    %c0_93 = arith.constant 0 : index
    %c0_94 = arith.constant 0 : index
    %89 = vector.load %arg10[%c0_93, %c0_94] : memref<1x768xf32, #tpu.memory_space<vmem>>, vector<1x768xf32>
    %90 = vector.broadcast %89 : vector<1x768xf32> to vector<22x768xf32>
    %91 = arith.addf %88, %90 : vector<22x768xf32>
    %cst_95 = arith.constant 0.000000e+00 : f32
    %92 = vector.broadcast %cst_95 : f32 to vector<22x768xf32>
    %93 = arith.maximumf %91, %92 : vector<22x768xf32>
    %94 = vector.shape_cast %93 : vector<22x768xf32> to vector<1x22x768xf32>
    %95 = vector.extract_strided_slice %94 {offsets = [0, 0, 0], sizes = [1, 21, 768], strides = [1, 1, 1]} : vector<1x22x768xf32> to vector<1x21x768xf32>
    %96 = vector.shape_cast %95 : vector<1x21x768xf32> to vector<1x7x3x768xf32>
    %cst_96 = arith.constant dense<0xFF800000> : vector<1x7x768xf32>
    %97 = vector.multi_reduction <maximumf>, %96, %cst_96 [2] : vector<1x7x3x768xf32> to vector<1x7x768xf32>
    %98 = arith.truncf %97 : vector<1x7x768xf32> to vector<1x7x768xbf16>
    %99 = vector.extract_strided_slice %98 {offsets = [0, 0, 0], sizes = [1, 1, 768], strides = [1, 1, 1]} : vector<1x7x768xbf16> to vector<1x1x768xbf16>
    %100 = vector.shape_cast %99 : vector<1x1x768xbf16> to vector<1x768xbf16>
    %c0_97 = arith.constant 0 : index
    %c0_98 = arith.constant 0 : index
    %c0_99 = arith.constant 0 : index
    %101 = vector.load %arg11[%c0_97, %c0_98, %c0_99] : memref<7x768x128xbf16, #tpu.memory_space<vmem>>, vector<1x768x128xbf16>
    %102 = vector.shape_cast %101 : vector<1x768x128xbf16> to vector<768x128xbf16>
    %cst_100 = arith.constant dense<0.000000e+00> : vector<1x128xf32>
    %103 = tpu.matmul %100, %102, %cst_100 {dimension_numbers = #tpu.dot_dimension_numbers<[1], [0], [0], [1], [0, 0, 1, 1], [], []>} : vector<1x768xbf16>, vector<768x128xbf16>, vector<1x128xf32> -> vector<1x128xf32>
    %104 = vector.extract_strided_slice %98 {offsets = [0, 1, 0], sizes = [1, 1, 768], strides = [1, 1, 1]} : vector<1x7x768xbf16> to vector<1x1x768xbf16>
    %105 = vector.shape_cast %104 : vector<1x1x768xbf16> to vector<1x768xbf16>
    %c1_101 = arith.constant 1 : index
    %c0_102 = arith.constant 0 : index
    %c0_103 = arith.constant 0 : index
    %106 = vector.load %arg11[%c1_101, %c0_102, %c0_103] : memref<7x768x128xbf16, #tpu.memory_space<vmem>>, vector<1x768x128xbf16>
    %107 = vector.shape_cast %106 : vector<1x768x128xbf16> to vector<768x128xbf16>
    %cst_104 = arith.constant dense<0.000000e+00> : vector<1x128xf32>
    %108 = tpu.matmul %105, %107, %cst_104 {dimension_numbers = #tpu.dot_dimension_numbers<[1], [0], [0], [1], [0, 0, 1, 1], [], []>} : vector<1x768xbf16>, vector<768x128xbf16>, vector<1x128xf32> -> vector<1x128xf32>
    %109 = arith.addf %103, %108 : vector<1x128xf32>
    %110 = vector.extract_strided_slice %98 {offsets = [0, 2, 0], sizes = [1, 1, 768], strides = [1, 1, 1]} : vector<1x7x768xbf16> to vector<1x1x768xbf16>
    %111 = vector.shape_cast %110 : vector<1x1x768xbf16> to vector<1x768xbf16>
    %c2_105 = arith.constant 2 : index
    %c0_106 = arith.constant 0 : index
    %c0_107 = arith.constant 0 : index
    %112 = vector.load %arg11[%c2_105, %c0_106, %c0_107] : memref<7x768x128xbf16, #tpu.memory_space<vmem>>, vector<1x768x128xbf16>
    %113 = vector.shape_cast %112 : vector<1x768x128xbf16> to vector<768x128xbf16>
    %cst_108 = arith.constant dense<0.000000e+00> : vector<1x128xf32>
    %114 = tpu.matmul %111, %113, %cst_108 {dimension_numbers = #tpu.dot_dimension_numbers<[1], [0], [0], [1], [0, 0, 1, 1], [], []>} : vector<1x768xbf16>, vector<768x128xbf16>, vector<1x128xf32> -> vector<1x128xf32>
    %115 = arith.addf %109, %114 : vector<1x128xf32>
    %116 = vector.extract_strided_slice %98 {offsets = [0, 3, 0], sizes = [1, 1, 768], strides = [1, 1, 1]} : vector<1x7x768xbf16> to vector<1x1x768xbf16>
    %117 = vector.shape_cast %116 : vector<1x1x768xbf16> to vector<1x768xbf16>
    %c3 = arith.constant 3 : index
    %c0_109 = arith.constant 0 : index
    %c0_110 = arith.constant 0 : index
    %118 = vector.load %arg11[%c3, %c0_109, %c0_110] : memref<7x768x128xbf16, #tpu.memory_space<vmem>>, vector<1x768x128xbf16>
    %119 = vector.shape_cast %118 : vector<1x768x128xbf16> to vector<768x128xbf16>
    %cst_111 = arith.constant dense<0.000000e+00> : vector<1x128xf32>
    %120 = tpu.matmul %117, %119, %cst_111 {dimension_numbers = #tpu.dot_dimension_numbers<[1], [0], [0], [1], [0, 0, 1, 1], [], []>} : vector<1x768xbf16>, vector<768x128xbf16>, vector<1x128xf32> -> vector<1x128xf32>
    %121 = arith.addf %115, %120 : vector<1x128xf32>
    %122 = vector.extract_strided_slice %98 {offsets = [0, 4, 0], sizes = [1, 1, 768], strides = [1, 1, 1]} : vector<1x7x768xbf16> to vector<1x1x768xbf16>
    %123 = vector.shape_cast %122 : vector<1x1x768xbf16> to vector<1x768xbf16>
    %c4 = arith.constant 4 : index
    %c0_112 = arith.constant 0 : index
    %c0_113 = arith.constant 0 : index
    %124 = vector.load %arg11[%c4, %c0_112, %c0_113] : memref<7x768x128xbf16, #tpu.memory_space<vmem>>, vector<1x768x128xbf16>
    %125 = vector.shape_cast %124 : vector<1x768x128xbf16> to vector<768x128xbf16>
    %cst_114 = arith.constant dense<0.000000e+00> : vector<1x128xf32>
    %126 = tpu.matmul %123, %125, %cst_114 {dimension_numbers = #tpu.dot_dimension_numbers<[1], [0], [0], [1], [0, 0, 1, 1], [], []>} : vector<1x768xbf16>, vector<768x128xbf16>, vector<1x128xf32> -> vector<1x128xf32>
    %127 = arith.addf %121, %126 : vector<1x128xf32>
    %128 = vector.extract_strided_slice %98 {offsets = [0, 5, 0], sizes = [1, 1, 768], strides = [1, 1, 1]} : vector<1x7x768xbf16> to vector<1x1x768xbf16>
    %129 = vector.shape_cast %128 : vector<1x1x768xbf16> to vector<1x768xbf16>
    %c5 = arith.constant 5 : index
    %c0_115 = arith.constant 0 : index
    %c0_116 = arith.constant 0 : index
    %130 = vector.load %arg11[%c5, %c0_115, %c0_116] : memref<7x768x128xbf16, #tpu.memory_space<vmem>>, vector<1x768x128xbf16>
    %131 = vector.shape_cast %130 : vector<1x768x128xbf16> to vector<768x128xbf16>
    %cst_117 = arith.constant dense<0.000000e+00> : vector<1x128xf32>
    %132 = tpu.matmul %129, %131, %cst_117 {dimension_numbers = #tpu.dot_dimension_numbers<[1], [0], [0], [1], [0, 0, 1, 1], [], []>} : vector<1x768xbf16>, vector<768x128xbf16>, vector<1x128xf32> -> vector<1x128xf32>
    %133 = arith.addf %127, %132 : vector<1x128xf32>
    %134 = vector.extract_strided_slice %98 {offsets = [0, 6, 0], sizes = [1, 1, 768], strides = [1, 1, 1]} : vector<1x7x768xbf16> to vector<1x1x768xbf16>
    %135 = vector.shape_cast %134 : vector<1x1x768xbf16> to vector<1x768xbf16>
    %c6 = arith.constant 6 : index
    %c0_118 = arith.constant 0 : index
    %c0_119 = arith.constant 0 : index
    %136 = vector.load %arg11[%c6, %c0_118, %c0_119] : memref<7x768x128xbf16, #tpu.memory_space<vmem>>, vector<1x768x128xbf16>
    %137 = vector.shape_cast %136 : vector<1x768x128xbf16> to vector<768x128xbf16>
    %cst_120 = arith.constant dense<0.000000e+00> : vector<1x128xf32>
    %138 = tpu.matmul %135, %137, %cst_120 {dimension_numbers = #tpu.dot_dimension_numbers<[1], [0], [0], [1], [0, 0, 1, 1], [], []>} : vector<1x768xbf16>, vector<768x128xbf16>, vector<1x128xf32> -> vector<1x128xf32>
    %139 = arith.addf %133, %138 : vector<1x128xf32>
    %c0_121 = arith.constant 0 : index
    %c0_122 = arith.constant 0 : index
    %140 = vector.load %arg12[%c0_121, %c0_122] : memref<1x128xf32, #tpu.memory_space<vmem>>, vector<1x128xf32>
    %141 = arith.addf %139, %140 : vector<1x128xf32>
    %142 = arith.mulf %141, %141 : vector<1x128xf32>
    %cst_123 = arith.constant dense<0.000000e+00> : vector<1xf32>
    %143 = vector.multi_reduction <add>, %142, %cst_123 [1] : vector<1x128xf32> to vector<1xf32>
    %144 = vector.shape_cast %143 : vector<1xf32> to vector<1x1xf32>
    %cst_124 = arith.constant 1.000000e-24 : f32
    %145 = vector.broadcast %cst_124 : f32 to vector<1x1xf32>
    %146 = arith.maximumf %144, %145 : vector<1x1xf32>
    %147 = math.rsqrt %146 : vector<1x1xf32>
    %148 = vector.broadcast %147 : vector<1x1xf32> to vector<1x128xf32>
    %149 = arith.mulf %141, %148 : vector<1x128xf32>
    %150 = vector.shape_cast %149 : vector<1x128xf32> to vector<1x1x128xf32>
    %c0_125 = arith.constant 0 : index
    %c0_126 = arith.constant 0 : index
    %c0_127 = arith.constant 0 : index
    %151 = vector.load %arg13[%c0_125, %c0_126, %c0_127] : memref<1x1x128xf32, #tpu.memory_space<vmem>>, vector<1x1x128xf32>
    tpu.vector_store %arg13[%c0_125, %c0_126, %c0_127], %150 {strides = array<i32>} : memref<1x1x128xf32, #tpu.memory_space<vmem>>, vector<1x1x128xf32>,
    return
  }
  func.func @transform_0(%arg0: i32) -> (i32, i32, i32) {
    %c0_i32 = arith.constant 0 : i32
    %c0_i32_0 = arith.constant 0 : i32
    %c0_i32_1 = arith.constant 0 : i32
    return %arg0, %c0_i32, %c0_i32_0 : i32, i32, i32
  }
  func.func @transform_1(%arg0: i32) -> (i32, i32, i32) {
    %c0_i32 = arith.constant 0 : i32
    %c0_i32_0 = arith.constant 0 : i32
    %c0_i32_1 = arith.constant 0 : i32
    %c0_i32_2 = arith.constant 0 : i32
    return %c0_i32, %c0_i32_0, %c0_i32_1 : i32, i32, i32
  }
  func.func @transform_2(%arg0: i32) -> (i32, i32) {
    %c0_i32 = arith.constant 0 : i32
    %c0_i32_0 = arith.constant 0 : i32
    %c0_i32_1 = arith.constant 0 : i32
    return %c0_i32, %c0_i32_0 : i32, i32
  }
  func.func @transform_3(%arg0: i32) -> (i32, i32) {
    %c0_i32 = arith.constant 0 : i32
    %c0_i32_0 = arith.constant 0 : i32
    %c0_i32_1 = arith.constant 0 : i32
    return %c0_i32, %c0_i32_0 : i32, i32
  }
  func.func @transform_4(%arg0: i32) -> (i32, i32, i32) {
    %c0_i32 = arith.constant 0 : i32
    %c0_i32_0 = arith.constant 0 : i32
    %c0_i32_1 = arith.constant 0 : i32
    %c0_i32_2 = arith.constant 0 : i32
    return %c0_i32, %c0_i32_0, %c0_i32_1 : i32, i32, i32
  }
  func.func @transform_5(%arg0: i32) -> (i32, i32) {
    %c0_i32 = arith.constant 0 : i32
    %c0_i32_0 = arith.constant 0 : i32
    %c0_i32_1 = arith.constant 0 : i32
    return %c0_i32, %c0_i32_0 : i32, i32
  }
  func.func @transform_6(%arg0: i32) -> (i32, i32) {
    %c0_i32 = arith.constant 0 : i32
    %c0_i32_0 = arith.constant 0 : i32
    %c0_i32_1 = arith.constant 0 : i32
    return %c0_i32, %c0_i32_0 : i32, i32
  }
  func.func @transform_7(%arg0: i32) -> (i32, i32, i32) {
    %c0_i32 = arith.constant 0 : i32
    %c0_i32_0 = arith.constant 0 : i32
    %c0_i32_1 = arith.constant 0 : i32
    %c0_i32_2 = arith.constant 0 : i32
    return %c0_i32, %c0_i32_0, %c0_i32_1 : i32, i32, i32
  }
  func.func @transform_8(%arg0: i32) -> (i32, i32) {
    %c0_i32 = arith.constant 0 : i32
    %c0_i32_0 = arith.constant 0 : i32
    %c0_i32_1 = arith.constant 0 : i32
    return %c0_i32, %c0_i32_0 : i32, i32
  }
  func.func @transform_9(%arg0: i32) -> (i32, i32) {
    %c0_i32 = arith.constant 0 : i32
    %c0_i32_0 = arith.constant 0 : i32
    %c0_i32_1 = arith.constant 0 : i32
    return %c0_i32, %c0_i32_0 : i32, i32
  }
  func.func @transform_10(%arg0: i32) -> (i32, i32, i32) {
    %c0_i32 = arith.constant 0 : i32
    %c0_i32_0 = arith.constant 0 : i32
    %c0_i32_1 = arith.constant 0 : i32
    %c0_i32_2 = arith.constant 0 : i32
    return %c0_i32, %c0_i32_0, %c0_i32_1 : i32, i32, i32
  }
  func.func @transform_11(%arg0: i32) -> (i32, i32) {
    %c0_i32 = arith.constant 0 : i32
    %c0_i32_0 = arith.constant 0 : i32
    %c0_i32_1 = arith.constant 0 : i32
    return %c0_i32, %c0_i32_0 : i32, i32
  }
  func.func @transform_12(%arg0: i32) -> (i32, i32, i32) {
    %c0_i32 = arith.constant 0 : i32
    %c0_i32_0 = arith.constant 0 : i32
    %c0_i32_1 = arith.constant 0 : i32
    return %arg0, %c0_i32, %c0_i32_0 : i32, i32, i32
  }
}

</mosaic_0001>

<bundles_post_ra>
// kernel: tile.33
= control target key start
LH: loop header
LB: loop body
LE: loop exit
PB: predicated region body
PF: predicated region fallthrough
CT: control target
= control target key end

     0   :  { %s22_s0 = inlined_call_operand.vmem [shape: f32[64], index: 0, kind: input, shape index: {}]   ;;  %s23_s1 = inlined_call_operand.vmem [shape: f32[3,64], index: 1, kind: output, shape index: {}]  }
   0x1   :  { %v4_v0 = vld [vmem:[%s22_s0] ss:$0 sm:$0xff] }
   0x2   :  { %5 = vst [vmem:[%s23_s1] sm:$0xf] %v4_v0 }

// kernel: tile.34
= control target key start
LH: loop header
LB: loop body
LE: loop exit
PB: predicated region body
PF: predicated region fallthrough
CT: control target
= control target key end

     0   :  { %vm8_vm0 = vcmask 523264   ;;  %s29_s8 = smov 64   ;;  %vm14_vm1 = vcmask 1048064   ;;  %s49_s0 = inlined_call_operand.vmem [shape: f32[3,64], index: 0, kind: input, shape index: {}]   ;;  %s50_s1 = inlined_call_operand.vmem [shape: f32[1,192], index: 1, kind: output, shape index: {}]  }
   0x1   :  { %v4_v0 = vld [vmem:[%s49_s0] sm:$0xf]  ;;  %s6_s0 = smov 3 }
   0x2   :  { %5 = vst [vmem:[#allocation1] sm:$0xf] %v4_v0 }
   0x9   :  { %v11_v1 = vld [vmem:[#allocation1 + $0x1] sm:$0x1]   ;;  %v7_v2 = vld [vmem:[#allocation1] ss:$2 sm:%s6_s0]  }
   0xa   :  { %12 = vrot.lane.b32.xlu0 %v11_v1, %s29_s8  ;;  %9 = vst.msk [vmem:[#allocation0] ss:$8 sm:$0x3] %vm8_vm0, %v7_v2  }
  0x11   :  { %v23_v3 = vld [vmem:[#allocation0 + $0x8] sm:$0x1] }
  0x12   :  { %27 = vst [vmem:[%s50_s1 + $0x1] sm:$0x1] %v23_v3 }
  0x7c   :  { %v13_v4 = vpop.permute.xlu0 %12  }
  0x7d   :  { %15 = vst.msk [vmem:[#allocation0] sm:$0x1] %vm14_vm1, %v13_v4  }
  0x84   :  { %v19_v5 = vld [vmem:[#allocation0] sm:$0x1] }
  0x85   :  { %21 = vst [vmem:[%s50_s1] sm:$0x1] %v19_v5 }

// kernel: wisdm_forward.1
= control target key start
LH: loop header
LB: loop body
LE: loop exit
PB: predicated region body
PF: predicated region fallthrough
CT: control target
= control target key end

     0   :  { %s29447_s0 = inlined_call_operand.vmem [shape: bf16[2,202,3], index: 0, kind: input, shape index: {}]   ;;  %s29448_s1 = inlined_call_operand.vmem [shape: bf16[3,3,192], index: 1, kind: input, shape index: {}]   ;;  %s29449_s2 = inlined_call_operand.vmem [shape: f32[1,192], index: 2, kind: input, shape index: {}]   ;;  %s29450_s3 = inlined_call_operand.vmem [shape: f32[1,192], index: 3, kind: input, shape index: {}]   ;;  %s29451_s4 = inlined_call_operand.vmem [shape: bf16[3,192,384], index: 4, kind: input, shape index: {}]   ;;  %s29452_s5 = inlined_call_operand.vmem [shape: f32[1,384], index: 5, kind: input, shape index: {}]   ;;  %s29453_s6 = inlined_call_operand.vmem [shape: f32[1,384], index: 6, kind: input, shape index: {}]   ;;  %s29454_s7 = inlined_call_operand.vmem [shape: bf16[3,384,768], index: 7, kind: input, shape index: {}]   ;;  %s29455_s8 = inlined_call_operand.vmem [shape: f32[1,768], index: 8, kind: input, shape index: {}]   ;;  %s29456_s9 = inlined_call_operand.vmem [shape: f32[1,768], index: 9, kind: input, shape index: {}]   ;;  %s29457_s10 = inlined_call_operand.vmem [shape: bf16[7,768,128], index: 10, kind: input, shape index: {}]   ;;  %s29458_s11 = inlined_call_operand.vmem [shape: f32[1,128], index: 11, kind: input, shape index: {}]   ;;  %s29459_s12 = inlined_call_operand.hbm [shape: f32[2,1,128], index: 12, kind: output, shape index: {}]  }
   0x1   :  { %29475 = sst [smem:[#allocation11_spill]] %s29447_s0 }
   0x2   :  { %29476 = sst [smem:[#allocation12_spill]] %s29448_s1 }
   0x3   :  { %17 = vsyncpa [#allocation5], 0 }
   0x4   :  { %19 = vsyncpa [#allocation5 + $0x1], 0  ;;  %s23483_s21 = smov 0   ;;  %s23485_s22 = smov 0  }
   0x5   :  { %s23487_s23 = smov 0   ;;  %s23489_s24 = smov 0  }
   0x6 LB: > { %s23504_s25 = sadd.s32 4294967295, %s23412_s24   ;;  %s19127_s26 = sadd.s32 4294967294, %s23412_s24   ;;  %s23412_s24 = sphi %s23489_s24, %s29549_s24   ;;  %s23408_s23 = sphi %s23487_s23, %s29548_s23   ;;  %s23404_s22 = sphi %s23485_s22, %s29547_s22   ;;  %s23400_s21 = sphi %s23483_s21, %s29546_s21  }
   0x7   : > { %s23508_s27 = sadd.s32 1, %s23412_s24   ;;  %s289_s28 = sadd.s32 1, %s23408_s23 }
   0x8   : > { %s286_s29 = ssub.s32 %s23412_s24, %s23508_s27  ;;  %p299_p0 = scmp.ne.s32.totalorder %s23408_s23, %s23404_s22 }
   0x9   : > { %p287_p1 = scmp.eq.s32.totalorder %s286_s29, 0  ;;  %p300_p2 = scmp.eq.s32.totalorder %s23504_s25, 1 }
   0xa   : > { %p305_p3 = scmp.ne.s32.totalorder %s23404_s22, %s23400_s21  ;;  %p306_p4 = scmp.eq.s32.totalorder %s19127_s26, 1 }
   0xb   : > { %s23519_s30 = scalar_select %p287_p1, %s23408_s23, %s289_s28  }
   0xc   : > { %p23521_p5 = por %p300_p2, %p299_p0  ;;  %p23525_p6 = por %p306_p4, %p305_p3 }
   0xd   : > { %p19130_p7 = scmp.ge.s32.totalorder %s23412_s24, 1  ;;  %p365_p8 = scmp.lt.s32.totalorder %s23412_s24, 3 }
   0xf   : > { %p366_p9 = pnand %p19130_p7, %p365_p8 }
  0x11   : > { %369 = sbr.rel (%p366_p9) target bundleno = 3295 (0xcdf), region = 68 }
  0x18   : > { %s29479_s1 = sld [smem:[#allocation12_spill]]  ;;  %vm29469_vm0 = vcmask 1040384   ;;  %vm660_vm1 = vcmask 1041408   ;;  %vm5995_vm2 = vsmask.f32 256  ;;  %vm5997_vm3 = vcmask 520196  }
  0x19   : > { %v23414_v2 = vmov 65535   ;;  %vm23536_vm4 = vmand %vm29469_vm0, %vm5995_vm2  ;;  %vm5998_vm5 = vsmask.f32 4352  ;;  %v6001_v5 = vld [vmem:[#allocation2] sm:$0x11]  ;;  %p406_p10 = scmp.lt.s32.totalorder %s23504_s25, 1 }
  0x1a   : > { %v661_v3 = vsel %vm29469_vm0, 4294967295, %v23414_v2  ;;  %vm5999_vm6 = vmand %vm5997_vm3, %vm5998_vm5  ;;  %v10143_v8 = vld [vmem:[#allocation3 + $0x8] sm:$0x1]  ;;  %v29460_v12 = vmov 0   ;;  %vm6612_vm8 = vcmask 1044484   ;;  %s29482_s0 = sld [smem:[#allocation11_spill]] }
  0x1b   : > { %v662_v6 = vsel %vm660_vm1, %v661_v3, 0  ;;  %vm6000_vm7 = vmor %vm5999_vm6, %vm23536_vm4  ;;  %v10144_v11 = vsel %vm23536_vm4, 0, %v10143_v8  ;;  %701 = vmatprep.mubr.bf16.mxu0 %v29460_v12  ;;  %1319 = vmatprep.mubr.bf16.mxu1 %v29460_v12  ;;  %s407_s19 = scalar_select %p406_p10, %s23504_s25, 1  ;;  %v10140_v16 = vld [vmem:[#allocation3] sm:$0x11]  ;;  %vm619_vm12 = vcmask 23552  }
  0x1c   : > { %v6002_v10 = vsel %vm6000_vm7, 0, %v6001_v5  ;;  %10145 = vst [vmem:[#allocation3 + $0x8] sm:$0x1] %v10144_v11  ;;  %vm10138_vm9 = vmand %vm6612_vm8, %vm5998_vm5  ;;  %vm29471_vm11 = vsmask.f32 7424  ;;  %vm29470_vm13 = vcmask 1046528  }
  0x1d   : > { %6003 = vst [vmem:[#allocation2] sm:$0x11] %v6002_v10  ;;  %s22126_s28 = smul.u32 104, %s407_s19  ;;  %vm10139_vm10 = vmor %vm10138_vm9, %vm23536_vm4  ;;  %vm5068_vm14 = vcmask 1042432   ;;  %vm5076_vm15 = vcmask 518144   ;;  %vm6004_vm2 = vcmask 1041409  }
  0x1e   : > { %v19146_v0 = vld.sshfl [vmem:[%s29479_s1 + $0x4] sm:$0x33 pattern:$0x76325410]  ;;  %v10141_v21 = vsel %vm10139_vm10, 0, %v10140_v16  ;;  %vm6608_vm3 = vcmask 1042434  }
  0x1f   : > { %v618_v1 = vcombine.high %v19146_v0, %v19146_v0  ;;  %v664_v9 = vand.u32 %v19146_v0, %v662_v6  ;;  %v19161_v13 = vld.sshfl [vmem:[%s29479_s1] sm:$0x33 pattern:$0x76325410]  ;;  %10142 = vst [vmem:[#allocation3] sm:$0x11] %v10141_v21 }
  0x20   : > { %v839_v14 = vcombine.high %v19161_v13, %v19161_v13  ;;  %v19189_v15 = vld.sshfl [vmem:[%s29479_s1 + $0x8] sm:$0x33 pattern:$0x76325410]  ;;  %s23565_s16 = scalar_lea.vmem %s29482_s0, %s22126_s28  ;;  %v868_v31 = vand.u32 %v19161_v13, %v662_v6  ;;  %vm6610_vm4 = vcmask 1043459   ;;  %vm6614_vm5 = vcmask 1045509  }
  0x21   : > { %v667_v7 = vand.u32 %v662_v6, %v618_v1  ;;  %v1161_v17 = vcombine.high %v19189_v15, %v19189_v15  ;;  %v23558_v19 = vand.u32 %v19189_v15, %v662_v6  ;;  %v23568_v22 = vld [vmem:[%s23565_s16] sm:$0xff]   ;;  %v23571_v23 = vld [vmem:[%s23565_s16 + $0x8] sm:$0xff]   ;;  %v23578_v27 = vld [vmem:[%s23565_s16 + $0x10] sm:$0xff]   ;;  %vm6616_vm6 = vcmask 1046534   ;;  %s21247_s17 = sshll.u32 %s23504_s25, 4  ;;  %s23417_s25 = smov [#allocation4]  }
  0x22   : > { %v871_v18 = vand.u32 %v839_v14, %v662_v6  ;;  %v508_v24 = vshrl.u32 %v23568_v22, 16  ;;  %v510_v25 = vshll.u32 %v23568_v22, 16  ;;  %v515_v26 = vshll.u32 %v23571_v23, 16  ;;  %v23586_v37 = vld [vmem:[%s23565_s16 + $0x18] sm:$0xff]   ;;  %v23592_v41 = vld [vmem:[%s23565_s16 + $0x20] sm:$0xff]   ;;  %v23598_v45 = vld [vmem:[%s23565_s16 + $0x28] sm:$0xff]   ;;  %s29405_s26 = scalar_lea.hbm %s29459_s12, %s21247_s17 }
  0x23   : > { %669 = vmatprep.subr.bf16.mxu0 %v667_v7  ;;  %v1205_v20 = vand.u32 %v1161_v17, %v662_v6  ;;  %v519_v32 = vshrl.u32 %v23571_v23, 16  ;;  %v523_v33 = vshll.u32 %v23578_v27, 16  ;;  %v527_v39 = vshrl.u32 %v23578_v27, 16  ;;  %v23608_v54 = vld [vmem:[%s23565_s16 + $0x30] sm:$0xff]   ;;  %v23613_v56 = vld [vmem:[%s23565_s16 + $0x38] sm:$0xff]   ;;  %v23622_v63 = vld [vmem:[%s23565_s16 + $0x40] sm:$0xff]  }
  0x24   : > { %670 = vmatpush1.bf16.msra.mxu0 %v664_v9  ;;  %v512_v28 = vrot.slane %v510_v25, 1  ;;  %v517_v29 = vrot.slane %v515_v26, 1  ;;  %v531_v40 = vshll.u32 %v23586_v37, 16  ;;  %v535_v44 = vshrl.u32 %v23586_v37, 16  ;;  %v22183_v0 = vld [vmem:[%s23565_s16 + $0x48] sm:$0xff]   ;;  %v23629_v5 = vld [vmem:[%s23565_s16 + $0x40] sm:$0xff]  }
  0x25   : > { %873 = vmatprep.subr.bf16.mxu0 %v871_v18  ;;  %21822 = vmatprep.subr.bf16.mxu1 %v1205_v20  ;;  %v525_v36 = vrot.slane %v523_v33, 1  ;;  %v539_v46 = vshll.u32 %v23592_v41, 16  ;;  %v547_v48 = vshll.u32 %v23598_v45, 16  ;;  %v543_v51 = vshrl.u32 %v23592_v41, 16  ;;  %v22184_v11 = vld [vmem:[%s23565_s16 + $0x50] sm:$0xff]   ;;  %v23642_v13 = vld [vmem:[%s23565_s16 + $0x48] sm:$0xff]  }
  0x26   : > { %21823 = vmatpush1.bf16.msra.mxu1 %v23558_v19  ;;  %v513_v30 = vor.u32 %v512_v28, %v508_v24  ;;  %v521_v35 = vor.u32 %v519_v32, %v517_v29  ;;  %v533_v43 = vrot.slane %v531_v40, 1  ;;  %v551_v58 = vshrl.u32 %v23598_v45, 16  ;;  %v23646_v16 = vld [vmem:[%s23565_s16 + $0x50] sm:$0xff]   ;;  %v22185_v24 = vld [vmem:[%s23565_s16 + $0x58] sm:$0xff]   ;;  %s23354_s15 = sshll.u32 %s23417_s25, 4  ;;  %s23355_s15 = int_to_ptr.vmem [resolvable:$false] %s23354_s15 }
  0x27   : > { %v529_v42 = vor.u32 %v527_v39, %v525_v36  ;;  %v541_v50 = vrot.slane %v539_v46, 1  ;;  %v549_v52 = vrot.slane %v547_v48, 1  ;;  %v555_v59 = vshll.u32 %v23608_v54, 16  ;;  %s23356_s1 = scalar_lea.vmem %s23355_s15, 32 }
  0x28   : > { %v518_v34 = vsel %vm29471_vm11, %v513_v30, %v517_v29  ;;  %v526_v38 = vsel %vm29471_vm11, %v521_v35, %v525_v36  ;;  %v537_v49 = vor.u32 %v535_v44, %v533_v43  ;;  %v563_v60 = vshll.u32 %v23613_v56, 16  ;;  %v438_v44 = vld [vmem:[%s23565_s16 + $0x64] sm:$0x1] }
  0x29   : > { %19147 = vmatmul.mubr.msk.bf16.vlgmr.msra.gmra.mrb[0].mxu0 %vm619_vm12, %v518_v34  ;;  %v534_v47 = vsel %vm29471_vm11, %v529_v42, %v533_v43  ;;  %v545_v55 = vor.u32 %v543_v51, %v541_v50  ;;  %v553_v61 = vor.u32 %v551_v58, %v549_v52  ;;  %v557_v62 = vrot.slane %v555_v59, 1  ;;  %v22186_v34 = vld [vmem:[%s23565_s16 + $0x60] sm:$0x1f]  }
  0x2a   : > { %874 = vmatpush1.bf16.msra.mxu0 %v868_v31  ;;  %711 = vmatprep.mubr.bf16.mxu0 %v29460_v12  ;;  %v542_v53 = vsel %vm29471_vm11, %v537_v49, %v541_v50  ;;  %v559_v1 = vshrl.u32 %v23608_v54, 16  ;;  %v565_v2 = vrot.slane %v563_v60, 1  ;;  %v567_v3 = vshrl.u32 %v23613_v56, 16  ;;  %v436_v43 = vld [vmem:[%s23565_s16 + $0x60] sm:$0xf] }
  0x2b   : > { %1207 = vmatprep.subr.bf16.mxu0 %v1205_v20  ;;  %v550_v57 = vsel %vm29471_vm11, %v545_v55, %v549_v52  ;;  %v558_v4 = vsel %vm29471_vm11, %v553_v61, %v557_v62  ;;  %v1143_v6 = vrot.slane %v23622_v63, 1  ;;  %v1145_v7 = vrot.slane %v22183_v0, 1 }
  0x2c   : > { %v561_v9 = vor.u32 %v559_v1, %v557_v62  ;;  %v571_v10 = vshll.u32 %v23629_v5, 16  ;;  %v1147_v15 = vrot.slane %v22184_v11, 1  ;;  %v569_v18 = vor.u32 %v567_v3, %v565_v2  ;;  %v22194_v62 = vld [vmem:[%s23565_s16 + $0x30] sm:$0xff]   ;;  %v22195_v11 = vld [vmem:[%s23565_s16 + $0x38] sm:$0xff]  }
  0x2d   : > { %v1146_v8 = vsel %vm29470_vm13, %v1143_v6, %v1145_v7  ;;  %v579_v21 = vshll.u32 %v23642_v13, 16  ;;  %v575_v25 = vshrl.u32 %v23629_v5, 16  ;;  %v583_v28 = vshrl.u32 %v23642_v13, 16 }
  0x2e   : > { %19198 = vmatmul.mubr.msk.bf16.vlgmr.msra.gmra.mrb[0].mxu1 %vm619_vm12, %v1146_v8  ;;  %v566_v14 = vsel %vm29471_vm11, %v561_v9, %v565_v2  ;;  %v1148_v17 = vsel %vm29470_vm13, %v1145_v7, %v1147_v15  ;;  %v573_v20 = vrot.slane %v571_v10, 1  ;;  %v587_v29 = vshll.u32 %v23646_v16, 16 }
  0x2f   : > { %1329 = vmatprep.mubr.bf16.mxu1 %v29460_v12  ;;  %v1149_v30 = vrot.slane %v22185_v24, 1  ;;  %v581_v31 = vrot.slane %v579_v21, 1  ;;  %v1151_v36 = vrot.slane %v22186_v34, 1  ;;  %v19145_v51 = vcombine.low %v436_v43, %v438_v44 }
  0x30   : > { %v574_v26 = vsel %vm29471_vm11, %v569_v18, %v573_v20  ;;  %v577_v33 = vor.u32 %v575_v25, %v573_v20  ;;  %v589_v42 = vrot.slane %v587_v29, 1  ;;  %vm6618_vm7 = vcmask 1047559  }
  0x31   : > { %19148 = vmatmul.mubr.msk.bf16.gmra.mrb[4].mxu0 %vm619_vm12, %v526_v38  ;;  %v1150_v32 = vsel %vm29470_vm13, %v1147_v15, %v1149_v30  ;;  %v22180_v38 = vld [vmem:[%s23565_s16 + $0x58] sm:$0xff]   ;;  %v1152_v39 = vsel %vm29470_vm13, %v1149_v30, %v1151_v36  ;;  %v585_v40 = vor.u32 %v583_v28, %v581_v31  ;;  %v603_v55 = vshll.u32 %v19145_v51, 16 }
  0x32   : > { %721 = vmatprep.mubr.bf16.mxu0 %v29460_v12  ;;  %v582_v35 = vsel %vm29471_vm11, %v577_v33, %v581_v31  ;;  %v595_v48 = vshll.u32 %v22180_v38, 16  ;;  %v607_v60 = vshrl.u32 %v19145_v51, 16  ;;  %v1420_v33 = vlaneseq }
  0x33   : > { %v590_v46 = vsel %vm29471_vm11, %v585_v40, %v589_v42  ;;  %v605_v58 = vrot.slane %v603_v55, 1  ;;  %vm29473_vm9 = vcmask 1043456   ;;  %vm29472_vm10 = vcmask 523268  }
  0x34   : > { %v597_v50 = vrot.slane %v595_v48, 1  ;;  %v23768_v63 = vshrl.u32 %v1420_v33, 7  ;;  %vm6005_vm0 = vsmask.f32 7942 }
  0x35   : > { %v609_v61 = vor.u32 %v607_v60, %v605_v58 }
  0x36   : > { %19199 = vmatmul.mubr.msk.bf16.gmra.mrb[4].mxu1 %vm619_vm12, %v1148_v17  ;;  %29483 = vst [vmem:[#allocation7_spill] sm:$0xff] %v23768_v63 }
  0x37   : > { %1339 = vmatprep.mubr.bf16.mxu1 %v29460_v12 }
  0x39   : > { %19149 = vmatmul.mubr.msk.bf16.gmra.mrb[8].mxu0 %vm619_vm12, %v534_v47  ;;  %v591_v47 = vshrl.u32 %v23646_v16, 16 }
  0x3a   : > { %731 = vmatprep.mubr.bf16.mxu0 %v29460_v12 }
  0x3b   : > { %v593_v49 = vor.u32 %v591_v47, %v589_v42 }
  0x3d   : > { %v598_v52 = vsel %vm29471_vm11, %v593_v49, %v597_v50 }
  0x3e   : > { %19200 = vmatmul.mubr.msk.bf16.gmra.mrb[8].mxu1 %vm619_vm12, %v1150_v32 }
  0x3f   : > { %1349 = vmatprep.mubr.bf16.mxu1 %v29460_v12 }
  0x41   : > { %19150 = vmatmul.mubr.msk.bf16.gmra.mrb[12].mxu0 %vm619_vm12, %v542_v53  ;;  %v599_v53 = vshrl.u32 %v22180_v38, 16 }
  0x42   : > { %741 = vmatprep.mubr.bf16.mxu0 %v29460_v12 }
  0x46   : > { %19201 = vmatmul.mubr.msk.bf16.gmra.mrb[12].mxu1 %vm619_vm12, %v1152_v39  ;;  %v1480_v39 = vld [vmem:[%s29450_s3] sm:$0x3] }
  0x47   : > { %1359 = vmatprep.mubr.bf16.mxu1 %v29460_v12 }
  0x49   : > { %19151 = vmatmul.mubr.msk.bf16.gmra.mrb[16].mxu0 %vm619_vm12, %v550_v57  ;;  %v601_v57 = vor.u32 %v599_v53, %v597_v50 }
  0x4a   : > { %751 = vmatprep.mubr.bf16.mxu0 %v29460_v12 }
  0x4b   : > { %v606_v59 = vsel %vm29471_vm11, %v601_v57, %v605_v58  ;;  %vm24250_vm11 = vmand %vm6004_vm2, %vm6005_vm0 }
  0x4e   : > { %19202 = vmatmul.mubr.msk.bf16.gmra.mrb[16].mxu1 %vm619_vm12, %v1151_v36  ;;  %v23776_v36 = vsub.s32 1, %v23768_v63 }
  0x50   : > { %29485 = vst [vmem:[#allocation9_spill] sm:$0xff] %v23776_v36  ;;  %v23798_v53 = vrot.slane %v1480_v39, %v23776_v36 }
  0x51   : > { %19152 = vmatmul.mubr.msk.bf16.gmra.mrb[20].mxu0 %vm619_vm12, %v558_v4 }
  0x52   : > { %761 = vmatprep.mubr.bf16.mxu0 %v29460_v12 }
  0x59   : > { %19153 = vmatmul.mubr.msk.bf16.gmra.mrb[24].mxu0 %vm619_vm12, %v566_v14  ;;  %v1141_v14 = vrot.slane %v22195_v11, 1 }
  0x5a   : > { %771 = vmatprep.mubr.bf16.mxu0 %v29460_v12 }
  0x5b   : > { %v1144_v21 = vsel %vm29470_vm13, %v1141_v14, %v1143_v6 }
  0x61   : > { %19154 = vmatmul.mubr.msk.bf16.gmra.mrb[28].mxu0 %vm619_vm12, %v574_v26 }
  0x62   : > { %781 = vmatprep.mubr.bf16.mxu0 %v29460_v12 }
  0x69   : > { %19155 = vmatmul.mubr.msk.bf16.gmra.mrb[32].mxu0 %vm619_vm12, %v582_v35  ;;  %v23773_v35 = vsub.s32 0, %v23768_v63 }
  0x6a   : > { %791 = vmatprep.mubr.bf16.mxu0 %v29460_v12 }
  0x6b   : > { %29484 = vst [vmem:[#allocation8_spill] sm:$0xff] %v23773_v35  ;;  %v23795_v50 = vrot.slane %v1480_v39, %v23773_v35 }
  0x71   : > { %19156 = vmatmul.mubr.msk.bf16.gmra.mrb[36].mxu0 %vm619_vm12, %v590_v46  ;;  %v23416_v46 = vmov 1966171168  }
  0x72   : > { %801 = vmatprep.mubr.bf16.mxu0 %v29460_v12  ;;  %v1645_v47 = vunpack.c.l.s4 %v23416_v46 }
  0x79   : > { %19157 = vmatmul.mubr.msk.bf16.gmra.mrb[40].mxu0 %vm619_vm12, %v598_v52 }
  0x7a   : > { %811 = vmatprep.mubr.bf16.mxu0 %v29460_v12 }
  0x81   : > { %19158 = vmatmul.mubr.msk.bf16.gmra.mrb[44].mxu0 %vm619_vm12, %v606_v59 }
  0x82   : > { %821 = vmatprep.mubr.bf16.mxu0 %v29460_v12 }
  0x89   : > { %19159 = vmatmul.mubr.msk.bf16.gmra.mrb[48].mxu0 %vm619_vm12, %v609_v61  ;;  %v1646_v61 = vunpack.c.0.s8 %v1645_v47 }
  0x8a   : > { %905 = vmatprep.mubr.bf16.mxu0 %v29460_v12 }
  0x91   : > { %19162 = vmatmul.mubr.msk.bf16.vlgmr.msra.gmra.mrb[0].mxu0 %vm619_vm12, %v23568_v22  ;;  %v22189_v22 = vld [vmem:[%s23565_s16 + $0x8] sm:$0xff]  }
  0x92   : > { %1208 = vmatpush1.bf16.msra.mxu0 %v23558_v19  ;;  %915 = vmatprep.mubr.bf16.mxu0 %v29460_v12  ;;  %v22188_v19 = vld [vmem:[%s23565_s16] sm:$0xfe]  }
  0x99   : > { %19163 = vmatmul.mubr.msk.bf16.gmra.mrb[4].mxu0 %vm619_vm12, %v23571_v23  ;;  %v19160_v23 = vcombine.low %v436_v43, %v436_v43 }
  0x9a   : > { %925 = vmatprep.mubr.bf16.mxu0 %v29460_v12 }
  0xa1   : > { %19164 = vmatmul.mubr.msk.bf16.gmra.mrb[8].mxu0 %vm619_vm12, %v23578_v27  ;;  %v1128_v27 = vrot.slane %v22188_v19, 1 }
  0xa2   : > { %935 = vmatprep.mubr.bf16.mxu0 %v29460_v12 }
  0xa9   : > { %19165 = vmatmul.mubr.msk.bf16.gmra.mrb[12].mxu0 %vm619_vm12, %v23586_v37  ;;  %v1129_v37 = vrot.slane %v22189_v22, 1 }
  0xaa   : > { %945 = vmatprep.mubr.bf16.mxu0 %v29460_v12 }
  0xab   : > { %v1130_v0 = vsel %vm29470_vm13, %v1128_v27, %v1129_v37 }
  0xb1   : > { %19166 = vmatmul.mubr.msk.bf16.gmra.mrb[16].mxu0 %vm619_vm12, %v23592_v41  ;;  %v22190_v41 = vld [vmem:[%s23565_s16 + $0x10] sm:$0xff]  }
  0xb2   : > { %955 = vmatprep.mubr.bf16.mxu0 %v29460_v12  ;;  %v1131_v1 = vrot.slane %v22190_v41, 1 }
  0xb4   : > { %v1132_v7 = vsel %vm29470_vm13, %v1129_v37, %v1131_v1 }
  0xb9   : > { %19167 = vmatmul.mubr.msk.bf16.gmra.mrb[20].mxu0 %vm619_vm12, %v23598_v45  ;;  %v22191_v45 = vld [vmem:[%s23565_s16 + $0x18] sm:$0xff]  }
  0xba   : > { %965 = vmatprep.mubr.bf16.mxu0 %v29460_v12  ;;  %v1133_v2 = vrot.slane %v22191_v45, 1 }
  0xbc   : > { %v1134_v8 = vsel %vm29470_vm13, %v1131_v1, %v1133_v2 }
  0xc1   : > { %19168 = vmatmul.mubr.msk.bf16.gmra.mrb[24].mxu0 %vm619_vm12, %v23608_v54  ;;  %v22192_v54 = vld [vmem:[%s23565_s16 + $0x20] sm:$0xff]  }
  0xc2   : > { %975 = vmatprep.mubr.bf16.mxu0 %v29460_v12  ;;  %v1135_v3 = vrot.slane %v22192_v54, 1 }
  0xc4   : > { %v1136_v9 = vsel %vm29470_vm13, %v1133_v2, %v1135_v3 }
  0xc9   : > { %19169 = vmatmul.mubr.msk.bf16.gmra.mrb[28].mxu0 %vm619_vm12, %v23613_v56  ;;  %v22193_v56 = vld [vmem:[%s23565_s16 + $0x28] sm:$0xff]   ;;  %s404_s16 = sand.u32 1, %s23404_s22  }
  0xca   : > { %985 = vmatprep.mubr.bf16.mxu0 %v29460_v12  ;;  %v1137_v4 = vrot.slane %v22193_v56, 1  ;;  %v23808_v56 = vsub.s32 %v1646_v61, %v23768_v63  ;;  %s405_s0 = scalar_lea.vmem [#allocation4], %s404_s16  ;;  %s19060_s28 = scalar_lea.sflag [#allocation5], %s404_s16 }
  0xcb   : > { %s19072_s18 = sshll.u32 %s405_s0, 4  ;;  %s29407_s18 = int_to_ptr.vmem [resolvable:$true] %s19072_s18 }
  0xcc   : > { %v1138_v10 = vsel %vm29470_vm13, %v1135_v3, %v1137_v4  ;;  %s23350_s29 = scalar_lea.vmem %s29407_s18, 16  ;;  %p23357_p0 = scmp.lt.s32.totalorder %s29407_s18, %s23355_s15 }
  0xcd   : > { %p23351_p11 = scmp.ne.s32.totalorder %s29407_s18, %s23350_s29  ;;  %p23358_p1 = scmp.lt.s32.totalorder %s23356_s1, %s23350_s29 }
  0xcf   : > { %p23352_p12 = pnand %p23351_p11, %p23521_p5  ;;  %p23359_p2 = por %p23358_p1, %p23357_p0 }
  0xd1   : > { %19170 = vmatmul.mubr.msk.bf16.gmra.mrb[32].mxu0 %vm619_vm12, %v23629_v5  ;;  %v1139_v5 = vrot.slane %v22194_v62, 1  ;;  %p23353_p13 = pneg %p23352_p12 }
  0xd2   : > { %995 = vmatprep.mubr.bf16.mxu0 %v29460_v12 }
  0xd3   : > { %v1142_v17 = vsel %vm29470_vm13, %v1139_v5, %v1141_v14  ;;  %p23360_p3 = pnand %p23359_p2, %p23353_p13 }
  0xd9   : > { %19171 = vmatmul.mubr.msk.bf16.gmra.mrb[36].mxu0 %vm619_vm12, %v23642_v13  ;;  %v1140_v13 = vsel %vm29470_vm13, %v1137_v4, %v1139_v5  ;;  %vm6007_vm13 = vcmask 521221  }
  0xda   : > { %1005 = vmatprep.mubr.bf16.mxu0 %v29460_v12 }
  0xe1   : > { %19172 = vmatmul.mubr.msk.bf16.gmra.mrb[40].mxu0 %vm619_vm12, %v23646_v16 }
  0xe2   : > { %1015 = vmatprep.mubr.bf16.mxu0 %v29460_v12 }
  0xe9   : > { %19173 = vmatmul.mubr.msk.bf16.gmra.mrb[44].mxu0 %vm619_vm12, %v22180_v38  ;;  %v1418_v38 = vld [vmem:[%s29449_s2] sm:$0x3] }
  0xea   : > { %1025 = vmatprep.mubr.bf16.mxu0 %v29460_v12  ;;  %v23785_v40 = vrot.slane %v1418_v38, %v23773_v35  ;;  %v23790_v44 = vrot.slane %v1418_v38, %v23776_v36 }
  0xf1   : > { %19174 = vmatmul.mubr.msk.bf16.gmra.mrb[48].mxu0 %vm619_vm12, %v19160_v23 }
  0xf2   : > { %1239 = vmatprep.mubr.bf16.mxu0 %v29460_v12 }
  0xf9   : > { %19190 = vmatmul.mubr.msk.bf16.vlgmr.msra.gmra.mrb[0].mxu0 %vm619_vm12, %v1130_v0 }
  0xfa   : > { %1249 = vmatprep.mubr.bf16.mxu0 %v29460_v12 }
 0x101   : > { %19191 = vmatmul.mubr.msk.bf16.gmra.mrb[4].mxu0 %vm619_vm12, %v1132_v7  ;;  %v1321_v15 = vpop.f32.mrb[0].mxu1 }
 0x102   : > { %1259 = vmatprep.mubr.bf16.mxu0 %v29460_v12  ;;  %v1323_v16 = vpop.f32.mrb[1].mxu1 }
 0x103   : > { %v1325_v18 = vpop.f32.mrb[2].mxu1 }
 0x104   : > { %v1327_v20 = vpop.f32.mrb[3].mxu1 }
 0x109   : > { %19192 = vmatmul.mubr.msk.bf16.gmra.mrb[8].mxu0 %vm619_vm12, %v1134_v8  ;;  %v1331_v24 = vpop.f32.mrb[4].mxu1 }
 0x10a   : > { %1269 = vmatprep.mubr.bf16.mxu0 %v29460_v12  ;;  %v1333_v25 = vpop.f32.mrb[5].mxu1 }
 0x10b   : > { %v1335_v26 = vpop.f32.mrb[6].mxu1 }
 0x10c   : > { %v1337_v28 = vpop.f32.mrb[7].mxu1 }
 0x111   : > { %19193 = vmatmul.mubr.msk.bf16.gmra.mrb[12].mxu0 %vm619_vm12, %v1136_v9  ;;  %v23758_v29 = vpop.f32.mrb[8].mxu1 }
 0x112   : > { %1279 = vmatprep.mubr.bf16.mxu0 %v29460_v12  ;;  %v23760_v30 = vpop.f32.mrb[9].mxu1 }
 0x113   : > { %v23762_v31 = vpop.f32.mrb[10].mxu1 }
 0x114   : > { %v23764_v32 = vpop.f32.mrb[11].mxu1 }
 0x119   : > { %19194 = vmatmul.mubr.msk.bf16.gmra.mrb[16].mxu0 %vm619_vm12, %v1138_v10  ;;  %v23766_v34 = vpop.f32.mrb[12].mxu1 }
 0x11a   : > { %1289 = vmatprep.mubr.bf16.mxu0 %v29460_v12  ;;  %v23770_v6 = vpop.f32.mrb[13].mxu1 }
 0x11b   : > { %v23787_v42 = vpop.f32.mrb[14].mxu1 }
 0x11c   : > { %v23792_v48 = vpop.f32.mrb[15].mxu1 }
 0x121   : > { %19195 = vmatmul.mubr.msk.bf16.gmra.mrb[20].mxu0 %vm619_vm12, %v1140_v13 }
 0x122   : > { %1299 = vmatprep.mubr.bf16.mxu0 %v29460_v12 }
 0x129   : > { %19196 = vmatmul.mubr.msk.bf16.gmra.mrb[24].mxu0 %vm619_vm12, %v1142_v17 }
 0x12a   : > { %1309 = vmatprep.mubr.bf16.mxu0 %v29460_v12 }
 0x131   : > { %19197 = vmatmul.mubr.msk.bf16.gmra.mrb[28].mxu0 %vm619_vm12, %v1144_v21  ;;  %vm24101_vm12 = vmor %vm29472_vm10, %vm29473_vm9  ;;  %vm6008_vm10 = vsmask.f32 7958 }
 0x132   : > { %vm24255_vm9 = vmand %vm6007_vm13, %vm6008_vm10  ;;  %vm6770_vm13 = vcmask 521220  }
 0x133   : > { %vm6010_vm0 = vmor %vm24255_vm9, %vm24250_vm11  ;;  %vm6768_vm11 = vsmask.f32 1280  ;;  %vm6771_vm9 = vsmask.f32 5376 }
 0x134   : > { %vm24349_vm10 = vmand %vm660_vm1, %vm6768_vm11  ;;  %vm6748_vm11 = vsmask.f32 7938 }
 0x1a4   : > { %v987_v43 = vpop.f32.mrb[32].mxu0 }
 0x1a5   : > { %v21824_v49 = vadd.f32 %v1321_v15, %v987_v43  ;;  %v989_v51 = vpop.f32.mrb[33].mxu0 }
 0x1a6   : > { %v21825_v52 = vadd.f32 %v1323_v16, %v989_v51  ;;  %v991_v55 = vpop.f32.mrb[34].mxu0 }
 0x1a7   : > { %v1462_v57 = vmul.f32 %v21824_v49, %v23785_v40  ;;  %v21826_v58 = vadd.f32 %v1325_v18, %v991_v55  ;;  %v993_v59 = vpop.f32.mrb[35].mxu0 }
 0x1a8   : > { %v1463_v60 = vmul.f32 %v21825_v52, %v23790_v44  ;;  %v21827_v19 = vadd.f32 %v1327_v20, %v993_v59 }
 0x1a9   : > { %v1524_v22 = vadd.f32 %v23795_v50, %v1462_v57  ;;  %v1464_v23 = vmul.f32 %v21826_v58, %v23785_v40 }
 0x1aa   : > { %v1525_v27 = vadd.f32 %v23798_v53, %v1463_v60  ;;  %v1465_v37 = vmul.f32 %v21827_v19, %v23790_v44 }
 0x1ab   : > { %v1574_v41 = vmax.f32 %v1524_v22, 0.0  ;;  %v1526_v45 = vadd.f32 %v23795_v50, %v1464_v23 }
 0x1ac   : > { %v1575_v54 = vmax.f32 %v1525_v27, 0.0  ;;  %v1527_v62 = vadd.f32 %v23798_v53, %v1465_v37  ;;  %v997_v0 = vpop.f32.mrb[36].mxu0 }
 0x1ad   : > { %v1576_v1 = vmax.f32 %v1526_v45, 0.0  ;;  %v21828_v2 = vadd.f32 %v1331_v24, %v997_v0  ;;  %v999_v3 = vpop.f32.mrb[37].mxu0 }
 0x1ae   : > { %v2442_v4 = vcombine.low %v1574_v41, %v1575_v54  ;;  %v2443_v5 = vcombine.high %v1574_v41, %v1575_v54  ;;  %v1577_v7 = vmax.f32 %v1527_v62, 0.0  ;;  %v21829_v8 = vadd.f32 %v1333_v25, %v999_v3  ;;  %v1001_v9 = vpop.f32.mrb[38].mxu0 }
 0x1af   : > { %v1466_v10 = vmul.f32 %v21828_v2, %v23785_v40  ;;  %v23812_v11 = vadd.f32 %v1335_v26, %v1001_v9  ;;  %v1003_v13 = vpop.f32.mrb[39].mxu0 }
 0x1b0   : > { %v2450_v14 = vrot.slane %v2442_v4, %v23808_v56  ;;  %v2457_v15 = vrot.slane %v2443_v5, %v23808_v56  ;;  %v2492_v16 = vcombine.low %v1576_v1, %v1577_v7  ;;  %v2493_v17 = vcombine.high %v1576_v1, %v1577_v7 }
 0x1b1   : > { %v23817_v18 = vadd.f32 %v23795_v50, %v1466_v10  ;;  %v23819_v20 = vadd.f32 %v1337_v28, %v1003_v13  ;;  %v1467_v55 = vmul.f32 %v21829_v8, %v23790_v44 }
 0x1b2   : > { %v2458_v21 = vcombine.high %v2450_v14, %v2450_v14  ;;  %v2459_v24 = vcombine.high %v2457_v15, %v2457_v15  ;;  %v23822_v25 = vrot.slane %v2450_v14, %v23808_v56  ;;  %v2473_v26 = vrot.slane %v2457_v15, %v23808_v56 }
 0x1b3   : > { %v2500_v33 = vrot.slane %v2492_v16, %v23808_v56  ;;  %v2507_v38 = vrot.slane %v2493_v17, %v23808_v56  ;;  %v1578_v52 = vmax.f32 %v23817_v18, 0.0  ;;  %v23850_v4 = vadd.f32 %v23798_v53, %v1467_v55 }
 0x1b4   : > { %v2480_v39 = vrot.slane %v2458_v21, %v23808_v56  ;;  %v2487_v43 = vrot.slane %v2459_v24, %v23808_v56  ;;  %v2488_v28 = vcombine.high %v23822_v25, %v23822_v25  ;;  %v2489_v46 = vcombine.high %v2473_v26, %v2473_v26  ;;  %v23831_v47 = vpop.f32.mrb[40].mxu0 }
 0x1b5   : > { %v2508_v49 = vcombine.high %v2500_v33, %v2500_v33  ;;  %v2509_v51 = vcombine.high %v2507_v38, %v2507_v38  ;;  %v23835_v57 = vpop.f32.mrb[41].mxu0  ;;  %v2516_v61 = vrot.slane %v2500_v33, %v23808_v56  ;;  %v2523_v23 = vrot.slane %v2507_v38, %v23808_v56 }
 0x1b6   : > { %v2490_v58 = vcombine.high %v2480_v39, %v2480_v39  ;;  %v4223_v59 = vcombine.low %v2480_v39, %v2488_v28  ;;  %v4254_v60 = vcombine.low %v2473_v26, %v2487_v43  ;;  %v23838_v19 = vpop.f32.mrb[42].mxu0  ;;  %v2491_v22 = vcombine.high %v2487_v43, %v2487_v43 }
 0x1b7   : > { %v2530_v27 = vrot.slane %v2508_v49, %v23808_v56  ;;  %v2537_v37 = vrot.slane %v2509_v51, %v23808_v56  ;;  %v23843_v41 = vpop.f32.mrb[43].mxu0  ;;  %v4268_v0 = vrot.slane %v2489_v46, %v23808_v56  ;;  %v2539_v1 = vcombine.high %v2523_v23, %v2523_v23 }
 0x1b8   : > { %v4230_v45 = vrot.slane %v4223_v59, %v23808_v56  ;;  %v4237_v54 = vrot.slane %v2490_v58, %v23808_v56  ;;  %v4261_v62 = vrot.slane %v4254_v60, %v23808_v56  ;;  %v4285_v3 = vcombine.low %v2491_v22, %v2516_v61  ;;  %v23870_v59 = vpop.f32.mrb[16].mxu1 }
 0x1b9   : > { %v2541_v2 = vcombine.high %v2537_v37, %v2537_v37  ;;  %v4299_v13 = vrot.slane %v2530_v27, %v23808_v56  ;;  %v19214_v14 = vcombine.high %v2516_v61, %v2530_v27  ;;  %v4347_v15 = vcombine.low %v2537_v37, %v2539_v1  ;;  %v23875_v37 = vpop.f32.mrb[17].mxu1 }
 0x1ba   : > { %v4238_v5 = vcombine.low %v4230_v45, %v4237_v54  ;;  %v4239_v7 = vcombine.high %v4230_v45, %v4237_v54  ;;  %v4269_v8 = vcombine.low %v4261_v62, %v4268_v0  ;;  %v4270_v9 = vcombine.high %v4261_v62, %v4268_v0  ;;  %v1365_v1 = vpop.f32.mrb[18].mxu1 }
 0x1bb   : > { %v4292_v10 = vrot.slane %v4285_v3, %v23808_v56  ;;  %v4323_v39 = vrot.slane %v19214_v14, %v23808_v56  ;;  %v4330_v43 = vrot.slane %v2523_v23, %v23808_v56  ;;  %v4354_v55 = vrot.slane %v4347_v15, %v23808_v56 }
 0x1bc   : > { %v4246_v16 = vrot.slane %v4238_v5, %v23808_v56  ;;  %v4253_v17 = vrot.slane %v4239_v7, %v23808_v56  ;;  %v4277_v21 = vrot.slane %v4269_v8, %v23808_v56  ;;  %v4284_v24 = vrot.slane %v4270_v9, %v23808_v56  ;;  %v23858_v26 = vpop.f32.mrb[44].mxu0  ;;  %v1366_v7 = vpop.f32.mrb[19].mxu1 }
 0x1bd   : > { %v4300_v33 = vcombine.low %v4292_v10, %v4299_v13  ;;  %v4301_v38 = vcombine.high %v4292_v10, %v4299_v13  ;;  %v23862_v28 = vpop.f32.mrb[45].mxu0  ;;  %v4331_v62 = vcombine.low %v4323_v39, %v4330_v43  ;;  %v4332_v0 = vcombine.high %v4323_v39, %v4330_v43 }
 0x1be   : > { %v5672_v46 = vsel %vm5068_vm14, %v4246_v16, -inf  ;;  %v5679_v49 = vsel %vm5076_vm15, %v4253_v17, -inf  ;;  %v5686_v51 = vsel %vm5068_vm14, %v4277_v21, -inf  ;;  %v23868_v58 = vpop.f32.mrb[46].mxu0  ;;  %v5693_v27 = vsel %vm5076_vm15, %v4284_v24, -inf }
 0x1bf   : > { %v5673_v60 = vrot.slane %v5672_v46, 4  ;;  %v5680_v61 = vrot.slane %v5679_v49, 4  ;;  %v5687_v22 = vrot.slane %v5686_v51, 4  ;;  %v23873_v23 = vpop.f32.mrb[47].mxu0  ;;  %v4308_v45 = vrot.slane %v4300_v33, %v23808_v56 }
 0x1c0   : > { %v4315_v54 = vrot.slane %v4301_v38, %v23808_v56  ;;  %v1579_v5 = vmax.f32 %v23850_v4, 0.0  ;;  %v5694_v8 = vrot.slane %v5693_v27, 4  ;;  %v4361_v9 = vrot.slane %v2541_v2, %v23808_v56 }
 0x1c1   : > { %v23879_v3 = vmax.f32 %v5672_v46, %v5673_v60  ;;  %v5700_v10 = vsel %vm5068_vm14, %v4308_v45, -inf  ;;  %v23884_v13 = vmax.f32 %v5679_v49, %v5680_v61  ;;  %v23886_v14 = vmax.f32 %v5686_v51, %v5687_v22 }
 0x1c2   : > { %v4339_v15 = vrot.slane %v4331_v62, %v23808_v56  ;;  %v4346_v16 = vrot.slane %v4332_v0, %v23808_v56  ;;  %v4362_v17 = vcombine.low %v4354_v55, %v4361_v9  ;;  %v4363_v21 = vcombine.high %v4354_v55, %v4361_v9 }
 0x1c3   : > { %v5701_v24 = vrot.slane %v5700_v10, 4  ;;  %v5707_v33 = vsel %vm5076_vm15, %v4315_v54, -inf  ;;  %v5675_v38 = vrot.slane %v23879_v3, 2  ;;  %v5682_v49 = vrot.slane %v23884_v13, 2 }
 0x1c4   : > { %v23891_v4 = vpop.f32.mrb[48].mxu0  ;;  %v5708_v43 = vrot.slane %v5707_v33, 4  ;;  %v4370_v60 = vrot.slane %v4362_v17, %v23808_v56  ;;  %v4377_v55 = vrot.slane %v4363_v21, %v23808_v56  ;;  %v5714_v54 = vsel %vm5068_vm14, %v4339_v15, -inf }
 0x1c5   : > { %v23894_v2 = vpop.f32.mrb[49].mxu0  ;;  %v5702_v39 = vmax.f32 %v5700_v10, %v5701_v24  ;;  %v5721_v62 = vsel %vm5076_vm15, %v4346_v16, -inf  ;;  %v5715_v7 = vrot.slane %v5714_v54, 4  ;;  %v1468_v17 = vmul.f32 %v23812_v11, %v23785_v40 }
 0x1c6   : > { %v1031_v46 = vpop.f32.mrb[50].mxu0  ;;  %v5709_v45 = vmax.f32 %v5707_v33, %v5708_v43  ;;  %v5722_v9 = vrot.slane %v5721_v62, 4  ;;  %v5728_v10 = vsel %vm5068_vm14, %v4370_v60, -inf  ;;  %v5735_v24 = vsel %vm5076_vm15, %v4377_v55, -inf }
 0x1c7   : > { %v1032_v61 = vpop.f32.mrb[51].mxu0  ;;  %v5703_v22 = vrot.slane %v5702_v39, 2  ;;  %v23906_v33 = vmax.f32 %v5693_v27, %v5694_v8  ;;  %v5736_v51 = vrot.slane %v5735_v24, 4  ;;  %v2542_v60 = vcombine.low %v1578_v52, %v1579_v5 }
 0x1c8   : > { %v5710_v1 = vrot.slane %v5709_v45, 2  ;;  %v5716_v61 = vmax.f32 %v5714_v54, %v5715_v7  ;;  %v5723_v12 = vmax.f32 %v5721_v62, %v5722_v9  ;;  %v2543_v55 = vcombine.high %v1578_v52, %v1579_v5 }
 0x1c9   : > { %v5704_v0 = vmax.f32 %v5702_v39, %v5703_v22  ;;  %v5729_v22 = vrot.slane %v5728_v10, 4  ;;  %v5737_v27 = vmax.f32 %v5735_v24, %v5736_v51  ;;  %v2550_v8 = vrot.slane %v2542_v60, %v23808_v56 }
 0x1ca   : > { %v5711_v21 = vmax.f32 %v5709_v45, %v5710_v1  ;;  %v5717_v16 = vrot.slane %v5716_v61, 2  ;;  %v5724_v39 = vrot.slane %v5723_v12, 2  ;;  %v1530_v45 = vadd.f32 %v23795_v50, %v1468_v17 }
 0x1cb   : > { %v5705_v46 = vrot.slane %v5704_v0, 1  ;;  %v5730_v54 = vmax.f32 %v5728_v10, %v5729_v22  ;;  %v2557_v62 = vrot.slane %v2543_v55, %v23808_v56  ;;  %v5738_v18 = vrot.slane %v5737_v27, 2 }
 0x1cc   : > { %v5712_v43 = vrot.slane %v5711_v21, 1  ;;  %v5718_v11 = vmax.f32 %v5716_v61, %v5717_v16  ;;  %v5725_v36 = vmax.f32 %v5723_v12, %v5724_v39  ;;  %v2558_v52 = vcombine.high %v2550_v8, %v2550_v8 }
 0x1cd   : > { %v5706_v15 = vmax.f32 %v5704_v0, %v5705_v46  ;;  %v5731_v46 = vrot.slane %v5730_v54, 2  ;;  %v2559_v5 = vcombine.high %v2557_v62, %v2557_v62  ;;  %v23920_v12 = vrot.slane %v23822_v25, %v23808_v56 }
 0x1ce   : > { %v5713_v63 = vmax.f32 %v5711_v21, %v5712_v43  ;;  %v5719_v1 = vrot.slane %v5718_v11, 1  ;;  %v5726_v7 = vrot.slane %v5725_v36, 1  ;;  %v23923_v51 = vmax.f32 %v23879_v3, %v5675_v38 }
 0x1cf   : > { %v5732_v17 = vmax.f32 %v5730_v54, %v5731_v46  ;;  %v5739_v21 = vmax.f32 %v5737_v27, %v5738_v18  ;;  %v2566_v61 = vrot.slane %v2550_v8, %v23808_v56  ;;  %v1580_v43 = vmax.f32 %v1530_v45, 0.0 }
 0x1d0   : > { %v23916_v9 = vpack.c.bf16 %v5713_v63, %v5706_v15  ;;  %v5720_v10 = vmax.f32 %v5718_v11, %v5719_v1  ;;  %v5727_v24 = vmax.f32 %v5725_v36, %v5726_v7  ;;  %v23926_v63 = vpop.f32.mrb[0].mxu0  ;;  %v2580_v16 = vrot.slane %v2558_v52, %v23808_v56 }
 0x1d1   : > { %v2587_v39 = vrot.slane %v2559_v5, %v23808_v56  ;;  %v1469_v25 = vmul.f32 %v23819_v20, %v23790_v44  ;;  %v5733_v3 = vrot.slane %v5732_v17, 1  ;;  %v5740_v38 = vrot.slane %v5739_v21, 1 }
 0x1d2   : > { %v23928_v15 = vpack.c.bf16 %v5727_v24, %v5720_v10  ;;  %v2588_v22 = vcombine.high %v2566_v61, %v2566_v61  ;;  %v21832_v36 = vadd.f32 %v23758_v29, %v23831_v47  ;;  %v23937_v60 = vmax.f32 %v23884_v13, %v5682_v49 }
 0x1d3   : > { %v2573_v55 = vrot.slane %v2557_v62, %v23808_v56  ;;  %v2590_v11 = vcombine.high %v2580_v16, %v2580_v16  ;;  %v4378_v45 = vcombine.low %v2566_v61, %v2580_v16  ;;  %v5734_v54 = vmax.f32 %v5732_v17, %v5733_v3  ;;  %v23960_v16 = vpop.f32.mrb[1].mxu0 }
 0x1d4   : > { %29486 = vst [vmem:[#allocation10_spill] sm:$0xff] %v23928_v15  ;;  %v5741_v27 = vmax.f32 %v5739_v21, %v5740_v38  ;;  %v4392_v8 = vrot.slane %v2588_v22, %v23808_v56  ;;  %v4423_v1 = vrot.slane %v2587_v39, %v23808_v56  ;;  %v1531_v18 = vadd.f32 %v23798_v53, %v1469_v25 }
 0x1d5   : > { %v4385_v20 = vrot.slane %v4378_v45, %v23808_v56  ;;  %v4409_v7 = vcombine.low %v2590_v11, %v2573_v55  ;;  %v19215_v46 = vcombine.high %v2573_v55, %v2587_v39  ;;  %v1470_v47 = vmul.f32 %v21832_v36, %v23785_v40 }
 0x1d6   : > { %v23944_v29 = vpack.c.bf16 %v5741_v27, %v5734_v54  ;;  %v21833_v13 = vadd.f32 %v23760_v30, %v23835_v57  ;;  %v21834_v49 = vadd.f32 %v23762_v31, %v23838_v19  ;;  %v1581_v21 = vmax.f32 %v1531_v18, 0.0 }
 0x1d7   : > { %v4393_v62 = vcombine.low %v4385_v20, %v4392_v8  ;;  %v4394_v52 = vcombine.high %v4385_v20, %v4392_v8  ;;  %v4416_v5 = vrot.slane %v4409_v7, %v23808_v56  ;;  %v23953_v10 = vrot.slane %v19215_v46, %v23808_v56 }
 0x1d8   : > { %v23958_v61 = vadd.f32 %v23795_v50, %v1470_v47  ;;  %v2592_v39 = vcombine.low %v1580_v43, %v1581_v21  ;;  %v2593_v25 = vcombine.high %v1580_v43, %v1581_v21  ;;  %v1471_v38 = vmul.f32 %v21833_v13, %v23790_v44 }
 0x1d9   : > { %v4401_v30 = vrot.slane %v4393_v62, %v23808_v56  ;;  %v4408_v31 = vrot.slane %v4394_v52, %v23808_v56  ;;  %v4424_v57 = vcombine.low %v4416_v5, %v4423_v1  ;;  %v4425_v19 = vcombine.high %v4416_v5, %v4423_v1  ;;  %v23980_v62 = vpop.f32.mrb[2].mxu0 }
 0x1da   : > { %v2600_v27 = vrot.slane %v2592_v39, %v23808_v56  ;;  %v2607_v8 = vrot.slane %v2593_v25, %v23808_v56  ;;  %v23975_v20 = vadd.f32 %v23798_v53, %v1471_v38  ;;  %v23978_v7 = vmul.f32 %v21834_v49, %v23785_v40 }
 0x1db   : > { %v4432_v22 = vrot.slane %v4424_v57, %v23808_v56  ;;  %v4439_v36 = vrot.slane %v4425_v19, %v23808_v56  ;;  %v5742_v55 = vsel %vm5068_vm14, %v4401_v30, -inf  ;;  %v5749_v11 = vsel %vm5076_vm15, %v4408_v31, -inf  ;;  %v23984_v31 = vpop.f32.mrb[3].mxu0 }
 0x1dc   : > { %v5743_v45 = vrot.slane %v5742_v55, 4  ;;  %v5750_v54 = vrot.slane %v5749_v11, 4  ;;  %v2608_v52 = vcombine.high %v2600_v27, %v2600_v27  ;;  %v2609_v5 = vcombine.high %v2607_v8, %v2607_v8 }
 0x1dd   : > { %v5756_v43 = vsel %vm5068_vm14, %v4432_v22, -inf  ;;  %v5763_v1 = vsel %vm5076_vm15, %v4439_v36, -inf  ;;  %v2616_v21 = vrot.slane %v2600_v27, %v23808_v56  ;;  %v2623_v30 = vrot.slane %v2607_v8, %v23808_v56 }
 0x1de   : > { %v5744_v46 = vmax.f32 %v5742_v55, %v5743_v45  ;;  %v5751_v18 = vmax.f32 %v5749_v11, %v5750_v54  ;;  %v5757_v47 = vrot.slane %v5756_v43, 4  ;;  %v5764_v13 = vrot.slane %v5763_v1, 4 }
 0x1df   : > { %v2630_v49 = vrot.slane %v2608_v52, %v23808_v56  ;;  %v23988_v38 = vrot.slane %v2609_v5, %v23808_v56  ;;  %v2638_v22 = vcombine.high %v2616_v21, %v2616_v21  ;;  %v2639_v36 = vcombine.high %v2623_v30, %v2623_v30 }
 0x1e0   : > { %v5745_v57 = vrot.slane %v5744_v46, 2  ;;  %v5752_v19 = vrot.slane %v5751_v18, 2  ;;  %v5758_v39 = vmax.f32 %v5756_v43, %v5757_v47  ;;  %v5765_v25 = vmax.f32 %v5763_v1, %v5764_v13 }
 0x1e1   : > { %v2640_v27 = vcombine.high %v2630_v49, %v2630_v49  ;;  %v4454_v8 = vrot.slane %v2616_v21, %v23808_v56  ;;  %v4471_v0 = vcombine.low %v2630_v49, %v2638_v22  ;;  %v4502_v43 = vcombine.low %v2623_v30, %v23988_v38 }
 0x1e2   : > { %v5746_v55 = vmax.f32 %v5744_v46, %v5745_v57  ;;  %v5753_v11 = vmax.f32 %v5751_v18, %v5752_v19  ;;  %v5759_v45 = vrot.slane %v5758_v39, 2  ;;  %v5766_v54 = vrot.slane %v5765_v25, 2 }
 0x1e3   : > { %v4455_v5 = vcombine.low %v23953_v10, %v4454_v8  ;;  %v4456_v3 = vcombine.high %v23953_v10, %v4454_v8  ;;  %v4478_v46 = vrot.slane %v4471_v0, %v23808_v56  ;;  %v4485_v18 = vrot.slane %v2640_v27, %v23808_v56 }
 0x1e4   : > { %v5747_v1 = vrot.slane %v5746_v55, 1  ;;  %v5754_v47 = vrot.slane %v5753_v11, 1  ;;  %v5760_v13 = vmax.f32 %v5758_v39, %v5759_v45  ;;  %v5767_v52 = vmax.f32 %v5765_v25, %v5766_v54 }
 0x1e5   : > { %v4463_v21 = vrot.slane %v4455_v5, %v23808_v56  ;;  %v4470_v30 = vrot.slane %v4456_v3, %v23808_v56  ;;  %v4486_v49 = vcombine.low %v4478_v46, %v4485_v18  ;;  %v4487_v22 = vcombine.high %v4478_v46, %v4485_v18 }
 0x1e6   : > { %v5748_v57 = vmax.f32 %v5746_v55, %v5747_v1  ;;  %v5755_v19 = vmax.f32 %v5753_v11, %v5754_v47  ;;  %v5761_v17 = vrot.slane %v5760_v13, 1  ;;  %v5768_v24 = vrot.slane %v5767_v52, 1 }
 0x1e7   : > { %v4509_v54 = vrot.slane %v4502_v43, %v23808_v56  ;;  %v4494_v10 = vrot.slane %v4486_v49, %v23808_v56  ;;  %v4501_v0 = vrot.slane %v4487_v22, %v23808_v56  ;;  %v4516_v55 = vrot.slane %v2639_v36, %v23808_v56 }
 0x1e8   : > { %v5762_v39 = vmax.f32 %v5760_v13, %v5761_v17  ;;  %v5769_v25 = vmax.f32 %v5767_v52, %v5768_v24  ;;  %v21298_v45 = vpack.c.bf16 %v5755_v19, %v5748_v57  ;;  %v5770_v11 = vsel %vm5068_vm14, %v4463_v21, -inf }
 0x1e9   : > { %v5771_v47 = vrot.slane %v5770_v11, 4  ;;  %v4517_v3 = vcombine.low %v4509_v54, %v4516_v55  ;;  %v4518_v5 = vcombine.high %v4509_v54, %v4516_v55  ;;  %v5777_v17 = vsel %vm5076_vm15, %v4470_v30, -inf }
 0x1ea   : > { %v21299_v27 = vpack.c.bf16 %v5769_v25, %v5762_v39  ;;  %v6572_v8 = vunpack.c.l.b16 %v21298_v45  ;;  %v6573_v1 = vunpack.c.h.b16 %v21298_v45  ;;  %v5784_v24 = vsel %vm5068_vm14, %v4494_v10, -inf }
 0x1eb   : > { %v29487_v52 = vunpack.c.l.b16 %v23944_v29  ;;  %v29488_v36 = vunpack.c.h.b16 %v23944_v29  ;;  %v4525_v57 = vrot.slane %v4517_v3, %v23808_v56  ;;  %v4532_v19 = vrot.slane %v4518_v5, %v23808_v56 }
 0x1ec   : > { %v6574_v13 = vunpack.c.l.b16 %v21299_v27  ;;  %v6575_v43 = vunpack.c.h.b16 %v21299_v27  ;;  %v5772_v21 = vmax.f32 %v5770_v11, %v5771_v47  ;;  %v5778_v49 = vrot.slane %v5777_v17, 4 }
 0x1ed   : > { %v6697_v46 = vsel %vm6004_vm2, %v6572_v8, %v29487_v52  ;;  %v6704_v18 = vsel %vm6004_vm2, %v6573_v1, %v29488_v36  ;;  %v5785_v39 = vrot.slane %v5784_v24, 4  ;;  %v5791_v25 = vsel %vm5076_vm15, %v4501_v0, -inf }
 0x1ee   : > { %v24014_v30 = vsel %vm6608_vm3, %v6574_v13, %v6697_v46  ;;  %v24017_v22 = vsel %vm6608_vm3, %v6575_v43, %v6704_v18  ;;  %v5773_v45 = vrot.slane %v5772_v21, 2  ;;  %v5779_v54 = vmax.f32 %v5777_v17, %v5778_v49 }
 0x1ef   : > { %v5792_v29 = vrot.slane %v5791_v25, 4  ;;  %v5798_v10 = vsel %vm5068_vm14, %v4525_v57, -inf  ;;  %v5786_v55 = vmax.f32 %v5784_v24, %v5785_v39  ;;  %v5805_v8 = vsel %vm5076_vm15, %v4532_v19, -inf }
 0x1f0   : > { %v5799_v27 = vrot.slane %v5798_v10, 4  ;;  %v1583_v11 = vmax.f32 %v23975_v20, 0.0  ;;  %v5774_v1 = vmax.f32 %v5772_v21, %v5773_v45  ;;  %v5780_v47 = vrot.slane %v5779_v54, 2 }
 0x1f1   : > { %v5793_v3 = vmax.f32 %v5791_v25, %v5792_v29  ;;  %v5806_v5 = vrot.slane %v5805_v8, 4  ;;  %v5787_v13 = vrot.slane %v5786_v55, 2  ;;  %v2641_v0 = vcombine.high %v23988_v38, %v23988_v38 }
 0x1f2   : > { %v5800_v43 = vmax.f32 %v5798_v10, %v5799_v27  ;;  %v29489_v17 = vmax.f32 %v23958_v61, 0.0  ;;  %v5775_v46 = vrot.slane %v5774_v1, 1  ;;  %v5781_v24 = vmax.f32 %v5779_v54, %v5780_v47  ;;  %v24031_v54 = vpop.f32.mrb[4].mxu0 }
 0x1f3   : > { %v5794_v36 = vrot.slane %v5793_v3, 2  ;;  %v5807_v18 = vmax.f32 %v5805_v8, %v5806_v5  ;;  %v5788_v57 = vmax.f32 %v5786_v55, %v5787_v13 }
 0x1f4   : > { %v2642_v52 = vcombine.low %v29489_v17, %v1583_v11  ;;  %v5801_v19 = vrot.slane %v5800_v43, 2  ;;  %v29490_v20 = vmov %v29489_v17  ;;  %v5776_v39 = vmax.f32 %v5774_v1, %v5775_v46 }
 0x1f5   : > { %v2643_v21 = vcombine.high %v29490_v20, %v1583_v11  ;;  %v5782_v25 = vrot.slane %v5781_v24, 1  ;;  %v5795_v45 = vmax.f32 %v5793_v3, %v5794_v36  ;;  %v5808_v29 = vrot.slane %v5807_v18, 2 }
 0x1f6   : > { %v2650_v49 = vrot.slane %v2642_v52, %v23808_v56  ;;  %v5789_v10 = vrot.slane %v5788_v57, 1  ;;  %v5802_v38 = vmax.f32 %v5800_v43, %v5801_v19 }
 0x1f7   : > { %v2657_v27 = vrot.slane %v2643_v21, %v23808_v56  ;;  %v5783_v8 = vmax.f32 %v5781_v24, %v5782_v25  ;;  %v5796_v55 = vrot.slane %v5795_v45, 1  ;;  %v5809_v47 = vmax.f32 %v5807_v18, %v5808_v29 }
 0x1f8   : > { %v2658_v17 = vcombine.high %v2650_v49, %v2650_v49  ;;  %v2666_v61 = vrot.slane %v2650_v49, %v23808_v56  ;;  %v5790_v11 = vmax.f32 %v5788_v57, %v5789_v10  ;;  %v5803_v5 = vrot.slane %v5802_v38, 1 }
 0x1f9   : > { %v2659_v13 = vcombine.high %v2657_v27, %v2657_v27  ;;  %v2673_v1 = vrot.slane %v2657_v27, %v23808_v56  ;;  %v5797_v3 = vmax.f32 %v5795_v45, %v5796_v55  ;;  %v5810_v52 = vrot.slane %v5809_v47, 1 }
 0x1fa   : > { %v21300_v46 = vpack.c.bf16 %v5783_v8, %v5776_v39  ;;  %v2680_v43 = vrot.slane %v2658_v17, %v23808_v56  ;;  %v5804_v36 = vmax.f32 %v5802_v38, %v5803_v5  ;;  %v4533_v21 = vcombine.low %v2641_v0, %v2666_v61 }
 0x1fb   : > { %v2687_v19 = vrot.slane %v2659_v13, %v23808_v56  ;;  %v2689_v20 = vcombine.high %v2673_v1, %v2673_v1  ;;  %v5811_v24 = vmax.f32 %v5809_v47, %v5810_v52  ;;  %v21301_v25 = vpack.c.bf16 %v5797_v3, %v5790_v11 }
 0x1fc   : > { %v6576_v18 = vunpack.c.l.b16 %v21300_v46  ;;  %v6577_v29 = vunpack.c.h.b16 %v21300_v46  ;;  %v4540_v57 = vrot.slane %v4533_v21, %v23808_v56  ;;  %v4547_v10 = vrot.slane %v2680_v43, %v23808_v56 }
 0x1fd   : > { %v2691_v49 = vcombine.high %v2687_v19, %v2687_v19  ;;  %v19216_v27 = vcombine.high %v2666_v61, %v2680_v43  ;;  %v21302_v45 = vpack.c.bf16 %v5811_v24, %v5804_v36  ;;  %v6578_v55 = vunpack.c.l.b16 %v21301_v25 }
 0x1fe   : > { %v6579_v39 = vunpack.c.h.b16 %v21301_v25  ;;  %v6699_v38 = vsel %vm6610_vm4, %v6576_v18, %v24014_v30  ;;  %v6706_v17 = vsel %vm6610_vm4, %v6577_v29, %v24017_v22  ;;  %v4548_v0 = vcombine.low %v4540_v57, %v4547_v10 }
 0x1ff   : > { %v4549_v8 = vcombine.high %v4540_v57, %v4547_v10  ;;  %v4571_v47 = vrot.slane %v19216_v27, %v23808_v56  ;;  %v6580_v11 = vunpack.c.l.b16 %v21302_v45  ;;  %v6581_v5 = vunpack.c.h.b16 %v21302_v45 }
 0x200   : > { %v6700_v13 = vsel %vm6612_vm8, %v6578_v55, %v6699_v38  ;;  %v6707_v3 = vsel %vm6612_vm8, %v6579_v39, %v6706_v17  ;;  %v4556_v61 = vrot.slane %v4548_v0, %v23808_v56  ;;  %v4578_v46 = vrot.slane %v2673_v1, %v23808_v56 }
 0x201   : > { %v4563_v52 = vrot.slane %v4549_v8, %v23808_v56  ;;  %v4595_v30 = vcombine.low %v2687_v19, %v2689_v20  ;;  %v24050_v43 = vsel %vm6614_vm5, %v6580_v11, %v6700_v13  ;;  %v24053_v22 = vsel %vm6614_vm5, %v6581_v5, %v6707_v3 }
 0x202   : > { %v4609_v36 = vrot.slane %v2691_v49, %v23808_v56  ;;  %v1534_v21 = vadd.f32 %v23795_v50, %v23978_v7  ;;  %v4579_v24 = vcombine.low %v4571_v47, %v4578_v46  ;;  %v4580_v25 = vcombine.high %v4571_v47, %v4578_v46  ;;  %v24065_v7 = vpop.f32.mrb[5].mxu0 }
 0x203   : > { %v4602_v18 = vrot.slane %v4595_v30, %v23808_v56  ;;  %v5812_v29 = vsel %vm5068_vm14, %v4556_v61, -inf  ;;  %v5819_v1 = vsel %vm5076_vm15, %v4563_v52, -inf  ;;  %v21835_v20 = vadd.f32 %v23764_v32, %v23843_v41 }
 0x204   : > { %v5813_v57 = vrot.slane %v5812_v29, 4  ;;  %v1584_v19 = vmax.f32 %v1534_v21, 0.0  ;;  %v4587_v10 = vrot.slane %v4579_v24, %v23808_v56  ;;  %v4594_v49 = vrot.slane %v4580_v25, %v23808_v56 }
 0x205   : > { %v4610_v27 = vcombine.low %v4602_v18, %v4609_v36  ;;  %v4611_v45 = vcombine.high %v4602_v18, %v4609_v36  ;;  %v5820_v39 = vrot.slane %v5819_v1, 4  ;;  %v1473_v38 = vmul.f32 %v21835_v20, %v23790_v44 }
 0x206   : > { %v5814_v55 = vmax.f32 %v5812_v29, %v5813_v57  ;;  %v21836_v17 = vadd.f32 %v23766_v34, %v23858_v26  ;;  %v5826_v32 = vsel %vm5068_vm14, %v4587_v10, -inf  ;;  %v5833_v41 = vsel %vm5076_vm15, %v4594_v49, -inf  ;;  %v24081_v10 = vpop.f32.mrb[6].mxu0 }
 0x207   : > { %v4618_v0 = vrot.slane %v4610_v27, %v23808_v56  ;;  %v4625_v8 = vrot.slane %v4611_v45, %v23808_v56  ;;  %v5821_v11 = vmax.f32 %v5819_v1, %v5820_v39  ;;  %v5827_v5 = vrot.slane %v5826_v32, 4 }
 0x208   : > { %v5815_v47 = vrot.slane %v5814_v55, 2  ;;  %v5834_v13 = vrot.slane %v5833_v41, 4  ;;  %v1535_v52 = vadd.f32 %v23798_v53, %v1473_v38  ;;  %v1474_v34 = vmul.f32 %v21836_v17, %v23785_v40 }
 0x209   : > { %v5840_v3 = vsel %vm5068_vm14, %v4618_v0, -inf  ;;  %v5847_v61 = vsel %vm5076_vm15, %v4625_v8, -inf  ;;  %v5822_v46 = vrot.slane %v5821_v11, 2  ;;  %v5828_v30 = vmax.f32 %v5826_v32, %v5827_v5 }
 0x20a   : > { %v5816_v26 = vmax.f32 %v5814_v55, %v5815_v47  ;;  %v5835_v36 = vmax.f32 %v5833_v41, %v5834_v13  ;;  %v5841_v21 = vrot.slane %v5840_v3, 4  ;;  %v5848_v24 = vrot.slane %v5847_v61, 4 }
 0x20b   : > { %v1585_v25 = vmax.f32 %v1535_v52, 0.0  ;;  %v24079_v18 = vadd.f32 %v23795_v50, %v1474_v34  ;;  %v5823_v57 = vmax.f32 %v5821_v11, %v5822_v46  ;;  %v5829_v1 = vrot.slane %v5828_v30, 2 }
 0x20c   : > { %v5817_v29 = vrot.slane %v5816_v26, 1  ;;  %v5836_v20 = vrot.slane %v5835_v36, 2  ;;  %v5842_v49 = vmax.f32 %v5840_v3, %v5841_v21  ;;  %v5849_v27 = vmax.f32 %v5847_v61, %v5848_v24 }
 0x20d   : > { %v2692_v45 = vcombine.low %v1584_v19, %v1585_v25  ;;  %v2693_v55 = vcombine.high %v1584_v19, %v1585_v25  ;;  %v5824_v38 = vrot.slane %v5823_v57, 1  ;;  %v5830_v17 = vmax.f32 %v5828_v30, %v5829_v1 }
 0x20e   : > { %v5818_v39 = vmax.f32 %v5816_v26, %v5817_v29  ;;  %v5837_v0 = vmax.f32 %v5835_v36, %v5836_v20  ;;  %v5843_v8 = vrot.slane %v5842_v49, 2  ;;  %v5850_v32 = vrot.slane %v5849_v27, 2 }
 0x20f   : > { %v2700_v41 = vrot.slane %v2692_v45, %v23808_v56  ;;  %v2707_v47 = vrot.slane %v2693_v55, %v23808_v56  ;;  %v5825_v11 = vmax.f32 %v5823_v57, %v5824_v38  ;;  %v5831_v5 = vrot.slane %v5830_v17, 1 }
 0x210   : > { %v5838_v13 = vrot.slane %v5837_v0, 1  ;;  %v1586_v3 = vmax.f32 %v24079_v18, 0.0  ;;  %v5844_v61 = vmax.f32 %v5842_v49, %v5843_v8  ;;  %v5851_v52 = vmax.f32 %v5849_v27, %v5850_v32 }
 0x211   : > { %v2708_v34 = vcombine.high %v2700_v41, %v2700_v41  ;;  %v2709_v46 = vcombine.high %v2707_v47, %v2707_v47  ;;  %v5832_v19 = vmax.f32 %v5830_v17, %v5831_v5  ;;  %v21303_v21 = vpack.c.bf16 %v5825_v11, %v5818_v39 }
 0x212   : > { %v5839_v26 = vmax.f32 %v5837_v0, %v5838_v13  ;;  %v2716_v30 = vrot.slane %v2700_v41, %v23808_v56  ;;  %v5845_v36 = vrot.slane %v5844_v61, 1  ;;  %v5852_v24 = vrot.slane %v5851_v52, 1 }
 0x213   : > { %v2723_v25 = vrot.slane %v2707_v47, %v23808_v56  ;;  %v2730_v29 = vrot.slane %v2708_v34, %v23808_v56  ;;  %v6582_v1 = vunpack.c.l.b16 %v21303_v21  ;;  %v6583_v20 = vunpack.c.h.b16 %v21303_v21 }
 0x214   : > { %v21304_v57 = vpack.c.bf16 %v5839_v26, %v5832_v19  ;;  %v2737_v45 = vrot.slane %v2709_v46, %v23808_v56  ;;  %v5846_v49 = vmax.f32 %v5844_v61, %v5845_v36  ;;  %v5853_v27 = vmax.f32 %v5851_v52, %v5852_v24  ;;  %v24117_v24 = vpop.f32.mrb[7].mxu0 }
 0x215   : > { %v2738_v55 = vcombine.high %v2716_v30, %v2716_v30  ;;  %v2740_v38 = vcombine.high %v2730_v29, %v2730_v29  ;;  %v6702_v39 = vsel %vm6616_vm6, %v6582_v1, %v24050_v43  ;;  %v6709_v8 = vsel %vm6616_vm6, %v6583_v20, %v24053_v22  ;;  %v24156_v18 = vpop.f32.mrb[8].mxu0 }
 0x216   : > { %v6584_v17 = vunpack.c.l.b16 %v21304_v57  ;;  %v6585_v0 = vunpack.c.h.b16 %v21304_v57  ;;  %v24094_v32 = vpack.c.bf16 %v5853_v27, %v5846_v49  ;;  %v4626_v41 = vcombine.low %v2716_v30, %v2730_v29 }
 0x217   : > { %v4640_v47 = vrot.slane %v2738_v55, %v23808_v56  ;;  %v4657_v11 = vcombine.low %v2740_v38, %v2723_v25  ;;  %v4671_v43 = vrot.slane %v2737_v45, %v23808_v56  ;;  %v19217_v52 = vcombine.high %v2723_v25, %v2737_v45 }
 0x218   : > { %v6703_v5 = vsel %vm6618_vm7, %v6584_v17, %v6702_v39  ;;  %v6710_v13 = vsel %vm6618_vm7, %v6585_v0, %v6709_v8  ;;  %v6586_v22 = vunpack.c.l.b16 %v24094_v32  ;;  %v6587_v34 = vunpack.c.h.b16 %v24094_v32 }
 0x219   : > { %v6735_v46 = vpack.c.b16 %v6710_v13, %v6703_v5  ;;  %v4633_v19 = vrot.slane %v4626_v41, %v23808_v56  ;;  %v4664_v26 = vrot.slane %v4657_v11, %v23808_v56  ;;  %v24111_v21 = vrot.slane %v19217_v52, %v23808_v56 }
 0x21a   : > { %v21837_v30 = vadd.f32 %v23770_v6, %v23862_v28  ;;  %v21838_v36 = vadd.f32 %v23787_v42, %v23868_v58  ;;  %v21839_v57 = vadd.f32 %v23792_v48, %v23873_v23  ;;  %v21840_v1 = vadd.f32 %v23870_v59, %v23891_v4 }
 0x21b   : > { %6765 = vst.msk [vmem:[#allocation2 + $0x30] sm:$0xff] %vm24101_vm12, %v6735_v46  ;;  %v4641_v25 = vcombine.low %v4633_v19, %v4640_v47  ;;  %v4642_v29 = vcombine.high %v4633_v19, %v4640_v47  ;;  %v4672_v20 = vcombine.low %v4664_v26, %v4671_v43  ;;  %v4673_v45 = vcombine.high %v4664_v26, %v4671_v43 }
 0x21c   : > { %v1475_v6 = vmul.f32 %v21837_v30, %v23790_v44  ;;  %v1476_v28 = vmul.f32 %v21838_v36, %v23785_v40  ;;  %v1477_v49 = vmul.f32 %v21839_v57, %v23790_v44  ;;  %v1478_v27 = vmul.f32 %v21840_v1, %v23785_v40 }
 0x21d   : > { %v4649_v42 = vrot.slane %v4641_v25, %v23808_v56  ;;  %v4656_v58 = vrot.slane %v4642_v29, %v23808_v56  ;;  %v4680_v55 = vrot.slane %v4672_v20, %v23808_v56  ;;  %v4687_v48 = vrot.slane %v4673_v45, %v23808_v56 }
 0x21e   : > { %v1537_v59 = vadd.f32 %v23798_v53, %v1475_v6  ;;  %v1538_v23 = vadd.f32 %v23795_v50, %v1476_v28  ;;  %v1539_v17 = vadd.f32 %v23798_v53, %v1477_v49  ;;  %v24139_v0 = vadd.f32 %v23795_v50, %v1478_v27 }
 0x21f   : > { %v5854_v4 = vsel %vm5068_vm14, %v4649_v42, -inf  ;;  %v5861_v38 = vsel %vm5076_vm15, %v4656_v58, -inf  ;;  %v5868_v41 = vsel %vm5068_vm14, %v4680_v55, -inf  ;;  %v5875_v47 = vsel %vm5076_vm15, %v4687_v48, -inf }
 0x220   : > { %v5855_v39 = vrot.slane %v5854_v4, 4  ;;  %v5862_v8 = vrot.slane %v5861_v38, 4  ;;  %v5869_v11 = vrot.slane %v5868_v41, 4  ;;  %v5876_v5 = vrot.slane %v5875_v47, 4 }
 0x221   : > { %v1587_v13 = vmax.f32 %v1537_v59, 0.0  ;;  %v1588_v43 = vmax.f32 %v1538_v23, 0.0  ;;  %v1589_v19 = vmax.f32 %v1539_v17, 0.0 }
 0x222   : > { %v5856_v52 = vmax.f32 %v5854_v4, %v5855_v39  ;;  %v5863_v46 = vmax.f32 %v5861_v38, %v5862_v8  ;;  %v5870_v30 = vmax.f32 %v5868_v41, %v5869_v11  ;;  %v5877_v36 = vmax.f32 %v5875_v47, %v5876_v5 }
 0x223   : > { %v2742_v25 = vcombine.low %v1586_v3, %v1587_v13  ;;  %v2743_v29 = vcombine.high %v1586_v3, %v1587_v13  ;;  %v2792_v20 = vcombine.low %v1588_v43, %v1589_v19  ;;  %v2793_v45 = vcombine.high %v1588_v43, %v1589_v19 }
 0x224   : > { %v5857_v57 = vrot.slane %v5856_v52, 2  ;;  %v5864_v1 = vrot.slane %v5863_v46, 2  ;;  %v5871_v6 = vrot.slane %v5870_v30, 2  ;;  %v5878_v28 = vrot.slane %v5877_v36, 2 }
 0x225   : > { %v2750_v42 = vrot.slane %v2742_v25, %v23808_v56  ;;  %v2757_v58 = vrot.slane %v2743_v29, %v23808_v56  ;;  %v24151_v55 = vrot.slane %v2792_v20, %v23808_v56  ;;  %v24154_v48 = vrot.slane %v2793_v45, %v23808_v56  ;;  %v24167_v45 = vpop.f32.mrb[9].mxu0 }
 0x226   : > { %v5858_v49 = vmax.f32 %v5856_v52, %v5857_v57  ;;  %v5865_v27 = vmax.f32 %v5863_v46, %v5864_v1  ;;  %v5872_v3 = vmax.f32 %v5870_v30, %v5871_v6  ;;  %v5879_v59 = vmax.f32 %v5877_v36, %v5878_v28 }
 0x227   : > { %v2758_v23 = vcombine.high %v2750_v42, %v2750_v42  ;;  %v2759_v4 = vcombine.high %v2757_v58, %v2757_v58  ;;  %v2766_v39 = vrot.slane %v2750_v42, %v23808_v56  ;;  %v2773_v8 = vrot.slane %v2757_v58, %v23808_v56 }
 0x228   : > { %v5859_v38 = vrot.slane %v5858_v49, 1  ;;  %v5866_v17 = vrot.slane %v5865_v27, 1  ;;  %v5873_v41 = vrot.slane %v5872_v3, 1  ;;  %v5880_v47 = vrot.slane %v5879_v59, 1 }
 0x229   : > { %v2780_v11 = vrot.slane %v2758_v23, %v23808_v56  ;;  %v24162_v5 = vrot.slane %v2759_v4, %v23808_v56  ;;  %v2788_v52 = vcombine.high %v2766_v39, %v2766_v39  ;;  %v2789_v46 = vcombine.high %v2773_v8, %v2773_v8 }
 0x22a   : > { %v5860_v13 = vmax.f32 %v5858_v49, %v5859_v38  ;;  %v5867_v43 = vmax.f32 %v5865_v27, %v5866_v17  ;;  %v5874_v19 = vmax.f32 %v5872_v3, %v5873_v41  ;;  %v5881_v30 = vmax.f32 %v5879_v59, %v5880_v47 }
 0x22b   : > { %v2790_v36 = vcombine.high %v2780_v11, %v2780_v11  ;;  %v4702_v25 = vrot.slane %v2766_v39, %v23808_v56  ;;  %v4719_v57 = vcombine.low %v2780_v11, %v2788_v52  ;;  %v4750_v1 = vcombine.low %v2773_v8, %v24162_v5 }
 0x22c   : > { %v21306_v29 = vpack.c.bf16 %v5867_v43, %v5860_v13  ;;  %v4764_v20 = vrot.slane %v2789_v46, %v23808_v56  ;;  %v21307_v6 = vpack.c.bf16 %v5881_v30, %v5874_v19 }
 0x22d   : > { %v4703_v28 = vcombine.low %v24111_v21, %v4702_v25  ;;  %v4704_v42 = vcombine.high %v24111_v21, %v4702_v25  ;;  %v4733_v58 = vrot.slane %v2790_v36, %v23808_v56  ;;  %v4726_v3 = vrot.slane %v4719_v57, %v23808_v56 }
 0x22e   : > { %v6588_v49 = vunpack.c.l.b16 %v21306_v29  ;;  %v6589_v27 = vunpack.c.h.b16 %v21306_v29  ;;  %v4757_v59 = vrot.slane %v4750_v1, %v23808_v56  ;;  %v6590_v23 = vunpack.c.l.b16 %v21307_v6 }
 0x22f   : > { %v6591_v4 = vunpack.c.h.b16 %v21307_v6  ;;  %v4711_v38 = vrot.slane %v4703_v28, %v23808_v56  ;;  %v4718_v17 = vrot.slane %v4704_v42, %v23808_v56  ;;  %v4734_v8 = vcombine.low %v4726_v3, %v4733_v58 }
 0x230   : > { %v6711_v39 = vsel %vm6004_vm2, %v6588_v49, %v6586_v22  ;;  %v6718_v21 = vsel %vm6004_vm2, %v6589_v27, %v6587_v34  ;;  %v4735_v41 = vcombine.high %v4726_v3, %v4733_v58  ;;  %v4765_v13 = vcombine.low %v4757_v59, %v4764_v20 }
 0x231   : > { %v24183_v47 = vsel %vm6608_vm3, %v6590_v23, %v6711_v39  ;;  %v24186_v11 = vsel %vm6608_vm3, %v6591_v4, %v6718_v21  ;;  %v4766_v43 = vcombine.high %v4757_v59, %v4764_v20  ;;  %v4742_v52 = vrot.slane %v4734_v8, %v23808_v56  ;;  %v24209_v8 = vpop.f32.mrb[10].mxu0 }
 0x232   : > { %v4749_v46 = vrot.slane %v4735_v41, %v23808_v56  ;;  %v5882_v22 = vsel %vm5068_vm14, %v4711_v38, -inf  ;;  %v5889_v32 = vsel %vm5076_vm15, %v4718_v17, -inf  ;;  %v4773_v34 = vrot.slane %v4765_v13, %v23808_v56 }
 0x233   : > { %v4780_v19 = vrot.slane %v4766_v43, %v23808_v56  ;;  %v5883_v30 = vrot.slane %v5882_v22, 4  ;;  %v5890_v36 = vrot.slane %v5889_v32, 4  ;;  %v5896_v25 = vsel %vm5068_vm14, %v4742_v52, -inf }
 0x234   : > { %v5903_v29 = vsel %vm5076_vm15, %v4749_v46, -inf  ;;  %v2791_v57 = vcombine.high %v24162_v5, %v24162_v5  ;;  %v2808_v1 = vcombine.high %v24151_v55, %v24151_v55  ;;  %v5897_v28 = vrot.slane %v5896_v25, 4  ;;  %v24211_v46 = vpop.f32.mrb[11].mxu0 }
 0x235   : > { %v5884_v20 = vmax.f32 %v5882_v22, %v5883_v30  ;;  %v5891_v6 = vmax.f32 %v5889_v32, %v5890_v36  ;;  %v5904_v42 = vrot.slane %v5903_v29, 4  ;;  %v5910_v58 = vsel %vm5068_vm14, %v4773_v34, -inf }
 0x236   : > { %v5917_v49 = vsel %vm5076_vm15, %v4780_v19, -inf  ;;  %v2809_v27 = vcombine.high %v24154_v48, %v24154_v48  ;;  %v2816_v3 = vrot.slane %v24151_v55, %v23808_v56  ;;  %v5898_v5 = vmax.f32 %v5896_v25, %v5897_v28 }
 0x237   : > { %v5885_v59 = vrot.slane %v5884_v20, 2  ;;  %v5892_v23 = vrot.slane %v5891_v6, 2  ;;  %v5905_v4 = vmax.f32 %v5903_v29, %v5904_v42  ;;  %v5911_v38 = vrot.slane %v5910_v58, 4 }
 0x238   : > { %v5918_v17 = vrot.slane %v5917_v49, 4  ;;  %v2823_v39 = vrot.slane %v24154_v48, %v23808_v56  ;;  %v2830_v21 = vrot.slane %v2808_v1, %v23808_v56  ;;  %v5899_v43 = vrot.slane %v5898_v5, 2 }
 0x239   : > { %v5886_v41 = vmax.f32 %v5884_v20, %v5885_v59  ;;  %v5893_v13 = vmax.f32 %v5891_v6, %v5892_v23  ;;  %v5906_v52 = vrot.slane %v5905_v4, 2  ;;  %v5912_v55 = vmax.f32 %v5910_v58, %v5911_v38 }
 0x23a   : > { %v5919_v22 = vmax.f32 %v5917_v49, %v5918_v17  ;;  %v2837_v32 = vrot.slane %v2809_v27, %v23808_v56  ;;  %v2839_v34 = vcombine.high %v2823_v39, %v2823_v39  ;;  %v5900_v36 = vmax.f32 %v5898_v5, %v5899_v43 }
 0x23b   : > { %v5887_v19 = vrot.slane %v5886_v41, 1  ;;  %v5894_v30 = vrot.slane %v5893_v13, 1  ;;  %v5907_v25 = vmax.f32 %v5905_v4, %v5906_v52  ;;  %v5913_v48 = vrot.slane %v5912_v55, 2 }
 0x23c   : > { %v5920_v29 = vrot.slane %v5919_v22, 2  ;;  %v2841_v1 = vcombine.high %v2837_v32, %v2837_v32  ;;  %v4781_v28 = vcombine.low %v2791_v57, %v2816_v3  ;;  %v5901_v6 = vrot.slane %v5900_v36, 1 }
 0x23d   : > { %v5888_v42 = vmax.f32 %v5886_v41, %v5887_v19  ;;  %v5895_v20 = vmax.f32 %v5893_v13, %v5894_v30  ;;  %v5908_v59 = vrot.slane %v5907_v25, 1  ;;  %v5914_v23 = vmax.f32 %v5912_v55, %v5913_v48 }
 0x23e   : > { %v5921_v26 = vmax.f32 %v5919_v22, %v5920_v29  ;;  %v4788_v58 = vrot.slane %v4781_v28, %v23808_v56  ;;  %v4795_v49 = vrot.slane %v2830_v21, %v23808_v56  ;;  %v5902_v27 = vmax.f32 %v5900_v36, %v5901_v6 }
 0x23f   : > { %v5909_v38 = vmax.f32 %v5907_v25, %v5908_v59  ;;  %v21308_v17 = vpack.c.bf16 %v5895_v20, %v5888_v42  ;;  %v19218_v35 = vcombine.high %v2816_v3, %v2830_v21  ;;  %v5915_v5 = vrot.slane %v5914_v23, 1 }
 0x240   : > { %v5922_v4 = vrot.slane %v5921_v26, 1  ;;  %v4796_v43 = vcombine.low %v4788_v58, %v4795_v49  ;;  %v4797_v52 = vcombine.high %v4788_v58, %v4795_v49  ;;  %v4826_v29 = vrot.slane %v2823_v39, %v23808_v56 }
 0x241   : > { %v21309_v15 = vpack.c.bf16 %v5909_v38, %v5902_v27  ;;  %v6592_v57 = vunpack.c.l.b16 %v21308_v17  ;;  %v6593_v41 = vunpack.c.h.b16 %v21308_v17  ;;  %v4819_v13 = vrot.slane %v19218_v35, %v23808_v56 }
 0x242   : > { %v5916_v19 = vmax.f32 %v5914_v23, %v5915_v5  ;;  %v5923_v55 = vmax.f32 %v5921_v26, %v5922_v4  ;;  %v4804_v22 = vrot.slane %v4796_v43, %v23808_v56  ;;  %v4811_v30 = vrot.slane %v4797_v52, %v23808_v56 }
 0x243   : > { %v6594_v48 = vunpack.c.l.b16 %v21309_v15  ;;  %v6595_v36 = vunpack.c.h.b16 %v21309_v15  ;;  %v6713_v3 = vsel %vm6610_vm4, %v6592_v57, %v24183_v47  ;;  %v6720_v21 = vsel %vm6610_vm4, %v6593_v41, %v24186_v11 }
 0x244   : > { %v21310_v25 = vpack.c.bf16 %v5923_v55, %v5916_v19  ;;  %v4843_v28 = vcombine.low %v2837_v32, %v2839_v34  ;;  %v4857_v35 = vrot.slane %v2841_v1, %v23808_v56  ;;  %v5924_v20 = vsel %vm5068_vm14, %v4804_v22, -inf }
 0x245   : > { %v6714_v26 = vsel %vm6612_vm8, %v6594_v48, %v6713_v3  ;;  %v6721_v42 = vsel %vm6612_vm8, %v6595_v36, %v6720_v21  ;;  %v5931_v15 = vsel %vm5076_vm15, %v4811_v30, -inf  ;;  %v4827_v47 = vcombine.low %v4819_v13, %v4826_v29 }
 0x246   : > { %v6596_v6 = vunpack.c.l.b16 %v21310_v25  ;;  %v6597_v59 = vunpack.c.h.b16 %v21310_v25  ;;  %v4828_v23 = vcombine.high %v4819_v13, %v4826_v29  ;;  %v4850_v11 = vrot.slane %v4843_v28, %v23808_v56 }
 0x247   : > { %v5925_v58 = vrot.slane %v5924_v20, 4  ;;  %v5932_v49 = vrot.slane %v5931_v15, 4  ;;  %v21841_v39 = vadd.f32 %v23875_v37, %v23894_v2  ;;  %v4835_v1 = vrot.slane %v4827_v47, %v23808_v56 }
 0x248   : > { %v24233_v32 = vsel %vm6614_vm5, %v6596_v6, %v6714_v26  ;;  %v24236_v34 = vsel %vm6614_vm5, %v6597_v59, %v6721_v42  ;;  %v4842_v27 = vrot.slane %v4828_v23, %v23808_v56  ;;  %v4858_v38 = vcombine.low %v4850_v11, %v4857_v35 }
 0x249   : > { %v4859_v17 = vcombine.high %v4850_v11, %v4857_v35  ;;  %v5926_v5 = vmax.f32 %v5924_v20, %v5925_v58  ;;  %v5933_v4 = vmax.f32 %v5931_v15, %v5932_v49  ;;  %v5938_v43 = vsel %vm5068_vm14, %v4835_v1, -inf  ;;  %v6011_v11 = vld [vmem:[#allocation2 + $0x40] sm:$0x22] }
 0x24a   : > { %v5945_v52 = vsel %vm5076_vm15, %v4842_v27, -inf  ;;  %v1479_v37 = vmul.f32 %v21841_v39, %v23790_v44  ;;  %v4866_v2 = vrot.slane %v4858_v38, %v23808_v56  ;;  %v5939_v19 = vrot.slane %v5938_v43, 4 }
 0x24b   : > { %v4873_v57 = vrot.slane %v4859_v17, %v23808_v56  ;;  %v5927_v41 = vrot.slane %v5926_v5, 2  ;;  %v5934_v13 = vrot.slane %v5933_v4, 2  ;;  %v5946_v55 = vrot.slane %v5945_v52, 4 }
 0x24c   : > { %v1541_v22 = vadd.f32 %v23798_v53, %v1479_v37  ;;  %v5952_v36 = vsel %vm5068_vm14, %v4866_v2, -inf  ;;  %v5940_v21 = vmax.f32 %v5938_v43, %v5939_v19  ;;  %v29497_v39 = vmax.f32 %v24139_v0, 0.0 }
 0x24d   : > { %v5928_v30 = vmax.f32 %v5926_v5, %v5927_v41  ;;  %v5935_v48 = vmax.f32 %v5933_v4, %v5934_v13  ;;  %v5959_v3 = vsel %vm5076_vm15, %v4873_v57, -inf  ;;  %v5947_v25 = vmax.f32 %v5945_v52, %v5946_v55  ;;  %v24267_v52 = vpop.f32.mrb[12].mxu0 }
 0x24e   : > { %v5953_v29 = vrot.slane %v5952_v36, 4  ;;  %v5960_v28 = vrot.slane %v5959_v3, 4  ;;  %v1591_v20 = vmax.f32 %v1541_v22, 0.0  ;;  %v5941_v15 = vrot.slane %v5940_v21, 2 }
 0x24f   : > { %v5929_v26 = vrot.slane %v5928_v30, 1  ;;  %v5936_v42 = vrot.slane %v5935_v48, 1  ;;  %v5948_v6 = vrot.slane %v5947_v25, 2  ;;  %v29498_v27 = vmov %v29497_v39 }
 0x250   : > { %v5954_v59 = vmax.f32 %v5952_v36, %v5953_v29  ;;  %v5961_v47 = vmax.f32 %v5959_v3, %v5960_v28  ;;  %v2842_v1 = vcombine.low %v29497_v39, %v1591_v20  ;;  %v2843_v38 = vcombine.high %v29498_v27, %v1591_v20 }
 0x251   : > { %v5930_v58 = vmax.f32 %v5928_v30, %v5929_v26  ;;  %v5937_v49 = vmax.f32 %v5935_v48, %v5936_v42  ;;  %v5942_v17 = vmax.f32 %v5940_v21, %v5941_v15  ;;  %v5949_v5 = vmax.f32 %v5947_v25, %v5948_v6 }
 0x252   : > { %v5955_v4 = vrot.slane %v5954_v59, 2  ;;  %v5962_v43 = vrot.slane %v5961_v47, 2  ;;  %v2850_v2 = vrot.slane %v2842_v1, %v23808_v56  ;;  %v2857_v57 = vrot.slane %v2843_v38, %v23808_v56  ;;  %v24285_v1 = vpop.f32.mrb[13].mxu0 }
 0x253   : > { %v21311_v37 = vpack.c.bf16 %v5937_v49, %v5930_v58  ;;  %v6012_v41 = vsel %vm6010_vm0, 0, %v6011_v11  ;;  %v5943_v13 = vrot.slane %v5942_v17, 1  ;;  %v5950_v0 = vrot.slane %v5949_v5, 1  ;;  %vm24355_vm0 = vmand %vm6770_vm13, %vm6771_vm9 }
 0x254   : > { %v5956_v19 = vmax.f32 %v5954_v59, %v5955_v4  ;;  %v5963_v55 = vmax.f32 %v5961_v47, %v5962_v43  ;;  %6013 = vst [vmem:[#allocation2 + $0x40] sm:$0x22] %v6012_v41  ;;  %v2858_v48 = vcombine.high %v2850_v2, %v2850_v2  ;;  %v2859_v36 = vcombine.high %v2857_v57, %v2857_v57  ;;  %vm6773_vm1 = vmor %vm24355_vm0, %vm24349_vm10 }
 0x255   : > { %v6598_v22 = vunpack.c.l.b16 %v21311_v37  ;;  %v6599_v30 = vunpack.c.h.b16 %v21311_v37  ;;  %v5944_v3 = vmax.f32 %v5942_v17, %v5943_v13  ;;  %v5951_v21 = vmax.f32 %v5949_v5, %v5950_v0 }
 0x256   : > { %v5957_v25 = vrot.slane %v5956_v19, 1  ;;  %v5964_v29 = vrot.slane %v5963_v55, 1  ;;  %v2866_v26 = vrot.slane %v2850_v2, %v23808_v56  ;;  %v2873_v42 = vrot.slane %v2857_v57, %v23808_v56 }
 0x257   : > { %v6716_v28 = vsel %vm6616_vm6, %v6598_v22, %v24233_v32  ;;  %v6723_v35 = vsel %vm6616_vm6, %v6599_v30, %v24236_v34  ;;  %v21312_v6 = vpack.c.bf16 %v5951_v21, %v5944_v3  ;;  %v2880_v59 = vrot.slane %v2858_v48, %v23808_v56 }
 0x258   : > { %v5958_v20 = vmax.f32 %v5956_v19, %v5957_v25  ;;  %v5965_v15 = vmax.f32 %v5963_v55, %v5964_v29  ;;  %v2887_v47 = vrot.slane %v2859_v36, %v23808_v56  ;;  %v2888_v23 = vcombine.high %v2866_v26, %v2866_v26 }
 0x259   : > { %v1430_v11 = vmul.f32 %v23785_v40, %v23926_v63  ;;  %v1431_v32 = vmul.f32 %v23790_v44, %v23960_v16  ;;  %v6600_v34 = vunpack.c.l.b16 %v21312_v6  ;;  %v6601_v49 = vunpack.c.h.b16 %v21312_v6 }
 0x25a   : > { %v24283_v58 = vpack.c.bf16 %v5965_v15, %v5958_v20  ;;  %v2889_v39 = vcombine.high %v2880_v59, %v2880_v59  ;;  %v4874_v27 = vcombine.low %v2866_v26, %v2880_v59  ;;  %v4888_v38 = vrot.slane %v2888_v23, %v23808_v56 }
 0x25b   : > { %v4919_v17 = vrot.slane %v2887_v47, %v23808_v56  ;;  %v1492_v5 = vadd.f32 %v23795_v50, %v1430_v11  ;;  %v6717_v16 = vsel %vm6618_vm7, %v6600_v34, %v6716_v28  ;;  %v6724_v43 = vsel %vm6618_vm7, %v6601_v49, %v6723_v35 }
 0x25c   : > { %v6602_v4 = vunpack.c.l.b16 %v24283_v58  ;;  %v6603_v63 = vunpack.c.h.b16 %v24283_v58  ;;  %v6736_v37 = vpack.c.b16 %v6724_v43, %v6717_v16  ;;  %v4881_v2 = vrot.slane %v4874_v27, %v23808_v56 }
 0x25d   : > { %v4905_v57 = vcombine.low %v2889_v39, %v2873_v42  ;;  %v1542_v41 = vmax.f32 %v1492_v5, 0.0  ;;  %v1493_v13 = vadd.f32 %v23798_v53, %v1431_v32  ;;  %v1432_v0 = vmul.f32 %v23785_v40, %v23980_v62 }
 0x25e   : > { %v1433_v19 = vmul.f32 %v23790_v44, %v23984_v31  ;;  %v1434_v55 = vmul.f32 %v23785_v40, %v24031_v54  ;;  %6766 = vst.msk [vmem:[#allocation2 + $0x38] sm:$0xff] %vm24101_vm12, %v6736_v37  ;;  %v4889_v22 = vcombine.low %v4881_v2, %v4888_v38  ;;  %v4890_v30 = vcombine.high %v4881_v2, %v4888_v38  ;;  %v24324_v38 = vpop.f32.mrb[14].mxu0 }
 0x25f   : > { %v4912_v48 = vrot.slane %v4905_v57, %v23808_v56  ;;  %v24307_v36 = vmul.f32 %v23790_v44, %v24065_v7  ;;  %v1543_v3 = vmax.f32 %v1493_v13, 0.0  ;;  %v1494_v62 = vadd.f32 %v23795_v50, %v1432_v0  ;;  %v24326_v37 = vpop.f32.mrb[15].mxu0 }
 0x260   : > { %v1495_v21 = vadd.f32 %v23798_v53, %v1433_v19  ;;  %v24312_v31 = vadd.f32 %v23795_v50, %v1434_v55  ;;  %v4897_v54 = vrot.slane %v4889_v22, %v23808_v56  ;;  %v4904_v25 = vrot.slane %v4890_v30, %v23808_v56 }
 0x261   : > { %v4920_v29 = vcombine.low %v4912_v48, %v4919_v17  ;;  %v4921_v28 = vcombine.high %v4912_v48, %v4919_v17  ;;  %v1642_v35 = vcombine.low %v1542_v41, %v1543_v3  ;;  %v1643_v26 = vcombine.high %v1542_v41, %v1543_v3 }
 0x262   : > { %v1544_v42 = vmax.f32 %v1494_v62, 0.0  ;;  %v1545_v20 = vmax.f32 %v1495_v21, 0.0  ;;  %v5966_v6 = vsel %vm5068_vm14, %v4897_v54, -inf  ;;  %v5973_v59 = vsel %vm5076_vm15, %v4904_v25, -inf }
 0x263   : > { %v4928_v7 = vrot.slane %v4920_v29, %v23808_v56  ;;  %v4935_v15 = vrot.slane %v4921_v28, %v23808_v56  ;;  %v5967_v47 = vrot.slane %v5966_v6, 4  ;;  %v5974_v23 = vrot.slane %v5973_v59, 4 }
 0x264   : > { %v1650_v11 = vrot.slane %v1642_v35, %v23808_v56  ;;  %v1657_v32 = vrot.slane %v1643_v26, %v23808_v56  ;;  %v1692_v39 = vcombine.low %v1544_v42, %v1545_v20  ;;  %v1693_v27 = vcombine.high %v1544_v42, %v1545_v20 }
 0x265   : > { %v5980_v34 = vsel %vm5068_vm14, %v4928_v7, -inf  ;;  %v5987_v49 = vsel %vm5076_vm15, %v4935_v15, -inf  ;;  %v5968_v17 = vmax.f32 %v5966_v6, %v5967_v47  ;;  %v5975_v5 = vmax.f32 %v5973_v59, %v5974_v23 }
 0x266   : > { %v5981_v16 = vrot.slane %v5980_v34, 4  ;;  %v5988_v43 = vrot.slane %v5987_v49, 4  ;;  %v1658_v2 = vcombine.high %v1650_v11, %v1650_v11  ;;  %v1659_v57 = vcombine.high %v1657_v32, %v1657_v32 }
 0x267   : > { %v1666_v41 = vrot.slane %v1650_v11, %v23808_v56  ;;  %v1673_v13 = vrot.slane %v1657_v32, %v23808_v56  ;;  %v5969_v0 = vrot.slane %v5968_v17, 2  ;;  %v5976_v19 = vrot.slane %v5975_v5, 2 }
 0x268   : > { %v5982_v55 = vmax.f32 %v5980_v34, %v5981_v16  ;;  %v5989_v22 = vmax.f32 %v5987_v49, %v5988_v43  ;;  %v1680_v30 = vrot.slane %v1658_v2, %v23808_v56  ;;  %v1687_v48 = vrot.slane %v1659_v57, %v23808_v56 }
 0x269   : > { %v1688_v3 = vcombine.high %v1666_v41, %v1666_v41  ;;  %v24333_v62 = vrot.slane %v1692_v39, %v23808_v56  ;;  %v5970_v21 = vmax.f32 %v5968_v17, %v5969_v0  ;;  %v5977_v54 = vmax.f32 %v5975_v5, %v5976_v19 }
 0x26a   : > { %v5983_v25 = vrot.slane %v5982_v55, 2  ;;  %v5990_v29 = vrot.slane %v5989_v22, 2  ;;  %v1690_v28 = vcombine.high %v1680_v30, %v1680_v30  ;;  %v2890_v35 = vcombine.low %v1666_v41, %v1680_v30 }
 0x26b   : > { %v2904_v26 = vrot.slane %v1688_v3, %v23808_v56  ;;  %v2935_v42 = vrot.slane %v1687_v48, %v23808_v56  ;;  %v5971_v20 = vrot.slane %v5970_v21, 1  ;;  %v5978_v7 = vrot.slane %v5977_v54, 1 }
 0x26c   : > { %v5984_v15 = vmax.f32 %v5982_v55, %v5983_v25  ;;  %v5991_v6 = vmax.f32 %v5989_v22, %v5990_v29  ;;  %v2897_v59 = vrot.slane %v2890_v35, %v23808_v56  ;;  %v2921_v47 = vcombine.low %v1690_v28, %v1673_v13 }
 0x26d   : > { %v19203_v23 = vcombine.high %v1673_v13, %v1687_v48  ;;  %v1707_v11 = vrot.slane %v1693_v27, %v23808_v56  ;;  %v5972_v32 = vmax.f32 %v5970_v21, %v5971_v20  ;;  %v5979_v34 = vmax.f32 %v5977_v54, %v5978_v7 }
 0x26e   : > { %v5985_v49 = vrot.slane %v5984_v15, 1  ;;  %v5992_v39 = vrot.slane %v5991_v6, 1  ;;  %v2905_v17 = vcombine.low %v2897_v59, %v2904_v26  ;;  %v2906_v5 = vcombine.high %v2897_v59, %v2904_v26 }
 0x26f   : > { %v2928_v16 = vrot.slane %v2921_v47, %v23808_v56  ;;  %v24341_v43 = vrot.slane %v19203_v23, %v23808_v56  ;;  %v21314_v41 = vpack.c.bf16 %v5979_v34, %v5972_v32  ;;  %v1708_v0 = vcombine.high %v24333_v62, %v24333_v62 }
 0x270   : > { %v5986_v2 = vmax.f32 %v5984_v15, %v5985_v49  ;;  %v5993_v57 = vmax.f32 %v5991_v6, %v5992_v39  ;;  %v2913_v13 = vrot.slane %v2905_v17, %v23808_v56  ;;  %v2920_v27 = vrot.slane %v2906_v5, %v23808_v56 }
 0x271   : > { %v2936_v19 = vcombine.low %v2928_v16, %v2935_v42  ;;  %v2937_v55 = vcombine.high %v2928_v16, %v2935_v42  ;;  %v6604_v48 = vunpack.c.l.b16 %v21314_v41  ;;  %v6605_v3 = vunpack.c.h.b16 %v21314_v41 }
 0x272   : > { %v21315_v30 = vpack.c.bf16 %v5993_v57, %v5986_v2  ;;  %v1709_v21 = vcombine.high %v1707_v11, %v1707_v11  ;;  %v5069_v28 = vsel %vm5068_vm14, %v2913_v13, -inf  ;;  %v5077_v35 = vsel %vm5076_vm15, %v2920_v27, -inf }
 0x273   : > { %v2944_v25 = vrot.slane %v2936_v19, %v23808_v56  ;;  %v2951_v29 = vrot.slane %v2937_v55, %v23808_v56  ;;  %v6725_v20 = vsel %vm6004_vm2, %v6604_v48, %v6602_v4  ;;  %v6727_v7 = vsel %vm6004_vm2, %v6605_v3, %v6603_v63  ;;  %v6774_v4 = vld [vmem:[#allocation2 + $0x40] sm:$0x33] }
 0x274   : > { %v6606_v26 = vunpack.c.l.b16 %v21315_v30  ;;  %v6607_v42 = vunpack.c.h.b16 %v21315_v30  ;;  %v5070_v15 = vrot.slane %v5069_v28, 4  ;;  %v5078_v6 = vrot.slane %v5077_v35, 4 }
 0x275   : > { %v5084_v59 = vsel %vm5068_vm14, %v2944_v25, -inf  ;;  %v5091_v47 = vsel %vm5076_vm15, %v2951_v29, -inf  ;;  %v1716_v17 = vrot.slane %v24333_v62, %v23808_v56  ;;  %v1723_v2 = vrot.slane %v1707_v11, %v23808_v56 }
 0x276   : > { %v6726_v23 = vsel %vm6608_vm3, %v6606_v26, %v6725_v20  ;;  %v6728_v32 = vsel %vm6608_vm3, %v6607_v42, %v6727_v7  ;;  %v5085_v34 = vrot.slane %v5084_v59, 4  ;;  %v5092_v58 = vrot.slane %v5091_v47, 4 }
 0x277   : > { %v6737_v49 = vpack.c.b16 %v6728_v32, %v6726_v23  ;;  %v5071_v63 = vmax.f32 %v5069_v28, %v5070_v15  ;;  %v5079_v39 = vmax.f32 %v5077_v35, %v5078_v6  ;;  %v1730_v57 = vrot.slane %v1708_v0, %v23808_v56  ;;  %v24386_v35 = vpop.f32.mrb[16].mxu0 }
 0x278   : > { %v5086_v5 = vmax.f32 %v5084_v59, %v5085_v34  ;;  %v5093_v16 = vmax.f32 %v5091_v47, %v5092_v58  ;;  %v24382_v19 = vrot.slane %v1709_v21, %v23808_v56  ;;  %v1738_v30 = vcombine.high %v1716_v17, %v1716_v17  ;;  %v24390_v7 = vpop.f32.mrb[17].mxu0 }
 0x279   : > { %v6775_v41 = vsel %vm6773_vm1, %v6737_v49, %v6774_v4  ;;  %v5072_v13 = vrot.slane %v5071_v63, 2  ;;  %v5080_v27 = vrot.slane %v5079_v39, 2  ;;  %v1739_v48 = vcombine.high %v1723_v2, %v1723_v2 }
 0x27a   : > { %6776 = vst [vmem:[#allocation2 + $0x40] sm:$0x33] %v6775_v41  ;;  %v5087_v55 = vrot.slane %v5086_v5, 2  ;;  %v5094_v22 = vrot.slane %v5093_v16, 2  ;;  %v1740_v62 = vcombine.high %v1730_v57, %v1730_v57  ;;  %v2966_v25 = vrot.slane %v1716_v17, %v23808_v56 }
 0x27b   : > { %v5073_v3 = vmax.f32 %v5071_v63, %v5072_v13  ;;  %v5081_v54 = vmax.f32 %v5079_v39, %v5080_v27  ;;  %v2983_v28 = vcombine.low %v1730_v57, %v1738_v30  ;;  %v3014_v0 = vcombine.low %v1723_v2, %v24382_v19 }
 0x27c   : > { %v5088_v29 = vmax.f32 %v5086_v5, %v5087_v55  ;;  %v5095_v11 = vmax.f32 %v5093_v16, %v5094_v22  ;;  %v2967_v42 = vcombine.low %v24341_v43, %v2966_v25  ;;  %v2968_v20 = vcombine.high %v24341_v43, %v2966_v25 }
 0x27d   : > { %v5074_v26 = vrot.slane %v5073_v3, 1  ;;  %v5082_v21 = vrot.slane %v5081_v54, 1  ;;  %v2990_v59 = vrot.slane %v2983_v28, %v23808_v56  ;;  %v2997_v47 = vrot.slane %v1740_v62, %v23808_v56 }
 0x27e   : > { %v5089_v15 = vrot.slane %v5088_v29, 1  ;;  %v5096_v6 = vrot.slane %v5095_v11, 1  ;;  %v2975_v4 = vrot.slane %v2967_v42, %v23808_v56  ;;  %v2982_v34 = vrot.slane %v2968_v20, %v23808_v56 }
 0x27f   : > { %v5075_v23 = vmax.f32 %v5073_v3, %v5074_v26  ;;  %v5083_v32 = vmax.f32 %v5081_v54, %v5082_v21  ;;  %v2998_v63 = vcombine.low %v2990_v59, %v2997_v47  ;;  %v2999_v39 = vcombine.high %v2990_v59, %v2997_v47 }
 0x280   : > { %v5090_v58 = vmax.f32 %v5088_v29, %v5089_v15  ;;  %v5097_v49 = vmax.f32 %v5095_v11, %v5096_v6  ;;  %v3021_v43 = vrot.slane %v3014_v0, %v23808_v56  ;;  %v3028_v5 = vrot.slane %v1739_v48, %v23808_v56 }
 0x281   : > { %v21250_v17 = vpack.c.bf16 %v5083_v32, %v5075_v23  ;;  %v5098_v16 = vsel %vm5068_vm14, %v2975_v4, -inf  ;;  %v3006_v57 = vrot.slane %v2998_v63, %v23808_v56  ;;  %v3013_v41 = vrot.slane %v2999_v39, %v23808_v56 }
 0x282   : > { %v21251_v2 = vpack.c.bf16 %v5097_v49, %v5090_v58  ;;  %v5099_v13 = vrot.slane %v5098_v16, 4  ;;  %v3029_v22 = vcombine.low %v3021_v43, %v3028_v5  ;;  %v3030_v30 = vcombine.high %v3021_v43, %v3028_v5 }
 0x283   : > { %v6476_v27 = vunpack.c.l.b16 %v21250_v17  ;;  %v6477_v55 = vunpack.c.h.b16 %v21250_v17  ;;  %v5105_v25 = vsel %vm5076_vm15, %v2982_v34, -inf  ;;  %v5112_v28 = vsel %vm5068_vm14, %v3006_v57, -inf }
 0x284   : > { %v6478_v3 = vunpack.c.l.b16 %v21251_v2  ;;  %v6479_v54 = vunpack.c.h.b16 %v21251_v2  ;;  %v5100_v62 = vmax.f32 %v5098_v16, %v5099_v13  ;;  %v3037_v29 = vrot.slane %v3029_v22, %v23808_v56 }
 0x285   : > { %v3044_v48 = vrot.slane %v3030_v30, %v23808_v56  ;;  %v5106_v11 = vrot.slane %v5105_v25, 4  ;;  %v5113_v42 = vrot.slane %v5112_v28, 4  ;;  %v5119_v15 = vsel %vm5076_vm15, %v3013_v41, -inf }
 0x286   : > { %v24406_v0 = vsel %vm6608_vm3, %v6478_v3, %v6476_v27  ;;  %v24409_v26 = vsel %vm6608_vm3, %v6479_v54, %v6477_v55  ;;  %v5101_v21 = vrot.slane %v5100_v62, 2  ;;  %v5126_v6 = vsel %vm5068_vm14, %v3037_v29, -inf }
 0x287   : > { %v5107_v20 = vmax.f32 %v5105_v25, %v5106_v11  ;;  %v5133_v59 = vsel %vm5076_vm15, %v3044_v48, -inf  ;;  %v5114_v23 = vmax.f32 %v5112_v28, %v5113_v42  ;;  %v5120_v32 = vrot.slane %v5119_v15, 4 }
 0x288   : > { %v5102_v47 = vmax.f32 %v5100_v62, %v5101_v21  ;;  %v5127_v4 = vrot.slane %v5126_v6, 4  ;;  %v5134_v58 = vrot.slane %v5133_v59, 4  ;;  %v1546_v49 = vmax.f32 %v24312_v31, 0.0 }
 0x289   : > { %v5108_v34 = vrot.slane %v5107_v20, 2  ;;  %v1497_v63 = vadd.f32 %v23798_v53, %v24307_v36  ;;  %v5115_v17 = vrot.slane %v5114_v23, 2  ;;  %v5121_v43 = vmax.f32 %v5119_v15, %v5120_v32 }
 0x28a   : > { %v5103_v39 = vrot.slane %v5102_v47, 1  ;;  %v5128_v5 = vmax.f32 %v5126_v6, %v5127_v4  ;;  %v29503_v16 = vrot.slane %v23886_v14, 2  ;;  %v5135_v41 = vmax.f32 %v5133_v59, %v5134_v58 }
 0x28b   : > { %v5109_v57 = vmax.f32 %v5107_v20, %v5108_v34  ;;  %v1547_v13 = vmax.f32 %v1497_v63, 0.0  ;;  %v5116_v55 = vmax.f32 %v5114_v23, %v5115_v17  ;;  %v5122_v22 = vrot.slane %v5121_v43, 2 }
 0x28c   : > { %v24420_v2 = vmax.f32 %v23886_v14, %v29503_v16  ;;  %v5104_v27 = vmax.f32 %v5102_v47, %v5103_v39  ;;  %v5129_v30 = vrot.slane %v5128_v5, 2  ;;  %v5136_v3 = vrot.slane %v5135_v41, 2  ;;  %v24431_v47 = vpop.f32.mrb[18].mxu0 }
 0x28d   : > { %v5110_v31 = vrot.slane %v5109_v57, 1  ;;  %v1742_v54 = vcombine.low %v1546_v49, %v1547_v13  ;;  %v1743_v36 = vcombine.high %v1546_v49, %v1547_v13  ;;  %v29504_v62 = vrot.slane %v23906_v33, 2 }
 0x28e   : > { %v5117_v29 = vrot.slane %v5116_v55, 1  ;;  %v5123_v48 = vmax.f32 %v5121_v43, %v5122_v22  ;;  %v5130_v14 = vmax.f32 %v5128_v5, %v5129_v30  ;;  %v5137_v28 = vmax.f32 %v5135_v41, %v5136_v3 }
 0x28f   : > { %v24425_v25 = vmax.f32 %v23906_v33, %v29504_v62  ;;  %v5111_v11 = vmax.f32 %v5109_v57, %v5110_v31  ;;  %v1750_v21 = vrot.slane %v1742_v54, %v23808_v56  ;;  %v1757_v42 = vrot.slane %v1743_v36, %v23808_v56 }
 0x290   : > { %v5118_v20 = vmax.f32 %v5116_v55, %v5117_v29  ;;  %v5124_v15 = vrot.slane %v5123_v48, 1  ;;  %v5131_v6 = vrot.slane %v5130_v14, 1  ;;  %v1741_v59 = vcombine.high %v24382_v19, %v24382_v19 }
 0x291   : > { %v5138_v23 = vrot.slane %v5137_v28, 1  ;;  %v21252_v33 = vpack.c.bf16 %v5111_v11, %v5104_v27  ;;  %v1758_v32 = vcombine.high %v1750_v21, %v1750_v21  ;;  %v1759_v4 = vcombine.high %v1757_v42, %v1757_v42 }
 0x292   : > { %v5125_v34 = vmax.f32 %v5123_v48, %v5124_v15  ;;  %v5132_v58 = vmax.f32 %v5130_v14, %v5131_v6  ;;  %v1766_v49 = vrot.slane %v1750_v21, %v23808_v56  ;;  %v1773_v63 = vrot.slane %v1757_v42, %v23808_v56 }
 0x293   : > { %v5139_v39 = vmax.f32 %v5137_v28, %v5138_v23  ;;  %v6480_v17 = vunpack.c.l.b16 %v21252_v33  ;;  %v6481_v43 = vunpack.c.h.b16 %v21252_v33  ;;  %v1780_v5 = vrot.slane %v1758_v32, %v23808_v56 }
 0x294   : > { %v21253_v16 = vpack.c.bf16 %v5125_v34, %v5118_v20  ;;  %v1787_v19 = vrot.slane %v1759_v4, %v23808_v56  ;;  %v1789_v57 = vcombine.high %v1773_v63, %v1773_v63  ;;  %v3045_v41 = vcombine.low %v1741_v59, %v1766_v49 }
 0x295   : > { %v21254_v13 = vpack.c.bf16 %v5139_v39, %v5132_v58  ;;  %v6611_v27 = vsel %vm6610_vm4, %v6480_v17, %v24406_v0  ;;  %v6621_v55 = vsel %vm6610_vm4, %v6481_v43, %v24409_v26  ;;  %v3059_v22 = vrot.slane %v1780_v5, %v23808_v56 }
 0x296   : > { %v6482_v30 = vunpack.c.l.b16 %v21253_v16  ;;  %v6483_v31 = vunpack.c.h.b16 %v21253_v16  ;;  %v1791_v3 = vcombine.high %v1787_v19, %v1787_v19  ;;  %v3052_v54 = vrot.slane %v3045_v41, %v23808_v56 }
 0x297   : > { %v6484_v36 = vunpack.c.l.b16 %v21254_v13  ;;  %v6485_v62 = vunpack.c.h.b16 %v21254_v13  ;;  %v19204_v29 = vcombine.high %v1766_v49, %v1780_v5  ;;  %v3090_v48 = vrot.slane %v1773_v63, %v23808_v56 }
 0x298   : > { %v6613_v14 = vsel %vm6612_vm8, %v6482_v30, %v6611_v27  ;;  %v6622_v11 = vsel %vm6612_vm8, %v6483_v31, %v6621_v55  ;;  %v3060_v0 = vcombine.low %v3052_v54, %v3059_v22  ;;  %v3061_v28 = vcombine.high %v3052_v54, %v3059_v22 }
 0x299   : > { %v24447_v26 = vsel %vm6614_vm5, %v6484_v36, %v6613_v14  ;;  %v24450_v21 = vsel %vm6614_vm5, %v6485_v62, %v6622_v11  ;;  %v3083_v42 = vrot.slane %v19204_v29, %v23808_v56  ;;  %v3107_v20 = vcombine.low %v1787_v19, %v1789_v57  ;;  %v24478_v29 = vpop.f32.mrb[19].mxu0 }
 0x29a   : > { %v3068_v15 = vrot.slane %v3060_v0, %v23808_v56  ;;  %v3075_v6 = vrot.slane %v3061_v28, %v23808_v56  ;;  %v3121_v59 = vrot.slane %v1791_v3, %v23808_v56  ;;  %v1436_v23 = vmul.f32 %v23785_v40, %v24081_v10 }
 0x29b   : > { %v3091_v33 = vcombine.low %v3083_v42, %v3090_v48  ;;  %v3092_v32 = vcombine.high %v3083_v42, %v3090_v48  ;;  %v3114_v4 = vrot.slane %v3107_v20, %v23808_v56  ;;  %v1437_v34 = vmul.f32 %v23790_v44, %v24117_v24 }
 0x29c   : > { %v5140_v58 = vsel %vm5068_vm14, %v3068_v15, -inf  ;;  %v5147_v49 = vsel %vm5076_vm15, %v3075_v6, -inf  ;;  %v1498_v63 = vadd.f32 %v23795_v50, %v1436_v23  ;;  %v1438_v39 = vmul.f32 %v23785_v40, %v24156_v18 }
 0x29d   : > { %v3099_v17 = vrot.slane %v3091_v33, %v23808_v56  ;;  %v3106_v10 = vrot.slane %v3092_v32, %v23808_v56  ;;  %v3122_v43 = vcombine.low %v3114_v4, %v3121_v59  ;;  %v3123_v5 = vcombine.high %v3114_v4, %v3121_v59 }
 0x29e   : > { %v5141_v16 = vrot.slane %v5140_v58, 4  ;;  %v5148_v19 = vrot.slane %v5147_v49, 4  ;;  %v1548_v57 = vmax.f32 %v1498_v63, 0.0  ;;  %v1499_v24 = vadd.f32 %v23798_v53, %v1437_v34 }
 0x29f   : > { %v3130_v41 = vrot.slane %v3122_v43, %v23808_v56  ;;  %v3137_v13 = vrot.slane %v3123_v5, %v23808_v56  ;;  %v5154_v27 = vsel %vm5068_vm14, %v3099_v17, -inf  ;;  %v5161_v55 = vsel %vm5076_vm15, %v3106_v10, -inf }
 0x2a0   : > { %v5142_v18 = vmax.f32 %v5140_v58, %v5141_v16  ;;  %v5149_v22 = vmax.f32 %v5147_v49, %v5148_v19  ;;  %v5155_v30 = vrot.slane %v5154_v27, 4  ;;  %v5162_v31 = vrot.slane %v5161_v55, 4 }
 0x2a1   : > { %v5168_v3 = vsel %vm5068_vm14, %v3130_v41, -inf  ;;  %v5175_v54 = vsel %vm5076_vm15, %v3137_v13, -inf  ;;  %v1549_v36 = vmax.f32 %v1499_v24, 0.0  ;;  %v24476_v62 = vadd.f32 %v23795_v50, %v1438_v39 }
 0x2a2   : > { %v5143_v48 = vrot.slane %v5142_v18, 2  ;;  %v5150_v14 = vrot.slane %v5149_v22, 2  ;;  %v5156_v11 = vmax.f32 %v5154_v27, %v5155_v30  ;;  %v5163_v0 = vmax.f32 %v5161_v55, %v5162_v31 }
 0x2a3   : > { %vm6751_vm13 = vsmask.f32 7954  ;;  %v5169_v28 = vrot.slane %v5168_v3, 4  ;;  %v5176_v42 = vrot.slane %v5175_v54, 4  ;;  %v1792_v20 = vcombine.low %v1548_v57, %v1549_v36 }
 0x2a4   : > { %v1793_v15 = vcombine.high %v1548_v57, %v1549_v36  ;;  %v5144_v6 = vmax.f32 %v5142_v18, %v5143_v48  ;;  %v5151_v59 = vmax.f32 %v5149_v22, %v5150_v14  ;;  %v5157_v23 = vrot.slane %v5156_v11, 2  ;;  %v24484_v22 = vpop.f32.mrb[20].mxu0 }
 0x2a5   : > { %v5164_v33 = vrot.slane %v5163_v0, 2  ;;  %v5170_v32 = vmax.f32 %v5168_v3, %v5169_v28  ;;  %v5177_v4 = vmax.f32 %v5175_v54, %v5176_v42  ;;  %v1800_v34 = vrot.slane %v1792_v20, %v23808_v56 }
 0x2a6   : > { %v1807_v58 = vrot.slane %v1793_v15, %v23808_v56  ;;  %v5145_v49 = vrot.slane %v5144_v6, 1  ;;  %v5152_v63 = vrot.slane %v5151_v59, 1  ;;  %v5158_v39 = vmax.f32 %v5156_v11, %v5157_v23 }
 0x2a7   : > { %v5165_v17 = vmax.f32 %v5163_v0, %v5164_v33  ;;  %v5171_v10 = vrot.slane %v5170_v32, 2  ;;  %v5178_v43 = vrot.slane %v5177_v4, 2  ;;  %v1808_v5 = vcombine.high %v1800_v34, %v1800_v34 }
 0x2a8   : > { %v1809_v16 = vcombine.high %v1807_v58, %v1807_v58  ;;  %v5146_v19 = vmax.f32 %v5144_v6, %v5145_v49  ;;  %v5153_v57 = vmax.f32 %v5151_v59, %v5152_v63  ;;  %v5159_v24 = vrot.slane %v5158_v39, 1 }
 0x2a9   : > { %v5166_v41 = vrot.slane %v5165_v17, 1  ;;  %v5172_v13 = vmax.f32 %v5170_v32, %v5171_v10  ;;  %v5179_v27 = vmax.f32 %v5177_v4, %v5178_v43  ;;  %v1816_v55 = vrot.slane %v1800_v34, %v23808_v56 }
 0x2aa   : > { %v1823_v18 = vrot.slane %v1807_v58, %v23808_v56  ;;  %v5160_v30 = vmax.f32 %v5158_v39, %v5159_v24  ;;  %v21255_v3 = vpack.c.bf16 %v5153_v57, %v5146_v19  ;;  %v1830_v54 = vrot.slane %v1808_v5, %v23808_v56 }
 0x2ab   : > { %v5167_v31 = vmax.f32 %v5165_v17, %v5166_v41  ;;  %v5173_v36 = vrot.slane %v5172_v13, 1  ;;  %v5180_v48 = vrot.slane %v5179_v27, 1  ;;  %v1837_v14 = vrot.slane %v1809_v16, %v23808_v56 }
 0x2ac   : > { %v1838_v11 = vcombine.high %v1816_v55, %v1816_v55  ;;  %v6486_v28 = vunpack.c.l.b16 %v21255_v3  ;;  %v6487_v42 = vunpack.c.h.b16 %v21255_v3  ;;  %vm29505_vm9 = vcmask 1043456  }
 0x2ad   : > { %v21256_v0 = vpack.c.bf16 %v5167_v31, %v5160_v30  ;;  %vm24490_vm10 = vmand %vm29505_vm9, %vm6748_vm11  ;;  %v1840_v15 = vcombine.high %v1830_v54, %v1830_v54  ;;  %v5174_v6 = vmax.f32 %v5172_v13, %v5173_v36  ;;  %v5181_v59 = vmax.f32 %v5179_v27, %v5180_v48 }
 0x2ae   : > { %vm29508_vm0 = vcmask 523268   ;;  %v3138_v33 = vcombine.low %v1816_v55, %v1830_v54  ;;  %v3152_v32 = vrot.slane %v1838_v11, %v23808_v56  ;;  %v6617_v58 = vsel %vm6616_vm6, %v6486_v28, %v24447_v26  ;;  %v6754_v26 = vld [vmem:[#allocation2] sm:$0xff]  ;;  %v24529_v54 = vpop.f32.mrb[21].mxu0 }
 0x2af   : > { %vm24496_vm1 = vmand %vm29508_vm0, %vm6751_vm13  ;;  %v6488_v4 = vunpack.c.l.b16 %v21256_v0  ;;  %v6489_v34 = vunpack.c.h.b16 %v21256_v0  ;;  %v6624_v49 = vsel %vm6616_vm6, %v6487_v42, %v24450_v21  ;;  %v24505_v63 = vpack.c.bf16 %v5181_v59, %v5174_v6 }
 0x2b0   : > { %v3145_v39 = vrot.slane %v3138_v33, %v23808_v56  ;;  %v3169_v17 = vcombine.low %v1840_v15, %v1823_v18  ;;  %v3183_v10 = vrot.slane %v1837_v14, %v23808_v56  ;;  %vm6753_vm11 = vmor %vm24496_vm1, %vm24490_vm10  ;;  %v19205_v16 = vcombine.high %v1823_v18, %v1837_v14 }
 0x2b1   : > { %v6619_v43 = vsel %vm6618_vm7, %v6488_v4, %v6617_v58  ;;  %v6625_v5 = vsel %vm6618_vm7, %v6489_v34, %v6624_v49  ;;  %v1550_v21 = vmax.f32 %v24476_v62, 0.0  ;;  %v6490_v19 = vunpack.c.l.b16 %v24505_v63 }
 0x2b2   : > { %v6491_v57 = vunpack.c.h.b16 %v24505_v63  ;;  %v6729_v24 = vpack.c.b16 %v6625_v5, %v6619_v43  ;;  %v3153_v41 = vcombine.low %v3145_v39, %v3152_v32  ;;  %v3154_v13 = vcombine.high %v3145_v39, %v3152_v32 }
 0x2b3   : > { %v3176_v27 = vrot.slane %v3169_v17, %v23808_v56  ;;  %v24520_v55 = vrot.slane %v19205_v16, %v23808_v56  ;;  %v1439_v30 = vmul.f32 %v23790_v44, %v24167_v45  ;;  %v1440_v62 = vmul.f32 %v23785_v40, %v24209_v8 }
 0x2b4   : > { %v6755_v31 = vsel %vm6753_vm11, %v6729_v24, %v6754_v26  ;;  %v3161_v18 = vrot.slane %v3153_v41, %v23808_v56  ;;  %v1441_v3 = vmul.f32 %v23790_v44, %v24211_v46  ;;  %v3168_v36 = vrot.slane %v3154_v13, %v23808_v56  ;;  %v24546_v24 = vpop.f32.mrb[22].mxu0 }
 0x2b5   : > { %6756 = vst [vmem:[#allocation2] sm:$0xff] %v6755_v31  ;;  %v3184_v48 = vcombine.low %v3176_v27, %v3183_v10  ;;  %v3185_v14 = vcombine.high %v3176_v27, %v3183_v10  ;;  %v1501_v11 = vadd.f32 %v23798_v53, %v1439_v30  ;;  %v1502_v0 = vadd.f32 %v23795_v50, %v1440_v62  ;;  %v24549_v31 = vpop.f32.mrb[23].mxu0 }
 0x2b6   : > { %v5182_v45 = vsel %vm5068_vm14, %v3161_v18, -inf  ;;  %v1503_v28 = vadd.f32 %v23798_v53, %v1441_v3  ;;  %v1442_v8 = vmul.f32 %v23785_v40, %v24267_v52  ;;  %v5189_v6 = vsel %vm5076_vm15, %v3168_v36, -inf }
 0x2b7   : > { %v3192_v46 = vrot.slane %v3184_v48, %v23808_v56  ;;  %v3199_v42 = vrot.slane %v3185_v14, %v23808_v56  ;;  %v5183_v15 = vrot.slane %v5182_v45, 4  ;;  %v5190_v59 = vrot.slane %v5189_v6, 4 }
 0x2b8   : > { %v1551_v23 = vmax.f32 %v1501_v11, 0.0  ;;  %v1552_v33 = vmax.f32 %v1502_v0, 0.0  ;;  %v1553_v32 = vmax.f32 %v1503_v28, 0.0  ;;  %v24544_v49 = vadd.f32 %v23795_v50, %v1442_v8 }
 0x2b9   : > { %v5184_v4 = vmax.f32 %v5182_v45, %v5183_v15  ;;  %v5196_v34 = vsel %vm5068_vm14, %v3192_v46, -inf  ;;  %v5203_v58 = vsel %vm5076_vm15, %v3199_v42, -inf  ;;  %v5191_v52 = vmax.f32 %v5189_v6, %v5190_v59 }
 0x2ba   : > { %v5197_v39 = vrot.slane %v5196_v34, 4  ;;  %v5204_v17 = vrot.slane %v5203_v58, 4  ;;  %v1842_v10 = vcombine.low %v1550_v21, %v1551_v23  ;;  %v1843_v5 = vcombine.high %v1550_v21, %v1551_v23 }
 0x2bb   : > { %v5185_v43 = vrot.slane %v5184_v4, 2  ;;  %v1892_v26 = vcombine.low %v1552_v33, %v1553_v32  ;;  %v1893_v16 = vcombine.high %v1552_v33, %v1553_v32  ;;  %v5192_v41 = vrot.slane %v5191_v52, 2 }
 0x2bc   : > { %v5198_v13 = vmax.f32 %v5196_v34, %v5197_v39  ;;  %v5205_v27 = vmax.f32 %v5203_v58, %v5204_v17  ;;  %v1850_v30 = vrot.slane %v1842_v10, %v23808_v56  ;;  %v1857_v62 = vrot.slane %v1843_v5, %v23808_v56 }
 0x2bd   : > { %v5186_v18 = vmax.f32 %v5184_v4, %v5185_v43  ;;  %v24553_v3 = vrot.slane %v1892_v26, %v23808_v56  ;;  %v24556_v36 = vrot.slane %v1893_v16, %v23808_v56  ;;  %v5193_v21 = vmax.f32 %v5191_v52, %v5192_v41 }
 0x2be   : > { %v5199_v48 = vrot.slane %v5198_v13, 2  ;;  %v5206_v14 = vrot.slane %v5205_v27, 2  ;;  %v1858_v11 = vcombine.high %v1850_v30, %v1850_v30  ;;  %v1859_v0 = vcombine.high %v1857_v62, %v1857_v62 }
 0x2bf   : > { %v5187_v45 = vrot.slane %v5186_v18, 1  ;;  %v1866_v28 = vrot.slane %v1850_v30, %v23808_v56  ;;  %v1873_v8 = vrot.slane %v1857_v62, %v23808_v56  ;;  %v5194_v46 = vrot.slane %v5193_v21, 1 }
 0x2c0   : > { %v5200_v42 = vmax.f32 %v5198_v13, %v5199_v48  ;;  %v5207_v15 = vmax.f32 %v5205_v27, %v5206_v14  ;;  %v1880_v6 = vrot.slane %v1858_v11, %v23808_v56  ;;  %v24562_v23 = vrot.slane %v1859_v0, %v23808_v56 }
 0x2c1   : > { %v5188_v59 = vmax.f32 %v5186_v18, %v5187_v45  ;;  %v1888_v33 = vcombine.high %v1866_v28, %v1866_v28  ;;  %v1889_v32 = vcombine.high %v1873_v8, %v1873_v8  ;;  %v5195_v4 = vmax.f32 %v5193_v21, %v5194_v46 }
 0x2c2   : > { %v5201_v34 = vrot.slane %v5200_v42, 1  ;;  %v5208_v58 = vrot.slane %v5207_v15, 1  ;;  %v1890_v52 = vcombine.high %v1880_v6, %v1880_v6  ;;  %v3214_v39 = vrot.slane %v1866_v28, %v23808_v56 }
 0x2c3   : > { %v3231_v17 = vcombine.low %v1880_v6, %v1888_v33  ;;  %v3262_v10 = vcombine.low %v1873_v8, %v24562_v23  ;;  %v3276_v43 = vrot.slane %v1889_v32, %v23808_v56  ;;  %v21258_v16 = vpack.c.bf16 %v5195_v4, %v5188_v59 }
 0x2c4   : > { %v5202_v5 = vmax.f32 %v5200_v42, %v5201_v34  ;;  %v5209_v26 = vmax.f32 %v5207_v15, %v5208_v58  ;;  %v3245_v41 = vrot.slane %v1890_v52, %v23808_v56  ;;  %v3215_v13 = vcombine.low %v24520_v55, %v3214_v39 }
 0x2c5   : > { %v3216_v27 = vcombine.high %v24520_v55, %v3214_v39  ;;  %v3238_v30 = vrot.slane %v3231_v17, %v23808_v56  ;;  %v3269_v18 = vrot.slane %v3262_v10, %v23808_v56  ;;  %v6492_v21 = vunpack.c.l.b16 %v21258_v16 }
 0x2c6   : > { %v21259_v62 = vpack.c.bf16 %v5209_v26, %v5202_v5  ;;  %v6493_v48 = vunpack.c.h.b16 %v21258_v16  ;;  %v1891_v14 = vcombine.high %v24562_v23, %v24562_v23  ;;  %v3223_v11 = vrot.slane %v3215_v13, %v23808_v56 }
 0x2c7   : > { %v3230_v45 = vrot.slane %v3216_v27, %v23808_v56  ;;  %v3246_v0 = vcombine.low %v3238_v30, %v3245_v41  ;;  %v3247_v28 = vcombine.high %v3238_v30, %v3245_v41  ;;  %v6627_v55 = vsel %vm6004_vm2, %v6492_v21, %v6490_v19 }
 0x2c8   : > { %v6494_v8 = vunpack.c.l.b16 %v21259_v62  ;;  %v6495_v46 = vunpack.c.h.b16 %v21259_v62  ;;  %v6634_v42 = vsel %vm6004_vm2, %v6493_v48, %v6491_v57  ;;  %v3277_v59 = vcombine.low %v3269_v18, %v3276_v43 }
 0x2c9   : > { %v3254_v15 = vrot.slane %v3246_v0, %v23808_v56  ;;  %v3261_v6 = vrot.slane %v3247_v28, %v23808_v56  ;;  %v3278_v23 = vcombine.high %v3269_v18, %v3276_v43  ;;  %v5210_v4 = vsel %vm5068_vm14, %v3223_v11, -inf }
 0x2ca   : > { %v24585_v33 = vsel %vm6608_vm3, %v6494_v8, %v6627_v55  ;;  %v24588_v32 = vsel %vm6608_vm3, %v6495_v46, %v6634_v42  ;;  %v5217_v19 = vsel %vm5076_vm15, %v3230_v45, -inf  ;;  %v3285_v63 = vrot.slane %v3277_v59, %v23808_v56 }
 0x2cb   : > { %v3292_v57 = vrot.slane %v3278_v23, %v23808_v56  ;;  %v5211_v34 = vrot.slane %v5210_v4, 4  ;;  %v5218_v58 = vrot.slane %v5217_v19, 4  ;;  %v5224_v52 = vsel %vm5068_vm14, %v3254_v15, -inf }
 0x2cc   : > { %v5231_v39 = vsel %vm5076_vm15, %v3261_v6, -inf  ;;  %v1908_v17 = vcombine.high %v24553_v3, %v24553_v3  ;;  %v1909_v10 = vcombine.high %v24556_v36, %v24556_v36  ;;  %v5225_v26 = vrot.slane %v5224_v52, 4 }
 0x2cd   : > { %v5212_v43 = vmax.f32 %v5210_v4, %v5211_v34  ;;  %v5219_v5 = vmax.f32 %v5217_v19, %v5218_v58  ;;  %v5232_v16 = vrot.slane %v5231_v39, 4  ;;  %v5238_v41 = vsel %vm5068_vm14, %v3285_v63, -inf }
 0x2ce   : > { %v5245_v13 = vsel %vm5076_vm15, %v3292_v57, -inf  ;;  %v1916_v27 = vrot.slane %v24553_v3, %v23808_v56  ;;  %v1923_v30 = vrot.slane %v24556_v36, %v23808_v56  ;;  %v5226_v21 = vmax.f32 %v5224_v52, %v5225_v26 }
 0x2cf   : > { %v5213_v18 = vrot.slane %v5212_v43, 2  ;;  %v5220_v62 = vrot.slane %v5219_v5, 2  ;;  %v5233_v48 = vmax.f32 %v5231_v39, %v5232_v16  ;;  %v5239_v11 = vrot.slane %v5238_v41, 4 }
 0x2d0   : > { %v5246_v45 = vrot.slane %v5245_v13, 4  ;;  %v1930_v0 = vrot.slane %v1908_v17, %v23808_v56  ;;  %v1937_v28 = vrot.slane %v1909_v10, %v23808_v56  ;;  %v5227_v55 = vrot.slane %v5226_v21, 2 }
 0x2d1   : > { %v5214_v8 = vmax.f32 %v5212_v43, %v5213_v18  ;;  %v5221_v46 = vmax.f32 %v5219_v5, %v5220_v62  ;;  %v5234_v42 = vrot.slane %v5233_v48, 2  ;;  %v5240_v15 = vmax.f32 %v5238_v41, %v5239_v11 }
 0x2d2   : > { %v5247_v6 = vmax.f32 %v5245_v13, %v5246_v45  ;;  %v1939_v3 = vcombine.high %v1923_v30, %v1923_v30  ;;  %v1941_v59 = vcombine.high %v1937_v28, %v1937_v28  ;;  %v5228_v4 = vmax.f32 %v5226_v21, %v5227_v55  ;;  %v24611_v21 = vpop.f32.mrb[24].mxu0 }
 0x2d3   : > { %v5215_v23 = vrot.slane %v5214_v8, 1  ;;  %v5222_v36 = vrot.slane %v5221_v46, 1  ;;  %v5235_v19 = vmax.f32 %v5233_v48, %v5234_v42  ;;  %v5241_v63 = vrot.slane %v5240_v15, 2 }
 0x2d4   : > { %v5248_v57 = vrot.slane %v5247_v6, 2  ;;  %v3293_v34 = vcombine.low %v1891_v14, %v1916_v27  ;;  %v3307_v58 = vrot.slane %v1930_v0, %v23808_v56  ;;  %v5229_v17 = vrot.slane %v5228_v4, 1 }
 0x2d5   : > { %v5216_v52 = vmax.f32 %v5214_v8, %v5215_v23  ;;  %v5223_v39 = vmax.f32 %v5221_v46, %v5222_v36  ;;  %v5236_v10 = vrot.slane %v5235_v19, 1  ;;  %v5242_v43 = vmax.f32 %v5240_v15, %v5241_v63 }
 0x2d6   : > { %v5249_v5 = vmax.f32 %v5247_v6, %v5248_v57  ;;  %v3300_v26 = vrot.slane %v3293_v34, %v23808_v56  ;;  %v19206_v16 = vcombine.high %v1916_v27, %v1930_v0  ;;  %v5230_v41 = vmax.f32 %v5228_v4, %v5229_v17 }
 0x2d7   : > { %v5237_v13 = vmax.f32 %v5235_v19, %v5236_v10  ;;  %v21260_v18 = vpack.c.bf16 %v5223_v39, %v5216_v52  ;;  %v3338_v62 = vrot.slane %v1923_v30, %v23808_v56  ;;  %v5243_v48 = vrot.slane %v5242_v43, 1 }
 0x2d8   : > { %v5250_v14 = vrot.slane %v5249_v5, 1  ;;  %v3308_v11 = vcombine.low %v3300_v26, %v3307_v58  ;;  %v3309_v45 = vcombine.high %v3300_v26, %v3307_v58  ;;  %v3331_v42 = vrot.slane %v19206_v16, %v23808_v56 }
 0x2d9   : > { %v21261_v8 = vpack.c.bf16 %v5237_v13, %v5230_v41  ;;  %v6496_v46 = vunpack.c.l.b16 %v21260_v18  ;;  %v6497_v55 = vunpack.c.h.b16 %v21260_v18  ;;  %v5244_v15 = vmax.f32 %v5242_v43, %v5243_v48 }
 0x2da   : > { %v5251_v6 = vmax.f32 %v5249_v5, %v5250_v14  ;;  %v3316_v27 = vrot.slane %v3308_v11, %v23808_v56  ;;  %v3323_v0 = vrot.slane %v3309_v45, %v23808_v56  ;;  %v3339_v63 = vcombine.low %v3331_v42, %v3338_v62 }
 0x2db   : > { %v6498_v23 = vunpack.c.l.b16 %v21261_v8  ;;  %v6499_v36 = vunpack.c.h.b16 %v21261_v8  ;;  %v6629_v30 = vsel %vm6610_vm4, %v6496_v46, %v24585_v33  ;;  %v6636_v4 = vsel %vm6610_vm4, %v6497_v55, %v24588_v32  ;;  %v24641_v46 = vpop.f32.mrb[25].mxu0 }
 0x2dc   : > { %v21262_v19 = vpack.c.bf16 %v5251_v6, %v5244_v15  ;;  %v3340_v57 = vcombine.high %v3331_v42, %v3338_v62  ;;  %v3355_v34 = vcombine.low %v1937_v28, %v1939_v3  ;;  %v3369_v39 = vrot.slane %v1941_v59, %v23808_v56 }
 0x2dd   : > { %v6630_v58 = vsel %vm6612_vm8, %v6498_v23, %v6629_v30  ;;  %v6637_v52 = vsel %vm6612_vm8, %v6499_v36, %v6636_v4  ;;  %v5252_v17 = vsel %vm5068_vm14, %v3316_v27, -inf  ;;  %v3347_v5 = vrot.slane %v3339_v63, %v23808_v56 }
 0x2de   : > { %v6500_v10 = vunpack.c.l.b16 %v21262_v19  ;;  %v6501_v43 = vunpack.c.h.b16 %v21262_v19  ;;  %v3354_v33 = vrot.slane %v3340_v57, %v23808_v56  ;;  %v3362_v32 = vrot.slane %v3355_v34, %v23808_v56 }
 0x2df   : > { %v5253_v26 = vrot.slane %v5252_v17, 4  ;;  %v5259_v16 = vsel %vm5076_vm15, %v3323_v0, -inf  ;;  %v1554_v28 = vmax.f32 %v24544_v49, 0.0  ;;  %v5266_v13 = vsel %vm5068_vm14, %v3347_v5, -inf }
 0x2e0   : > { %v24630_v3 = vsel %vm6614_vm5, %v6500_v10, %v6630_v58  ;;  %v24633_v59 = vsel %vm6614_vm5, %v6501_v43, %v6637_v52  ;;  %v5260_v41 = vrot.slane %v5259_v16, 4  ;;  %v3370_v18 = vcombine.low %v3362_v32, %v3369_v39 }
 0x2e1   : > { %v3371_v62 = vcombine.high %v3362_v32, %v3369_v39  ;;  %v5254_v48 = vmax.f32 %v5252_v17, %v5253_v26  ;;  %v5267_v14 = vrot.slane %v5266_v13, 4  ;;  %v5273_v45 = vsel %vm5076_vm15, %v3354_v33, -inf }
 0x2e2   : > { %v5261_v11 = vmax.f32 %v5259_v16, %v5260_v41  ;;  %v1443_v8 = vmul.f32 %v23790_v44, %v24285_v1  ;;  %v1444_v49 = vmul.f32 %v23785_v40, %v24324_v38  ;;  %v3378_v55 = vrot.slane %v3370_v18, %v23808_v56 }
 0x2e3   : > { %v3385_v42 = vrot.slane %v3371_v62, %v23808_v56  ;;  %v5255_v15 = vrot.slane %v5254_v48, 2  ;;  %v5268_v6 = vmax.f32 %v5266_v13, %v5267_v14  ;;  %v5274_v0 = vrot.slane %v5273_v45, 4  ;;  %v24652_v13 = vpop.f32.mrb[26].mxu0 }
 0x2e4   : > { %v5262_v27 = vrot.slane %v5261_v11, 2  ;;  %v1505_v23 = vadd.f32 %v23798_v53, %v1443_v8  ;;  %v24647_v36 = vadd.f32 %v23795_v50, %v1444_v49  ;;  %v5280_v4 = vsel %vm5068_vm14, %v3378_v55, -inf }
 0x2e5   : > { %v5256_v30 = vmax.f32 %v5254_v48, %v5255_v15  ;;  %v5269_v1 = vrot.slane %v5268_v6, 2  ;;  %v5287_v38 = vsel %vm5076_vm15, %v3385_v42, -inf  ;;  %v5275_v63 = vmax.f32 %v5273_v45, %v5274_v0 }
 0x2e6   : > { %v5263_v19 = vmax.f32 %v5261_v11, %v5262_v27  ;;  %v5281_v57 = vrot.slane %v5280_v4, 4  ;;  %v5288_v34 = vrot.slane %v5287_v38, 4  ;;  %v1555_v39 = vmax.f32 %v1505_v23, 0.0 }
 0x2e7   : > { %v5257_v58 = vrot.slane %v5256_v30, 1  ;;  %v5270_v52 = vmax.f32 %v5268_v6, %v5269_v1  ;;  %v1556_v17 = vmax.f32 %v24647_v36, 0.0  ;;  %v5276_v43 = vrot.slane %v5275_v63, 2 }
 0x2e8   : > { %v5264_v10 = vrot.slane %v5263_v19, 1  ;;  %v5282_v5 = vmax.f32 %v5280_v4, %v5281_v57  ;;  %v5289_v33 = vmax.f32 %v5287_v38, %v5288_v34  ;;  %v1942_v16 = vcombine.low %v1554_v28, %v1555_v39 }
 0x2e9   : > { %v5258_v32 = vmax.f32 %v5256_v30, %v5257_v58  ;;  %v5271_v26 = vrot.slane %v5270_v52, 1  ;;  %v1943_v41 = vcombine.high %v1554_v28, %v1555_v39  ;;  %v5277_v62 = vmax.f32 %v5275_v63, %v5276_v43 }
 0x2ea   : > { %v5265_v18 = vmax.f32 %v5263_v19, %v5264_v10  ;;  %v5283_v48 = vrot.slane %v5282_v5, 2  ;;  %v5290_v14 = vrot.slane %v5289_v33, 2  ;;  %v1950_v45 = vrot.slane %v1942_v16, %v23808_v56 }
 0x2eb   : > { %v5272_v11 = vmax.f32 %v5270_v52, %v5271_v26  ;;  %v1957_v8 = vrot.slane %v1943_v41, %v23808_v56  ;;  %v1445_v49 = vmul.f32 %v23790_v44, %v24326_v37  ;;  %v5278_v55 = vrot.slane %v5277_v62, 1 }
 0x2ec   : > { %v5284_v42 = vmax.f32 %v5282_v5, %v5283_v48  ;;  %v5291_v15 = vmax.f32 %v5289_v33, %v5290_v14  ;;  %v21263_v6 = vpack.c.bf16 %v5265_v18, %v5258_v32  ;;  %v1958_v27 = vcombine.high %v1950_v45, %v1950_v45 }
 0x2ed   : > { %v1959_v28 = vcombine.high %v1957_v8, %v1957_v8  ;;  %v1966_v0 = vrot.slane %v1950_v45, %v23808_v56  ;;  %v1973_v23 = vrot.slane %v1957_v8, %v23808_v56  ;;  %v5279_v30 = vmax.f32 %v5277_v62, %v5278_v55 }
 0x2ee   : > { %v5285_v1 = vrot.slane %v5284_v42, 1  ;;  %v5292_v4 = vrot.slane %v5291_v15, 1  ;;  %v6502_v38 = vunpack.c.l.b16 %v21263_v6  ;;  %v6503_v19 = vunpack.c.h.b16 %v21263_v6 }
 0x2ef   : > { %v1980_v63 = vrot.slane %v1958_v27, %v23808_v56  ;;  %v1987_v57 = vrot.slane %v1959_v28, %v23808_v56  ;;  %v1988_v37 = vcombine.high %v1966_v0, %v1966_v0  ;;  %v21264_v52 = vpack.c.bf16 %v5279_v30, %v5272_v11 }
 0x2f0   : > { %v5286_v34 = vmax.f32 %v5284_v42, %v5285_v1  ;;  %v5293_v58 = vmax.f32 %v5291_v15, %v5292_v4  ;;  %v6632_v39 = vsel %vm6616_vm6, %v6502_v38, %v24630_v3  ;;  %v6639_v10 = vsel %vm6616_vm6, %v6503_v19, %v24633_v59  ;;  %v24672_v3 = vpop.f32.mrb[27].mxu0 }
 0x2f1   : > { %v1990_v43 = vcombine.high %v1980_v63, %v1980_v63  ;;  %v3386_v5 = vcombine.low %v1966_v0, %v1980_v63  ;;  %v3400_v33 = vrot.slane %v1988_v37, %v23808_v56  ;;  %v6504_v26 = vunpack.c.l.b16 %v21264_v52 }
 0x2f2   : > { %v24667_v32 = vpack.c.bf16 %v5293_v58, %v5286_v34  ;;  %v6505_v16 = vunpack.c.h.b16 %v21264_v52  ;;  %v3431_v41 = vrot.slane %v1987_v57, %v23808_v56  ;;  %v19207_v48 = vcombine.high %v1973_v23, %v1987_v57 }
 0x2f3   : > { %v3393_v18 = vrot.slane %v3386_v5, %v23808_v56  ;;  %v3417_v62 = vcombine.low %v1990_v43, %v1973_v23  ;;  %v1507_v14 = vadd.f32 %v23798_v53, %v1445_v49  ;;  %v6633_v45 = vsel %vm6618_vm7, %v6504_v26, %v6632_v39 }
 0x2f4   : > { %v6506_v59 = vunpack.c.l.b16 %v24667_v32  ;;  %v6507_v11 = vunpack.c.h.b16 %v24667_v32  ;;  %v6640_v8 = vsel %vm6618_vm7, %v6505_v16, %v6639_v10  ;;  %v24680_v27 = vrot.slane %v19207_v48, %v23808_v56 }
 0x2f5   : > { %v6730_v55 = vpack.c.b16 %v6640_v8, %v6633_v45  ;;  %v3401_v42 = vcombine.low %v3393_v18, %v3400_v33  ;;  %v3402_v15 = vcombine.high %v3393_v18, %v3400_v33  ;;  %v3424_v6 = vrot.slane %v3417_v62, %v23808_v56  ;;  %v22198_v45 = vld [vmem:[%s29451_s4 + $0x124] ss:$12 sps:$4 sm:$0xff]  }
 0x2f6   : > { %v1557_v28 = vmax.f32 %v1507_v14, 0.0  ;;  %v1446_v49 = vmul.f32 %v23785_v40, %v24386_v35  ;;  %v1447_v0 = vmul.f32 %v23790_v44, %v24390_v7  ;;  %7212 = vmatprep.subr.bf16.mxu1 %v22198_v45  ;;  %vm7196_vm9 = vcmask 523264  }
 0x2f7   : > { %6760 = vst.msk [vmem:[#allocation2 + $0x8] sm:$0xff] %vm24101_vm12, %v6730_v55  ;;  %v3409_v23 = vrot.slane %v3401_v42, %v23808_v56  ;;  %v3416_v30 = vrot.slane %v3402_v15, %v23808_v56  ;;  %v3432_v1 = vcombine.low %v3424_v6, %v3431_v41  ;;  %v3433_v4 = vcombine.high %v3424_v6, %v3431_v41  ;;  %v22196_v6 = vld [vmem:[%s29451_s4 + $0x120] ss:$12 sps:$4 sm:$0xff]  }
 0x2f8   : > { %v1992_v38 = vcombine.low %v1556_v17, %v1557_v28  ;;  %v1993_v19 = vcombine.high %v1556_v17, %v1557_v28  ;;  %v24695_v35 = vadd.f32 %v23795_v50, %v1446_v49  ;;  %v24698_v7 = vadd.f32 %v23798_v53, %v1447_v0  ;;  %7213 = vmatpush1.bf16.msra.mxu1 %v22196_v6 }
 0x2f9   : > { %v3440_v63 = vrot.slane %v3432_v1, %v23808_v56  ;;  %v3447_v57 = vrot.slane %v3433_v4, %v23808_v56  ;;  %v5294_v37 = vsel %vm5068_vm14, %v3409_v23, -inf  ;;  %v5301_v34 = vsel %vm5076_vm15, %v3416_v30, -inf }
 0x2fa   : > { %v5295_v58 = vrot.slane %v5294_v37, 4  ;;  %v5302_v52 = vrot.slane %v5301_v34, 4  ;;  %v2000_v39 = vrot.slane %v1992_v38, %v23808_v56  ;;  %v2007_v36 = vrot.slane %v1993_v19, %v23808_v56 }
 0x2fb   : > { %v5308_v17 = vsel %vm5068_vm14, %v3440_v63, -inf  ;;  %v5315_v10 = vsel %vm5076_vm15, %v3447_v57, -inf  ;;  %v1558_v43 = vmax.f32 %v24695_v35, 0.0  ;;  %v1559_v5 = vmax.f32 %v24698_v7, 0.0 }
 0x2fc   : > { %v5296_v33 = vmax.f32 %v5294_v37, %v5295_v58  ;;  %v5303_v26 = vmax.f32 %v5301_v34, %v5302_v52  ;;  %v5309_v16 = vrot.slane %v5308_v17, 4  ;;  %v5316_v41 = vrot.slane %v5315_v10, 4  ;;  %v24724_v34 = vpop.f32.mrb[28].mxu0 }
 0x2fd   : > { %v2008_v18 = vcombine.high %v2000_v39, %v2000_v39  ;;  %v2009_v62 = vcombine.high %v2007_v36, %v2007_v36  ;;  %v2016_v48 = vrot.slane %v2000_v39, %v23808_v56  ;;  %v2023_v14 = vrot.slane %v2007_v36, %v23808_v56 }
 0x2fe   : > { %v5297_v8 = vrot.slane %v5296_v33, 2  ;;  %v5304_v55 = vrot.slane %v5303_v26, 2  ;;  %v5310_v42 = vmax.f32 %v5308_v17, %v5309_v16  ;;  %v5317_v15 = vmax.f32 %v5315_v10, %v5316_v41  ;;  %v24726_v17 = vpop.f32.mrb[29].mxu0 }
 0x2ff   : > { %v2030_v28 = vrot.slane %v2008_v18, %v23808_v56  ;;  %v24720_v49 = vrot.slane %v2009_v62, %v23808_v56  ;;  %v2038_v0 = vcombine.high %v2016_v48, %v2016_v48  ;;  %v2039_v23 = vcombine.high %v2023_v14, %v2023_v14  ;;  %v24770_v35 = vpop.f32.mrb[30].mxu0 }
 0x300   : > { %v5298_v30 = vmax.f32 %v5296_v33, %v5297_v8  ;;  %v5305_v1 = vmax.f32 %v5303_v26, %v5304_v55  ;;  %v5311_v4 = vrot.slane %v5310_v42, 2  ;;  %v5318_v38 = vrot.slane %v5317_v15, 2 }
 0x301   : > { %v2040_v19 = vcombine.high %v2030_v28, %v2030_v28  ;;  %v3462_v63 = vrot.slane %v2016_v48, %v23808_v56  ;;  %v3479_v57 = vcombine.low %v2030_v28, %v2038_v0  ;;  %v3510_v37 = vcombine.low %v2023_v14, %v24720_v49 }
 0x302   : > { %v5299_v58 = vrot.slane %v5298_v30, 1  ;;  %v5306_v52 = vrot.slane %v5305_v1, 1  ;;  %v5312_v39 = vmax.f32 %v5310_v42, %v5311_v4  ;;  %v5319_v36 = vmax.f32 %v5317_v15, %v5318_v38 }
 0x303   : > { %v3463_v10 = vcombine.low %v24680_v27, %v3462_v63  ;;  %v3464_v33 = vcombine.high %v24680_v27, %v3462_v63  ;;  %v3486_v26 = vrot.slane %v3479_v57, %v23808_v56  ;;  %v3493_v16 = vrot.slane %v2040_v19, %v23808_v56 }
 0x304   : > { %v5300_v41 = vmax.f32 %v5298_v30, %v5299_v58  ;;  %v5307_v18 = vmax.f32 %v5305_v1, %v5306_v52  ;;  %v5313_v62 = vrot.slane %v5312_v39, 1  ;;  %v5320_v48 = vrot.slane %v5319_v36, 1 }
 0x305   : > { %v3471_v14 = vrot.slane %v3463_v10, %v23808_v56  ;;  %v3478_v45 = vrot.slane %v3464_v33, %v23808_v56  ;;  %v3494_v8 = vcombine.low %v3486_v26, %v3493_v16  ;;  %v3495_v55 = vcombine.high %v3486_v26, %v3493_v16 }
 0x306   : > { %v5314_v42 = vmax.f32 %v5312_v39, %v5313_v62  ;;  %v5321_v15 = vmax.f32 %v5319_v36, %v5320_v48  ;;  %v21266_v6 = vpack.c.bf16 %v5307_v18, %v5300_v41  ;;  %v3517_v28 = vrot.slane %v3510_v37, %v23808_v56 }
 0x307   : > { %v3502_v27 = vrot.slane %v3494_v8, %v23808_v56  ;;  %v3509_v0 = vrot.slane %v3495_v55, %v23808_v56  ;;  %v3524_v30 = vrot.slane %v2039_v23, %v23808_v56  ;;  %v5322_v1 = vsel %vm5068_vm14, %v3471_v14, -inf }
 0x308   : > { %v21267_v4 = vpack.c.bf16 %v5321_v15, %v5314_v42  ;;  %v6508_v38 = vunpack.c.l.b16 %v21266_v6  ;;  %v6509_v19 = vunpack.c.h.b16 %v21266_v6  ;;  %v5323_v63 = vrot.slane %v5322_v1, 4 }
 0x309   : > { %v3525_v57 = vcombine.low %v3517_v28, %v3524_v30  ;;  %v3526_v58 = vcombine.high %v3517_v28, %v3524_v30  ;;  %v5329_v52 = vsel %vm5076_vm15, %v3478_v45, -inf  ;;  %v5336_v39 = vsel %vm5068_vm14, %v3502_v27, -inf }
 0x30a   : > { %v6510_v36 = vunpack.c.l.b16 %v21267_v4  ;;  %v6511_v37 = vunpack.c.h.b16 %v21267_v4  ;;  %v6641_v10 = vsel %vm6004_vm2, %v6508_v38, %v6506_v59  ;;  %v6648_v23 = vsel %vm6004_vm2, %v6509_v19, %v6507_v11 }
 0x30b   : > { %v3533_v33 = vrot.slane %v3525_v57, %v23808_v56  ;;  %v3540_v26 = vrot.slane %v3526_v58, %v23808_v56  ;;  %v5324_v16 = vmax.f32 %v5322_v1, %v5323_v63  ;;  %v5330_v41 = vrot.slane %v5329_v52, 4 }
 0x30c   : > { %v24750_v18 = vsel %vm6608_vm3, %v6510_v36, %v6641_v10  ;;  %v24753_v62 = vsel %vm6608_vm3, %v6511_v37, %v6648_v23  ;;  %v5337_v48 = vrot.slane %v5336_v39, 4  ;;  %v5343_v14 = vsel %vm5076_vm15, %v3509_v0, -inf }
 0x30d   : > { %v5325_v59 = vrot.slane %v5324_v16, 2  ;;  %v5331_v45 = vmax.f32 %v5329_v52, %v5330_v41  ;;  %v5344_v32 = vrot.slane %v5343_v14, 4  ;;  %v5350_v11 = vsel %vm5068_vm14, %v3533_v33, -inf }
 0x30e   : > { %v5338_v8 = vmax.f32 %v5336_v39, %v5337_v48  ;;  %v5351_v55 = vrot.slane %v5350_v11, 4  ;;  %v5357_v42 = vsel %vm5076_vm15, %v3540_v26, -inf  ;;  %v2041_v15 = vcombine.high %v24720_v49, %v24720_v49 }
 0x30f   : > { %v5326_v6 = vmax.f32 %v5324_v16, %v5325_v59  ;;  %v5332_v28 = vrot.slane %v5331_v45, 2  ;;  %v5345_v27 = vmax.f32 %v5343_v14, %v5344_v32  ;;  %v5358_v30 = vrot.slane %v5357_v42, 4 }
 0x310   : > { %v5339_v1 = vrot.slane %v5338_v8, 2  ;;  %v5352_v4 = vmax.f32 %v5350_v11, %v5351_v55  ;;  %v2042_v0 = vcombine.low %v1558_v43, %v1559_v5  ;;  %v2043_v38 = vcombine.high %v1558_v43, %v1559_v5 }
 0x311   : > { %v5327_v19 = vrot.slane %v5326_v6, 1  ;;  %v5333_v63 = vmax.f32 %v5331_v45, %v5332_v28  ;;  %v5346_v57 = vrot.slane %v5345_v27, 2  ;;  %v5359_v49 = vmax.f32 %v5357_v42, %v5358_v30 }
 0x312   : > { %v5340_v58 = vmax.f32 %v5338_v8, %v5339_v1  ;;  %v5353_v52 = vrot.slane %v5352_v4, 2  ;;  %v2050_v39 = vrot.slane %v2042_v0, %v23808_v56  ;;  %v2057_v36 = vrot.slane %v2043_v38, %v23808_v56 }
 0x313   : > { %v5328_v37 = vmax.f32 %v5326_v6, %v5327_v19  ;;  %v5334_v10 = vrot.slane %v5333_v63, 1  ;;  %v5347_v23 = vmax.f32 %v5345_v27, %v5346_v57  ;;  %v5360_v33 = vrot.slane %v5359_v49, 2 }
 0x314   : > { %v5341_v26 = vrot.slane %v5340_v58, 1  ;;  %v5354_v16 = vmax.f32 %v5352_v4, %v5353_v52  ;;  %v2058_v7 = vcombine.high %v2050_v39, %v2050_v39  ;;  %v2059_v41 = vcombine.high %v2057_v36, %v2057_v36 }
 0x315   : > { %v5335_v43 = vmax.f32 %v5333_v63, %v5334_v10  ;;  %v5348_v5 = vrot.slane %v5347_v23, 1  ;;  %v5361_v48 = vmax.f32 %v5359_v49, %v5360_v33  ;;  %v2066_v14 = vrot.slane %v2050_v39, %v23808_v56 }
 0x316   : > { %v5342_v59 = vmax.f32 %v5340_v58, %v5341_v26  ;;  %v5355_v45 = vrot.slane %v5354_v16, 1  ;;  %v2073_v32 = vrot.slane %v2057_v36, %v23808_v56  ;;  %v2080_v11 = vrot.slane %v2058_v7, %v23808_v56 }
 0x317   : > { %v5349_v8 = vmax.f32 %v5347_v23, %v5348_v5  ;;  %v5362_v55 = vrot.slane %v5361_v48, 1  ;;  %v21268_v42 = vpack.c.bf16 %v5335_v43, %v5328_v37  ;;  %v2087_v6 = vrot.slane %v2059_v41, %v23808_v56 }
 0x318   : > { %v5356_v28 = vmax.f32 %v5354_v16, %v5355_v45  ;;  %v2089_v27 = vcombine.high %v2073_v32, %v2073_v32  ;;  %v3541_v30 = vcombine.low %v2041_v15, %v2066_v14  ;;  %v3555_v1 = vrot.slane %v2080_v11, %v23808_v56 }
 0x319   : > { %v5363_v4 = vmax.f32 %v5361_v48, %v5362_v55  ;;  %v21269_v0 = vpack.c.bf16 %v5349_v8, %v5342_v59  ;;  %v6512_v38 = vunpack.c.l.b16 %v21268_v42  ;;  %v6513_v19 = vunpack.c.h.b16 %v21268_v42 }
 0x31a   : > { %v2091_v63 = vcombine.high %v2087_v6, %v2087_v6  ;;  %v3548_v57 = vrot.slane %v3541_v30, %v23808_v56  ;;  %v19208_v49 = vcombine.high %v2066_v14, %v2080_v11  ;;  %v3586_v58 = vrot.slane %v2073_v32, %v23808_v56  ;;  %v24795_v32 = vpop.f32.mrb[31].mxu0 }
 0x31b   : > { %v21270_v52 = vpack.c.bf16 %v5363_v4, %v5356_v28  ;;  %v6514_v39 = vunpack.c.l.b16 %v21269_v0  ;;  %v6515_v36 = vunpack.c.h.b16 %v21269_v0  ;;  %v6643_v37 = vsel %vm6610_vm4, %v6512_v38, %v24750_v18 }
 0x31c   : > { %v6650_v15 = vsel %vm6610_vm4, %v6513_v19, %v24753_v62  ;;  %v3556_v10 = vcombine.low %v3548_v57, %v3555_v1  ;;  %v3557_v23 = vcombine.high %v3548_v57, %v3555_v1  ;;  %v3579_v33 = vrot.slane %v19208_v49, %v23808_v56 }
 0x31d   : > { %v6516_v26 = vunpack.c.l.b16 %v21270_v52  ;;  %v6517_v16 = vunpack.c.h.b16 %v21270_v52  ;;  %v6644_v7 = vsel %vm6612_vm8, %v6514_v39, %v6643_v37  ;;  %v6651_v41 = vsel %vm6612_vm8, %v6515_v36, %v6650_v15 }
 0x31e   : > { %v3564_v43 = vrot.slane %v3556_v10, %v23808_v56  ;;  %v3571_v5 = vrot.slane %v3557_v23, %v23808_v56  ;;  %v3587_v48 = vcombine.low %v3579_v33, %v3586_v58  ;;  %v3588_v14 = vcombine.high %v3579_v33, %v3586_v58 }
 0x31f   : > { %v24789_v18 = vsel %vm6614_vm5, %v6516_v26, %v6644_v7  ;;  %v24792_v62 = vsel %vm6614_vm5, %v6517_v16, %v6651_v41  ;;  %v3603_v59 = vcombine.low %v2087_v6, %v2089_v27  ;;  %v3617_v45 = vrot.slane %v2091_v63, %v23808_v56 }
 0x320   : > { %v3595_v11 = vrot.slane %v3587_v48, %v23808_v56  ;;  %v3602_v8 = vrot.slane %v3588_v14, %v23808_v56  ;;  %v5364_v55 = vsel %vm5068_vm14, %v3564_v43, -inf  ;;  %v5371_v42 = vsel %vm5076_vm15, %v3571_v5, -inf }
 0x321   : > { %v3610_v28 = vrot.slane %v3603_v59, %v23808_v56  ;;  %v5365_v30 = vrot.slane %v5364_v55, 4  ;;  %v5372_v1 = vrot.slane %v5371_v42, 4  ;;  %v1448_v4 = vmul.f32 %v23785_v40, %v24431_v47 }
 0x322   : > { %v5378_v6 = vsel %vm5068_vm14, %v3595_v11, -inf  ;;  %v5385_v27 = vsel %vm5076_vm15, %v3602_v8, -inf  ;;  %v1449_v0 = vmul.f32 %v23790_v44, %v24478_v29  ;;  %v24810_v38 = vmul.f32 %v23785_v40, %v24484_v22 }
 0x323   : > { %v3618_v19 = vcombine.low %v3610_v28, %v3617_v45  ;;  %v3619_v63 = vcombine.high %v3610_v28, %v3617_v45  ;;  %v5366_v57 = vmax.f32 %v5364_v55, %v5365_v30  ;;  %v5373_v49 = vmax.f32 %v5371_v42, %v5372_v1  ;;  %v22201_v55 = vld [vmem:[%s29451_s4 + $0x13c] ss:$12 sps:$4 sm:$0xff]  }
 0x324   : > { %v5379_v58 = vrot.slane %v5378_v6, 4  ;;  %v5386_v52 = vrot.slane %v5385_v27, 4  ;;  %v1510_v39 = vadd.f32 %v23795_v50, %v1448_v4  ;;  %v1511_v47 = vadd.f32 %v23798_v53, %v1449_v0  ;;  %v22199_v4 = vld [vmem:[%s29451_s4 + $0x138] ss:$12 sps:$4 sm:$0xff]   ;;  %7214 = vmatprep.subr.bf16.mxu1 %v22201_v55 }
 0x325   : > { %v3626_v36 = vrot.slane %v3618_v19, %v23808_v56  ;;  %v3633_v37 = vrot.slane %v3619_v63, %v23808_v56  ;;  %v5367_v15 = vrot.slane %v5366_v57, 2  ;;  %v5374_v29 = vrot.slane %v5373_v49, 2  ;;  %7215 = vmatpush1.bf16.msra.mxu1 %v22199_v4 }
 0x326   : > { %v5380_v10 = vmax.f32 %v5378_v6, %v5379_v58  ;;  %v5387_v23 = vmax.f32 %v5385_v27, %v5386_v52  ;;  %v1560_v22 = vmax.f32 %v1510_v39, 0.0  ;;  %v1561_v33 = vmax.f32 %v1511_v47, 0.0 }
 0x327   : > { %v5368_v26 = vmax.f32 %v5366_v57, %v5367_v15  ;;  %v5375_v16 = vmax.f32 %v5373_v49, %v5374_v29  ;;  %v5392_v7 = vsel %vm5068_vm14, %v3626_v36, -inf  ;;  %v5399_v41 = vsel %vm5076_vm15, %v3633_v37, -inf  ;;  %v22204_v37 = vld [vmem:[%s29451_s4 + $0x154] ss:$12 sps:$4 sm:$0xff]  }
 0x328   : > { %v5381_v43 = vrot.slane %v5380_v10, 2  ;;  %v5388_v5 = vrot.slane %v5387_v23, 2  ;;  %v5393_v48 = vrot.slane %v5392_v7, 4  ;;  %v5400_v14 = vrot.slane %v5399_v41, 4  ;;  %7216 = vmatprep.subr.bf16.mxu1 %v22204_v37 }
 0x329   : > { %v5369_v59 = vrot.slane %v5368_v26, 1  ;;  %v5376_v45 = vrot.slane %v5375_v16, 1  ;;  %v2092_v11 = vcombine.low %v1560_v22, %v1561_v33  ;;  %v2093_v8 = vcombine.high %v1560_v22, %v1561_v33  ;;  %v22202_v22 = vld [vmem:[%s29451_s4 + $0x150] ss:$12 sps:$4 sm:$0xff]  }
 0x32a   : > { %v5382_v42 = vmax.f32 %v5380_v10, %v5381_v43  ;;  %v5389_v28 = vmax.f32 %v5387_v23, %v5388_v5  ;;  %v5394_v30 = vmax.f32 %v5392_v7, %v5393_v48  ;;  %v5401_v1 = vmax.f32 %v5399_v41, %v5400_v14  ;;  %7217 = vmatpush1.bf16.msra.mxu1 %v22202_v22 }
 0x32b   : > { %v5370_v6 = vmax.f32 %v5368_v26, %v5369_v59  ;;  %v5377_v27 = vmax.f32 %v5375_v16, %v5376_v45  ;;  %v2100_v0 = vrot.slane %v2092_v11, %v23808_v56  ;;  %v2107_v19 = vrot.slane %v2093_v8, %v23808_v56  ;;  %v22207_v8 = vld [vmem:[%s29451_s4 + $0x16c] ss:$12 sps:$4 sm:$0xff]  }
 0x32c   : > { %v5383_v63 = vrot.slane %v5382_v42, 1  ;;  %v5390_v57 = vrot.slane %v5389_v28, 1  ;;  %v5395_v49 = vrot.slane %v5394_v30, 2  ;;  %v5402_v58 = vrot.slane %v5401_v1, 2  ;;  %7218 = vmatprep.subr.bf16.mxu1 %v22207_v8 }
 0x32d   : > { %v21271_v52 = vpack.c.bf16 %v5377_v27, %v5370_v6  ;;  %v2108_v39 = vcombine.high %v2100_v0, %v2100_v0  ;;  %v2109_v47 = vcombine.high %v2107_v19, %v2107_v19  ;;  %v2116_v36 = vrot.slane %v2100_v0, %v23808_v56 }
 0x32e   : > { %v5384_v15 = vmax.f32 %v5382_v42, %v5383_v63  ;;  %v5391_v29 = vmax.f32 %v5389_v28, %v5390_v57  ;;  %v5396_v10 = vmax.f32 %v5394_v30, %v5395_v49  ;;  %v5403_v23 = vmax.f32 %v5401_v1, %v5402_v58  ;;  %v22205_v1 = vld [vmem:[%s29451_s4 + $0x168] ss:$12 sps:$4 sm:$0xff]  }
 0x32f   : > { %v6518_v33 = vunpack.c.l.b16 %v21271_v52  ;;  %v6519_v26 = vunpack.c.h.b16 %v21271_v52  ;;  %v2123_v16 = vrot.slane %v2107_v19, %v23808_v56  ;;  %v2130_v7 = vrot.slane %v2108_v39, %v23808_v56  ;;  %7219 = vmatpush1.bf16.msra.mxu1 %v22205_v1  ;;  %v22210_v39 = vld [vmem:[%s29451_s4 + $0x184] ss:$12 sps:$4 sm:$0xff]  }
 0x330   : > { %v5397_v41 = vrot.slane %v5396_v10, 1  ;;  %v5404_v43 = vrot.slane %v5403_v23, 1  ;;  %v21272_v5 = vpack.c.bf16 %v5391_v29, %v5384_v15  ;;  %v2137_v48 = vrot.slane %v2109_v47, %v23808_v56  ;;  %v22208_v29 = vld [vmem:[%s29451_s4 + $0x180] ss:$12 sps:$4 sm:$0xff]   ;;  %7220 = vmatprep.subr.bf16.mxu1 %v22210_v39 }
 0x331   : > { %v6646_v14 = vsel %vm6616_vm6, %v6518_v33, %v24789_v18  ;;  %v6653_v59 = vsel %vm6616_vm6, %v6519_v26, %v24792_v62  ;;  %v2138_v45 = vcombine.high %v2116_v36, %v2116_v36  ;;  %v2140_v11 = vcombine.high %v2130_v7, %v2130_v7 }
 0x332   : > { %v5398_v55 = vmax.f32 %v5396_v10, %v5397_v41  ;;  %v5405_v42 = vmax.f32 %v5403_v23, %v5404_v43  ;;  %v6520_v28 = vunpack.c.l.b16 %v21272_v5  ;;  %v6521_v30 = vunpack.c.h.b16 %v21272_v5 }
 0x333   : > { %v3634_v4 = vcombine.low %v2116_v36, %v2130_v7  ;;  %v3648_v18 = vrot.slane %v2138_v45, %v23808_v56  ;;  %v3665_v6 = vcombine.low %v2140_v11, %v2123_v16  ;;  %v3679_v62 = vrot.slane %v2137_v48, %v23808_v56  ;;  %7221 = vmatpush1.bf16.msra.mxu1 %v22208_v29  ;;  %v22211_v45 = vld [vmem:[%s29451_s4 + $0x198] ss:$12 sps:$4 sm:$0xff]  }
 0x334   : > { %v24848_v27 = vpack.c.bf16 %v5405_v42, %v5398_v55  ;;  %v6647_v0 = vsel %vm6618_vm7, %v6520_v28, %v6646_v14  ;;  %v6654_v19 = vsel %vm6618_vm7, %v6521_v30, %v6653_v59  ;;  %v19209_v63 = vcombine.high %v2123_v16, %v2137_v48  ;;  %v22213_v48 = vld [vmem:[%s29451_s4 + $0x19c] ss:$12 sps:$4 sm:$0xff]  }
 0x335   : > { %v6731_v57 = vpack.c.b16 %v6654_v19, %v6647_v0  ;;  %v3641_v49 = vrot.slane %v3634_v4, %v23808_v56  ;;  %v3672_v58 = vrot.slane %v3665_v6, %v23808_v56  ;;  %v1512_v52 = vadd.f32 %v23795_v50, %v24810_v38  ;;  %7222 = vmatprep.subr.bf16.mxu1 %v22213_v48  ;;  %v22216_v0 = vld [vmem:[%s29451_s4 + $0x1b4] ss:$12 sps:$4 sm:$0xff]  }
 0x336   : > { %v6522_v47 = vunpack.c.l.b16 %v24848_v27  ;;  %v6523_v36 = vunpack.c.h.b16 %v24848_v27  ;;  %v24862_v37 = vrot.slane %v19209_v63, %v23808_v56  ;;  %v1451_v15 = vmul.f32 %v23790_v44, %v24529_v54  ;;  %v22228_v27 = vld [vmem:[%s29451_s4 + $0x214] ss:$12 sps:$4 sm:$0xff]  }
 0x337   : > { %6761 = vst.msk [vmem:[#allocation2 + $0x10] sm:$0xff] %vm24101_vm12, %v6731_v57  ;;  %v3649_v38 = vcombine.low %v3641_v49, %v3648_v18  ;;  %v3650_v10 = vcombine.high %v3641_v49, %v3648_v18  ;;  %v3680_v23 = vcombine.low %v3672_v58, %v3679_v62  ;;  %v3681_v22 = vcombine.high %v3672_v58, %v3679_v62  ;;  %v22214_v58 = vld [vmem:[%s29451_s4 + $0x1b0] ss:$12 sps:$4 sm:$0xff]  }
 0x338   : > { %v1562_v33 = vmax.f32 %v1512_v52, 0.0  ;;  %v1513_v26 = vadd.f32 %v23798_v53, %v1451_v15  ;;  %v1452_v16 = vmul.f32 %v23785_v40, %v24546_v24  ;;  %v1453_v54 = vmul.f32 %v23790_v44, %v24549_v31  ;;  %7223 = vmatpush1.bf16.msra.mxu1 %v22211_v45 }
 0x339   : > { %v3657_v7 = vrot.slane %v3649_v38, %v23808_v56  ;;  %v3664_v41 = vrot.slane %v3650_v10, %v23808_v56  ;;  %v3688_v43 = vrot.slane %v3680_v23, %v23808_v56  ;;  %v3695_v5 = vrot.slane %v3681_v22, %v23808_v56  ;;  %7224 = vmatprep.subr.bf16.mxu1 %v22216_v0 }
 0x33a   : > { %v1563_v14 = vmax.f32 %v1513_v26, 0.0  ;;  %v1514_v59 = vadd.f32 %v23795_v50, %v1452_v16  ;;  %v1515_v24 = vadd.f32 %v23798_v53, %v1453_v54  ;;  %v24887_v31 = vmul.f32 %v23785_v40, %v24611_v21 }
 0x33b   : > { %v5406_v11 = vsel %vm5068_vm14, %v3657_v7, -inf  ;;  %v5413_v8 = vsel %vm5076_vm15, %v3664_v41, -inf  ;;  %v5420_v55 = vsel %vm5068_vm14, %v3688_v43, -inf  ;;  %v5427_v42 = vsel %vm5076_vm15, %v3695_v5, -inf  ;;  %v22219_v7 = vld [vmem:[%s29451_s4 + $0x1cc] ss:$12 sps:$4 sm:$0xff]  }
 0x33c   : > { %v5407_v28 = vrot.slane %v5406_v11, 4  ;;  %v5414_v30 = vrot.slane %v5413_v8, 4  ;;  %v5421_v1 = vrot.slane %v5420_v55, 4  ;;  %v5428_v4 = vrot.slane %v5427_v42, 4  ;;  %7225 = vmatpush1.bf16.msra.mxu1 %v22214_v58 }
 0x33d   : > { %v2142_v21 = vcombine.low %v1562_v33, %v1563_v14  ;;  %v2143_v18 = vcombine.high %v1562_v33, %v1563_v14  ;;  %v1564_v6 = vmax.f32 %v1514_v59, 0.0  ;;  %v1565_v62 = vmax.f32 %v1515_v24, 0.0  ;;  %v22217_v14 = vld [vmem:[%s29451_s4 + $0x1c8] ss:$12 sps:$4 sm:$0xff]   ;;  %7226 = vmatprep.subr.bf16.mxu1 %v22219_v7 }
 0x33e   : > { %v5408_v19 = vmax.f32 %v5406_v11, %v5407_v28  ;;  %v5415_v63 = vmax.f32 %v5413_v8, %v5414_v30  ;;  %v5422_v57 = vmax.f32 %v5420_v55, %v5421_v1  ;;  %v5429_v49 = vmax.f32 %v5427_v42, %v5428_v4 }
 0x33f   : > { %v2150_v52 = vrot.slane %v2142_v21, %v23808_v56  ;;  %v2157_v39 = vrot.slane %v2143_v18, %v23808_v56  ;;  %v24904_v15 = vcombine.low %v1564_v6, %v1565_v62  ;;  %v24906_v29 = vcombine.high %v1564_v6, %v1565_v62  ;;  %v22222_v18 = vld [vmem:[%s29451_s4 + $0x1e4] ss:$12 sps:$4 sm:$0xff]  }
 0x340   : > { %v5409_v38 = vrot.slane %v5408_v19, 2  ;;  %v5416_v10 = vrot.slane %v5415_v63, 2  ;;  %v5423_v23 = vrot.slane %v5422_v57, 2  ;;  %v5430_v22 = vrot.slane %v5429_v49, 2  ;;  %7227 = vmatpush1.bf16.msra.mxu1 %v22217_v14 }
 0x341   : > { %v2158_v33 = vcombine.high %v2150_v52, %v2150_v52  ;;  %v2159_v26 = vcombine.high %v2157_v39, %v2157_v39  ;;  %v2166_v16 = vrot.slane %v2150_v52, %v23808_v56  ;;  %v2173_v54 = vrot.slane %v2157_v39, %v23808_v56  ;;  %7228 = vmatprep.subr.bf16.mxu1 %v22222_v18 }
 0x342   : > { %v5410_v41 = vmax.f32 %v5408_v19, %v5409_v38  ;;  %v5417_v43 = vmax.f32 %v5415_v63, %v5416_v10  ;;  %v5424_v5 = vmax.f32 %v5422_v57, %v5423_v23  ;;  %v5431_v48 = vmax.f32 %v5429_v49, %v5430_v22  ;;  %v22220_v63 = vld [vmem:[%s29451_s4 + $0x1e0] ss:$12 sps:$4 sm:$0xff]  }
 0x343   : > { %v2180_v59 = vrot.slane %v2158_v33, %v23808_v56  ;;  %v24918_v24 = vrot.slane %v2159_v26, %v23808_v56  ;;  %v2188_v45 = vcombine.high %v2166_v16, %v2166_v16  ;;  %v2189_v11 = vcombine.high %v2173_v54, %v2173_v54 }
 0x344   : > { %v5411_v8 = vrot.slane %v5410_v41, 1  ;;  %v5418_v55 = vrot.slane %v5417_v43, 1  ;;  %v5425_v42 = vrot.slane %v5424_v5, 1  ;;  %v5432_v28 = vrot.slane %v5431_v48, 1  ;;  %7229 = vmatpush1.bf16.msra.mxu1 %v22220_v63 }
 0x345   : > { %v2190_v30 = vcombine.high %v2180_v59, %v2180_v59  ;;  %v3710_v1 = vrot.slane %v2166_v16, %v23808_v56  ;;  %v3727_v4 = vcombine.low %v2180_v59, %v2188_v45  ;;  %v3758_v21 = vcombine.low %v2173_v54, %v24918_v24 }
 0x346   : > { %v5412_v6 = vmax.f32 %v5410_v41, %v5411_v8  ;;  %v5419_v62 = vmax.f32 %v5417_v43, %v5418_v55  ;;  %v5426_v0 = vmax.f32 %v5424_v5, %v5425_v42  ;;  %v5433_v19 = vmax.f32 %v5431_v48, %v5432_v28  ;;  %v22223_v5 = vld [vmem:[%s29451_s4 + $0x1f8] ss:$12 sps:$4 sm:$0xff]  }
 0x347   : > { %v3711_v57 = vcombine.low %v24862_v37, %v3710_v1  ;;  %v3712_v49 = vcombine.high %v24862_v37, %v3710_v1  ;;  %v3734_v58 = vrot.slane %v3727_v4, %v23808_v56  ;;  %v3741_v52 = vrot.slane %v2190_v30, %v23808_v56  ;;  %v22225_v37 = vld [vmem:[%s29451_s4 + $0x1fc] ss:$12 sps:$4 sm:$0xff]  }
 0x348   : > { %v21274_v39 = vpack.c.bf16 %v5419_v62, %v5412_v6  ;;  %v21275_v38 = vpack.c.bf16 %v5433_v19, %v5426_v0  ;;  %v3765_v10 = vrot.slane %v3758_v21, %v23808_v56  ;;  %v3772_v23 = vrot.slane %v2189_v11, %v23808_v56  ;;  %7230 = vmatprep.subr.bf16.mxu1 %v22225_v37  ;;  %v22226_v6 = vld [vmem:[%s29451_s4 + $0x210] ss:$12 sps:$4 sm:$0xff]  }
 0x349   : > { %v3719_v22 = vrot.slane %v3711_v57, %v23808_v56  ;;  %v3726_v33 = vrot.slane %v3712_v49, %v23808_v56  ;;  %v3742_v26 = vcombine.low %v3734_v58, %v3741_v52  ;;  %v3743_v16 = vcombine.high %v3734_v58, %v3741_v52  ;;  %7231 = vmatpush1.bf16.msra.mxu1 %v22223_v5 }
 0x34a   : > { %v6524_v54 = vunpack.c.l.b16 %v21274_v39  ;;  %v6525_v7 = vunpack.c.h.b16 %v21274_v39  ;;  %v6526_v41 = vunpack.c.l.b16 %v21275_v38  ;;  %v6527_v43 = vunpack.c.h.b16 %v21275_v38  ;;  %7232 = vmatprep.subr.bf16.mxu1 %v22228_v27 }
 0x34b   : > { %v3750_v48 = vrot.slane %v3742_v26, %v23808_v56  ;;  %v3757_v14 = vrot.slane %v3743_v16, %v23808_v56  ;;  %v3773_v59 = vcombine.low %v3765_v10, %v3772_v23  ;;  %v3774_v45 = vcombine.high %v3765_v10, %v3772_v23 }
 0x34c   : > { %v6655_v11 = vsel %vm6004_vm2, %v6524_v54, %v6522_v47  ;;  %v6662_v8 = vsel %vm6004_vm2, %v6525_v7, %v6523_v36  ;;  %v5434_v55 = vsel %vm5068_vm14, %v3719_v22, -inf  ;;  %v5441_v42 = vsel %vm5076_vm15, %v3726_v33, -inf  ;;  %v22231_v22 = vld [vmem:[%s29451_s4 + $0x22c] ss:$12 sps:$4 sm:$0xff]   ;;  %v22229_v54 = vld [vmem:[%s29451_s4 + $0x228] ss:$12 sps:$4 sm:$0xff]  }
 0x34d   : > { %v24953_v28 = vsel %vm6608_vm3, %v6526_v41, %v6655_v11  ;;  %v24956_v30 = vsel %vm6608_vm3, %v6527_v43, %v6662_v8  ;;  %v3781_v1 = vrot.slane %v3773_v59, %v23808_v56  ;;  %v3788_v4 = vrot.slane %v3774_v45, %v23808_v56  ;;  %7233 = vmatpush1.bf16.msra.mxu1 %v22226_v6 }
 0x34e   : > { %v5435_v47 = vrot.slane %v5434_v55, 4  ;;  %v5442_v36 = vrot.slane %v5441_v42, 4  ;;  %v5448_v21 = vsel %vm5068_vm14, %v3750_v48, -inf  ;;  %v5455_v18 = vsel %vm5076_vm15, %v3757_v14, -inf  ;;  %7234 = vmatprep.subr.bf16.mxu1 %v22231_v22 }
 0x34f   : > { %v5449_v62 = vrot.slane %v5448_v21, 4  ;;  %v5456_v0 = vrot.slane %v5455_v18, 4  ;;  %v5462_v19 = vsel %vm5068_vm14, %v3781_v1, -inf  ;;  %v5469_v63 = vsel %vm5076_vm15, %v3788_v4, -inf }
 0x350   : > { %v5436_v57 = vmax.f32 %v5434_v55, %v5435_v47  ;;  %v5443_v49 = vmax.f32 %v5441_v42, %v5442_v36  ;;  %v5463_v58 = vrot.slane %v5462_v19, 4  ;;  %v5470_v52 = vrot.slane %v5469_v63, 4 }
 0x351   : > { %v5450_v39 = vmax.f32 %v5448_v21, %v5449_v62  ;;  %v5457_v38 = vmax.f32 %v5455_v18, %v5456_v0  ;;  %v2191_v10 = vcombine.high %v24918_v24, %v24918_v24  ;;  %v2200_v23 = vrot.slane %v24904_v15, %v23808_v56  ;;  %7235 = vmatpush1.bf16.msra.mxu1 %v22229_v54 }
 0x352   : > { %v5437_v33 = vrot.slane %v5436_v57, 2  ;;  %v5444_v26 = vrot.slane %v5443_v49, 2  ;;  %v5464_v16 = vmax.f32 %v5462_v19, %v5463_v58  ;;  %v5471_v37 = vmax.f32 %v5469_v63, %v5470_v52 }
 0x353   : > { %v5451_v7 = vrot.slane %v5450_v39, 2  ;;  %v5458_v41 = vrot.slane %v5457_v38, 2  ;;  %v2207_v24 = vrot.slane %v24906_v29, %v23808_v56  ;;  %v2208_v43 = vcombine.high %v2200_v23, %v2200_v23 }
 0x354   : > { %v5438_v15 = vmax.f32 %v5436_v57, %v5437_v33  ;;  %v5445_v5 = vmax.f32 %v5443_v49, %v5444_v26  ;;  %v5465_v48 = vrot.slane %v5464_v16, 2  ;;  %v5472_v14 = vrot.slane %v5471_v37, 2 }
 0x355   : > { %v5452_v59 = vmax.f32 %v5450_v39, %v5451_v7  ;;  %v5459_v45 = vmax.f32 %v5457_v38, %v5458_v41  ;;  %v2209_v11 = vcombine.high %v2207_v24, %v2207_v24  ;;  %v2216_v8 = vrot.slane %v2200_v23, %v23808_v56 }
 0x356   : > { %v29511_v55 = vmov 0   ;;  %v5439_v42 = vrot.slane %v5438_v15, 1  ;;  %v5446_v1 = vrot.slane %v5445_v5, 1  ;;  %v5466_v4 = vmax.f32 %v5464_v16, %v5465_v48 }
 0x357   : > { %7293 = vmatprep.subr.bf16.mxu1 %v29511_v55  ;;  %v5473_v27 = vmax.f32 %v5471_v37, %v5472_v14  ;;  %v5453_v47 = vrot.slane %v5452_v59, 1  ;;  %v5460_v29 = vrot.slane %v5459_v45, 1  ;;  %v2223_v36 = vrot.slane %v2207_v24, %v23808_v56 }
 0x358   : > { %v2230_v21 = vrot.slane %v2208_v43, %v23808_v56  ;;  %v5440_v18 = vmax.f32 %v5438_v15, %v5439_v42  ;;  %v5447_v6 = vmax.f32 %v5445_v5, %v5446_v1  ;;  %v5467_v62 = vrot.slane %v5466_v4, 1 }
 0x359   : > { %v5474_v0 = vrot.slane %v5473_v27, 1  ;;  %v5454_v19 = vmax.f32 %v5452_v59, %v5453_v47  ;;  %v5461_v63 = vmax.f32 %v5459_v45, %v5460_v29  ;;  %v2237_v57 = vrot.slane %v2209_v11, %v23808_v56 }
 0x35a   : > { %v2239_v49 = vcombine.high %v2223_v36, %v2223_v36  ;;  %v5468_v58 = vmax.f32 %v5466_v4, %v5467_v62  ;;  %v21276_v39 = vpack.c.bf16 %v5447_v6, %v5440_v18  ;;  %v3789_v38 = vcombine.low %v2191_v10, %v2216_v8 }
 0x35b   : > { %v5475_v52 = vmax.f32 %v5473_v27, %v5474_v0  ;;  %v21277_v23 = vpack.c.bf16 %v5461_v63, %v5454_v19  ;;  %v2241_v22 = vcombine.high %v2237_v57, %v2237_v57  ;;  %v3803_v33 = vrot.slane %v2230_v21, %v23808_v56 }
 0x35c   : > { %v19210_v26 = vcombine.high %v2216_v8, %v2230_v21  ;;  %v6528_v37 = vunpack.c.l.b16 %v21276_v39  ;;  %v6529_v54 = vunpack.c.h.b16 %v21276_v39  ;;  %v3796_v7 = vrot.slane %v3789_v38, %v23808_v56 }
 0x35d   : > { %v21278_v16 = vpack.c.bf16 %v5475_v52, %v5468_v58  ;;  %v6530_v41 = vunpack.c.l.b16 %v21277_v23  ;;  %v6531_v24 = vunpack.c.h.b16 %v21277_v23  ;;  %v3834_v15 = vrot.slane %v2223_v36, %v23808_v56 }
 0x35e   : > { %v3827_v43 = vrot.slane %v19210_v26, %v23808_v56  ;;  %v6657_v10 = vsel %vm6610_vm4, %v6528_v37, %v24953_v28  ;;  %v6664_v14 = vsel %vm6610_vm4, %v6529_v54, %v24956_v30  ;;  %v3804_v11 = vcombine.low %v3796_v7, %v3803_v33 }
 0x35f   : > { %v6532_v5 = vunpack.c.l.b16 %v21278_v16  ;;  %v6533_v48 = vunpack.c.h.b16 %v21278_v16  ;;  %v6658_v59 = vsel %vm6612_vm8, %v6530_v41, %v6657_v10  ;;  %v6665_v45 = vsel %vm6612_vm8, %v6531_v24, %v6664_v14 }
 0x360   : > { %v3805_v8 = vcombine.high %v3796_v7, %v3803_v33  ;;  %v3835_v4 = vcombine.low %v3827_v43, %v3834_v15  ;;  %v3836_v27 = vcombine.high %v3827_v43, %v3834_v15  ;;  %v3812_v47 = vrot.slane %v3804_v11, %v23808_v56 }
 0x361   : > { %v24998_v42 = vsel %vm6614_vm5, %v6532_v5, %v6658_v59  ;;  %v25001_v1 = vsel %vm6614_vm5, %v6533_v48, %v6665_v45  ;;  %v3851_v29 = vcombine.low %v2237_v57, %v2239_v49  ;;  %v3865_v30 = vrot.slane %v2241_v22, %v23808_v56 }
 0x362   : > { %v3819_v28 = vrot.slane %v3805_v8, %v23808_v56  ;;  %v3843_v36 = vrot.slane %v3835_v4, %v23808_v56  ;;  %v3850_v21 = vrot.slane %v3836_v27, %v23808_v56  ;;  %v1516_v18 = vadd.f32 %v23795_v50, %v24887_v31 }
 0x363   : > { %v1455_v6 = vmul.f32 %v23790_v44, %v24641_v46  ;;  %v3858_v62 = vrot.slane %v3851_v29, %v23808_v56  ;;  %v5476_v0 = vsel %vm5068_vm14, %v3812_v47, -inf  ;;  %v1456_v63 = vmul.f32 %v23785_v40, %v24652_v13 }
 0x364   : > { %v5483_v19 = vsel %vm5076_vm15, %v3819_v28, -inf  ;;  %v5477_v57 = vrot.slane %v5476_v0, 4  ;;  %v5490_v58 = vsel %vm5068_vm14, %v3843_v36, -inf  ;;  %v5497_v52 = vsel %vm5076_vm15, %v3850_v21, -inf }
 0x365   : > { %v5484_v49 = vrot.slane %v5483_v19, 4  ;;  %v3866_v39 = vcombine.low %v3858_v62, %v3865_v30  ;;  %v3867_v31 = vcombine.high %v3858_v62, %v3865_v30  ;;  %v5491_v38 = vrot.slane %v5490_v58, 4 }
 0x366   : > { %v5498_v23 = vrot.slane %v5497_v52, 4  ;;  %v5478_v46 = vmax.f32 %v5476_v0, %v5477_v57  ;;  %v1566_v33 = vmax.f32 %v1516_v18, 0.0  ;;  %v1517_v26 = vadd.f32 %v23798_v53, %v1455_v6 }
 0x367   : > { %v5485_v22 = vmax.f32 %v5483_v19, %v5484_v49  ;;  %v3874_v16 = vrot.slane %v3866_v39, %v23808_v56  ;;  %v3881_v37 = vrot.slane %v3867_v31, %v23808_v56  ;;  %v5492_v13 = vmax.f32 %v5490_v58, %v5491_v38 }
 0x368   : > { %v5499_v54 = vmax.f32 %v5497_v52, %v5498_v23  ;;  %v5479_v7 = vrot.slane %v5478_v46, 2  ;;  %v1567_v24 = vmax.f32 %v1517_v26, 0.0  ;;  %v25023_v43 = vadd.f32 %v23795_v50, %v1456_v63 }
 0x369   : > { %v5486_v41 = vrot.slane %v5485_v22, 2  ;;  %v5493_v15 = vrot.slane %v5492_v13, 2  ;;  %v5504_v48 = vsel %vm5068_vm14, %v3874_v16, -inf  ;;  %v5511_v10 = vsel %vm5076_vm15, %v3881_v37, -inf }
 0x36a   : > { %v5500_v5 = vrot.slane %v5499_v54, 2  ;;  %v5480_v14 = vmax.f32 %v5478_v46, %v5479_v7  ;;  %v5505_v45 = vrot.slane %v5504_v48, 4  ;;  %v5512_v11 = vrot.slane %v5511_v10, 4 }
 0x36b   : > { %v5487_v59 = vmax.f32 %v5485_v22, %v5486_v41  ;;  %v5494_v8 = vmax.f32 %v5492_v13, %v5493_v15  ;;  %v2242_v27 = vcombine.low %v1566_v33, %v1567_v24  ;;  %v2243_v47 = vcombine.high %v1566_v33, %v1567_v24 }
 0x36c   : > { %v5501_v4 = vmax.f32 %v5499_v54, %v5500_v5  ;;  %v5481_v28 = vrot.slane %v5480_v14, 1  ;;  %v5506_v30 = vmax.f32 %v5504_v48, %v5505_v45  ;;  %v5513_v36 = vmax.f32 %v5511_v10, %v5512_v11 }
 0x36d   : > { %v5488_v29 = vrot.slane %v5487_v59, 1  ;;  %v5495_v21 = vrot.slane %v5494_v8, 1  ;;  %v2250_v6 = vrot.slane %v2242_v27, %v23808_v56  ;;  %v2257_v62 = vrot.slane %v2243_v47, %v23808_v56 }
 0x36e   : > { %v5502_v18 = vrot.slane %v5501_v4, 1  ;;  %v5482_v0 = vmax.f32 %v5480_v14, %v5481_v28  ;;  %v5507_v63 = vrot.slane %v5506_v30, 2  ;;  %v5514_v57 = vrot.slane %v5513_v36, 2 }
 0x36f   : > { %v5489_v19 = vmax.f32 %v5487_v59, %v5488_v29  ;;  %v5496_v49 = vmax.f32 %v5494_v8, %v5495_v21  ;;  %v2258_v52 = vcombine.high %v2250_v6, %v2250_v6  ;;  %v2259_v39 = vcombine.high %v2257_v62, %v2257_v62 }
 0x370   : > { %v5503_v58 = vmax.f32 %v5501_v4, %v5502_v18  ;;  %v5508_v31 = vmax.f32 %v5506_v30, %v5507_v63  ;;  %v5515_v38 = vmax.f32 %v5513_v36, %v5514_v57  ;;  %v2266_v46 = vrot.slane %v2250_v6, %v23808_v56 }
 0x371   : > { %v21279_v23 = vpack.c.bf16 %v5489_v19, %v5482_v0  ;;  %v2273_v33 = vrot.slane %v2257_v62, %v23808_v56  ;;  %v2280_v26 = vrot.slane %v2258_v52, %v23808_v56  ;;  %v2287_v16 = vrot.slane %v2259_v39, %v23808_v56 }
 0x372   : > { %v21280_v22 = vpack.c.bf16 %v5503_v58, %v5496_v49  ;;  %v5509_v37 = vrot.slane %v5508_v31, 1  ;;  %v5516_v13 = vrot.slane %v5515_v38, 1  ;;  %v2288_v15 = vcombine.high %v2266_v46, %v2266_v46 }
 0x373   : > { %v6534_v54 = vunpack.c.l.b16 %v21279_v23  ;;  %v6535_v7 = vunpack.c.h.b16 %v21279_v23  ;;  %v2290_v5 = vcombine.high %v2280_v26, %v2280_v26  ;;  %v5677_v45 = vrot.slane %v23923_v51, 1 }
 0x374   : > { %v6536_v41 = vunpack.c.l.b16 %v21280_v22  ;;  %v6537_v24 = vunpack.c.h.b16 %v21280_v22  ;;  %v5510_v48 = vmax.f32 %v5508_v31, %v5509_v37  ;;  %v5517_v10 = vmax.f32 %v5515_v38, %v5516_v13 }
 0x375   : > { %v6660_v14 = vsel %vm6616_vm6, %v6534_v54, %v24998_v42  ;;  %v6667_v59 = vsel %vm6616_vm6, %v6535_v7, %v25001_v1  ;;  %v3882_v4 = vcombine.low %v2266_v46, %v2280_v26  ;;  %v3896_v28 = vrot.slane %v2288_v15, %v23808_v56 }
 0x376   : > { %v6661_v11 = vsel %vm6618_vm7, %v6536_v41, %v6660_v14  ;;  %v6668_v8 = vsel %vm6618_vm7, %v6537_v24, %v6667_v59  ;;  %v25040_v27 = vpack.c.bf16 %v5517_v10, %v5510_v48  ;;  %v3913_v29 = vcombine.low %v2290_v5, %v2273_v33 }
 0x377   : > { %v6732_v47 = vpack.c.b16 %v6668_v8, %v6661_v11  ;;  %v3889_v30 = vrot.slane %v3882_v4, %v23808_v56  ;;  %v3927_v42 = vrot.slane %v2287_v16, %v23808_v56  ;;  %v19211_v36 = vcombine.high %v2273_v33, %v2287_v16 }
 0x378   : > { %v1457_v1 = vmul.f32 %v23790_v44, %v24672_v3  ;;  %v6538_v21 = vunpack.c.l.b16 %v25040_v27  ;;  %v3920_v18 = vrot.slane %v3913_v29, %v23808_v56  ;;  %v1568_v6 = vmax.f32 %v25023_v43, 0.0 }
 0x379   : > { %6762 = vst.msk [vmem:[#allocation2 + $0x18] sm:$0xff] %vm24101_vm12, %v6732_v47  ;;  %v1458_v62 = vmul.f32 %v23785_v40, %v24724_v34  ;;  %v6539_v0 = vunpack.c.h.b16 %v25040_v27  ;;  %v3897_v19 = vcombine.low %v3889_v30, %v3896_v28  ;;  %v3898_v63 = vcombine.high %v3889_v30, %v3896_v28 }
 0x37a   : > { %v1519_v57 = vadd.f32 %v23798_v53, %v1457_v1  ;;  %v3928_v49 = vcombine.low %v3920_v18, %v3927_v42  ;;  %v3929_v3 = vcombine.high %v3920_v18, %v3927_v42  ;;  %v3951_v58 = vrot.slane %v19211_v36, %v23808_v56 }
 0x37b   : > { %v1459_v52 = vmul.f32 %v23790_v44, %v24726_v17  ;;  %v3905_v39 = vrot.slane %v3897_v19, %v23808_v56  ;;  %v3912_v43 = vrot.slane %v3898_v63, %v23808_v56  ;;  %v25062_v34 = vadd.f32 %v23795_v50, %v1458_v62 }
 0x37c   : > { %v1569_v31 = vmax.f32 %v1519_v57, 0.0  ;;  %v3936_v38 = vrot.slane %v3928_v49, %v23808_v56  ;;  %v3943_v23 = vrot.slane %v3929_v3, %v23808_v56  ;;  %v25071_v22 = vmul.f32 %v23785_v40, %v24770_v35 }
 0x37d   : > { %v25067_v46 = vadd.f32 %v23798_v53, %v1459_v52  ;;  %v5518_v17 = vsel %vm5068_vm14, %v3905_v39, -inf  ;;  %v5525_v33 = vsel %vm5076_vm15, %v3912_v43, -inf  ;;  %v1570_v48 = vmax.f32 %v25062_v34, 0.0 }
 0x37e   : > { %v2292_v26 = vcombine.low %v1568_v6, %v1569_v31  ;;  %v2293_v16 = vcombine.high %v1568_v6, %v1569_v31  ;;  %v5519_v37 = vrot.slane %v5518_v17, 4  ;;  %v5526_v13 = vrot.slane %v5525_v33, 4 }
 0x37f   : > { %v5532_v54 = vsel %vm5068_vm14, %v3936_v38, -inf  ;;  %v5539_v7 = vsel %vm5076_vm15, %v3943_v23, -inf  ;;  %v1571_v10 = vmax.f32 %v25067_v46, 0.0  ;;  %vm29512_vm0 = vsmask.f32 7424 }
 0x380   : > { %v5533_v41 = vrot.slane %v5532_v54, 4  ;;  %v5540_v24 = vrot.slane %v5539_v7, 4  ;;  %v2300_v15 = vrot.slane %v2292_v26, %v23808_v56  ;;  %v2307_v5 = vrot.slane %v2293_v16, %v23808_v56  ;;  %vm29516_vm1 = vmmov %vm29512_vm0 }
 0x381   : > { %v5520_v40 = vmax.f32 %v5518_v17, %v5519_v37  ;;  %v5527_v35 = vmax.f32 %v5525_v33, %v5526_v13  ;;  %vm29517_vm11 = vmmov %vm29512_vm0 }
 0x382   : > { %v5534_v14 = vmax.f32 %v5532_v54, %v5533_v41  ;;  %v5541_v59 = vmax.f32 %v5539_v7, %v5540_v24  ;;  %v2308_v11 = vcombine.high %v2300_v15, %v2300_v15  ;;  %v2309_v8 = vcombine.high %v2307_v5, %v2307_v5 }
 0x383   : > { %v5521_v4 = vrot.slane %v5520_v40, 2  ;;  %v5528_v47 = vrot.slane %v5527_v35, 2  ;;  %v2316_v28 = vrot.slane %v2300_v15, %v23808_v56  ;;  %v2323_v29 = vrot.slane %v2307_v5, %v23808_v56 }
 0x384   : > { %v5535_v30 = vrot.slane %v5534_v14, 2  ;;  %v5542_v42 = vrot.slane %v5541_v59, 2  ;;  %v2330_v36 = vrot.slane %v2308_v11, %v23808_v56  ;;  %v25085_v1 = vrot.slane %v2309_v8, %v23808_v56 }
 0x385   : > { %v5522_v18 = vmax.f32 %v5520_v40, %v5521_v4  ;;  %v5529_v6 = vmax.f32 %v5527_v35, %v5528_v47  ;;  %v2338_v62 = vcombine.high %v2316_v28, %v2316_v28  ;;  %v2339_v19 = vcombine.high %v2323_v29, %v2323_v29 }
 0x386   : > { %v5536_v63 = vmax.f32 %v5534_v14, %v5535_v30  ;;  %v5543_v57 = vmax.f32 %v5541_v59, %v5542_v42  ;;  %v2340_v49 = vcombine.high %v2330_v36, %v2330_v36  ;;  %v3958_v3 = vrot.slane %v2316_v28, %v23808_v56 }
 0x387   : > { %v5523_v52 = vrot.slane %v5522_v18, 1  ;;  %v5530_v39 = vrot.slane %v5529_v6, 1  ;;  %v3975_v43 = vcombine.low %v2330_v36, %v2338_v62  ;;  %v4006_v31 = vcombine.low %v2323_v29, %v25085_v1 }
 0x388   : > { %v5537_v38 = vrot.slane %v5536_v63, 1  ;;  %v5544_v23 = vrot.slane %v5543_v57, 1  ;;  %v3959_v17 = vcombine.low %v3951_v58, %v3958_v3  ;;  %v3960_v33 = vcombine.high %v3951_v58, %v3958_v3 }
 0x389   : > { %v5524_v26 = vmax.f32 %v5522_v18, %v5523_v52  ;;  %v5531_v16 = vmax.f32 %v5529_v6, %v5530_v39  ;;  %v3982_v37 = vrot.slane %v3975_v43, %v23808_v56  ;;  %v3989_v13 = vrot.slane %v2340_v49, %v23808_v56 }
 0x38a   : > { %v5538_v54 = vmax.f32 %v5536_v63, %v5537_v38  ;;  %v5545_v7 = vmax.f32 %v5543_v57, %v5544_v23  ;;  %v3967_v41 = vrot.slane %v3959_v17, %v23808_v56  ;;  %v3974_v24 = vrot.slane %v3960_v33, %v23808_v56 }
 0x38b   : > { %v21282_v15 = vpack.c.bf16 %v5531_v16, %v5524_v26  ;;  %v3990_v5 = vcombine.low %v3982_v37, %v3989_v13  ;;  %v3991_v40 = vcombine.high %v3982_v37, %v3989_v13  ;;  %v4013_v35 = vrot.slane %v4006_v31, %v23808_v56 }
 0x38c   : > { %v21283_v14 = vpack.c.bf16 %v5545_v7, %v5538_v54  ;;  %v4020_v58 = vrot.slane %v2339_v19, %v23808_v56  ;;  %v5546_v59 = vsel %vm5068_vm14, %v3967_v41, -inf  ;;  %v5553_v11 = vsel %vm5076_vm15, %v3974_v24, -inf }
 0x38d   : > { %v6540_v8 = vunpack.c.l.b16 %v21282_v15  ;;  %v6541_v4 = vunpack.c.h.b16 %v21282_v15  ;;  %v3998_v47 = vrot.slane %v3990_v5, %v23808_v56  ;;  %v4005_v28 = vrot.slane %v3991_v40, %v23808_v56 }
 0x38e   : > { %v6542_v29 = vunpack.c.l.b16 %v21283_v14  ;;  %v6543_v30 = vunpack.c.h.b16 %v21283_v14  ;;  %v4021_v42 = vcombine.low %v4013_v35, %v4020_v58  ;;  %v4022_v36 = vcombine.high %v4013_v35, %v4020_v58 }
 0x38f   : > { %v6669_v18 = vsel %vm6004_vm2, %v6540_v8, %v6538_v21  ;;  %v6676_v6 = vsel %vm6004_vm2, %v6541_v4, %v6539_v0  ;;  %v5547_v62 = vrot.slane %v5546_v59, 4  ;;  %v5554_v19 = vrot.slane %v5553_v11, 4 }
 0x390   : > { %v6670_v63 = vsel %vm6608_vm3, %v6542_v29, %v6669_v18  ;;  %v6677_v57 = vsel %vm6608_vm3, %v6543_v30, %v6676_v6  ;;  %v4029_v49 = vrot.slane %v4021_v42, %v23808_v56  ;;  %v4036_v3 = vrot.slane %v4022_v36, %v23808_v56 }
 0x391   : > { %v5548_v52 = vmax.f32 %v5546_v59, %v5547_v62  ;;  %v5555_v39 = vmax.f32 %v5553_v11, %v5554_v19  ;;  %v5560_v43 = vsel %vm5068_vm14, %v3998_v47, -inf  ;;  %v5567_v21 = vsel %vm5076_vm15, %v4005_v28, -inf }
 0x392   : > { %v5561_v31 = vrot.slane %v5560_v43, 4  ;;  %v5568_v27 = vrot.slane %v5567_v21, 4  ;;  %v5574_v0 = vsel %vm5068_vm14, %v4029_v49, -inf  ;;  %v5581_v38 = vsel %vm5076_vm15, %v4036_v3, -inf }
 0x393   : > { %v5549_v23 = vrot.slane %v5548_v52, 2  ;;  %v5556_v17 = vrot.slane %v5555_v39, 2  ;;  %v5575_v33 = vrot.slane %v5574_v0, 4  ;;  %v5582_v26 = vrot.slane %v5581_v38, 4 }
 0x394   : > { %v5562_v16 = vmax.f32 %v5560_v43, %v5561_v31  ;;  %v5569_v37 = vmax.f32 %v5567_v21, %v5568_v27  ;;  %v2341_v13 = vcombine.high %v25085_v1, %v25085_v1  ;;  %v2342_v54 = vcombine.low %v1570_v48, %v1571_v10 }
 0x395   : > { %v5550_v7 = vmax.f32 %v5548_v52, %v5549_v23  ;;  %v5557_v41 = vmax.f32 %v5555_v39, %v5556_v17  ;;  %v5576_v24 = vmax.f32 %v5574_v0, %v5575_v33  ;;  %v5583_v15 = vmax.f32 %v5581_v38, %v5582_v26 }
 0x396   : > { %v5563_v5 = vrot.slane %v5562_v16, 2  ;;  %v5570_v40 = vrot.slane %v5569_v37, 2  ;;  %v2343_v35 = vcombine.high %v1570_v48, %v1571_v10  ;;  %v2350_v14 = vrot.slane %v2342_v54, %v23808_v56 }
 0x397   : > { %v5551_v58 = vrot.slane %v5550_v7, 1  ;;  %v5558_v1 = vrot.slane %v5557_v41, 1  ;;  %v5577_v59 = vrot.slane %v5576_v24, 2  ;;  %v5584_v11 = vrot.slane %v5583_v15, 2 }
 0x398   : > { %v5564_v8 = vmax.f32 %v5562_v16, %v5563_v5  ;;  %v5571_v4 = vmax.f32 %v5569_v37, %v5570_v40  ;;  %v2357_v47 = vrot.slane %v2343_v35, %v23808_v56  ;;  %v2358_v28 = vcombine.high %v2350_v14, %v2350_v14 }
 0x399   : > { %v5552_v29 = vmax.f32 %v5550_v7, %v5551_v58  ;;  %v5559_v30 = vmax.f32 %v5557_v41, %v5558_v1  ;;  %v5578_v42 = vmax.f32 %v5576_v24, %v5577_v59  ;;  %v5585_v36 = vmax.f32 %v5583_v15, %v5584_v11 }
 0x39a   : > { %v5565_v18 = vrot.slane %v5564_v8, 1  ;;  %v5572_v46 = vrot.slane %v5571_v4, 1  ;;  %v2359_v6 = vcombine.high %v2357_v47, %v2357_v47  ;;  %v2366_v34 = vrot.slane %v2350_v14, %v23808_v56 }
 0x39b   : > { %v5579_v48 = vrot.slane %v5578_v42, 1  ;;  %v5586_v10 = vrot.slane %v5585_v36, 1  ;;  %v21284_v62 = vpack.c.bf16 %v5559_v30, %v5552_v29  ;;  %v2373_v19 = vrot.slane %v2357_v47, %v23808_v56 }
 0x39c   : > { %v5566_v49 = vmax.f32 %v5564_v8, %v5565_v18  ;;  %v5573_v3 = vmax.f32 %v5571_v4, %v5572_v46  ;;  %v2380_v52 = vrot.slane %v2358_v28, %v23808_v56  ;;  %v2387_v39 = vrot.slane %v2359_v6, %v23808_v56 }
 0x39d   : > { %v5580_v43 = vmax.f32 %v5578_v42, %v5579_v48  ;;  %v5587_v21 = vmax.f32 %v5585_v36, %v5586_v10  ;;  %v6544_v31 = vunpack.c.l.b16 %v21284_v62  ;;  %v6545_v27 = vunpack.c.h.b16 %v21284_v62 }
 0x39e   : > { %v21285_v0 = vpack.c.bf16 %v5573_v3, %v5566_v49  ;;  %v2389_v38 = vcombine.high %v2373_v19, %v2373_v19  ;;  %v2391_v23 = vcombine.high %v2387_v39, %v2387_v39  ;;  %v4037_v17 = vcombine.low %v2341_v13, %v2366_v34 }
 0x39f   : > { %v21286_v33 = vpack.c.bf16 %v5587_v21, %v5580_v43  ;;  %v6671_v26 = vsel %vm6610_vm4, %v6544_v31, %v6670_v63  ;;  %v6678_v16 = vsel %vm6610_vm4, %v6545_v27, %v6677_v57  ;;  %v4051_v37 = vrot.slane %v2380_v52, %v23808_v56 }
 0x3a0   : > { %v6546_v54 = vunpack.c.l.b16 %v21285_v0  ;;  %v6547_v7 = vunpack.c.h.b16 %v21285_v0  ;;  %v4044_v41 = vrot.slane %v4037_v17, %v23808_v56  ;;  %v19212_v24 = vcombine.high %v2366_v34, %v2380_v52 }
 0x3a1   : > { %v6548_v15 = vunpack.c.l.b16 %v21286_v33  ;;  %v6549_v5 = vunpack.c.h.b16 %v21286_v33  ;;  %v4082_v40 = vrot.slane %v2373_v19, %v23808_v56  ;;  %v4099_v35 = vcombine.low %v2387_v39, %v2389_v38 }
 0x3a2   : > { %v6672_v14 = vsel %vm6612_vm8, %v6546_v54, %v6671_v26  ;;  %v6679_v13 = vsel %vm6612_vm8, %v6547_v7, %v6678_v16  ;;  %v4052_v58 = vcombine.low %v4044_v41, %v4051_v37  ;;  %v4053_v63 = vcombine.high %v4044_v41, %v4051_v37 }
 0x3a3   : > { %v25137_v57 = vsel %vm6614_vm5, %v6548_v15, %v6672_v14  ;;  %v25140_v1 = vsel %vm6614_vm5, %v6549_v5, %v6679_v13  ;;  %v4075_v59 = vrot.slane %v19212_v24, %v23808_v56  ;;  %v4106_v11 = vrot.slane %v4099_v35, %v23808_v56 }
 0x3a4   : > { %v4060_v8 = vrot.slane %v4052_v58, %v23808_v56  ;;  %v4067_v4 = vrot.slane %v4053_v63, %v23808_v56  ;;  %v4113_v47 = vrot.slane %v2391_v23, %v23808_v56  ;;  %v1522_v28 = vadd.f32 %v23795_v50, %v25071_v22 }
 0x3a5   : > { %v5684_v29 = vrot.slane %v23937_v60, 1  ;;  %v4083_v30 = vcombine.low %v4075_v59, %v4082_v40  ;;  %v4084_v42 = vcombine.high %v4075_v59, %v4082_v40  ;;  %v1461_v36 = vmul.f32 %v23790_v44, %v24795_v32 }
 0x3a6   : > { %v4114_v18 = vcombine.low %v4106_v11, %v4113_v47  ;;  %v4115_v46 = vcombine.high %v4106_v11, %v4113_v47  ;;  %v5588_v6 = vsel %vm5068_vm14, %v4060_v8, -inf  ;;  %v5595_v34 = vsel %vm5076_vm15, %v4067_v4, -inf  ;;  %v25166_v4 = vld [vmem:[#allocation2 + $0x8] sm:$0xff] }
 0x3a7   : > { %v4091_v48 = vrot.slane %v4083_v30, %v23808_v56  ;;  %v4098_v10 = vrot.slane %v4084_v42, %v23808_v56  ;;  %v5589_v62 = vrot.slane %v5588_v6, 4  ;;  %v5596_v19 = vrot.slane %v5595_v34, 4 }
 0x3a8   : > { %v4122_v50 = vrot.slane %v4114_v18, %v23808_v56  ;;  %v4129_v22 = vrot.slane %v4115_v46, %v23808_v56  ;;  %v1572_v49 = vmax.f32 %v1522_v28, 0.0  ;;  %v1523_v3 = vadd.f32 %v23798_v53, %v1461_v36 }
 0x3a9   : > { %v5590_v44 = vmax.f32 %v5588_v6, %v5589_v62  ;;  %v5597_v32 = vmax.f32 %v5595_v34, %v5596_v19  ;;  %v5602_v52 = vsel %vm5068_vm14, %v4091_v48, -inf  ;;  %v5609_v39 = vsel %vm5076_vm15, %v4098_v10, -inf  ;;  %v6777_v34 = vld [vmem:[#allocation2] sm:$0xff] }
 0x3aa   : > { %v5603_v43 = vrot.slane %v5602_v52, 4  ;;  %v5610_v21 = vrot.slane %v5609_v39, 4  ;;  %v5616_v31 = vsel %vm5068_vm14, %v4122_v50, -inf  ;;  %v5623_v27 = vsel %vm5076_vm15, %v4129_v22, -inf }
 0x3ab   : > { %v5591_v0 = vrot.slane %v5590_v44, 2  ;;  %v5598_v38 = vrot.slane %v5597_v32, 2  ;;  %v5617_v23 = vrot.slane %v5616_v31, 4  ;;  %v5624_v17 = vrot.slane %v5623_v27, 4 }
 0x3ac   : > { %v5691_v33 = vrot.slane %v24420_v2, 1  ;;  %v5604_v26 = vmax.f32 %v5602_v52, %v5603_v43  ;;  %v5611_v53 = vmax.f32 %v5609_v39, %v5610_v21  ;;  %v1573_v16 = vmax.f32 %v1523_v3, 0.0 }
 0x3ad   : > { %v5592_v37 = vmax.f32 %v5590_v44, %v5591_v0  ;;  %v5599_v54 = vmax.f32 %v5597_v32, %v5598_v38  ;;  %v5618_v7 = vmax.f32 %v5616_v31, %v5617_v23  ;;  %v5625_v41 = vmax.f32 %v5623_v27, %v5624_v17 }
 0x3ae   : > { %v5605_v24 = vrot.slane %v5604_v26, 2  ;;  %v5612_v15 = vrot.slane %v5611_v53, 2  ;;  %v2392_v5 = vcombine.low %v1572_v49, %v1573_v16  ;;  %v2393_v40 = vcombine.high %v1572_v49, %v1573_v16 }
 0x3af   : > { %v5593_v35 = vrot.slane %v5592_v37, 1  ;;  %v5600_v14 = vrot.slane %v5599_v54, 1  ;;  %v5619_v13 = vrot.slane %v5618_v7, 2  ;;  %v5626_v58 = vrot.slane %v5625_v41, 2 }
 0x3b0   : > { %v5606_v63 = vmax.f32 %v5604_v26, %v5605_v24  ;;  %v5613_v59 = vmax.f32 %v5611_v53, %v5612_v15  ;;  %v2400_v11 = vrot.slane %v2392_v5, %v23808_v56  ;;  %v2407_v8 = vrot.slane %v2393_v40, %v23808_v56 }
 0x3b1   : > { %v5594_v47 = vmax.f32 %v5592_v37, %v5593_v35  ;;  %v5601_v28 = vmax.f32 %v5599_v54, %v5600_v14  ;;  %v5620_v30 = vmax.f32 %v5618_v7, %v5619_v13  ;;  %v5627_v42 = vmax.f32 %v5625_v41, %v5626_v58  ;;  %v25185_v54 = vld [vmem:[#allocation2 + $0x14] ss:$8 sps:$4 sm:$0xff]  }
 0x3b2   : > { %v5607_v36 = vrot.slane %v5606_v63, 1  ;;  %v5614_v18 = vrot.slane %v5613_v59, 1  ;;  %v2408_v46 = vcombine.high %v2400_v11, %v2400_v11  ;;  %v2409_v6 = vcombine.high %v2407_v8, %v2407_v8 }
 0x3b3   : > { %v21287_v48 = vpack.c.bf16 %v5601_v28, %v5594_v47  ;;  %v2416_v10 = vrot.slane %v2400_v11, %v23808_v56  ;;  %v25170_v62 = vcombine.low %v6777_v34, %v25166_v4  ;;  %v25173_v19 = vcombine.high %v6777_v34, %v25166_v4 }
 0x3b4   : > { %v5608_v50 = vmax.f32 %v5606_v63, %v5607_v36  ;;  %v5615_v22 = vmax.f32 %v5613_v59, %v5614_v18  ;;  %v5621_v49 = vrot.slane %v5620_v30, 1  ;;  %v2430_v3 = vrot.slane %v2408_v46, %v23808_v56 }
 0x3b5   : > { %v5628_v44 = vrot.slane %v5627_v42, 1  ;;  %v6550_v32 = vunpack.c.l.b16 %v21287_v48  ;;  %v6551_v52 = vunpack.c.h.b16 %v21287_v48  ;;  %v2423_v39 = vrot.slane %v2407_v8, %v23808_v56  ;;  %v25208_v48 = vld [vmem:[#allocation2 + $0x10] ss:$8 sps:$4 sm:$0xff]  }
 0x3b6   : > { %v21288_v43 = vpack.c.bf16 %v5615_v22, %v5608_v50  ;;  %v2437_v21 = vrot.slane %v2409_v6, %v23808_v56  ;;  %v2438_v31 = vcombine.high %v2416_v10, %v2416_v10  ;;  %v2440_v27 = vcombine.high %v2430_v3, %v2430_v3 }
 0x3b7   : > { %v6674_v0 = vsel %vm6616_vm6, %v6550_v32, %v25137_v57  ;;  %v6681_v38 = vsel %vm6616_vm6, %v6551_v52, %v25140_v1  ;;  %v4130_v23 = vcombine.low %v2416_v10, %v2430_v3  ;;  %v6934_v17 = vshrl.u32 %v25173_v19, 16 }
 0x3b8   : > { %v25183_v26 = vmax.f32 %v5620_v30, %v5621_v49  ;;  %v6552_v53 = vunpack.c.l.b16 %v21288_v43  ;;  %v6553_v16 = vunpack.c.h.b16 %v21288_v43  ;;  %v4161_v37 = vcombine.low %v2440_v27, %v2423_v39 }
 0x3b9   : > { %v25187_v7 = vmax.f32 %v5627_v42, %v5628_v44  ;;  %v4137_v41 = vrot.slane %v4130_v23, %v23808_v56  ;;  %v4144_v24 = vrot.slane %v2438_v31, %v23808_v56  ;;  %v4175_v57 = vrot.slane %v2437_v21, %v23808_v56 }
 0x3ba   : > { %v6675_v1 = vsel %vm6618_vm7, %v6552_v53, %v6674_v0  ;;  %v6682_v15 = vsel %vm6618_vm7, %v6553_v16, %v6681_v38  ;;  %v4168_v5 = vrot.slane %v4161_v37, %v23808_v56  ;;  %v19213_v40 = vcombine.high %v2423_v39, %v2437_v21 }
 0x3bb   : > { %v6733_v35 = vpack.c.b16 %v6682_v15, %v6675_v1  ;;  %v4145_v14 = vcombine.low %v4137_v41, %v4144_v24  ;;  %v4146_v13 = vcombine.high %v4137_v41, %v4144_v24  ;;  %v6936_v58 = vshll.u32 %v25173_v19, 16 }
 0x3bc   : > { %v4176_v63 = vcombine.low %v4168_v5, %v4175_v57  ;;  %v4177_v59 = vcombine.high %v4168_v5, %v4175_v57  ;;  %v4199_v11 = vrot.slane %v19213_v40, %v23808_v56  ;;  %v6941_v8 = vshll.u32 %v25185_v54, 16 }
 0x3bd   : > { %6763 = vst.msk [vmem:[#allocation2 + $0x20] sm:$0xff] %vm24101_vm12, %v6733_v35  ;;  %v4153_v47 = vrot.slane %v4145_v14, %v23808_v56  ;;  %v4160_v28 = vrot.slane %v4146_v13, %v23808_v56  ;;  %v6938_v30 = vrot.slane %v6936_v58, 1  ;;  %v6922_v39 = vshrl.u32 %v25170_v62, 16 }
 0x3be   : > { %v4184_v42 = vrot.slane %v4176_v63, %v23808_v56  ;;  %v4191_v36 = vrot.slane %v4177_v59, %v23808_v56  ;;  %v4207_v18 = vcombine.low %v4199_v11, %v23920_v12  ;;  %v4208_v46 = vcombine.high %v4199_v11, %v23920_v12  ;;  %v22237_v11 = vld [vmem:[%s29451_s4 + $0x128] ss:$12 sps:$4 sm:$0xff]  }
 0x3bf   : > { %v5630_v6 = vsel %vm5068_vm14, %v4153_v47, -inf  ;;  %v5637_v34 = vsel %vm5076_vm15, %v4160_v28, -inf  ;;  %v6939_v10 = vor.u32 %v6938_v30, %v6934_v17  ;;  %v25210_v50 = vrot.slane %v6941_v8, 1 }
 0x3c0   : > { %v4215_v22 = vrot.slane %v4207_v18, %v23808_v56  ;;  %v4222_v49 = vrot.slane %v4208_v46, %v23808_v56  ;;  %v5631_v3 = vrot.slane %v5630_v6, 4  ;;  %v5638_v44 = vrot.slane %v5637_v34, 4 }
 0x3c1   : > { %v5644_v32 = vsel %vm5068_vm14, %v4184_v42, -inf  ;;  %v5651_v52 = vsel %vm5076_vm15, %v4191_v36, -inf  ;;  %v25218_v12 = vsel %vm29512_vm0, %v6939_v10, %v25210_v50  ;;  %v6924_v23 = vshll.u32 %v25170_v62, 16 }
 0x3c2   : > { %v5632_v43 = vmax.f32 %v5630_v6, %v5631_v3  ;;  %v5639_v21 = vmax.f32 %v5637_v34, %v5638_v44  ;;  %v5645_v31 = vrot.slane %v5644_v32, 4  ;;  %v5652_v27 = vrot.slane %v5651_v52, 4  ;;  %19379 = vmatprep.mubr.msk.bf16.mxu1 %vm7196_vm9, %v25218_v12  ;;  %v22238_v44 = vld [vmem:[%s29451_s4 + $0x140] ss:$12 sps:$4 sm:$0xff]  }
 0x3c3   : > { %v5658_v0 = vsel %vm5068_vm14, %v4215_v22, -inf  ;;  %v5665_v38 = vsel %vm5076_vm15, %v4222_v49, -inf  ;;  %v6929_v17 = vshll.u32 %v25208_v48, 16  ;;  %v6926_v1 = vrot.slane %v6924_v23, 1  ;;  %vm29513_vm15 = vmmov %vm29512_vm0 }
 0x3c4   : > { %v5633_v53 = vrot.slane %v5632_v43, 2  ;;  %v5640_v16 = vrot.slane %v5639_v21, 2  ;;  %v5646_v37 = vmax.f32 %v5644_v32, %v5645_v31  ;;  %v5653_v41 = vmax.f32 %v5651_v52, %v5652_v27 }
 0x3c5   : > { %v5659_v24 = vrot.slane %v5658_v0, 4  ;;  %v5666_v57 = vrot.slane %v5665_v38, 4  ;;  %v25227_v15 = vrot.slane %v6929_v17, 1  ;;  %v5698_v13 = vrot.slane %v24425_v25, 1 }
 0x3c6   : > { %v5634_v5 = vmax.f32 %v5632_v43, %v5633_v53  ;;  %v5641_v40 = vmax.f32 %v5639_v21, %v5640_v16  ;;  %v5647_v35 = vrot.slane %v5646_v37, 2  ;;  %v5654_v14 = vrot.slane %v5653_v41, 2 }
 0x3c7   : > { %v5660_v58 = vmax.f32 %v5658_v0, %v5659_v24  ;;  %v5667_v63 = vmax.f32 %v5665_v38, %v5666_v57  ;;  %v6927_v59 = vor.u32 %v6926_v1, %v6922_v39  ;;  %v21289_v42 = vpack.c.bf16 %v25187_v7, %v25183_v26 }
 0x3c8   : > { %v5635_v8 = vrot.slane %v5634_v5, 1  ;;  %v5642_v47 = vrot.slane %v5641_v40, 1  ;;  %v5648_v28 = vmax.f32 %v5646_v37, %v5647_v35  ;;  %v5655_v30 = vmax.f32 %v5653_v41, %v5654_v14 }
 0x3c9   : > { %v5661_v36 = vrot.slane %v5660_v58, 2  ;;  %v5668_v18 = vrot.slane %v5667_v63, 2  ;;  %v25237_v46 = vsel %vm29513_vm15, %v6927_v59, %v25227_v15  ;;  %v5678_v49 = vmax.f32 %v23923_v51, %v5677_v45  ;;  %vm29518_vm15 = vmmov %vm29512_vm0 }
 0x3ca   : > { %v5636_v6 = vmax.f32 %v5634_v5, %v5635_v8  ;;  %v5643_v34 = vmax.f32 %v5641_v40, %v5642_v47  ;;  %v5649_v10 = vrot.slane %v5648_v28, 1  ;;  %v5656_v22 = vrot.slane %v5655_v30, 1  ;;  %7245 = vmatmul.mubr.bf16.vlgmr.msra.gmra.mrb[20].mxu1 %v25237_v46  ;;  %v22240_v40 = vld [vmem:[%s29451_s4 + $0x170] ss:$12 sps:$4 sm:$0xff]  }
 0x3cb   : > { %v5685_v26 = vmax.f32 %v23937_v60, %v5684_v29  ;;  %v5662_v7 = vmax.f32 %v5660_v58, %v5661_v36  ;;  %v5669_v3 = vmax.f32 %v5667_v63, %v5668_v18  ;;  %7294 = vmatpush1.bf16.msra.mxu1 %v22237_v11  ;;  %v5692_v32 = vmax.f32 %v24420_v2, %v5691_v33  ;;  %v22239_v2 = vld [vmem:[%s29451_s4 + $0x158] ss:$12 sps:$4 sm:$0xff]  }
 0x3cc   : > { %v5650_v52 = vmax.f32 %v5648_v28, %v5649_v10  ;;  %v5657_v39 = vmax.f32 %v5655_v30, %v5656_v22  ;;  %v21290_v43 = vpack.c.bf16 %v5643_v34, %v5636_v6  ;;  %7295 = vmatprep.subr.bf16.mxu1 %v29511_v55  ;;  %v5699_v51 = vmax.f32 %v24425_v25, %v5698_v13  ;;  %v29514_v30 = vld [vmem:[#allocation10_spill] sm:$0xff] }
 0x3cd   : > { %v6554_v45 = vunpack.c.l.b16 %v21289_v42  ;;  %v5663_v60 = vrot.slane %v5662_v7, 1  ;;  %v5670_v29 = vrot.slane %v5669_v3, 1  ;;  %v6555_v21 = vunpack.c.h.b16 %v21289_v42  ;;  %v22244_v34 = vld [vmem:[%s29451_s4 + $0x188] ss:$12 sps:$4 sm:$0xff]  }
 0x3ce   : > { %v21291_v31 = vpack.c.bf16 %v5657_v39, %v5650_v52  ;;  %v6556_v27 = vunpack.c.l.b16 %v21290_v43  ;;  %v6557_v0 = vunpack.c.h.b16 %v21290_v43  ;;  %v21293_v38 = vpack.c.bf16 %v5685_v26, %v5678_v49 }
 0x3cf   : > { %v5664_v23 = vmax.f32 %v5662_v7, %v5663_v60  ;;  %v5671_v17 = vmax.f32 %v5669_v3, %v5670_v29  ;;  %7296 = vmatpush1.bf16.msra.mxu1 %v22238_v44  ;;  %v21294_v37 = vpack.c.bf16 %v5699_v51, %v5692_v32  ;;  %v6566_v11 = vunpack.c.l.b16 %v23916_v9  ;;  %v22247_v7 = vld [vmem:[%s29451_s4 + $0x1a0] ss:$12 sps:$4 sm:$0xff]   ;;  %v22249_v3 = vld [vmem:[%s29451_s4 + $0x1b8] ss:$12 sps:$4 sm:$0xff]   ;;  %v25294_v44 = vld [vmem:[#allocation2 + $0x34] ss:$8 sps:$4 sm:$0xff]  }
 0x3d0   : > { %v6558_v33 = vunpack.c.l.b16 %v21291_v31  ;;  %v6559_v53 = vunpack.c.h.b16 %v21291_v31  ;;  %v6683_v16 = vsel %vm6004_vm2, %v6556_v27, %v6554_v45  ;;  %v6690_v25 = vsel %vm6004_vm2, %v6557_v0, %v6555_v21  ;;  %7297 = vmatprep.subr.bf16.mxu1 %v29511_v55  ;;  %v22251_v32 = vld [vmem:[%s29451_s4 + $0x1d0] ss:$12 sps:$4 sm:$0xff]   ;;  %v6834_v51 = vld [vmem:[#allocation2 + $0x40] sm:$0x33] }
 0x3d1   : > { %v21292_v41 = vpack.c.bf16 %v5671_v17, %v5664_v23  ;;  %v6562_v35 = vunpack.c.l.b16 %v21293_v38  ;;  %v6563_v14 = vunpack.c.h.b16 %v21293_v38  ;;  %v6564_v13 = vunpack.c.l.b16 %v21294_v37  ;;  %v25314_v17 = vld [vmem:[#allocation2 + $0x30] ss:$8 sps:$4 sm:$0xff]  }
 0x3d2   : > { %v6684_v24 = vsel %vm6608_vm3, %v6558_v33, %v6683_v16  ;;  %v6691_v57 = vsel %vm6608_vm3, %v6559_v53, %v6690_v25  ;;  %v6565_v58 = vunpack.c.h.b16 %v21294_v37  ;;  %v6567_v8 = vunpack.c.h.b16 %v23916_v9 }
 0x3d3   : > { %v6560_v1 = vunpack.c.l.b16 %v21292_v41  ;;  %v6561_v5 = vunpack.c.h.b16 %v21292_v41  ;;  %7298 = vmatpush1.bf16.msra.mxu1 %v22239_v2  ;;  %v6568_v42 = vunpack.c.l.b16 %v29514_v30  ;;  %v6569_v36 = vunpack.c.h.b16 %v29514_v30  ;;  %v22253_v2 = vld [vmem:[%s29451_s4 + $0x1e8] ss:$12 sps:$4 sm:$0xff]  }
 0x3d4   : > { %7299 = vmatprep.subr.bf16.mxu1 %v29511_v55  ;;  %v6953_v61 = vshrl.u32 %v25185_v54, 16  ;;  %v6945_v43 = vshrl.u32 %v25208_v48, 16  ;;  %v6973_v29 = vshll.u32 %v25294_v44, 16  ;;  %v25312_v23 = vcombine.high %v6834_v51, %v6834_v51 }
 0x3d5   : > { %v6685_v63 = vsel %vm6610_vm4, %v6560_v1, %v6684_v24  ;;  %v6692_v59 = vsel %vm6610_vm4, %v6561_v5, %v6691_v57  ;;  %v6965_v41 = vshll.u32 %v25314_v17, 16  ;;  %v22254_v24 = vld [vmem:[%s29451_s4 + $0x200] ss:$12 sps:$4 sm:$0xff]   ;;  %v25332_v1 = vcombine.low %v6834_v51, %v6834_v51  ;;  %v22275_v51 = vld [vmem:[%s29451_s4 + $0x90] ss:$12 sps:$4 sm:$0xff]  }
 0x3d6   : > { %v6686_v47 = vsel %vm6612_vm8, %v6562_v35, %v6685_v63  ;;  %v6693_v28 = vsel %vm6612_vm8, %v6563_v14, %v6692_v59  ;;  %v6955_v21 = vor.u32 %v6953_v61, %v25210_v50  ;;  %v6947_v31 = vor.u32 %v6945_v43, %v25227_v15  ;;  %v22255_v14 = vld [vmem:[%s29451_s4 + $0x218] ss:$12 sps:$4 sm:$0xff]   ;;  %v22277_v43 = vld [vmem:[%s29451_s4 + $0x94] ss:$12 sps:$4 sm:$0xff]  }
 0x3d7   : > { %v6687_v18 = vsel %vm6614_vm5, %v6564_v13, %v6686_v47  ;;  %v6694_v6 = vsel %vm6614_vm5, %v6565_v58, %v6693_v28  ;;  %7300 = vmatpush1.bf16.msra.mxu1 %v22240_v40  ;;  %v6975_v53 = vrot.slane %v6973_v29, 1  ;;  %v6989_v25 = vshll.u32 %v25312_v23, 16  ;;  %v22272_v61 = vld [vmem:[%s29451_s4 + $0x78] ss:$12 sps:$4 sm:$0xff]  }
 0x3d8   : > { %v6688_v10 = vsel %vm6616_vm6, %v6566_v11, %v6687_v18  ;;  %v6695_v9 = vsel %vm6616_vm6, %v6567_v8, %v6694_v6  ;;  %7301 = vmatprep.subr.bf16.mxu1 %v29511_v55  ;;  %v6985_v5 = vshrl.u32 %v25294_v44, 16  ;;  %v6967_v35 = vrot.slane %v6965_v41, 1  ;;  %v22256_v11 = vld [vmem:[%s29451_s4 + $0x230] ss:$12 sps:$4 sm:$0xff]   ;;  %v6785_v41 = vld [vmem:[#allocation2 + $0x40] sm:$0x11] }
 0x3d9   : > { %v6689_v22 = vsel %vm6618_vm7, %v6568_v42, %v6688_v10  ;;  %v6696_v49 = vsel %vm6618_vm7, %v6569_v36, %v6695_v9  ;;  %v6991_v40 = vrot.slane %v6989_v25, 1  ;;  %v6981_v63 = vshll.u32 %v25332_v1, 16  ;;  %v22259_v8 = vld [vmem:[%s29451_s4 + $0x4] ss:$12 sps:$4 sm:$0xff]   ;;  %v22257_v10 = vld [vmem:[%s29451_s4] ss:$12 sps:$4 sm:$0xff]  }
 0x3da   : > { %v6734_v26 = vpack.c.b16 %v6696_v49, %v6689_v22  ;;  %v6987_v13 = vor.u32 %v6985_v5, %v6975_v53  ;;  %v6977_v47 = vshrl.u32 %v25314_v17, 16  ;;  %v6996_v42 = vshrl.u32 %v25312_v23, 16  ;;  %v22262_v9 = vld [vmem:[%s29451_s4 + $0x1c] ss:$12 sps:$4 sm:$0xff]   ;;  %v22260_v22 = vld [vmem:[%s29451_s4 + $0x18] ss:$12 sps:$4 sm:$0xff]  }
 0x3db   : > { %7302 = vmatpush1.bf16.msra.mxu1 %v22244_v34  ;;  %v6983_v28 = vrot.slane %v6981_v63, 1  ;;  %v6993_v6 = vshrl.u32 %v25332_v1, 16  ;;  %v22263_v49 = vld [vmem:[%s29451_s4 + $0x30] ss:$12 sps:$4 sm:$0xff]   ;;  %v22297_v25 = vld [vmem:[%s29451_s4 + $0x68] ss:$12 sps:$4 sm:$0xff]  }
 0x3dc   : > { %6764 = vst.msk [vmem:[#allocation2 + $0x28] sm:$0xff] %vm24101_vm12, %v6734_v26  ;;  %7303 = vmatprep.subr.bf16.mxu1 %v29511_v55  ;;  %vm29515_vm12 = vmmov %vm29512_vm0  ;;  %v6992_v59 = vsel %vm29518_vm15, %v6987_v13, %v6991_v40  ;;  %v6979_v30 = vor.u32 %v6977_v47, %v6967_v35  ;;  %v6998_v18 = vor.u32 %v6996_v42, %v6991_v40  ;;  %v22266_v26 = vld [vmem:[%s29451_s4 + $0x48] ss:$12 sps:$4 sm:$0xff]   ;;  %v22283_v29 = vld [vmem:[%s29451_s4 + $0xc4] ss:$12 sps:$4 sm:$0xff]  }
 0x3dd   : > { %v6995_v34 = vor.u32 %v6993_v6, %v6983_v28  ;;  %v22301_v5 = vld [vmem:[%s29451_s4 + $0xb0] ss:$12 sps:$4 sm:$0xff]   ;;  %v22303_v40 = vld [vmem:[%s29451_s4 + $0xc8] ss:$12 sps:$4 sm:$0xff]   ;;  %v22305_v13 = vld [vmem:[%s29451_s4 + $0xf8] ss:$12 sps:$4 sm:$0xff]  }
 0x3de   : > { %v22307_v63 = vld [vmem:[%s29451_s4 + $0x240] ss:$12 sps:$4 sm:$0xff]   ;;  %v22313_v47 = vld [vmem:[%s29451_s4 + $0x270] ss:$12 sps:$4 sm:$0xff]  }
 0x3df   : > { %7304 = vmatpush1.bf16.msra.mxu1 %v22247_v7  ;;  %v22271_v7 = vld [vmem:[%s29451_s4 + $0x64] ss:$12 sps:$4 sm:$0xff]   ;;  %v22319_v42 = vld [vmem:[%s29451_s4 + $0x2a0] ss:$12 sps:$4 sm:$0xff]  }
 0x3e0   : > { %7305 = vmatprep.subr.bf16.mxu1 %v29511_v55  ;;  %v22327_v6 = vld [vmem:[%s29451_s4 + $0x2d4] ss:$12 sps:$4 sm:$0xff]  }
 0x3e3   : > { %v25299_v52 = vld [vmem:[#allocation2 + $0x24] ss:$8 sps:$4 sm:$0xff]   ;;  %v25301_v39 = vld [vmem:[#allocation2 + $0x20] ss:$8 sps:$4 sm:$0xff]   ;;  %7306 = vmatpush1.bf16.msra.mxu1 %v22249_v3 }
 0x3e4   : > { %7307 = vmatprep.subr.bf16.mxu1 %v29511_v55  ;;  %v6957_v45 = vshll.u32 %v25299_v52, 16  ;;  %v6949_v60 = vshll.u32 %v25301_v39, 16  ;;  %v6969_v38 = vshrl.u32 %v25299_v52, 16  ;;  %v6961_v37 = vshrl.u32 %v25301_v39, 16  ;;  %v22269_v3 = vld [vmem:[%s29451_s4 + $0x60] ss:$12 sps:$4 sm:$0xff]  }
 0x3e6   : > { %v6959_v27 = vrot.slane %v6957_v45, 1  ;;  %v6951_v0 = vrot.slane %v6949_v60, 1  ;;  %v22280_v45 = vld [vmem:[%s29451_s4 + $0xac] ss:$12 sps:$4 sm:$0xff]   ;;  %v22278_v60 = vld [vmem:[%s29451_s4 + $0xa8] ss:$12 sps:$4 sm:$0xff]  }
 0x3e7   : > { %7308 = vmatpush1.bf16.msra.mxu1 %v22251_v32  ;;  %v22274_v32 = vld [vmem:[%s29451_s4 + $0x7c] ss:$12 sps:$4 sm:$0xff]  }
 0x3e8   : > { %7309 = vmatprep.subr.bf16.mxu1 %v29511_v55  ;;  %v6960_v33 = vsel %vm29515_vm12, %v6955_v21, %v6959_v27  ;;  %v6952_v50 = vsel %vm29516_vm1, %v6947_v31, %v6951_v0  ;;  %v6971_v15 = vor.u32 %v6969_v38, %v6959_v27  ;;  %v6963_v57 = vor.u32 %v6961_v37, %v6951_v0  ;;  %vm29519_vm12 = vmmov %vm29512_vm0  ;;  %v22281_v21 = vld [vmem:[%s29451_s4 + $0xc0] ss:$12 sps:$4 sm:$0xff]   ;;  %v22286_v31 = vld [vmem:[%s29451_s4 + $0xdc] ss:$12 sps:$4 sm:$0xff]  }
 0x3e9   : > { %19380 = vmatprep.mubr.msk.bf16.mxu1 %vm7196_vm9, %v6960_v33  ;;  %v6984_v36 = vsel %vm29519_vm12, %v6979_v30, %v6983_v28  ;;  %v22284_v27 = vld [vmem:[%s29451_s4 + $0xd8] ss:$12 sps:$4 sm:$0xff]   ;;  %v22289_v0 = vld [vmem:[%s29451_s4 + $0xf4] ss:$12 sps:$4 sm:$0xff]   ;;  %v22287_v38 = vld [vmem:[%s29451_s4 + $0xf0] ss:$12 sps:$4 sm:$0xff]  }
 0x3ea   : > { %7255 = vmatmul.mubr.bf16.gmra.mrb[24].mxu1 %v6952_v50  ;;  %v6976_v16 = vsel %vm29517_vm11, %v6971_v15, %v6975_v53  ;;  %v6968_v58 = vsel %vm29512_vm0, %v6963_v57, %v6967_v35  ;;  %v22294_v15 = vld [vmem:[%s29451_s4 + $0x20] ss:$12 sps:$4 sm:$0xff]   ;;  %v22295_v53 = vld [vmem:[%s29451_s4 + $0x38] ss:$12 sps:$4 sm:$0xff]   ;;  %v19390_v57 = vcombine.high %v6785_v41, %v6785_v41  ;;  %v19389_v35 = vcombine.low %v6785_v41, %v6785_v41  ;;  %v22316_v28 = vld [vmem:[%s29451_s4 + $0x288] ss:$12 sps:$4 sm:$0xff]  }
 0x3eb   : > { %19381 = vmatprep.mubr.msk.bf16.mxu1 %vm7196_vm9, %v6976_v16  ;;  %7310 = vmatpush1.bf16.msra.mxu1 %v22253_v2  ;;  %v22292_v2 = vld [vmem:[%s29451_s4 + $0x10c] ss:$12 sps:$4 sm:$0xff]   ;;  %v22321_v30 = vld [vmem:[%s29451_s4 + $0x2a4] ss:$12 sps:$4 sm:$0xff]   ;;  %vm29520_vm1 = vcmask 1046528  }
 0x3ec   : > { %7311 = vmatprep.subr.bf16.mxu1 %v29511_v55  ;;  %v22298_v37 = vld [vmem:[%s29451_s4 + $0x80] ss:$12 sps:$4 sm:$0xff]   ;;  %vm29521_vm11 = vmmov %vm29520_vm1 }
 0x3ed   : > { %vm29522_vm0 = vmmov %vm29520_vm1 }
 0x3ee   : > { %vm29523_vm15 = vmmov %vm29522_vm0 }
 0x3ef   : > { %7312 = vmatpush1.bf16.msra.mxu1 %v22254_v24  ;;  %v22300_v24 = vld [vmem:[%s29451_s4 + $0x98] ss:$12 sps:$4 sm:$0xff]   ;;  %vm29524_vm12 = vmmov %vm29522_vm0 }
 0x3f0   : > { %7313 = vmatprep.subr.bf16.mxu1 %v29511_v55 }
 0x3f2   : > { %7265 = vmatmul.mubr.bf16.gmra.mrb[28].mxu1 %v6968_v58 }
 0x3f3   : > { %19382 = vmatprep.mubr.msk.bf16.mxu1 %vm7196_vm9, %v6992_v59  ;;  %7314 = vmatpush1.bf16.msra.mxu1 %v22255_v14  ;;  %v22304_v14 = vld [vmem:[%s29451_s4 + $0xe0] ss:$12 sps:$4 sm:$0xff]  }
 0x3f4   : > { %7315 = vmatprep.subr.bf16.mxu1 %v29511_v55 }
 0x3f7   : > { %7316 = vmatpush1.bf16.msra.mxu1 %v22256_v11  ;;  %v22310_v11 = vld [vmem:[%s29451_s4 + $0x258] ss:$12 sps:$4 sm:$0xff]  }
 0x3f8   : > { %7578 = vmatprep.subr.bf16.mxu1 %v22259_v8  ;;  %v22315_v8 = vld [vmem:[%s29451_s4 + $0x274] ss:$12 sps:$4 sm:$0xff]  }
 0x3fa   : > { %7275 = vmatmul.mubr.bf16.gmra.mrb[32].mxu1 %v6984_v36 }
 0x3fb   : > { %19383 = vmatprep.mubr.msk.bf16.mxu1 %vm7196_vm9, %v6998_v18 }
 0x402   : > { %7285 = vmatmul.mubr.bf16.gmra.mrb[36].mxu1 %v6995_v34 }
 0x403   : > { %19384 = vmatprep.mubr.msk.bf16.mxu1 %vm7196_vm9, %v25218_v12  ;;  %v22265_v12 = vld [vmem:[%s29451_s4 + $0x34] ss:$12 sps:$4 sm:$0xff]  }
 0x40a   : > { %7326 = vmatmul.mubr.bf16.vlgmr.msra.gmra.mrb[40].mxu1 %v25237_v46  ;;  %v22268_v46 = vld [vmem:[%s29451_s4 + $0x4c] ss:$12 sps:$4 sm:$0xff]  }
 0x40b   : > { %7579 = vmatpush1.bf16.msra.mxu1 %v22257_v10  ;;  %19385 = vmatprep.mubr.msk.bf16.mxu1 %vm7196_vm9, %v6960_v33  ;;  %v22290_v33 = vld [vmem:[%s29451_s4 + $0x108] ss:$12 sps:$4 sm:$0xff]   ;;  %v22330_v10 = vld [vmem:[%s29451_s4 + $0x2ec] ss:$12 sps:$4 sm:$0xff]  }
 0x40c   : > { %7580 = vmatprep.subr.bf16.mxu1 %v22262_v9  ;;  %v22328_v9 = vld [vmem:[%s29451_s4 + $0x2e8] ss:$12 sps:$4 sm:$0xff]  }
 0x40f   : > { %7581 = vmatpush1.bf16.msra.mxu1 %v22260_v22  ;;  %v7731_v22 = vld [vmem:[#allocation2] sm:$0xee] }
 0x410   : > { %7582 = vmatprep.subr.bf16.mxu1 %v22265_v12  ;;  %v22333_v12 = vld [vmem:[%s29451_s4 + $0x304] ss:$12 sps:$4 sm:$0xff]  }
 0x412   : > { %7334 = vmatmul.mubr.bf16.gmra.mrb[44].mxu1 %v6952_v50  ;;  %v22293_v50 = vld [vmem:[%s29451_s4 + $0x8] ss:$12 sps:$4 sm:$0xff]  }
 0x413   : > { %7583 = vmatpush1.bf16.msra.mxu1 %v22263_v49  ;;  %19386 = vmatprep.mubr.msk.bf16.mxu1 %vm7196_vm9, %v6976_v16  ;;  %v22296_v16 = vld [vmem:[%s29451_s4 + $0x50] ss:$12 sps:$4 sm:$0xff]   ;;  %v19486_v49 = vcombine.high %v7731_v22, %v25166_v4 }
 0x414   : > { %7584 = vmatprep.subr.bf16.mxu1 %v22268_v46  ;;  %v7790_v46 = vrot.slane %v25185_v54, 1 }
 0x417   : > { %7585 = vmatpush1.bf16.msra.mxu1 %v22266_v26  ;;  %v22331_v26 = vld [vmem:[%s29451_s4 + $0x300] ss:$12 sps:$4 sm:$0xff]  }
 0x418   : > { %7586 = vmatprep.subr.bf16.mxu1 %v22271_v7  ;;  %v7789_v7 = vrot.slane %v19486_v49, 1 }
 0x41a   : > { %7342 = vmatmul.mubr.bf16.gmra.mrb[48].mxu1 %v6968_v58  ;;  %v22306_v58 = vld [vmem:[%s29451_s4 + $0x110] ss:$12 sps:$4 sm:$0xff]  }
 0x41b   : > { %7587 = vmatpush1.bf16.msra.mxu1 %v22269_v3  ;;  %19387 = vmatprep.mubr.msk.bf16.mxu1 %vm7196_vm9, %v6992_v59  ;;  %v22312_v59 = vld [vmem:[%s29451_s4 + $0x25c] ss:$12 sps:$4 sm:$0xff]  }
 0x41c   : > { %7588 = vmatprep.subr.bf16.mxu1 %v22274_v32  ;;  %v22338_v3 = vld [vmem:[%s29451_s4 + $0x31c] ss:$12 sps:$4 sm:$0xff]   ;;  %v25565_v32 = vsel %vm29520_vm1, %v7789_v7, %v7790_v46  ;;  %vm29525_vm1 = vmmov %vm29522_vm0 }
 0x41f   : > { %7589 = vmatpush1.bf16.msra.mxu1 %v22272_v61  ;;  %v22341_v61 = vld [vmem:[%s29451_s4 + $0x334] ss:$12 sps:$4 sm:$0xff]  }
 0x420   : > { %7590 = vmatprep.subr.bf16.mxu1 %v22277_v43  ;;  %v22339_v43 = vld [vmem:[%s29451_s4 + $0x330] ss:$12 sps:$4 sm:$0xff]  }
 0x422   : > { %7350 = vmatmul.mubr.bf16.gmra.mrb[52].mxu1 %v6984_v36  ;;  %v22324_v36 = vld [vmem:[%s29451_s4 + $0x2bc] ss:$12 sps:$4 sm:$0xff]  }
 0x423   : > { %7591 = vmatpush1.bf16.msra.mxu1 %v22275_v51  ;;  %19388 = vmatprep.mubr.msk.bf16.mxu1 %vm7196_vm9, %v6998_v18  ;;  %v22322_v18 = vld [vmem:[%s29451_s4 + $0x2b8] ss:$12 sps:$4 sm:$0xff]  }
 0x424   : > { %7592 = vmatprep.subr.bf16.mxu1 %v22280_v45  ;;  %v22344_v51 = vld [vmem:[%s29451_s4 + $0x34c] ss:$12 sps:$4 sm:$0xff]   ;;  %v19485_v45 = vcombine.low %v7731_v22, %v25166_v4 }
 0x427   : > { %7593 = vmatpush1.bf16.msra.mxu1 %v22278_v60  ;;  %v22342_v60 = vld [vmem:[%s29451_s4 + $0x348] ss:$12 sps:$4 sm:$0xff]  }
 0x428   : > { %7594 = vmatprep.subr.bf16.mxu1 %v22283_v29  ;;  %v7787_v29 = vrot.slane %v25208_v48, 1 }
 0x42a   : > { %7358 = vmatmul.mubr.bf16.gmra.mrb[56].mxu1 %v6995_v34  ;;  %v22325_v34 = vld [vmem:[%s29451_s4 + $0x2d0] ss:$12 sps:$4 sm:$0xff]  }
 0x42b   : > { %7595 = vmatpush1.bf16.msra.mxu1 %v22281_v21  ;;  %19427 = vmatprep.mubr.msk.bf16.mxu1 %vm7196_vm9, %v25173_v19  ;;  %v7794_v21 = vrot.slane %v25299_v52, 1 }
 0x42c   : > { %7596 = vmatprep.subr.bf16.mxu1 %v22286_v31  ;;  %v7786_v31 = vrot.slane %v19485_v45, 1 }
 0x42e   : > { %v7788_v4 = vsel %vm29521_vm11, %v7786_v31, %v7787_v29  ;;  %vm29526_vm11 = vmmov %vm29522_vm0 }
 0x42f   : > { %7597 = vmatpush1.bf16.msra.mxu1 %v22284_v27  ;;  %v22345_v27 = vld [vmem:[%s29451_s4 + $0x248] ss:$12 sps:$4 sm:$0xff]  }
 0x430   : > { %7598 = vmatprep.subr.bf16.mxu1 %v22289_v0  ;;  %v7795_v0 = vsel %vm29522_vm0, %v7790_v46, %v7794_v21 }
 0x433   : > { %7599 = vmatpush1.bf16.msra.mxu1 %v22287_v38  ;;  %v22347_v38 = vld [vmem:[%s29451_s4 + $0x278] ss:$12 sps:$4 sm:$0xff]  }
 0x434   : > { %7600 = vmatprep.subr.bf16.mxu1 %v22292_v2  ;;  %v7798_v2 = vrot.slane %v25294_v44, 1 }
 0x437   : > { %7601 = vmatpush1.bf16.msra.mxu1 %v22290_v33 }
 0x438   : > { %7659 = vmatprep.subr.bf16.mxu1 %v29511_v55 }
 0x43a   : > { %7611 = vmatmul.mubr.bf16.vlgmr.msra.gmra.mrb[20].mxu1 %v25170_v62 }
 0x43b   : > { %19428 = vmatprep.mubr.msk.bf16.mxu1 %vm7196_vm9, %v25185_v54  ;;  %7660 = vmatpush1.bf16.msra.mxu1 %v22293_v50  ;;  %v7799_v50 = vsel %vm29524_vm12, %v7794_v21, %v7798_v2 }
 0x43c   : > { %7661 = vmatprep.subr.bf16.mxu1 %v29511_v55 }
 0x43f   : > { %7662 = vmatpush1.bf16.msra.mxu1 %v22294_v15  ;;  %v7802_v15 = vrot.slane %v25312_v23, 1  ;;  %v22350_v23 = vld [vmem:[%s29451_s4 + $0x2c0] ss:$12 sps:$4 sm:$0xff]  }
 0x440   : > { %7663 = vmatprep.subr.bf16.mxu1 %v29511_v55 }
 0x442   : > { %7621 = vmatmul.mubr.bf16.gmra.mrb[24].mxu1 %v25208_v48 }
 0x443   : > { %19429 = vmatprep.mubr.msk.bf16.mxu1 %vm7196_vm9, %v25299_v52  ;;  %7664 = vmatpush1.bf16.msra.mxu1 %v22295_v53  ;;  %v7796_v53 = vrot.slane %v25314_v17, 1 }
 0x444   : > { %7665 = vmatprep.subr.bf16.mxu1 %v29511_v55 }
 0x447   : > { %7666 = vmatpush1.bf16.msra.mxu1 %v22296_v16 }
 0x448   : > { %7667 = vmatprep.subr.bf16.mxu1 %v29511_v55 }
 0x44a   : > { %7631 = vmatmul.mubr.bf16.gmra.mrb[28].mxu1 %v25301_v39 }
 0x44b   : > { %19430 = vmatprep.mubr.msk.bf16.mxu1 %vm7196_vm9, %v25294_v44  ;;  %7668 = vmatpush1.bf16.msra.mxu1 %v22297_v25  ;;  %v7803_v25 = vsel %vm29526_vm11, %v7798_v2, %v7802_v15 }
 0x44c   : > { %7669 = vmatprep.subr.bf16.mxu1 %v29511_v55 }
 0x44f   : > { %7670 = vmatpush1.bf16.msra.mxu1 %v22298_v37  ;;  %v22351_v37 = vld [vmem:[%s29451_s4 + $0x2d8] ss:$12 sps:$4 sm:$0xff]  }
 0x450   : > { %7671 = vmatprep.subr.bf16.mxu1 %v29511_v55 }
 0x452   : > { %7641 = vmatmul.mubr.bf16.gmra.mrb[32].mxu1 %v25314_v17 }
 0x453   : > { %19431 = vmatprep.mubr.msk.bf16.mxu1 %vm7196_vm9, %v19390_v57  ;;  %7672 = vmatpush1.bf16.msra.mxu1 %v22300_v24  ;;  %v22352_v24 = vld [vmem:[%s29451_s4 + $0x2f0] ss:$12 sps:$4 sm:$0xff]  }
 0x454   : > { %7673 = vmatprep.subr.bf16.mxu1 %v29511_v55 }
 0x457   : > { %7674 = vmatpush1.bf16.msra.mxu1 %v22301_v5  ;;  %v22355_v5 = vld [vmem:[%s29451_s4 + $0x338] ss:$12 sps:$4 sm:$0xff]  }
 0x458   : > { %7675 = vmatprep.subr.bf16.mxu1 %v29511_v55 }
 0x45a   : > { %7651 = vmatmul.mubr.bf16.gmra.mrb[36].mxu1 %v19389_v35 }
 0x45b   : > { %7676 = vmatpush1.bf16.msra.mxu1 %v22303_v40  ;;  %19432 = vmatprep.mubr.msk.bf16.mxu1 %vm7196_vm9, %v25173_v19  ;;  %v22309_v19 = vld [vmem:[%s29451_s4 + $0x244] ss:$12 sps:$4 sm:$0xff]  }
 0x45c   : > { %7677 = vmatprep.subr.bf16.mxu1 %v29511_v55  ;;  %v22356_v40 = vld [vmem:[%s29451_s4 + $0x350] ss:$12 sps:$4 sm:$0xff]  }
 0x45f   : > { %7678 = vmatpush1.bf16.msra.mxu1 %v22304_v14  ;;  %v25665_v14 = vld [vmem:[%s29453_s6] sm:$0x7] }
 0x460   : > { %7679 = vmatprep.subr.bf16.mxu1 %v29511_v55 }
 0x463   : > { %7680 = vmatpush1.bf16.msra.mxu1 %v22305_v13  ;;  %v29527_v13 = vld [vmem:[#allocation8_spill] sm:$0xff] }
 0x464   : > { %7681 = vmatprep.subr.bf16.mxu1 %v29511_v55 }
 0x467   : > { %7682 = vmatpush1.bf16.msra.mxu1 %v22306_v58 }
 0x468   : > { %8016 = vmatprep.subr.bf16.mxu1 %v22309_v19  ;;  %v29528_v19 = vld [vmem:[#allocation9_spill] sm:$0xff] }
 0x46a   : > { %7692 = vmatmul.mubr.bf16.vlgmr.msra.gmra.mrb[40].mxu1 %v25170_v62  ;;  %v22318_v62 = vld [vmem:[%s29451_s4 + $0x28c] ss:$12 sps:$4 sm:$0xff]  }
 0x46b   : > { %19433 = vmatprep.mubr.msk.bf16.mxu1 %vm7196_vm9, %v25185_v54  ;;  %8017 = vmatpush1.bf16.msra.mxu1 %v22307_v63  ;;  %v22336_v54 = vld [vmem:[%s29451_s4 + $0x318] ss:$12 sps:$4 sm:$0xff]  }
 0x46c   : > { %8018 = vmatprep.subr.bf16.mxu1 %v22312_v59  ;;  %v25677_v59 = vrot.slane %v25665_v14, %v29527_v13 }
 0x46f   : > { %8019 = vmatpush1.bf16.msra.mxu1 %v22310_v11 }
 0x470   : > { %8020 = vmatprep.subr.bf16.mxu1 %v22315_v8  ;;  %v25681_v8 = vrot.slane %v25665_v14, %v29528_v19 }
 0x472   : > { %7700 = vmatmul.mubr.bf16.gmra.mrb[44].mxu1 %v25208_v48  ;;  %v22346_v48 = vld [vmem:[%s29451_s4 + $0x260] ss:$12 sps:$4 sm:$0xff]  }
 0x473   : > { %19434 = vmatprep.mubr.msk.bf16.mxu1 %vm7196_vm9, %v25299_v52  ;;  %8021 = vmatpush1.bf16.msra.mxu1 %v22313_v47  ;;  %v7792_v52 = vrot.slane %v25301_v39, 1 }
 0x474   : > { %8022 = vmatprep.subr.bf16.mxu1 %v22318_v62 }
 0x475   : > { %v7793_v33 = vsel %vm29523_vm15, %v7787_v29, %v7792_v52  ;;  %v7797_v16 = vsel %vm29525_vm1, %v7792_v52, %v7796_v53  ;;  %vm29535_vm1 = vcmask 1043456  }
 0x477   : > { %8023 = vmatpush1.bf16.msra.mxu1 %v22316_v28 }
 0x478   : > { %8024 = vmatprep.subr.bf16.mxu1 %v22321_v30 }
 0x47a   : > { %7708 = vmatmul.mubr.bf16.gmra.mrb[48].mxu1 %v25301_v39  ;;  %v22348_v39 = vld [vmem:[%s29451_s4 + $0x290] ss:$12 sps:$4 sm:$0xff]  }
 0x47b   : > { %19435 = vmatprep.mubr.msk.bf16.mxu1 %vm7196_vm9, %v25294_v44  ;;  %8025 = vmatpush1.bf16.msra.mxu1 %v22319_v42  ;;  %v22349_v44 = vld [vmem:[%s29451_s4 + $0x2a8] ss:$12 sps:$4 sm:$0xff]  }
 0x47c   : > { %8026 = vmatprep.subr.bf16.mxu1 %v22324_v36 }
 0x47f   : > { %8027 = vmatpush1.bf16.msra.mxu1 %v22322_v18 }
 0x480   : > { %8028 = vmatprep.subr.bf16.mxu1 %v22327_v6 }
 0x482   : > { %7716 = vmatmul.mubr.bf16.gmra.mrb[52].mxu1 %v25314_v17  ;;  %v7800_v17 = vrot.slane %v25332_v1, 1  ;;  %v22353_v1 = vld [vmem:[%s29451_s4 + $0x308] ss:$12 sps:$4 sm:$0xff]  }
 0x483   : > { %19436 = vmatprep.mubr.msk.bf16.mxu1 %vm7196_vm9, %v19390_v57  ;;  %8029 = vmatpush1.bf16.msra.mxu1 %v22325_v34  ;;  %v22354_v57 = vld [vmem:[%s29451_s4 + $0x320] ss:$12 sps:$4 sm:$0xff]  }
 0x484   : > { %8030 = vmatprep.subr.bf16.mxu1 %v22330_v10  ;;  %v7801_v41 = vsel %vm29522_vm0, %v7796_v53, %v7800_v17 }
 0x487   : > { %8031 = vmatpush1.bf16.msra.mxu1 %v22328_v9 }
 0x488   : > { %8032 = vmatprep.subr.bf16.mxu1 %v22333_v12 }
 0x48a   : > { %7724 = vmatmul.mubr.bf16.gmra.mrb[56].mxu1 %v19389_v35  ;;  %v25660_v35 = vld [vmem:[%s29452_s5] sm:$0x7] }
 0x48b   : > { %8033 = vmatpush1.bf16.msra.mxu1 %v22331_v26  ;;  %19523 = vmatprep.mubr.msk.bf16.mxu1 %vm7196_vm9, %v25565_v32  ;;  %v25669_v58 = vrot.slane %v25660_v35, %v29527_v13  ;;  %v25673_v63 = vrot.slane %v25660_v35, %v29528_v19 }
 0x48c   : > { %8034 = vmatprep.subr.bf16.mxu1 %v22338_v3 }
 0x48f   : > { %8035 = vmatpush1.bf16.msra.mxu1 %v22336_v54 }
 0x490   : > { %8036 = vmatprep.subr.bf16.mxu1 %v22341_v61 }
 0x493   : > { %8037 = vmatpush1.bf16.msra.mxu1 %v22339_v43 }
 0x494   : > { %8038 = vmatprep.subr.bf16.mxu1 %v22344_v51 }
 0x497   : > { %8039 = vmatpush1.bf16.msra.mxu1 %v22342_v60 }
 0x498   : > { %8097 = vmatprep.subr.bf16.mxu1 %v29511_v55 }
 0x49a   : > { %8049 = vmatmul.mubr.bf16.vlgmr.msra.gmra.mrb[20].mxu1 %v7788_v4 }
 0x49b   : > { %19524 = vmatprep.mubr.msk.bf16.mxu1 %vm7196_vm9, %v7795_v0  ;;  %8098 = vmatpush1.bf16.msra.mxu1 %v22345_v27 }
 0x49c   : > { %8099 = vmatprep.subr.bf16.mxu1 %v29511_v55 }
 0x49f   : > { %8100 = vmatpush1.bf16.msra.mxu1 %v22346_v48 }
 0x4a0   : > { %8101 = vmatprep.subr.bf16.mxu1 %v29511_v55 }
 0x4a2   : > { %8059 = vmatmul.mubr.bf16.gmra.mrb[24].mxu1 %v7793_v33 }
 0x4a3   : > { %19525 = vmatprep.mubr.msk.bf16.mxu1 %vm7196_vm9, %v7799_v50  ;;  %8102 = vmatpush1.bf16.msra.mxu1 %v22347_v38 }
 0x4a4   : > { %8103 = vmatprep.subr.bf16.mxu1 %v29511_v55 }
 0x4a7   : > { %8104 = vmatpush1.bf16.msra.mxu1 %v22348_v39 }
 0x4a8   : > { %8105 = vmatprep.subr.bf16.mxu1 %v29511_v55 }
 0x4aa   : > { %8069 = vmatmul.mubr.bf16.gmra.mrb[28].mxu1 %v7797_v16 }
 0x4ab   : > { %19526 = vmatprep.mubr.msk.bf16.mxu1 %vm7196_vm9, %v7803_v25  ;;  %8106 = vmatpush1.bf16.msra.mxu1 %v22349_v44 }
 0x4ac   : > { %8107 = vmatprep.subr.bf16.mxu1 %v29511_v55 }
 0x4af   : > { %8108 = vmatpush1.bf16.msra.mxu1 %v22350_v23 }
 0x4b0   : > { %8109 = vmatprep.subr.bf16.mxu1 %v29511_v55 }
 0x4b2   : > { %8079 = vmatmul.mubr.bf16.gmra.mrb[32].mxu1 %v7801_v41 }
 0x4b3   : > { %19527 = vmatprep.mubr.msk.bf16.mxu1 %vm7196_vm9, %v7802_v15  ;;  %8110 = vmatpush1.bf16.msra.mxu1 %v22351_v37 }
 0x4b4   : > { %8111 = vmatprep.subr.bf16.mxu1 %v29511_v55 }
 0x4b7   : > { %8112 = vmatpush1.bf16.msra.mxu1 %v22352_v24 }
 0x4b8   : > { %8113 = vmatprep.subr.bf16.mxu1 %v29511_v55 }
 0x4ba   : > { %8089 = vmatmul.mubr.bf16.gmra.mrb[36].mxu1 %v7800_v17 }
 0x4bb   : > { %8114 = vmatpush1.bf16.msra.mxu1 %v22353_v1  ;;  %19528 = vmatprep.mubr.msk.bf16.mxu1 %vm7196_vm9, %v25565_v32 }
 0x4bc   : > { %8115 = vmatprep.subr.bf16.mxu1 %v29511_v55 }
 0x4bf   : > { %8116 = vmatpush1.bf16.msra.mxu1 %v22354_v57 }
 0x4c0   : > { %8117 = vmatprep.subr.bf16.mxu1 %v29511_v55 }
 0x4c3   : > { %8118 = vmatpush1.bf16.msra.mxu1 %v22355_v5 }
 0x4c4   : > { %8119 = vmatprep.subr.bf16.mxu1 %v29511_v55 }
 0x4c7   : > { %8120 = vmatpush1.bf16.msra.mxu1 %v22356_v40 }
 0x4ca   : > { %8130 = vmatmul.mubr.bf16.vlgmr.msra.gmra.mrb[40].mxu1 %v7788_v4 }
 0x4cb   : > { %19529 = vmatprep.mubr.msk.bf16.mxu1 %vm7196_vm9, %v7795_v0 }
 0x4d2   : > { %8138 = vmatmul.mubr.bf16.gmra.mrb[44].mxu1 %v7793_v33 }
 0x4d3   : > { %19530 = vmatprep.mubr.msk.bf16.mxu1 %vm7196_vm9, %v7799_v50 }
 0x4da   : > { %8146 = vmatmul.mubr.bf16.gmra.mrb[48].mxu1 %v7797_v16 }
 0x4db   : > { %19531 = vmatprep.mubr.msk.bf16.mxu1 %vm7196_vm9, %v7803_v25 }
 0x4e2   : > { %8154 = vmatmul.mubr.bf16.gmra.mrb[52].mxu1 %v7801_v41 }
 0x4e3   : > { %19532 = vmatprep.mubr.msk.bf16.mxu1 %vm7196_vm9, %v7802_v15  ;;  %vm10536_vm9 = vcmask 1047556  }
 0x4e4   : > { %vm26021_vm15 = vmand %vm10536_vm9, %vm6751_vm13 }
 0x4e5   : > { %vm10538_vm13 = vmor %vm26021_vm15, %vm24490_vm10 }
 0x4ea   : > { %8162 = vmatmul.mubr.bf16.gmra.mrb[56].mxu1 %v7800_v17 }
 0x56d   : > { %v8050_v11 = vpop.f32.mrb[20].mxu1 }
 0x56e   : > { %v8213_v47 = vmul.f32 %v25669_v58, %v8050_v11  ;;  %v8052_v62 = vpop.f32.mrb[21].mxu1 }
 0x56f   : > { %v8214_v28 = vmul.f32 %v25673_v63, %v8052_v62  ;;  %v8054_v30 = vpop.f32.mrb[22].mxu1 }
 0x570   : > { %v8257_v42 = vadd.f32 %v25677_v59, %v8213_v47  ;;  %v8216_v36 = vmul.f32 %v25669_v58, %v8054_v30  ;;  %v8056_v18 = vpop.f32.mrb[23].mxu1 }
 0x571   : > { %v8258_v6 = vadd.f32 %v25681_v8, %v8214_v28  ;;  %v8217_v34 = vmul.f32 %v25673_v63, %v8056_v18 }
 0x572   : > { %v8284_v10 = vmax.f32 %v8257_v42, 0.0  ;;  %v8260_v9 = vadd.f32 %v25677_v59, %v8216_v36 }
 0x573   : > { %v8285_v22 = vmax.f32 %v8258_v6, 0.0  ;;  %v8261_v12 = vadd.f32 %v25681_v8, %v8217_v34 }
 0x574   : > { %v8287_v49 = vmax.f32 %v8260_v9, 0.0 }
 0x575   : > { %v25691_v46 = vcombine.low %v8284_v10, %v8285_v22  ;;  %v25693_v26 = vcombine.high %v8284_v10, %v8285_v22  ;;  %v8288_v7 = vmax.f32 %v8261_v12, 0.0  ;;  %v8060_v3 = vpop.f32.mrb[24].mxu1 }
 0x576   : > { %v8219_v32 = vmul.f32 %v25669_v58, %v8060_v3  ;;  %v8062_v54 = vpop.f32.mrb[25].mxu1 }
 0x577   : > { %v25696_v61 = vcombine.low %v8287_v49, %v8288_v7  ;;  %v25698_v43 = vcombine.high %v8287_v49, %v8288_v7  ;;  %v8064_v51 = vpop.f32.mrb[26].mxu1  ;;  %v8220_v60 = vmul.f32 %v25673_v63, %v8062_v54 }
 0x578   : > { %v8263_v45 = vadd.f32 %v25677_v59, %v8219_v32  ;;  %v8222_v29 = vmul.f32 %v25669_v58, %v8064_v51  ;;  %v8066_v21 = vpop.f32.mrb[27].mxu1 }
 0x579   : > { %v8223_v31 = vmul.f32 %v25673_v63, %v8066_v21  ;;  %v8264_v4 = vadd.f32 %v25681_v8, %v8220_v60 }
 0x57a   : > { %v8290_v27 = vmax.f32 %v8263_v45, 0.0  ;;  %v8266_v0 = vadd.f32 %v25677_v59, %v8222_v29 }
 0x57b   : > { %v8267_v48 = vadd.f32 %v25681_v8, %v8223_v31  ;;  %v8291_v52 = vmax.f32 %v8264_v4, 0.0 }
 0x57c   : > { %v8293_v38 = vmax.f32 %v8266_v0, 0.0 }
 0x57d   : > { %v8294_v2 = vmax.f32 %v8267_v48, 0.0  ;;  %v8070_v33 = vpop.f32.mrb[28].mxu1  ;;  %v25707_v50 = vcombine.low %v8290_v27, %v8291_v52  ;;  %v25709_v39 = vcombine.high %v8290_v27, %v8291_v52 }
 0x57e   : > { %v8225_v15 = vmul.f32 %v25669_v58, %v8070_v33  ;;  %v8072_v53 = vpop.f32.mrb[29].mxu1 }
 0x57f   : > { %v25712_v44 = vcombine.low %v8293_v38, %v8294_v2  ;;  %v25714_v16 = vcombine.high %v8293_v38, %v8294_v2  ;;  %v8226_v25 = vmul.f32 %v25673_v63, %v8072_v53  ;;  %v8074_v23 = vpop.f32.mrb[30].mxu1 }
 0x580   : > { %v8269_v17 = vadd.f32 %v25677_v59, %v8225_v15  ;;  %v8228_v37 = vmul.f32 %v25669_v58, %v8074_v23  ;;  %v8076_v41 = vpop.f32.mrb[31].mxu1 }
 0x581   : > { %v8270_v24 = vadd.f32 %v25681_v8, %v8226_v25  ;;  %v8229_v1 = vmul.f32 %v25673_v63, %v8076_v41 }
 0x582   : > { %v8296_v57 = vmax.f32 %v8269_v17, 0.0  ;;  %v8272_v5 = vadd.f32 %v25677_v59, %v8228_v37  ;;  %v29529_v37 = vld [vmem:[#allocation7_spill] sm:$0xff] }
 0x583   : > { %v8297_v40 = vmax.f32 %v8270_v24, 0.0  ;;  %v8273_v11 = vadd.f32 %v25681_v8, %v8229_v1  ;;  %v25738_v41 = vsub.s32 2, %v29529_v37 }
 0x584   : > { %v8299_v47 = vmax.f32 %v8272_v5, 0.0 }
 0x585   : > { %v8606_v62 = vcombine.low %v8296_v57, %v8297_v40  ;;  %v8607_v28 = vcombine.high %v8296_v57, %v8297_v40  ;;  %v8300_v30 = vmax.f32 %v8273_v11, 0.0  ;;  %v8080_v42 = vpop.f32.mrb[32].mxu1  ;;  %v8347_v11 = vrot.slane %v25691_v46, %v23808_v56 }
 0x586   : > { %v8231_v36 = vmul.f32 %v25669_v58, %v8080_v42  ;;  %v8082_v18 = vpop.f32.mrb[33].mxu1  ;;  %v25770_v46 = vrot.slane %v25712_v44, %v23808_v56 }
 0x587   : > { %v8673_v6 = vcombine.low %v8299_v47, %v8300_v30  ;;  %v8674_v34 = vcombine.high %v8299_v47, %v8300_v30  ;;  %v8084_v10 = vpop.f32.mrb[34].mxu1  ;;  %v8232_v22 = vmul.f32 %v25673_v63, %v8082_v18  ;;  %v8421_v47 = vrot.slane %v25698_v43, %v23808_v56 }
 0x588   : > { %v8275_v9 = vadd.f32 %v25677_v59, %v8231_v36  ;;  %v8234_v12 = vmul.f32 %v25669_v58, %v8084_v10  ;;  %v8086_v49 = vpop.f32.mrb[35].mxu1  ;;  %v25761_v30 = vrot.slane %v25707_v50, %v23808_v56  ;;  %v25766_v18 = vrot.slane %v25709_v39, %v23808_v56 }
 0x589   : > { %v8235_v7 = vmul.f32 %v25673_v63, %v8086_v49  ;;  %v8276_v32 = vadd.f32 %v25681_v8, %v8232_v22  ;;  %v25780_v43 = vrot.slane %v8607_v28, %v23808_v56  ;;  %v25784_v39 = vrot.slane %v8673_v6, %v23808_v56 }
 0x58a   : > { %v8302_v3 = vmax.f32 %v8275_v9, 0.0  ;;  %v8278_v54 = vadd.f32 %v25677_v59, %v8234_v12  ;;  %v25787_v44 = vrot.slane %v8674_v34, %v23808_v56 }
 0x58b   : > { %v8279_v51 = vadd.f32 %v25681_v8, %v8235_v7  ;;  %v8303_v45 = vmax.f32 %v8276_v32, 0.0 }
 0x58c   : > { %v8305_v60 = vmax.f32 %v8278_v54, 0.0 }
 0x58d   : > { %v8306_v29 = vmax.f32 %v8279_v51, 0.0  ;;  %v8090_v21 = vpop.f32.mrb[36].mxu1  ;;  %v8740_v31 = vcombine.low %v8302_v3, %v8303_v45  ;;  %v8741_v27 = vcombine.high %v8302_v3, %v8303_v45 }
 0x58e   : > { %v8237_v4 = vmul.f32 %v25669_v58, %v8090_v21  ;;  %v8092_v0 = vpop.f32.mrb[37].mxu1  ;;  %v25742_v58 = vrot.slane %v25660_v35, %v25738_v41  ;;  %v8354_v35 = vrot.slane %v25693_v26, %v23808_v56  ;;  %v25774_v26 = vrot.slane %v25714_v16, %v23808_v56 }
 0x58f   : > { %v8807_v48 = vcombine.low %v8305_v60, %v8306_v29  ;;  %v8808_v52 = vcombine.high %v8305_v60, %v8306_v29  ;;  %v8238_v38 = vmul.f32 %v25673_v63, %v8092_v0  ;;  %v8094_v2 = vpop.f32.mrb[38].mxu1  ;;  %v25746_v63 = vrot.slane %v25665_v14, %v25738_v41 }
 0x590   : > { %v8281_v33 = vadd.f32 %v25677_v59, %v8237_v4  ;;  %v8095_v15 = vpop.f32.mrb[39].mxu1  ;;  %v8414_v14 = vrot.slane %v25696_v61, %v23808_v56  ;;  %v25777_v61 = vrot.slane %v8606_v62, %v23808_v56  ;;  %v25790_v22 = vrot.slane %v8740_v31, %v23808_v56 }
 0x591   : > { %v8282_v53 = vadd.f32 %v25681_v8, %v8238_v38  ;;  %v25793_v16 = vrot.slane %v8741_v27, %v23808_v56  ;;  %v25797_v32 = vrot.slane %v8807_v48, %v23808_v56  ;;  %v25800_v6 = vrot.slane %v8808_v52, %v23808_v56 }
 0x592   : > { %v8308_v25 = vmax.f32 %v8281_v33, 0.0 }
 0x593   : > { %v8309_v23 = vmax.f32 %v8282_v53, 0.0 }
 0x595   : > { %v25735_v17 = vcombine.low %v8308_v25, %v8309_v23 }
 0x59d   : > { %v8131_v24 = vpop.f32.mrb[40].mxu1 }
 0x59e   : > { %v8215_v59 = vmul.f32 %v25742_v58, %v8131_v24  ;;  %v8133_v1 = vpop.f32.mrb[41].mxu1 }
 0x59f   : > { %v8134_v8 = vpop.f32.mrb[42].mxu1 }
 0x5a0   : > { %v8259_v57 = vadd.f32 %v25746_v63, %v8215_v59  ;;  %v8218_v5 = vmul.f32 %v25742_v58, %v8134_v8  ;;  %v8136_v40 = vpop.f32.mrb[43].mxu1 }
 0x5a2   : > { %v8286_v42 = vmax.f32 %v8259_v57, 0.0  ;;  %v8262_v36 = vadd.f32 %v25746_v63, %v8218_v5 }
 0x5a4   : > { %v8340_v50 = vcombine.high %v8286_v42, %v8286_v42  ;;  %v8361_v10 = vrot.slane %v8286_v42, %v23808_v56  ;;  %v8289_v9 = vmax.f32 %v8262_v36, 0.0 }
 0x5a5   : > { %v8139_v62 = vpop.f32.mrb[44].mxu1 }
 0x5a6   : > { %v8368_v28 = vrot.slane %v8340_v50, %v23808_v56  ;;  %v8369_v12 = vcombine.low %v8347_v11, %v8361_v10  ;;  %v8370_v49 = vcombine.high %v8347_v11, %v8361_v10  ;;  %v8407_v7 = vcombine.high %v8289_v9, %v8289_v9  ;;  %v8141_v3 = vpop.f32.mrb[45].mxu1 }
 0x5a7   : > { %v8428_v34 = vrot.slane %v8289_v9, %v23808_v56  ;;  %v8221_v54 = vmul.f32 %v25742_v58, %v8139_v62  ;;  %v25804_v51 = vpop.f32.mrb[46].mxu1 }
 0x5a8   : > { %v8371_v45 = vcombine.low %v8354_v35, %v8368_v28  ;;  %v8372_v60 = vcombine.high %v8354_v35, %v8368_v28  ;;  %v8379_v29 = vrot.slane %v8369_v12, %v23808_v56  ;;  %v8393_v21 = vrot.slane %v8370_v49, %v23808_v56  ;;  %v8144_v31 = vpop.f32.mrb[47].mxu1 }
 0x5a9   : > { %v8435_v27 = vrot.slane %v8407_v7, %v23808_v56  ;;  %v8436_v4 = vcombine.low %v8414_v14, %v8428_v34  ;;  %v8437_v0 = vcombine.high %v8414_v14, %v8428_v34  ;;  %v25810_v48 = vadd.f32 %v25746_v63, %v8221_v54 }
 0x5aa   : > { %v8386_v52 = vrot.slane %v8371_v45, %v23808_v56  ;;  %v8400_v38 = vrot.slane %v8372_v60, %v23808_v56  ;;  %v8401_v2 = vcombine.high %v8379_v29, %v8379_v29  ;;  %v8403_v33 = vcombine.high %v8393_v21, %v8393_v21 }
 0x5ab   : > { %v8905_v15 = vcombine.low %v8379_v29, %v8393_v21  ;;  %v8438_v53 = vcombine.low %v8421_v47, %v8435_v27  ;;  %v8439_v25 = vcombine.high %v8421_v47, %v8435_v27  ;;  %v8446_v23 = vrot.slane %v8436_v4, %v23808_v56 }
 0x5ac   : > { %v8919_v24 = vrot.slane %v8401_v2, %v23808_v56  ;;  %v8937_v59 = vcombine.low %v8403_v33, %v8386_v52  ;;  %v8951_v1 = vrot.slane %v8400_v38, %v23808_v56  ;;  %v19533_v8 = vcombine.high %v8386_v52, %v8400_v38 }
 0x5ad   : > { %v8912_v57 = vrot.slane %v8905_v15, %v23808_v56  ;;  %v25819_v5 = vrot.slane %v8438_v53, %v23808_v56  ;;  %v8460_v40 = vrot.slane %v8437_v0, %v23808_v56  ;;  %v25823_v11 = vrot.slane %v8439_v25, %v23808_v56  ;;  %v25825_v35 = vpop.f32.mrb[48].mxu1 }
 0x5ae   : > { %v8944_v14 = vrot.slane %v8937_v59, %v23808_v56  ;;  %v8468_v47 = vcombine.high %v8446_v23, %v8446_v23  ;;  %v8976_v42 = vrot.slane %v19533_v8, %v23808_v56  ;;  %v8983_v36 = vrot.slane %v8446_v23, %v23808_v56  ;;  %v8149_v50 = vpop.f32.mrb[49].mxu1 }
 0x5af   : > { %v8920_v10 = vcombine.low %v8912_v57, %v8919_v24  ;;  %v8921_v9 = vcombine.high %v8912_v57, %v8919_v24  ;;  %v8469_v62 = vcombine.high %v25819_v5, %v25819_v5  ;;  %v8470_v28 = vcombine.high %v8460_v40, %v8460_v40  ;;  %v25832_v12 = vpop.f32.mrb[50].mxu1 }
 0x5b0   : > { %v8952_v49 = vcombine.low %v8944_v14, %v8951_v1  ;;  %v8953_v7 = vcombine.high %v8944_v14, %v8951_v1  ;;  %v8984_v3 = vcombine.low %v8976_v42, %v8983_v36  ;;  %v8985_v34 = vcombine.high %v8976_v42, %v8983_v36  ;;  %v8152_v54 = vpop.f32.mrb[51].mxu1 }
 0x5b1   : > { %v8928_v45 = vrot.slane %v8920_v10, %v23808_v56  ;;  %v8935_v60 = vrot.slane %v8921_v9, %v23808_v56  ;;  %v9001_v29 = vcombine.low %v8460_v40, %v8468_v47  ;;  %v9015_v21 = vrot.slane %v8470_v28, %v23808_v56 }
 0x5b2   : > { %v8960_v31 = vrot.slane %v8952_v49, %v23808_v56  ;;  %v8967_v27 = vrot.slane %v8953_v7, %v23808_v56  ;;  %v25840_v4 = vrot.slane %v8984_v3, %v23808_v56  ;;  %v25843_v0 = vrot.slane %v8985_v34, %v23808_v56 }
 0x5b3   : > { %v8936_v52 = vcombine.high %v8928_v45, %v8928_v45  ;;  %v9675_v38 = vsel %vm5068_vm14, %v8928_v45, -inf  ;;  %v9682_v2 = vsel %vm5068_vm14, %v8935_v60, -inf  ;;  %v9008_v33 = vrot.slane %v9001_v29, %v23808_v56 }
 0x5b4   : > { %v8968_v15 = vcombine.high %v8960_v31, %v8960_v31  ;;  %v9676_v53 = vrot.slane %v9675_v38, 4  ;;  %v9683_v25 = vrot.slane %v9682_v2, 4  ;;  %v9696_v23 = vsel %vm5068_vm14, %v8960_v31, -inf }
 0x5b5   : > { %v9689_v24 = vsel %vm5068_vm14, %v8936_v52, -inf  ;;  %v9697_v59 = vrot.slane %v9696_v23, 4  ;;  %v9703_v1 = vsel %vm5068_vm14, %v8967_v27, -inf  ;;  %v9000_v8 = vcombine.high %v25840_v4, %v25840_v4  ;;  %v25853_v57 = vpop.f32.mrb[52].mxu1 }
 0x5b6   : > { %v9677_v40 = vmax.f32 %v9675_v38, %v9676_v53  ;;  %v9684_v14 = vmax.f32 %v9682_v2, %v9683_v25  ;;  %v9690_v47 = vrot.slane %v9689_v24, 4  ;;  %v9704_v42 = vrot.slane %v9703_v1, 4  ;;  %v8157_v36 = vpop.f32.mrb[53].mxu1 }
 0x5b7   : > { %v9698_v50 = vmax.f32 %v9696_v23, %v9697_v59  ;;  %v9710_v10 = vsel %vm5068_vm14, %v8968_v15, -inf  ;;  %v9016_v9 = vcombine.low %v9008_v33, %v9015_v21  ;;  %v9017_v28 = vcombine.high %v9008_v33, %v9015_v21 }
 0x5b8   : > { %v9678_v49 = vrot.slane %v9677_v40, 2  ;;  %v9685_v7 = vrot.slane %v9684_v14, 2  ;;  %v9691_v3 = vmax.f32 %v9689_v24, %v9690_v47  ;;  %v9705_v34 = vmax.f32 %v9703_v1, %v9704_v42 }
 0x5b9   : > { %v9699_v54 = vrot.slane %v9698_v50, 2  ;;  %v9711_v45 = vrot.slane %v9710_v10, 4  ;;  %v25857_v60 = vrot.slane %v9016_v9, %v23808_v56  ;;  %v25860_v29 = vrot.slane %v9017_v28, %v23808_v56 }
 0x5ba   : > { %v9679_v31 = vmax.f32 %v9677_v40, %v9678_v49  ;;  %v9686_v27 = vmax.f32 %v9684_v14, %v9685_v7  ;;  %v9692_v52 = vrot.slane %v9691_v3, 2  ;;  %v9706_v38 = vrot.slane %v9705_v34, 2  ;;  %v22362_v7 = vld [vmem:[%s29454_s7 + $0x48c] ss:$24 sps:$4 sm:$0xff]  }
 0x5bb   : > { %v9700_v2 = vmax.f32 %v9698_v50, %v9699_v54  ;;  %v9712_v15 = vmax.f32 %v9710_v10, %v9711_v45  ;;  %v9032_v21 = vcombine.high %v25857_v60, %v25857_v60  ;;  %v9033_v33 = vcombine.low %v25819_v5, %v25823_v11  ;;  %v22359_v5 = vld [vmem:[%s29454_s7 + $0x484] ss:$24 sps:$4 sm:$0xff]   ;;  %v22357_v45 = vld [vmem:[%s29454_s7 + $0x480] ss:$24 sps:$4 sm:$0xff]   ;;  %11748 = vmatprep.subr.bf16.mxu1 %v22362_v7 }
 0x5bc   : > { %v9680_v53 = vrot.slane %v9679_v31, 1  ;;  %v9687_v25 = vrot.slane %v9686_v27, 1  ;;  %v9693_v23 = vmax.f32 %v9691_v3, %v9692_v52  ;;  %v9707_v24 = vmax.f32 %v9705_v34, %v9706_v38  ;;  %11646 = vmatprep.subr.bf16.mxu0 %v22359_v5 }
 0x5bd   : > { %v9701_v59 = vrot.slane %v9700_v2, 1  ;;  %v9713_v1 = vrot.slane %v9712_v15, 2  ;;  %v9040_v47 = vrot.slane %v9033_v33, %v23808_v56  ;;  %v9047_v40 = vrot.slane %v8469_v62, %v23808_v56  ;;  %11647 = vmatpush1.bf16.msra.mxu0 %v22357_v45 }
 0x5be   : > { %v9681_v14 = vmax.f32 %v9679_v31, %v9680_v53  ;;  %v9688_v42 = vmax.f32 %v9686_v27, %v9687_v25  ;;  %v9694_v36 = vrot.slane %v9693_v23, 1  ;;  %v9708_v50 = vrot.slane %v9707_v24, 1  ;;  %v22360_v31 = vld [vmem:[%s29454_s7 + $0x488] ss:$24 sps:$4 sm:$0xff]  }
 0x5bf   : > { %v9702_v10 = vmax.f32 %v9700_v2, %v9701_v59  ;;  %v9714_v9 = vmax.f32 %v9712_v15, %v9713_v1  ;;  %v9048_v28 = vcombine.low %v9040_v47, %v9047_v40  ;;  %v9049_v49 = vcombine.high %v9040_v47, %v9047_v40  ;;  %11749 = vmatpush1.bf16.msra.mxu1 %v22360_v31 }
 0x5c0   : > { %v9695_v3 = vmax.f32 %v9693_v23, %v9694_v36  ;;  %v9709_v34 = vmax.f32 %v9707_v24, %v9708_v50  ;;  %v21316_v54 = vpack.c.bf16 %v9688_v42, %v9681_v14  ;;  %v9717_v62 = vsel %vm5068_vm14, %v25840_v4, -inf }
 0x5c1   : > { %v9715_v27 = vrot.slane %v9714_v9, 1  ;;  %v9056_v52 = vrot.slane %v9048_v28, %v23808_v56  ;;  %v9063_v38 = vrot.slane %v9049_v49, %v23808_v56  ;;  %v9718_v2 = vrot.slane %v9717_v62, 4 }
 0x5c2   : > { %v21317_v15 = vpack.c.bf16 %v9695_v3, %v9695_v3  ;;  %v21318_v33 = vpack.c.bf16 %v9709_v34, %v9702_v10  ;;  %v10401_v53 = vunpack.c.l.b16 %v21316_v54  ;;  %v10402_v25 = vunpack.c.h.b16 %v21316_v54 }
 0x5c3   : > { %v9716_v23 = vmax.f32 %v9714_v9, %v9715_v27  ;;  %v9064_v24 = vcombine.high %v9056_v52, %v9056_v52  ;;  %v9719_v59 = vmax.f32 %v9717_v62, %v9718_v2  ;;  %v9724_v1 = vsel %vm5068_vm14, %v25843_v0, -inf }
 0x5c4   : > { %v10403_v47 = vunpack.c.l.b16 %v21317_v15  ;;  %v10404_v40 = vunpack.c.l.b16 %v21318_v33  ;;  %v10405_v14 = vunpack.c.h.b16 %v21318_v33  ;;  %v9725_v42 = vrot.slane %v9724_v1, 4 }
 0x5c5   : > { %v21319_v36 = vpack.c.bf16 %v9716_v23, %v9716_v23  ;;  %v9720_v50 = vrot.slane %v9719_v59, 2  ;;  %v9731_v10 = vsel %vm5068_vm14, %v9000_v8, -inf  ;;  %v9738_v28 = vsel %vm5068_vm14, %v25857_v60, -inf  ;;  %v25901_v23 = vpop.f32.mrb[54].mxu1 }
 0x5c6   : > { %v10467_v9 = vsel %vm6608_vm3, %v10404_v40, %v10401_v53  ;;  %v25894_v49 = vsel %vm6608_vm3, %v10405_v14, %v10402_v25  ;;  %v9726_v0 = vmax.f32 %v9724_v1, %v9725_v42  ;;  %v9732_v5 = vrot.slane %v9731_v10, 4  ;;  %v8160_v14 = vpop.f32.mrb[55].mxu1 }
 0x5c7   : > { %v10406_v7 = vunpack.c.l.b16 %v21319_v36  ;;  %v9721_v3 = vmax.f32 %v9719_v59, %v9720_v50  ;;  %v9739_v34 = vrot.slane %v9738_v28, 4  ;;  %v9745_v54 = vsel %vm5068_vm14, %v25860_v29, -inf }
 0x5c8   : > { %v9727_v62 = vrot.slane %v9726_v0, 2  ;;  %v9733_v4 = vmax.f32 %v9731_v10, %v9732_v5  ;;  %v9746_v45 = vrot.slane %v9745_v54, 4  ;;  %v9752_v8 = vsel %vm5068_vm14, %v9032_v21, -inf }
 0x5c9   : > { %v10479_v60 = vsel %vm6608_vm3, %v10406_v7, %v10403_v47  ;;  %v9722_v31 = vrot.slane %v9721_v3, 1  ;;  %v9740_v27 = vmax.f32 %v9738_v28, %v9739_v34  ;;  %v9753_v2 = vrot.slane %v9752_v8, 4 }
 0x5ca   : > { %v9728_v15 = vmax.f32 %v9726_v0, %v9727_v62  ;;  %v9734_v33 = vrot.slane %v9733_v4, 2  ;;  %v9747_v53 = vmax.f32 %v9745_v54, %v9746_v45  ;;  %v9759_v25 = vsel %vm5068_vm14, %v9056_v52, -inf }
 0x5cb   : > { %v9723_v59 = vmax.f32 %v9721_v3, %v9722_v31  ;;  %v9741_v1 = vrot.slane %v9740_v27, 2  ;;  %v9754_v29 = vmax.f32 %v9752_v8, %v9753_v2  ;;  %v9760_v40 = vrot.slane %v9759_v25, 4 }
 0x5cc   : > { %v9729_v42 = vrot.slane %v9728_v15, 1  ;;  %v9735_v36 = vmax.f32 %v9733_v4, %v9734_v33  ;;  %v9748_v21 = vrot.slane %v9747_v53, 2  ;;  %v9766_v47 = vsel %vm5068_vm14, %v9063_v38, -inf }
 0x5cd   : > { %v9742_v50 = vmax.f32 %v9740_v27, %v9741_v1  ;;  %v9755_v10 = vrot.slane %v9754_v29, 2  ;;  %v9761_v28 = vmax.f32 %v9759_v25, %v9760_v40  ;;  %v9767_v0 = vrot.slane %v9766_v47, 4 }
 0x5ce   : > { %v9730_v5 = vmax.f32 %v9728_v15, %v9729_v42  ;;  %v9736_v7 = vrot.slane %v9735_v36, 1  ;;  %v9749_v34 = vmax.f32 %v9747_v53, %v9748_v21  ;;  %v9773_v52 = vsel %vm5068_vm14, %v9064_v24, -inf }
 0x5cf   : > { %v9743_v54 = vrot.slane %v9742_v50, 1  ;;  %v9756_v3 = vmax.f32 %v9754_v29, %v9755_v10  ;;  %v9762_v62 = vrot.slane %v9761_v28, 2  ;;  %v9768_v45 = vmax.f32 %v9766_v47, %v9767_v0 }
 0x5d0   : > { %v9737_v8 = vmax.f32 %v9735_v36, %v9736_v7  ;;  %v9750_v31 = vrot.slane %v9749_v34, 1  ;;  %v9774_v2 = vrot.slane %v9773_v52, 4  ;;  %v21320_v4 = vpack.c.bf16 %v9730_v5, %v9723_v59 }
 0x5d1   : > { %v9744_v33 = vmax.f32 %v9742_v50, %v9743_v54  ;;  %v9757_v14 = vrot.slane %v9756_v3, 1  ;;  %v9763_v38 = vmax.f32 %v9761_v28, %v9762_v62  ;;  %v9769_v27 = vrot.slane %v9768_v45, 2 }
 0x5d2   : > { %v9751_v1 = vmax.f32 %v9749_v34, %v9750_v31  ;;  %v9775_v25 = vmax.f32 %v9773_v52, %v9774_v2  ;;  %v21321_v40 = vpack.c.bf16 %v9737_v8, %v9737_v8  ;;  %v10407_v15 = vunpack.c.l.b16 %v21320_v4 }
 0x5d3   : > { %v9758_v42 = vmax.f32 %v9756_v3, %v9757_v14  ;;  %v9764_v53 = vrot.slane %v9763_v38, 1  ;;  %v9770_v21 = vmax.f32 %v9768_v45, %v9769_v27  ;;  %v10408_v24 = vunpack.c.h.b16 %v21320_v4 }
 0x5d4   : > { %v9776_v19 = vrot.slane %v9775_v25, 2  ;;  %v21322_v29 = vpack.c.bf16 %v9751_v1, %v9744_v33  ;;  %v10409_v10 = vunpack.c.l.b16 %v21321_v40  ;;  %v10468_v36 = vsel %vm6610_vm4, %v10407_v15, %v10467_v9 }
 0x5d5   : > { %v9765_v47 = vmax.f32 %v9763_v38, %v9764_v53  ;;  %v9771_v0 = vrot.slane %v9770_v21, 1  ;;  %v21323_v59 = vpack.c.bf16 %v9758_v42, %v9758_v42  ;;  %v10474_v50 = vsel %vm6610_vm4, %v10408_v24, %v25894_v49 }
 0x5d6   : > { %v9777_v28 = vmax.f32 %v9775_v25, %v9776_v19  ;;  %v10410_v5 = vunpack.c.l.b16 %v21322_v29  ;;  %v10411_v7 = vunpack.c.h.b16 %v21322_v29  ;;  %v10480_v34 = vsel %vm6610_vm4, %v10409_v10, %v10479_v60 }
 0x5d7   : > { %v9772_v52 = vmax.f32 %v9770_v21, %v9771_v0  ;;  %v10412_v54 = vunpack.c.l.b16 %v21323_v59  ;;  %v8292_v3 = vmax.f32 %v25810_v48, 0.0  ;;  %v8471_v62 = vcombine.high %v25823_v11, %v25823_v11  ;;  %v22368_v59 = vld [vmem:[%s29454_s7 + $0x4bc] ss:$24 sps:$4 sm:$0xff]  }
 0x5d8   : > { %v9778_v45 = vrot.slane %v9777_v28, 1  ;;  %v10469_v9 = vsel %vm6612_vm8, %v10410_v5, %v10468_v36  ;;  %v10475_v8 = vsel %vm6612_vm8, %v10411_v7, %v10474_v50  ;;  %v8224_v49 = vmul.f32 %v25742_v58, %v25804_v51  ;;  %11750 = vmatprep.subr.bf16.mxu1 %v22368_v59 }
 0x5d9   : > { %v21324_v19 = vpack.c.bf16 %v9772_v52, %v9765_v47  ;;  %v10481_v31 = vsel %vm6612_vm8, %v10412_v54, %v10480_v34  ;;  %v8474_v2 = vcombine.high %v8292_v3, %v8292_v3  ;;  %v8495_v60 = vrot.slane %v8292_v3, %v23808_v56  ;;  %v22363_v34 = vld [vmem:[%s29454_s7 + $0x4b0] ss:$24 sps:$4 sm:$0xff]  }
 0x5da   : > { %v9779_v4 = vmax.f32 %v9777_v28, %v9778_v45  ;;  %v8268_v48 = vadd.f32 %v25746_v63, %v8224_v49  ;;  %v8227_v11 = vmul.f32 %v25742_v58, %v25825_v35  ;;  %v25923_v33 = vmul.f32 %v25742_v58, %v25832_v12  ;;  %v22366_v52 = vld [vmem:[%s29454_s7 + $0x4b8] ss:$24 sps:$4 sm:$0xff]  }
 0x5db   : > { %v10413_v14 = vunpack.c.l.b16 %v21324_v19  ;;  %v10414_v38 = vunpack.c.h.b16 %v21324_v19  ;;  %v8502_v51 = vrot.slane %v8474_v2, %v23808_v56  ;;  %v8503_v27 = vcombine.low %v25761_v30, %v8495_v60  ;;  %11751 = vmatpush1.bf16.msra.mxu1 %v22366_v52 }
 0x5dc   : > { %v21325_v1 = vpack.c.bf16 %v9779_v4, %v9779_v4  ;;  %v8504_v25 = vcombine.high %v25761_v30, %v8495_v60  ;;  %v8295_v40 = vmax.f32 %v8268_v48, 0.0  ;;  %v25929_v15 = vadd.f32 %v25746_v63, %v8227_v11 }
 0x5dd   : > { %v8505_v42 = vcombine.low %v25766_v18, %v8502_v51  ;;  %v8506_v35 = vcombine.high %v25766_v18, %v8502_v51  ;;  %v8513_v12 = vrot.slane %v8503_v27, %v23808_v56  ;;  %v25935_v53 = vsel %vm6614_vm5, %v10413_v14, %v10469_v9  ;;  %v22365_v18 = vld [vmem:[%s29454_s7 + $0x4b4] ss:$24 sps:$4 sm:$0xff]  }
 0x5de   : > { %v10415_v21 = vunpack.c.l.b16 %v21325_v1  ;;  %v8527_v24 = vrot.slane %v8504_v25, %v23808_v56  ;;  %v25939_v29 = vsel %vm6614_vm5, %v10414_v38, %v10475_v8  ;;  %v8541_v30 = vcombine.high %v8295_v40, %v8295_v40  ;;  %11648 = vmatprep.subr.bf16.mxu0 %v22365_v18 }
 0x5df   : > { %v8520_v10 = vrot.slane %v8505_v42, %v23808_v56  ;;  %v8534_v36 = vrot.slane %v8506_v35, %v23808_v56  ;;  %v9065_v47 = vcombine.low %v8471_v62, %v8513_v12  ;;  %v8562_v0 = vrot.slane %v8295_v40, %v23808_v56  ;;  %11649 = vmatpush1.bf16.msra.mxu0 %v22363_v34 }
 0x5e0   : > { %v9079_v50 = vrot.slane %v8527_v24, %v23808_v56  ;;  %v19534_v28 = vcombine.high %v8513_v12, %v8527_v24  ;;  %v25952_v5 = vsel %vm6614_vm5, %v10415_v21, %v10481_v31  ;;  %v8569_v7 = vrot.slane %v8541_v30, %v23808_v56 }
 0x5e1   : > { %v8536_v54 = vcombine.high %v8520_v10, %v8520_v10  ;;  %v8538_v3 = vcombine.high %v8534_v36, %v8534_v36  ;;  %v9072_v62 = vrot.slane %v9065_v47, %v23808_v56  ;;  %v9111_v45 = vrot.slane %v8520_v10, %v23808_v56 }
 0x5e2   : > { %v9104_v9 = vrot.slane %v19534_v28, %v23808_v56  ;;  %v8570_v8 = vcombine.low %v25770_v46, %v8562_v0  ;;  %v8571_v49 = vcombine.high %v25770_v46, %v8562_v0  ;;  %v8572_v19 = vcombine.low %v25774_v26, %v8569_v7 }
 0x5e3   : > { %v9080_v31 = vcombine.low %v9072_v62, %v9079_v50  ;;  %v9081_v2 = vcombine.high %v9072_v62, %v9079_v50  ;;  %v9129_v60 = vcombine.low %v8534_v36, %v8536_v54  ;;  %v9143_v4 = vrot.slane %v8538_v3, %v23808_v56 }
 0x5e4   : > { %v9112_v48 = vcombine.low %v9104_v9, %v9111_v45  ;;  %v9113_v11 = vcombine.high %v9104_v9, %v9111_v45  ;;  %v8573_v14 = vcombine.high %v25774_v26, %v8569_v7  ;;  %v25970_v38 = vrot.slane %v8570_v8, %v23808_v56 }
 0x5e5   : > { %v9088_v51 = vrot.slane %v9080_v31, %v23808_v56  ;;  %v9095_v46 = vrot.slane %v9081_v2, %v23808_v56  ;;  %v9136_v27 = vrot.slane %v9129_v60, %v23808_v56  ;;  %v25976_v1 = vrot.slane %v8572_v19, %v23808_v56  ;;  %v25994_v31 = vpop.f32.mrb[56].mxu1 }
 0x5e6   : > { %v9120_v25 = vrot.slane %v9112_v48, %v23808_v56  ;;  %v9127_v40 = vrot.slane %v9113_v11, %v23808_v56  ;;  %v25981_v42 = vrot.slane %v8571_v49, %v23808_v56  ;;  %v25984_v26 = vrot.slane %v8573_v14, %v23808_v56  ;;  %v8165_v11 = vpop.f32.mrb[57].mxu1 }
 0x5e7   : > { %v9096_v35 = vcombine.high %v9088_v51, %v9088_v51  ;;  %v9144_v12 = vcombine.low %v9136_v27, %v9143_v4  ;;  %v9145_v21 = vcombine.high %v9136_v27, %v9143_v4  ;;  %v9780_v24 = vsel %vm5068_vm14, %v9088_v51, -inf }
 0x5e8   : > { %v9128_v30 = vcombine.high %v9120_v25, %v9120_v25  ;;  %v9781_v10 = vrot.slane %v9780_v24, 4  ;;  %v9787_v36 = vsel %vm5068_vm14, %v9095_v46, -inf  ;;  %v9801_v47 = vsel %vm5068_vm14, %v9120_v25, -inf  ;;  %v8166_v25 = vpop.f32.mrb[58].mxu1 }
 0x5e9   : > { %v9152_v0 = vrot.slane %v9144_v12, %v23808_v56  ;;  %v9159_v18 = vrot.slane %v9145_v21, %v23808_v56  ;;  %v9788_v59 = vrot.slane %v9787_v36, 4  ;;  %v9794_v50 = vsel %vm5068_vm14, %v9096_v35, -inf }
 0x5ea   : > { %v9782_v28 = vmax.f32 %v9780_v24, %v9781_v10  ;;  %v9795_v7 = vrot.slane %v9794_v50, 4  ;;  %v9802_v34 = vrot.slane %v9801_v47, 4  ;;  %v9808_v52 = vsel %vm5068_vm14, %v9127_v40, -inf  ;;  %v8167_v24 = vpop.f32.mrb[59].mxu1 }
 0x5eb   : > { %v9160_v54 = vcombine.high %v9152_v0, %v9152_v0  ;;  %v9789_v3 = vmax.f32 %v9787_v36, %v9788_v59  ;;  %v9809_v62 = vrot.slane %v9808_v52, 4  ;;  %v9815_v45 = vsel %vm5068_vm14, %v9128_v30, -inf }
 0x5ec   : > { %v9783_v9 = vrot.slane %v9782_v28, 2  ;;  %v9796_v8 = vmax.f32 %v9794_v50, %v9795_v7  ;;  %v9803_v49 = vmax.f32 %v9801_v47, %v9802_v34  ;;  %v9816_v19 = vrot.slane %v9815_v45, 4 }
 0x5ed   : > { %v9790_v2 = vrot.slane %v9789_v3, 2  ;;  %v9810_v60 = vmax.f32 %v9808_v52, %v9809_v62  ;;  %v9822_v4 = vsel %vm5068_vm14, %v9152_v0, -inf  ;;  %v9829_v48 = vsel %vm5068_vm14, %v9159_v18, -inf }
 0x5ee   : > { %v9784_v14 = vmax.f32 %v9782_v28, %v9783_v9  ;;  %v9797_v51 = vrot.slane %v9796_v8, 2  ;;  %v9804_v46 = vrot.slane %v9803_v49, 2  ;;  %v9817_v27 = vmax.f32 %v9815_v45, %v9816_v19 }
 0x5ef   : > { %v9791_v40 = vmax.f32 %v9789_v3, %v9790_v2  ;;  %v9811_v35 = vrot.slane %v9810_v60, 2  ;;  %v9823_v12 = vrot.slane %v9822_v4, 4  ;;  %v9830_v21 = vrot.slane %v9829_v48, 4 }
 0x5f0   : > { %v9785_v30 = vrot.slane %v9784_v14, 1  ;;  %v9798_v10 = vmax.f32 %v9796_v8, %v9797_v51  ;;  %v9805_v36 = vmax.f32 %v9803_v49, %v9804_v46  ;;  %v9818_v47 = vrot.slane %v9817_v27, 2  ;;  %v22371_v8 = vld [vmem:[%s29454_s7 + $0x4e4] ss:$24 sps:$4 sm:$0xff]   ;;  %v22369_v51 = vld [vmem:[%s29454_s7 + $0x4e0] ss:$24 sps:$4 sm:$0xff]  }
 0x5f1   : > { %v9792_v59 = vrot.slane %v9791_v40, 1  ;;  %v9812_v0 = vmax.f32 %v9810_v60, %v9811_v35  ;;  %v9824_v50 = vmax.f32 %v9822_v4, %v9823_v12  ;;  %v9831_v18 = vmax.f32 %v9829_v48, %v9830_v21  ;;  %v22374_v49 = vld [vmem:[%s29454_s7 + $0x4ec] ss:$24 sps:$4 sm:$0xff]   ;;  %11650 = vmatprep.subr.bf16.mxu0 %v22371_v8 }
 0x5f2   : > { %v9786_v7 = vmax.f32 %v9784_v14, %v9785_v30  ;;  %v9799_v28 = vrot.slane %v9798_v10, 1  ;;  %v9806_v34 = vrot.slane %v9805_v36, 1  ;;  %v9819_v52 = vmax.f32 %v9817_v27, %v9818_v47  ;;  %11752 = vmatprep.subr.bf16.mxu1 %v22374_v49  ;;  %11651 = vmatpush1.bf16.msra.mxu0 %v22369_v51  ;;  %v22386_v51 = vld [vmem:[%s29454_s7 + $0x54c] ss:$24 sps:$4 sm:$0xff]  }
 0x5f3   : > { %v9793_v62 = vmax.f32 %v9791_v40, %v9792_v59  ;;  %v9813_v45 = vrot.slane %v9812_v0, 1  ;;  %v9825_v9 = vrot.slane %v9824_v50, 2  ;;  %v9832_v3 = vrot.slane %v9831_v18, 2 }
 0x5f4   : > { %v9800_v19 = vmax.f32 %v9798_v10, %v9799_v28  ;;  %v9807_v2 = vmax.f32 %v9805_v36, %v9806_v34  ;;  %v9820_v11 = vrot.slane %v9819_v52, 1  ;;  %v9836_v25 = vsel %vm5068_vm14, %v9160_v54, -inf  ;;  %v22372_v54 = vld [vmem:[%s29454_s7 + $0x4e8] ss:$24 sps:$4 sm:$0xff]  }
 0x5f5   : > { %v9814_v60 = vmax.f32 %v9812_v0, %v9813_v45  ;;  %v9826_v4 = vmax.f32 %v9824_v50, %v9825_v9  ;;  %v9833_v48 = vmax.f32 %v9831_v18, %v9832_v3  ;;  %v9837_v14 = vrot.slane %v9836_v25, 4  ;;  %11753 = vmatpush1.bf16.msra.mxu1 %v22372_v54  ;;  %v22377_v0 = vld [vmem:[%s29454_s7 + $0x514] ss:$24 sps:$4 sm:$0xff]   ;;  %v22378_v45 = vld [vmem:[%s29454_s7 + $0x518] ss:$24 sps:$4 sm:$0xff]  }
 0x5f6   : > { %v9821_v46 = vmax.f32 %v9819_v52, %v9820_v11  ;;  %v21326_v27 = vpack.c.bf16 %v9793_v62, %v9786_v7  ;;  %v21327_v40 = vpack.c.bf16 %v9800_v19, %v9800_v19  ;;  %v8602_v35 = vcombine.high %v25970_v38, %v25970_v38  ;;  %v22380_v50 = vld [vmem:[%s29454_s7 + $0x51c] ss:$24 sps:$4 sm:$0xff]   ;;  %v22375_v62 = vld [vmem:[%s29454_s7 + $0x510] ss:$24 sps:$4 sm:$0xff]   ;;  %11652 = vmatprep.subr.bf16.mxu0 %v22377_v0 }
 0x5f7   : > { %v9827_v12 = vrot.slane %v9826_v4, 1  ;;  %v9834_v21 = vrot.slane %v9833_v48, 1  ;;  %v9838_v24 = vmax.f32 %v9836_v25, %v9837_v14  ;;  %v21328_v30 = vpack.c.bf16 %v9814_v60, %v9807_v2  ;;  %11754 = vmatprep.subr.bf16.mxu1 %v22380_v50  ;;  %v10539_v60 = vld [vmem:[#allocation3] sm:$0xff]  ;;  %11653 = vmatpush1.bf16.msra.mxu0 %v22375_v62  ;;  %v22390_v62 = vld [vmem:[%s29454_s7 + $0x578] ss:$24 sps:$4 sm:$0xff]  }
 0x5f8   : > { %v21329_v10 = vpack.c.bf16 %v9821_v46, %v9821_v46  ;;  %v10416_v36 = vunpack.c.l.b16 %v21326_v27  ;;  %v10417_v47 = vunpack.c.h.b16 %v21326_v27  ;;  %v10418_v59 = vunpack.c.l.b16 %v21327_v40  ;;  %v22387_v52 = vld [vmem:[%s29454_s7 + $0x570] ss:$24 sps:$4 sm:$0xff]  }
 0x5f9   : > { %v9828_v18 = vmax.f32 %v9826_v4, %v9827_v12  ;;  %v9835_v7 = vmax.f32 %v9833_v48, %v9834_v21  ;;  %v9839_v28 = vrot.slane %v9838_v24, 2  ;;  %v10419_v34 = vunpack.c.l.b16 %v21328_v30  ;;  %v10542_v4 = vld [vmem:[#allocation3 + $0x8] sm:$0xf]  ;;  %11755 = vmatpush1.bf16.msra.mxu1 %v22378_v45  ;;  %v22381_v12 = vld [vmem:[%s29454_s7 + $0x540] ss:$24 sps:$4 sm:$0xff]  }
 0x5fa   : > { %v10420_v9 = vunpack.c.h.b16 %v21328_v30  ;;  %v10421_v3 = vunpack.c.l.b16 %v21329_v10  ;;  %v10471_v19 = vsel %vm6616_vm6, %v10416_v36, %v25935_v53  ;;  %v10477_v2 = vsel %vm6616_vm6, %v10417_v47, %v25939_v29  ;;  %11756 = vmatprep.subr.bf16.mxu1 %v22386_v51 }
 0x5fb   : > { %v9840_v11 = vmax.f32 %v9838_v24, %v9839_v28  ;;  %v26035_v25 = vpack.c.bf16 %v9835_v7, %v9828_v18  ;;  %v10472_v8 = vsel %vm6618_vm7, %v10419_v34, %v10471_v19  ;;  %v10483_v49 = vsel %vm6616_vm6, %v10418_v59, %v25952_v5  ;;  %v22383_v5 = vld [vmem:[%s29454_s7 + $0x544] ss:$24 sps:$4 sm:$0xff]   ;;  %v22389_v7 = vld [vmem:[%s29454_s7 + $0x574] ss:$24 sps:$4 sm:$0xff]  }
 0x5fc   : > { %v10478_v48 = vsel %vm6618_vm7, %v10420_v9, %v10477_v2  ;;  %v10484_v53 = vsel %vm6618_vm7, %v10421_v3, %v10483_v49  ;;  %v8604_v29 = vcombine.high %v25981_v42, %v25981_v42  ;;  %v9161_v14 = vcombine.low %v25970_v38, %v25981_v42  ;;  %v22384_v38 = vld [vmem:[%s29454_s7 + $0x548] ss:$24 sps:$4 sm:$0xff]   ;;  %11654 = vmatprep.subr.bf16.mxu0 %v22383_v5  ;;  %v22392_v28 = vld [vmem:[%s29454_s7 + $0x57c] ss:$24 sps:$4 sm:$0xff]  }
 0x5fd   : > { %v9841_v54 = vrot.slane %v9840_v11, 1  ;;  %v10422_v46 = vunpack.c.l.b16 %v26035_v25  ;;  %v10423_v27 = vunpack.c.h.b16 %v26035_v25  ;;  %v10524_v40 = vpack.c.b16 %v10478_v48, %v10472_v8  ;;  %11655 = vmatpush1.bf16.msra.mxu0 %v22381_v12  ;;  %11757 = vmatpush1.bf16.msra.mxu1 %v22384_v38  ;;  %v22395_v48 = vld [vmem:[%s29454_s7 + $0x5a4] ss:$24 sps:$4 sm:$0xff]  }
 0x5fe   : > { %v10525_v42 = vpack.c.b16 %v10484_v53, %v10484_v53  ;;  %v9168_v21 = vrot.slane %v9161_v14, %v23808_v56  ;;  %v9175_v24 = vrot.slane %v8602_v35, %v23808_v56  ;;  %v9193_v30 = vcombine.low %v8604_v29, %v25976_v1  ;;  %11656 = vmatprep.subr.bf16.mxu0 %v22389_v7  ;;  %v22398_v53 = vld [vmem:[%s29454_s7 + $0x5ac] ss:$24 sps:$4 sm:$0xff]  }
 0x5ff   : > { %v9842_v10 = vmax.f32 %v9840_v11, %v9841_v54  ;;  %v10540_v36 = vsel %vm10538_vm13, %v10524_v40, %v10539_v60  ;;  %v9207_v47 = vrot.slane %v25984_v26, %v23808_v56  ;;  %v19535_v59 = vcombine.high %v25976_v1, %v25984_v26  ;;  %11758 = vmatprep.subr.bf16.mxu1 %v22392_v28  ;;  %v22393_v54 = vld [vmem:[%s29454_s7 + $0x5a0] ss:$24 sps:$4 sm:$0xff]  }
 0x600   : > { %10541 = vst [vmem:[#allocation3] sm:$0xff] %v10540_v36  ;;  %v10543_v35 = vsel %vm24490_vm10, %v10525_v42, %v10542_v4  ;;  %v9176_v0 = vcombine.low %v9168_v21, %v9175_v24  ;;  %v9177_v50 = vcombine.high %v9168_v21, %v9175_v24  ;;  %v9200_v18 = vrot.slane %v9193_v30, %v23808_v56  ;;  %v22396_v40 = vld [vmem:[%s29454_s7 + $0x5a8] ss:$24 sps:$4 sm:$0xff]  }
 0x601   : > { %v21331_v34 = vpack.c.bf16 %v9842_v10, %v9842_v10  ;;  %10544 = vst [vmem:[#allocation3 + $0x8] sm:$0xf] %v10543_v35  ;;  %v8298_v1 = vmax.f32 %v25929_v15, 0.0  ;;  %v26087_v20 = vrot.slane %v19535_v59, %v23808_v56  ;;  %v8274_v26 = vadd.f32 %v25746_v63, %v25923_v33  ;;  %11657 = vmatpush1.bf16.msra.mxu0 %v22387_v52 }
 0x602   : > { %v9184_v45 = vrot.slane %v9176_v0, %v23808_v56  ;;  %v9191_v9 = vrot.slane %v9177_v50, %v23808_v56  ;;  %v9208_v15 = vcombine.low %v9200_v18, %v9207_v47  ;;  %v9209_v3 = vcombine.high %v9200_v18, %v9207_v47  ;;  %11759 = vmatpush1.bf16.msra.mxu1 %v22390_v62  ;;  %v22401_v50 = vld [vmem:[%s29454_s7 + $0x5d4] ss:$24 sps:$4 sm:$0xff]  }
 0x603   : > { %v26099_v19 = vunpack.c.l.b16 %v21331_v34  ;;  %v8608_v2 = vcombine.high %v8298_v1, %v8298_v1  ;;  %v26102_v33 = vrot.slane %v8298_v1, %v23808_v56  ;;  %v26104_v11 = vmax.f32 %v8274_v26, 0.0  ;;  %11658 = vmatprep.subr.bf16.mxu0 %v22395_v48  ;;  %11760 = vmatprep.subr.bf16.mxu1 %v22398_v53  ;;  %v22404_v18 = vld [vmem:[%s29454_s7 + $0x5dc] ss:$24 sps:$4 sm:$0xff]   ;;  %v22399_v26 = vld [vmem:[%s29454_s7 + $0x5d0] ss:$24 sps:$4 sm:$0xff]  }
 0x604   : > { %v9192_v8 = vcombine.high %v9184_v45, %v9184_v45  ;;  %v9216_v49 = vrot.slane %v9208_v15, %v23808_v56  ;;  %v9223_v60 = vrot.slane %v9209_v3, %v23808_v56  ;;  %v9843_v4 = vsel %vm5068_vm14, %v9184_v45, -inf  ;;  %v22407_v48 = vld [vmem:[%s29454_s7 + $0x604] ss:$24 sps:$4 sm:$0xff]  }
 0x605   : > { %v9844_v29 = vrot.slane %v9843_v4, 4  ;;  %v9850_v14 = vsel %vm5068_vm14, %v9191_v9, -inf  ;;  %v8636_v5 = vrot.slane %v8608_v2, %v23808_v56  ;;  %v8637_v51 = vcombine.low %v25777_v61, %v26102_v33  ;;  %11659 = vmatpush1.bf16.msra.mxu0 %v22393_v54  ;;  %v22408_v54 = vld [vmem:[%s29454_s7 + $0x608] ss:$24 sps:$4 sm:$0xff]  }
 0x606   : > { %v9224_v12 = vcombine.high %v9216_v49, %v9216_v49  ;;  %v9851_v38 = vrot.slane %v9850_v14, 4  ;;  %v9857_v42 = vsel %vm5068_vm14, %v9192_v8, -inf  ;;  %v9864_v21 = vsel %vm5068_vm14, %v9216_v49, -inf  ;;  %11761 = vmatpush1.bf16.msra.mxu1 %v22396_v40  ;;  %11660 = vmatprep.subr.bf16.mxu0 %v22401_v50  ;;  %v22416_v50 = vld [vmem:[%s29454_s7 + $0x63c] ss:$24 sps:$4 sm:$0xff]  }
 0x607   : > { %v9845_v24 = vmax.f32 %v9843_v4, %v9844_v29  ;;  %v9858_v30 = vrot.slane %v9857_v42, 4  ;;  %v9865_v10 = vrot.slane %v9864_v21, 4  ;;  %v9871_v36 = vsel %vm5068_vm14, %v9223_v60, -inf  ;;  %11762 = vmatprep.subr.bf16.mxu1 %v22404_v18 }
 0x608   : > { %v9852_v47 = vmax.f32 %v9850_v14, %v9851_v38  ;;  %v9872_v59 = vrot.slane %v9871_v36, 4  ;;  %v9878_v35 = vsel %vm5068_vm14, %v9224_v12, -inf  ;;  %v8638_v0 = vcombine.high %v25777_v61, %v26102_v33  ;;  %v22402_v61 = vld [vmem:[%s29454_s7 + $0x5d8] ss:$24 sps:$4 sm:$0xff]  }
 0x609   : > { %v9846_v7 = vrot.slane %v9845_v24, 2  ;;  %v9859_v28 = vmax.f32 %v9857_v42, %v9858_v30  ;;  %v9866_v34 = vmax.f32 %v9864_v21, %v9865_v10  ;;  %v9879_v1 = vrot.slane %v9878_v35, 4  ;;  %11661 = vmatpush1.bf16.msra.mxu0 %v22399_v26  ;;  %v22414_v26 = vld [vmem:[%s29454_s7 + $0x638] ss:$24 sps:$4 sm:$0xff]  }
 0x60a   : > { %v9853_v52 = vrot.slane %v9852_v47, 2  ;;  %v9873_v62 = vmax.f32 %v9871_v36, %v9872_v59  ;;  %v8639_v45 = vcombine.low %v25780_v43, %v8636_v5  ;;  %v8640_v9 = vcombine.high %v25780_v43, %v8636_v5  ;;  %v22410_v43 = vld [vmem:[%s29454_s7 + $0x60c] ss:$24 sps:$4 sm:$0xff]   ;;  %11763 = vmatpush1.bf16.msra.mxu1 %v22402_v61  ;;  %11662 = vmatprep.subr.bf16.mxu0 %v22407_v48 }
 0x60b   : > { %v9847_v15 = vmax.f32 %v9845_v24, %v9846_v7  ;;  %v9860_v3 = vrot.slane %v9859_v28, 2  ;;  %v9867_v2 = vrot.slane %v9866_v34, 2  ;;  %v9880_v33 = vmax.f32 %v9878_v35, %v9879_v1  ;;  %11764 = vmatprep.subr.bf16.mxu1 %v22410_v43  ;;  %v22411_v1 = vld [vmem:[%s29454_s7 + $0x630] ss:$24 sps:$4 sm:$0xff]   ;;  %v22422_v43 = vld [vmem:[%s29454_s7 + $0x66c] ss:$24 sps:$4 sm:$0xff]  }
 0x60c   : > { %v9854_v8 = vmax.f32 %v9852_v47, %v9853_v52  ;;  %v9874_v49 = vrot.slane %v9873_v62, 2  ;;  %v8647_v60 = vrot.slane %v8637_v51, %v23808_v56  ;;  %v26147_v4 = vrot.slane %v8639_v45, %v23808_v56  ;;  %v22405_v51 = vld [vmem:[%s29454_s7 + $0x600] ss:$24 sps:$4 sm:$0xff]  }
 0x60d   : > { %v9848_v53 = vrot.slane %v9847_v15, 1  ;;  %v9861_v29 = vmax.f32 %v9859_v28, %v9860_v3  ;;  %v9868_v14 = vmax.f32 %v9866_v34, %v9867_v2  ;;  %v9881_v5 = vrot.slane %v9880_v33, 2  ;;  %11663 = vmatpush1.bf16.msra.mxu0 %v22405_v51  ;;  %v22420_v51 = vld [vmem:[%s29454_s7 + $0x668] ss:$24 sps:$4 sm:$0xff]  }
 0x60e   : > { %v9855_v40 = vrot.slane %v9854_v8, 1  ;;  %v9875_v12 = vmax.f32 %v9873_v62, %v9874_v49  ;;  %v8661_v38 = vrot.slane %v8638_v0, %v23808_v56  ;;  %v26163_v42 = vrot.slane %v8640_v9, %v23808_v56  ;;  %v22413_v0 = vld [vmem:[%s29454_s7 + $0x634] ss:$24 sps:$4 sm:$0xff]   ;;  %11765 = vmatpush1.bf16.msra.mxu1 %v22408_v54 }
 0x60f   : > { %v9849_v21 = vmax.f32 %v9847_v15, %v9848_v53  ;;  %v9862_v24 = vrot.slane %v9861_v29, 1  ;;  %v9869_v30 = vrot.slane %v9868_v14, 1  ;;  %v9882_v10 = vmax.f32 %v9880_v33, %v9881_v5  ;;  %11664 = vmatprep.subr.bf16.mxu0 %v22413_v0  ;;  %11766 = vmatprep.subr.bf16.mxu1 %v22416_v50  ;;  %v22417_v5 = vld [vmem:[%s29454_s7 + $0x660] ss:$24 sps:$4 sm:$0xff]  }
 0x610   : > { %v9856_v36 = vmax.f32 %v9854_v8, %v9855_v40  ;;  %v9876_v47 = vrot.slane %v9875_v12, 1  ;;  %v8669_v59 = vcombine.high %v8647_v60, %v8647_v60  ;;  %v8670_v35 = vcombine.high %v26147_v4, %v26147_v4 }
 0x611   : > { %v9863_v18 = vmax.f32 %v9861_v29, %v9862_v24  ;;  %v9870_v7 = vmax.f32 %v9868_v14, %v9869_v30  ;;  %v9883_v28 = vrot.slane %v9882_v10, 1  ;;  %v8671_v34 = vcombine.high %v8661_v38, %v8661_v38  ;;  %11665 = vmatpush1.bf16.msra.mxu0 %v22411_v1 }
 0x612   : > { %v9877_v61 = vmax.f32 %v9875_v12, %v9876_v47  ;;  %v21332_v52 = vpack.c.bf16 %v9856_v36, %v9849_v21  ;;  %v9239_v62 = vrot.slane %v8647_v60, %v23808_v56  ;;  %v9257_v45 = vcombine.low %v8661_v38, %v8669_v59  ;;  %v22419_v60 = vld [vmem:[%s29454_s7 + $0x664] ss:$24 sps:$4 sm:$0xff]   ;;  %11767 = vmatpush1.bf16.msra.mxu1 %v22414_v26 }
 0x613   : > { %v9884_v9 = vmax.f32 %v9882_v10, %v9883_v28  ;;  %v21333_v15 = vpack.c.bf16 %v9863_v18, %v9863_v18  ;;  %v9271_v3 = vrot.slane %v8671_v34, %v23808_v56  ;;  %v9289_v2 = vcombine.low %v26147_v4, %v26163_v42  ;;  %11666 = vmatprep.subr.bf16.mxu0 %v22419_v60  ;;  %v22423_v18 = vld [vmem:[%s29454_s7 + $0x690] ss:$24 sps:$4 sm:$0xff]   ;;  %v22431_v60 = vld [vmem:[%s29454_s7 + $0x6c4] ss:$24 sps:$4 sm:$0xff]  }
 0x614   : > { %v21334_v33 = vpack.c.bf16 %v9877_v61, %v9870_v7  ;;  %v10425_v8 = vunpack.c.l.b16 %v21332_v52  ;;  %v10426_v49 = vunpack.c.h.b16 %v21332_v52  ;;  %v9240_v48 = vcombine.low %v26087_v20, %v9239_v62  ;;  %11768 = vmatprep.subr.bf16.mxu1 %v22422_v43  ;;  %v22426_v7 = vld [vmem:[%s29454_s7 + $0x698] ss:$24 sps:$4 sm:$0xff]  }
 0x615   : > { %v21335_v53 = vpack.c.bf16 %v9884_v9, %v9884_v9  ;;  %v10427_v29 = vunpack.c.l.b16 %v21333_v15  ;;  %v9241_v14 = vcombine.high %v26087_v20, %v9239_v62  ;;  %v9264_v4 = vrot.slane %v9257_v45, %v23808_v56  ;;  %11667 = vmatpush1.bf16.msra.mxu0 %v22417_v5 }
 0x616   : > { %v10428_v54 = vunpack.c.l.b16 %v21334_v33  ;;  %v10429_v40 = vunpack.c.h.b16 %v21334_v33  ;;  %v10485_v12 = vsel %vm6004_vm2, %v10425_v8, %v10422_v46  ;;  %v10492_v20 = vsel %vm6004_vm2, %v10426_v49, %v10423_v27  ;;  %v22425_v27 = vld [vmem:[%s29454_s7 + $0x694] ss:$24 sps:$4 sm:$0xff]   ;;  %11769 = vmatpush1.bf16.msra.mxu1 %v22420_v51 }
 0x617   : > { %v10430_v38 = vunpack.c.l.b16 %v21335_v53  ;;  %v10499_v21 = vsel %vm6004_vm2, %v10427_v29, %v26099_v19  ;;  %v9248_v24 = vrot.slane %v9240_v48, %v23808_v56  ;;  %v9255_v30 = vrot.slane %v9241_v14, %v23808_v56  ;;  %v22428_v19 = vld [vmem:[%s29454_s7 + $0x69c] ss:$24 sps:$4 sm:$0xff]   ;;  %11668 = vmatprep.subr.bf16.mxu0 %v22425_v27  ;;  %v22429_v48 = vld [vmem:[%s29454_s7 + $0x6c0] ss:$24 sps:$4 sm:$0xff]  }
 0x618   : > { %v26209_v10 = vsel %vm6608_vm3, %v10428_v54, %v10485_v12  ;;  %v26212_v36 = vsel %vm6608_vm3, %v10429_v40, %v10492_v20  ;;  %v9272_v46 = vcombine.low %v9264_v4, %v9271_v3  ;;  %v9273_v25 = vcombine.high %v9264_v4, %v9271_v3  ;;  %11770 = vmatprep.subr.bf16.mxu1 %v22428_v19  ;;  %v22432_v4 = vld [vmem:[%s29454_s7 + $0x6c8] ss:$24 sps:$4 sm:$0xff]   ;;  %v22434_v12 = vld [vmem:[%s29454_s7 + $0x6cc] ss:$24 sps:$4 sm:$0xff]  }
 0x619   : > { %v26221_v47 = vsel %vm6608_vm3, %v10430_v38, %v10499_v21  ;;  %v9256_v59 = vcombine.high %v9248_v24, %v9248_v24  ;;  %v9296_v0 = vrot.slane %v9289_v2, %v23808_v56  ;;  %v9303_v50 = vrot.slane %v8670_v35, %v23808_v56  ;;  %11669 = vmatpush1.bf16.msra.mxu0 %v22423_v18 }
 0x61a   : > { %v9280_v28 = vrot.slane %v9272_v46, %v23808_v56  ;;  %v9287_v34 = vrot.slane %v9273_v25, %v23808_v56  ;;  %v9885_v1 = vsel %vm5068_vm14, %v9248_v24, -inf  ;;  %v9892_v26 = vsel %vm5068_vm14, %v9255_v30, -inf  ;;  %11771 = vmatpush1.bf16.msra.mxu1 %v22426_v7  ;;  %11670 = vmatprep.subr.bf16.mxu0 %v22431_v60  ;;  %v22437_v30 = vld [vmem:[%s29454_s7 + $0x6f4] ss:$24 sps:$4 sm:$0xff]  }
 0x61b   : > { %v9304_v35 = vcombine.low %v9296_v0, %v9303_v50  ;;  %v9305_v61 = vcombine.high %v9296_v0, %v9303_v50  ;;  %v9886_v52 = vrot.slane %v9885_v1, 4  ;;  %v9893_v62 = vrot.slane %v9892_v26, 4  ;;  %v22440_v46 = vld [vmem:[%s29454_s7 + $0x6fc] ss:$24 sps:$4 sm:$0xff]   ;;  %11772 = vmatprep.subr.bf16.mxu1 %v22434_v12  ;;  %v22435_v0 = vld [vmem:[%s29454_s7 + $0x6f0] ss:$24 sps:$4 sm:$0xff]  }
 0x61c   : > { %v9288_v45 = vcombine.high %v9280_v28, %v9280_v28  ;;  %v9899_v9 = vsel %vm5068_vm14, %v9256_v59, -inf  ;;  %v9906_v15 = vsel %vm5068_vm14, %v9280_v28, -inf  ;;  %v9913_v3 = vsel %vm5068_vm14, %v9287_v34, -inf  ;;  %v22438_v34 = vld [vmem:[%s29454_s7 + $0x6f8] ss:$24 sps:$4 sm:$0xff]  }
 0x61d   : > { %v26239_v2 = vrot.slane %v9304_v35, %v23808_v56  ;;  %v9319_v33 = vrot.slane %v9305_v61, %v23808_v56  ;;  %v9887_v8 = vmax.f32 %v9885_v1, %v9886_v52  ;;  %v9894_v49 = vmax.f32 %v9892_v26, %v9893_v62  ;;  %11671 = vmatpush1.bf16.msra.mxu0 %v22429_v48  ;;  %v22441_v48 = vld [vmem:[%s29454_s7 + $0x720] ss:$24 sps:$4 sm:$0xff]  }
 0x61e   : > { %v9900_v43 = vrot.slane %v9899_v9, 4  ;;  %v9907_v53 = vrot.slane %v9906_v15, 4  ;;  %v9914_v29 = vrot.slane %v9913_v3, 4  ;;  %v9920_v14 = vsel %vm5068_vm14, %v9288_v45, -inf  ;;  %11773 = vmatpush1.bf16.msra.mxu1 %v22432_v4  ;;  %11672 = vmatprep.subr.bf16.mxu0 %v22437_v30  ;;  %v22452_v30 = vld [vmem:[%s29454_s7 + $0x75c] ss:$24 sps:$4 sm:$0xff]  }
 0x61f   : > { %v9320_v5 = vcombine.high %v26239_v2, %v26239_v2  ;;  %v9888_v51 = vrot.slane %v9887_v8, 2  ;;  %v9895_v54 = vrot.slane %v9894_v49, 2  ;;  %v9921_v40 = vrot.slane %v9920_v14, 4  ;;  %11774 = vmatprep.subr.bf16.mxu1 %v22440_v46 }
 0x620   : > { %v9901_v20 = vmax.f32 %v9899_v9, %v9900_v43  ;;  %v9908_v38 = vmax.f32 %v9906_v15, %v9907_v53  ;;  %v9915_v21 = vmax.f32 %v9913_v3, %v9914_v29  ;;  %v9927_v24 = vsel %vm5068_vm14, %v26239_v2, -inf  ;;  %v22443_v15 = vld [vmem:[%s29454_s7 + $0x724] ss:$24 sps:$4 sm:$0xff]  }
 0x621   : > { %v9889_v25 = vmax.f32 %v9887_v8, %v9888_v51  ;;  %v9896_v27 = vmax.f32 %v9894_v49, %v9895_v54  ;;  %v9922_v19 = vmax.f32 %v9920_v14, %v9921_v40  ;;  %v9928_v59 = vrot.slane %v9927_v24, 4  ;;  %11673 = vmatpush1.bf16.msra.mxu0 %v22435_v0  ;;  %v22446_v3 = vld [vmem:[%s29454_s7 + $0x72c] ss:$24 sps:$4 sm:$0xff]   ;;  %v22444_v14 = vld [vmem:[%s29454_s7 + $0x728] ss:$24 sps:$4 sm:$0xff]  }
 0x622   : > { %v9902_v50 = vrot.slane %v9901_v20, 2  ;;  %v9909_v18 = vrot.slane %v9908_v38, 2  ;;  %v9916_v7 = vrot.slane %v9915_v21, 2  ;;  %v9934_v28 = vsel %vm5068_vm14, %v9319_v33, -inf  ;;  %11775 = vmatpush1.bf16.msra.mxu1 %v22438_v34  ;;  %11674 = vmatprep.subr.bf16.mxu0 %v22443_v15 }
 0x623   : > { %v9890_v1 = vrot.slane %v9889_v25, 1  ;;  %v9897_v26 = vrot.slane %v9896_v27, 1  ;;  %v9923_v35 = vrot.slane %v9922_v19, 2  ;;  %v9929_v61 = vmax.f32 %v9927_v24, %v9928_v59  ;;  %11776 = vmatprep.subr.bf16.mxu1 %v22446_v3  ;;  %v22449_v24 = vld [vmem:[%s29454_s7 + $0x754] ss:$24 sps:$4 sm:$0xff]  }
 0x624   : > { %v9903_v52 = vmax.f32 %v9901_v20, %v9902_v50  ;;  %v9910_v62 = vmax.f32 %v9908_v38, %v9909_v18  ;;  %v9917_v45 = vmax.f32 %v9915_v21, %v9916_v7  ;;  %v9935_v9 = vrot.slane %v9934_v28, 4  ;;  %v22450_v7 = vld [vmem:[%s29454_s7 + $0x758] ss:$24 sps:$4 sm:$0xff]  }
 0x625   : > { %v9891_v2 = vmax.f32 %v9889_v25, %v9890_v1  ;;  %v9898_v33 = vmax.f32 %v9896_v27, %v9897_v26  ;;  %v9924_v8 = vmax.f32 %v9922_v19, %v9923_v35  ;;  %v9930_v49 = vrot.slane %v9929_v61, 2  ;;  %11675 = vmatpush1.bf16.msra.mxu0 %v22441_v48 }
 0x626   : > { %v9904_v60 = vrot.slane %v9903_v52, 1  ;;  %v9911_v43 = vrot.slane %v9910_v62, 1  ;;  %v9918_v53 = vrot.slane %v9917_v45, 1  ;;  %v9936_v29 = vmax.f32 %v9934_v28, %v9935_v9  ;;  %11777 = vmatpush1.bf16.msra.mxu1 %v22444_v14  ;;  %11676 = vmatprep.subr.bf16.mxu0 %v22449_v24  ;;  %v22458_v9 = vld [vmem:[%s29454_s7 + $0x78c] ss:$24 sps:$4 sm:$0xff]  }
 0x627   : > { %v9925_v4 = vrot.slane %v9924_v8, 1  ;;  %v9931_v51 = vmax.f32 %v9929_v61, %v9930_v49  ;;  %v9941_v54 = vsel %vm5068_vm14, %v9320_v5, -inf  ;;  %v21336_v40 = vpack.c.bf16 %v9898_v33, %v9891_v2  ;;  %v22447_v5 = vld [vmem:[%s29454_s7 + $0x750] ss:$24 sps:$4 sm:$0xff]   ;;  %11778 = vmatprep.subr.bf16.mxu1 %v22452_v30 }
 0x628   : > { %v9905_v12 = vmax.f32 %v9903_v52, %v9904_v60  ;;  %v9912_v20 = vmax.f32 %v9910_v62, %v9911_v43  ;;  %v9919_v38 = vmax.f32 %v9917_v45, %v9918_v53  ;;  %v9937_v21 = vrot.slane %v9936_v29, 2  ;;  %v22455_v45 = vld [vmem:[%s29454_s7 + $0x784] ss:$24 sps:$4 sm:$0xff]  }
 0x629   : > { %v9926_v46 = vmax.f32 %v9924_v8, %v9925_v4  ;;  %v9932_v25 = vrot.slane %v9931_v51, 1  ;;  %v9942_v27 = vrot.slane %v9941_v54, 4  ;;  %v10431_v19 = vunpack.c.l.b16 %v21336_v40  ;;  %11677 = vmatpush1.bf16.msra.mxu0 %v22447_v5 }
 0x62a   : > { %v9938_v59 = vmax.f32 %v9936_v29, %v9937_v21  ;;  %v21337_v0 = vpack.c.bf16 %v9905_v12, %v9905_v12  ;;  %v21338_v50 = vpack.c.bf16 %v9919_v38, %v9912_v20  ;;  %v10432_v18 = vunpack.c.h.b16 %v21336_v40  ;;  %11779 = vmatpush1.bf16.msra.mxu1 %v22450_v7  ;;  %11697 = vmatprep.subr.bf16.mxu0 %v22455_v45 }
 0x62b   : > { %v9933_v28 = vmax.f32 %v9931_v51, %v9932_v25  ;;  %v9943_v34 = vmax.f32 %v9941_v54, %v9942_v27  ;;  %v21339_v1 = vpack.c.bf16 %v9926_v46, %v9926_v46  ;;  %v10487_v26 = vsel %vm6610_vm4, %v10431_v19, %v26209_v10  ;;  %11799 = vmatprep.subr.bf16.mxu1 %v22458_v9 }
 0x62c   : > { %v9939_v35 = vrot.slane %v9938_v59, 1  ;;  %v10433_v61 = vunpack.c.l.b16 %v21337_v0  ;;  %v10434_v52 = vunpack.c.l.b16 %v21338_v50  ;;  %v10435_v62 = vunpack.c.h.b16 %v21338_v50 }
 0x62d   : > { %v9944_v15 = vrot.slane %v9943_v34, 2  ;;  %v10436_v3 = vunpack.c.l.b16 %v21339_v1  ;;  %v10494_v2 = vsel %vm6610_vm4, %v10432_v18, %v26212_v36  ;;  %v8672_v10 = vcombine.high %v26163_v42, %v26163_v42 }
 0x62e   : > { %v9940_v33 = vmax.f32 %v9938_v59, %v9939_v35  ;;  %v10488_v8 = vsel %vm6612_vm8, %v10434_v52, %v10487_v26  ;;  %v10495_v49 = vsel %vm6612_vm8, %v10435_v62, %v10494_v2  ;;  %v10501_v48 = vsel %vm6610_vm4, %v10433_v61, %v26221_v47 }
 0x62f   : > { %v9945_v60 = vmax.f32 %v9943_v34, %v9944_v15  ;;  %v10502_v43 = vsel %vm6612_vm8, %v10436_v3, %v10501_v48  ;;  %v8675_v53 = vcombine.high %v26104_v11, %v26104_v11  ;;  %v8696_v36 = vrot.slane %v26104_v11, %v23808_v56 }
 0x630   : > { %v21340_v42 = vpack.c.bf16 %v9940_v33, %v9933_v28  ;;  %v8233_v29 = vmul.f32 %v25742_v58, %v25853_v57  ;;  %v8236_v14 = vmul.f32 %v25742_v58, %v25901_v23  ;;  %v26324_v47 = vmul.f32 %v25742_v58, %v25994_v31 }
 0x631   : > { %v9946_v4 = vrot.slane %v9945_v60, 1  ;;  %v8703_v51 = vrot.slane %v8675_v53, %v23808_v56  ;;  %v8704_v54 = vcombine.low %v25784_v39, %v8696_v36  ;;  %v8705_v11 = vcombine.high %v25784_v39, %v8696_v36 }
 0x632   : > { %v10437_v40 = vunpack.c.l.b16 %v21340_v42  ;;  %v10438_v12 = vunpack.c.h.b16 %v21340_v42  ;;  %v8277_v20 = vadd.f32 %v25746_v63, %v8233_v29  ;;  %v26331_v57 = vadd.f32 %v25746_v63, %v8236_v14 }
 0x633   : > { %v9947_v23 = vmax.f32 %v9945_v60, %v9946_v4  ;;  %v8706_v38 = vcombine.low %v25787_v44, %v8703_v51  ;;  %v8707_v58 = vcombine.high %v25787_v44, %v8703_v51  ;;  %v8714_v31 = vrot.slane %v8704_v54, %v23808_v56 }
 0x634   : > { %v8728_v21 = vrot.slane %v8705_v11, %v23808_v56  ;;  %v26338_v24 = vsel %vm6614_vm5, %v10437_v40, %v10488_v8  ;;  %v26341_v39 = vsel %vm6614_vm5, %v10438_v12, %v10495_v49  ;;  %v8304_v30 = vmax.f32 %v8277_v20, 0.0 }
 0x635   : > { %v21341_v46 = vpack.c.bf16 %v9947_v23, %v9947_v23  ;;  %v8721_v25 = vrot.slane %v8706_v38, %v23808_v56  ;;  %v8735_v27 = vrot.slane %v8707_v58, %v23808_v56  ;;  %v9321_v19 = vcombine.low %v8672_v10, %v8714_v31 }
 0x636   : > { %v9335_v5 = vrot.slane %v8728_v21, %v23808_v56  ;;  %v19536_v44 = vcombine.high %v8714_v31, %v8728_v21  ;;  %v8742_v59 = vcombine.high %v8304_v30, %v8304_v30  ;;  %v26347_v0 = vrot.slane %v8304_v30, %v23808_v56 }
 0x637   : > { %v10439_v50 = vunpack.c.l.b16 %v21341_v46  ;;  %v8737_v18 = vcombine.high %v8721_v25, %v8721_v25  ;;  %v8739_v7 = vcombine.high %v8735_v27, %v8735_v27  ;;  %v9328_v28 = vrot.slane %v9321_v19, %v23808_v56 }
 0x638   : > { %v9360_v34 = vrot.slane %v19536_v44, %v23808_v56  ;;  %v9367_v1 = vrot.slane %v8721_v25, %v23808_v56  ;;  %v26353_v26 = vrot.slane %v8742_v59, %v23808_v56  ;;  %v8771_v35 = vcombine.low %v25790_v22, %v26347_v0 }
 0x639   : > { %v9336_v61 = vcombine.low %v9328_v28, %v9335_v5  ;;  %v9337_v52 = vcombine.high %v9328_v28, %v9335_v5  ;;  %v9385_v62 = vcombine.low %v8735_v27, %v8737_v18  ;;  %v9399_v45 = vrot.slane %v8739_v7, %v23808_v56 }
 0x63a   : > { %v9368_v9 = vcombine.low %v9360_v34, %v9367_v1  ;;  %v9369_v15 = vcombine.high %v9360_v34, %v9367_v1  ;;  %v26359_v3 = vsel %vm6614_vm5, %v10439_v50, %v10502_v43  ;;  %v8772_v2 = vcombine.high %v25790_v22, %v26347_v0 }
 0x63b   : > { %v9344_v10 = vrot.slane %v9336_v61, %v23808_v56  ;;  %v9351_v33 = vrot.slane %v9337_v52, %v23808_v56  ;;  %v9392_v8 = vrot.slane %v9385_v62, %v23808_v56  ;;  %v8773_v49 = vcombine.low %v25793_v16, %v26353_v26 }
 0x63c   : > { %v9376_v48 = vrot.slane %v9368_v9, %v23808_v56  ;;  %v9383_v60 = vrot.slane %v9369_v15, %v23808_v56  ;;  %v8774_v43 = vcombine.high %v25793_v16, %v26353_v26  ;;  %v26373_v53 = vrot.slane %v8771_v35, %v23808_v56 }
 0x63d   : > { %v9352_v36 = vcombine.high %v9344_v10, %v9344_v10  ;;  %v9400_v42 = vcombine.low %v9392_v8, %v9399_v45  ;;  %v9401_v29 = vcombine.high %v9392_v8, %v9399_v45  ;;  %v9948_v14 = vsel %vm5068_vm14, %v9344_v10, -inf }
 0x63e   : > { %v9384_v4 = vcombine.high %v9376_v48, %v9376_v48  ;;  %v9949_v51 = vrot.slane %v9948_v14, 4  ;;  %v9955_v54 = vsel %vm5068_vm14, %v9351_v33, -inf  ;;  %v9969_v11 = vsel %vm5068_vm14, %v9376_v48, -inf }
 0x63f   : > { %v9408_v40 = vrot.slane %v9400_v42, %v23808_v56  ;;  %v9415_v12 = vrot.slane %v9401_v29, %v23808_v56  ;;  %v9956_v20 = vrot.slane %v9955_v54, 4  ;;  %v9962_v23 = vsel %vm5068_vm14, %v9352_v36, -inf }
 0x640   : > { %v9950_v38 = vmax.f32 %v9948_v14, %v9949_v51  ;;  %v9963_v58 = vrot.slane %v9962_v23, 4  ;;  %v9970_v31 = vrot.slane %v9969_v11, 4  ;;  %v9976_v21 = vsel %vm5068_vm14, %v9383_v60, -inf }
 0x641   : > { %v9416_v30 = vcombine.high %v9408_v40, %v9408_v40  ;;  %v9957_v46 = vmax.f32 %v9955_v54, %v9956_v20  ;;  %v9977_v25 = vrot.slane %v9976_v21, 4  ;;  %v9983_v27 = vsel %vm5068_vm14, %v9384_v4, -inf }
 0x642   : > { %v9951_v19 = vrot.slane %v9950_v38, 2  ;;  %v9964_v5 = vmax.f32 %v9962_v23, %v9963_v58  ;;  %v9971_v44 = vmax.f32 %v9969_v11, %v9970_v31  ;;  %v9984_v59 = vrot.slane %v9983_v27, 4 }
 0x643   : > { %v9958_v50 = vrot.slane %v9957_v46, 2  ;;  %v9978_v18 = vmax.f32 %v9976_v21, %v9977_v25  ;;  %v9990_v7 = vsel %vm5068_vm14, %v9408_v40, -inf  ;;  %v9997_v28 = vsel %vm5068_vm14, %v9415_v12, -inf }
 0x644   : > { %v9952_v34 = vmax.f32 %v9950_v38, %v9951_v19  ;;  %v9965_v1 = vrot.slane %v9964_v5, 2  ;;  %v9972_v35 = vrot.slane %v9971_v44, 2  ;;  %v9985_v61 = vmax.f32 %v9983_v27, %v9984_v59 }
 0x645   : > { %v9959_v52 = vmax.f32 %v9957_v46, %v9958_v50  ;;  %v9979_v62 = vrot.slane %v9978_v18, 2  ;;  %v9991_v45 = vrot.slane %v9990_v7, 4  ;;  %v9998_v9 = vrot.slane %v9997_v28, 4 }
 0x646   : > { %v9953_v15 = vrot.slane %v9952_v34, 1  ;;  %v9966_v10 = vmax.f32 %v9964_v5, %v9965_v1  ;;  %v9973_v33 = vmax.f32 %v9971_v44, %v9972_v35  ;;  %v9986_v8 = vrot.slane %v9985_v61, 2 }
 0x647   : > { %v9960_v48 = vrot.slane %v9959_v52, 1  ;;  %v9980_v60 = vmax.f32 %v9978_v18, %v9979_v62  ;;  %v9992_v36 = vmax.f32 %v9990_v7, %v9991_v45  ;;  %v9999_v42 = vmax.f32 %v9997_v28, %v9998_v9 }
 0x648   : > { %v9954_v29 = vmax.f32 %v9952_v34, %v9953_v15  ;;  %v9967_v14 = vrot.slane %v9966_v10, 1  ;;  %v9974_v4 = vrot.slane %v9973_v33, 1  ;;  %v9987_v51 = vmax.f32 %v9985_v61, %v9986_v8 }
 0x649   : > { %v9961_v54 = vmax.f32 %v9959_v52, %v9960_v48  ;;  %v9981_v11 = vrot.slane %v9980_v60, 1  ;;  %v9993_v40 = vrot.slane %v9992_v36, 2  ;;  %v10000_v12 = vrot.slane %v9999_v42, 2 }
 0x64a   : > { %v9968_v20 = vmax.f32 %v9966_v10, %v9967_v14  ;;  %v9975_v23 = vmax.f32 %v9973_v33, %v9974_v4  ;;  %v9988_v38 = vrot.slane %v9987_v51, 1  ;;  %v10004_v58 = vsel %vm5068_vm14, %v9416_v30, -inf }
 0x64b   : > { %v9982_v31 = vmax.f32 %v9980_v60, %v9981_v11  ;;  %v9994_v21 = vmax.f32 %v9992_v36, %v9993_v40  ;;  %v10001_v46 = vmax.f32 %v9999_v42, %v10000_v12  ;;  %v10005_v25 = vrot.slane %v10004_v58, 4 }
 0x64c   : > { %v9989_v27 = vmax.f32 %v9987_v51, %v9988_v38  ;;  %v21342_v19 = vpack.c.bf16 %v9961_v54, %v9954_v29  ;;  %v21343_v5 = vpack.c.bf16 %v9968_v20, %v9968_v20  ;;  %v8788_v44 = vrot.slane %v8773_v49, %v23808_v56 }
 0x64d   : > { %v9995_v59 = vrot.slane %v9994_v21, 1  ;;  %v10002_v50 = vrot.slane %v10001_v46, 1  ;;  %v10006_v18 = vmax.f32 %v10004_v58, %v10005_v25  ;;  %v21344_v7 = vpack.c.bf16 %v9982_v31, %v9975_v23 }
 0x64e   : > { %v21345_v28 = vpack.c.bf16 %v9989_v27, %v9989_v27  ;;  %v10440_v34 = vunpack.c.l.b16 %v21342_v19  ;;  %v10441_v1 = vunpack.c.h.b16 %v21342_v19  ;;  %v10442_v30 = vunpack.c.l.b16 %v21343_v5 }
 0x64f   : > { %v9996_v35 = vmax.f32 %v9994_v21, %v9995_v59  ;;  %v10003_v61 = vmax.f32 %v10001_v46, %v10002_v50  ;;  %v10007_v52 = vrot.slane %v10006_v18, 2  ;;  %v10443_v62 = vunpack.c.l.b16 %v21344_v7 }
 0x650   : > { %v10444_v45 = vunpack.c.h.b16 %v21344_v7  ;;  %v10445_v9 = vunpack.c.l.b16 %v21345_v28  ;;  %v10490_v15 = vsel %vm6616_vm6, %v10440_v34, %v26338_v24  ;;  %v10497_v49 = vsel %vm6616_vm6, %v10441_v1, %v26341_v39 }
 0x651   : > { %v10008_v10 = vmax.f32 %v10006_v18, %v10007_v52  ;;  %v26394_v33 = vpack.c.bf16 %v10003_v61, %v9996_v35  ;;  %v10491_v8 = vsel %vm6618_vm7, %v10443_v62, %v10490_v15  ;;  %v10504_v48 = vsel %vm6616_vm6, %v10442_v30, %v26359_v3 }
 0x652   : > { %v10498_v60 = vsel %vm6618_vm7, %v10444_v45, %v10497_v49  ;;  %v10505_v36 = vsel %vm6618_vm7, %v10445_v9, %v10504_v48  ;;  %v8795_v24 = vrot.slane %v8772_v2, %v23808_v56  ;;  %v8802_v39 = vrot.slane %v8774_v43, %v23808_v56 }
 0x653   : > { %v10009_v42 = vrot.slane %v10008_v10, 1  ;;  %v10446_v29 = vunpack.c.l.b16 %v26394_v33  ;;  %v10447_v14 = vunpack.c.h.b16 %v26394_v33  ;;  %v26411_v3 = vpack.c.b16 %v10498_v60, %v10491_v8 }
 0x654   : > { %v10527_v4 = vpack.c.b16 %v10505_v36, %v10505_v36  ;;  %v8803_v51 = vcombine.high %v26373_v53, %v26373_v53  ;;  %v8805_v54 = vcombine.high %v8795_v24, %v8795_v24  ;;  %v9417_v22 = vcombine.low %v26373_v53, %v8795_v24 }
 0x655   : > { %v10010_v0 = vmax.f32 %v10008_v10, %v10009_v42  ;;  %10545 = vst [vmem:[#allocation3 + $0xc] sm:$0xff] %v26411_v3  ;;  %v9463_v16 = vrot.slane %v8802_v39, %v23808_v56  ;;  %v19537_v26 = vcombine.high %v8788_v44, %v8802_v39  ;;  %v8307_v2 = vmax.f32 %v26331_v57, 0.0 }
 0x656   : > { %10546 = vst [vmem:[#allocation3 + $0x14] sm:$0xf] %v10527_v4  ;;  %v9424_v43 = vrot.slane %v9417_v22, %v23808_v56  ;;  %v9431_v11 = vrot.slane %v8803_v51, %v23808_v56  ;;  %v9449_v40 = vcombine.low %v8805_v54, %v8788_v44  ;;  %v26423_v12 = vadd.f32 %v25746_v63, %v26324_v47 }
 0x657   : > { %v21347_v20 = vpack.c.bf16 %v10010_v0, %v10010_v0  ;;  %v8809_v53 = vcombine.high %v8307_v2, %v8307_v2  ;;  %v8830_v23 = vrot.slane %v8307_v2, %v23808_v56  ;;  %v26427_v38 = vrot.slane %v19537_v26, %v23808_v56 }
 0x658   : > { %v9432_v58 = vcombine.low %v9424_v43, %v9431_v11  ;;  %v9433_v31 = vcombine.high %v9424_v43, %v9431_v11  ;;  %v9456_v57 = vrot.slane %v9449_v40, %v23808_v56  ;;  %v8310_v21 = vmax.f32 %v26423_v12, 0.0  ;;  %v10153_v12 = vld [vmem:[#allocation3 + $0x18] sm:$0x88] }
 0x659   : > { %v26431_v46 = vunpack.c.l.b16 %v21347_v20  ;;  %v8837_v25 = vrot.slane %v8809_v53, %v23808_v56  ;;  %v8838_v63 = vcombine.low %v25797_v32, %v8830_v23  ;;  %v8839_v47 = vcombine.high %v25797_v32, %v8830_v23 }
 0x65a   : > { %v9440_v27 = vrot.slane %v9432_v58, %v23808_v56  ;;  %v9447_v19 = vrot.slane %v9433_v31, %v23808_v56  ;;  %v9464_v5 = vcombine.low %v9456_v57, %v9463_v16  ;;  %v9465_v44 = vcombine.high %v9456_v57, %v9463_v16 }
 0x65b   : > { %v8840_v59 = vcombine.low %v25800_v6, %v8837_v25  ;;  %v8841_v50 = vcombine.high %v25800_v6, %v8837_v25  ;;  %v8848_v18 = vrot.slane %v8838_v63, %v23808_v56  ;;  %v8862_v7 = vrot.slane %v8839_v47, %v23808_v56 }
 0x65c   : > { %v9448_v28 = vcombine.high %v9440_v27, %v9440_v27  ;;  %v9472_v34 = vrot.slane %v9464_v5, %v23808_v56  ;;  %v9479_v1 = vrot.slane %v9465_v44, %v23808_v56  ;;  %v10011_v32 = vsel %vm5068_vm14, %v9440_v27, -inf }
 0x65d   : > { %v10012_v30 = vrot.slane %v10011_v32, 4  ;;  %v10018_v35 = vsel %vm5068_vm14, %v9447_v19, -inf  ;;  %v26447_v61 = vrot.slane %v8840_v59, %v23808_v56  ;;  %v26450_v52 = vrot.slane %v8841_v50, %v23808_v56 }
 0x65e   : > { %v9480_v6 = vcombine.high %v9472_v34, %v9472_v34  ;;  %v10019_v62 = vrot.slane %v10018_v35, 4  ;;  %v10025_v45 = vsel %vm5068_vm14, %v9448_v28, -inf  ;;  %v10032_v9 = vsel %vm5068_vm14, %v9472_v34, -inf }
 0x65f   : > { %v10013_v15 = vmax.f32 %v10011_v32, %v10012_v30  ;;  %v10026_v49 = vrot.slane %v10025_v45, 4  ;;  %v10033_v10 = vrot.slane %v10032_v9, 4  ;;  %v10039_v8 = vsel %vm5068_vm14, %v9479_v1, -inf }
 0x660   : > { %v10020_v48 = vmax.f32 %v10018_v35, %v10019_v62  ;;  %v10040_v60 = vrot.slane %v10039_v8, 4  ;;  %v10046_v36 = vsel %vm5068_vm14, %v9480_v6, -inf  ;;  %v8870_v24 = vcombine.high %v8848_v18, %v8848_v18 }
 0x661   : > { %v10014_v39 = vrot.slane %v10013_v15, 2  ;;  %v10027_v42 = vmax.f32 %v10025_v45, %v10026_v49  ;;  %v10034_v4 = vmax.f32 %v10032_v9, %v10033_v10  ;;  %v10047_v51 = vrot.slane %v10046_v36, 4 }
 0x662   : > { %v10021_v54 = vrot.slane %v10020_v48, 2  ;;  %v10041_v22 = vmax.f32 %v10039_v8, %v10040_v60  ;;  %v8871_v0 = vcombine.high %v26447_v61, %v26447_v61  ;;  %v8872_v16 = vcombine.high %v8862_v7, %v8862_v7 }
 0x663   : > { %v10015_v26 = vmax.f32 %v10013_v15, %v10014_v39  ;;  %v10028_v2 = vrot.slane %v10027_v42, 2  ;;  %v10035_v43 = vrot.slane %v10034_v4, 2  ;;  %v10048_v11 = vmax.f32 %v10046_v36, %v10047_v51 }
 0x664   : > { %v10022_v40 = vmax.f32 %v10020_v48, %v10021_v54  ;;  %v10042_v20 = vrot.slane %v10041_v22, 2  ;;  %v9495_v53 = vrot.slane %v8848_v18, %v23808_v56  ;;  %v9513_v23 = vcombine.low %v8862_v7, %v8870_v24 }
 0x665   : > { %v10016_v58 = vrot.slane %v10015_v26, 1  ;;  %v10029_v31 = vmax.f32 %v10027_v42, %v10028_v2  ;;  %v10036_v57 = vmax.f32 %v10034_v4, %v10035_v43  ;;  %v10049_v25 = vrot.slane %v10048_v11, 2 }
 0x666   : > { %v10023_v63 = vrot.slane %v10022_v40, 1  ;;  %v10043_v47 = vmax.f32 %v10041_v22, %v10042_v20  ;;  %v9496_v27 = vcombine.low %v26427_v38, %v9495_v53  ;;  %v9497_v19 = vcombine.high %v26427_v38, %v9495_v53 }
 0x667   : > { %v10017_v5 = vmax.f32 %v10015_v26, %v10016_v58  ;;  %v10030_v44 = vrot.slane %v10029_v31, 1  ;;  %v10037_v59 = vrot.slane %v10036_v57, 1  ;;  %v10050_v50 = vmax.f32 %v10048_v11, %v10049_v25 }
 0x668   : > { %v10024_v28 = vmax.f32 %v10022_v40, %v10023_v63  ;;  %v10044_v34 = vrot.slane %v10043_v47, 1  ;;  %v9504_v1 = vrot.slane %v9496_v27, %v23808_v56  ;;  %v9511_v18 = vrot.slane %v9497_v19, %v23808_v56 }
 0x669   : > { %v10031_v7 = vmax.f32 %v10029_v31, %v10030_v44  ;;  %v10038_v32 = vmax.f32 %v10036_v57, %v10037_v59  ;;  %v10051_v30 = vrot.slane %v10050_v50, 1  ;;  %v9520_v35 = vrot.slane %v9513_v23, %v23808_v56 }
 0x66a   : > { %v10045_v6 = vmax.f32 %v10043_v47, %v10044_v34  ;;  %v21348_v62 = vpack.c.bf16 %v10024_v28, %v10017_v5  ;;  %v9512_v45 = vcombine.high %v9504_v1, %v9504_v1  ;;  %v9527_v38 = vrot.slane %v8872_v16, %v23808_v56 }
 0x66b   : > { %v10052_v9 = vmax.f32 %v10050_v50, %v10051_v30  ;;  %v21349_v15 = vpack.c.bf16 %v10031_v7, %v10031_v7  ;;  %v9545_v49 = vcombine.low %v26447_v61, %v26450_v52  ;;  %v9559_v10 = vrot.slane %v8871_v0, %v23808_v56 }
 0x66c   : > { %v21350_v8 = vpack.c.bf16 %v10045_v6, %v10038_v32  ;;  %v10449_v48 = vunpack.c.l.b16 %v21348_v62  ;;  %v10450_v60 = vunpack.c.h.b16 %v21348_v62  ;;  %v9528_v36 = vcombine.low %v9520_v35, %v9527_v38 }
 0x66d   : > { %v21351_v24 = vpack.c.bf16 %v10052_v9, %v10052_v9  ;;  %v10451_v39 = vunpack.c.l.b16 %v21349_v15  ;;  %v9529_v42 = vcombine.high %v9520_v35, %v9527_v38  ;;  %v9552_v4 = vrot.slane %v9545_v49, %v23808_v56 }
 0x66e   : > { %v10452_v51 = vunpack.c.l.b16 %v21350_v8  ;;  %v10453_v54 = vunpack.c.h.b16 %v21350_v8  ;;  %v10506_v22 = vsel %vm6004_vm2, %v10449_v48, %v10446_v29  ;;  %v10512_v61 = vsel %vm6004_vm2, %v10450_v60, %v10447_v14 }
 0x66f   : > { %v10454_v0 = vunpack.c.l.b16 %v21351_v24  ;;  %v10518_v16 = vsel %vm6004_vm2, %v10451_v39, %v26431_v46  ;;  %v9536_v26 = vrot.slane %v9528_v36, %v23808_v56  ;;  %v9543_v2 = vrot.slane %v9529_v42, %v23808_v56 }
 0x670   : > { %v26480_v43 = vsel %vm6608_vm3, %v10452_v51, %v10506_v22  ;;  %v26483_v11 = vsel %vm6608_vm3, %v10453_v54, %v10512_v61  ;;  %v9560_v40 = vcombine.low %v9552_v4, %v9559_v10  ;;  %v9561_v29 = vcombine.high %v9552_v4, %v9559_v10 }
 0x671   : > { %v26486_v33 = vsel %vm6608_vm3, %v10454_v0, %v10518_v16  ;;  %v9544_v14 = vcombine.high %v9536_v26, %v9536_v26  ;;  %v10053_v20 = vsel %vm5068_vm14, %v9504_v1, -inf  ;;  %v10060_v46 = vsel %vm5068_vm14, %v9511_v18, -inf }
 0x672   : > { %v9568_v53 = vrot.slane %v9560_v40, %v23808_v56  ;;  %v9575_v23 = vrot.slane %v9561_v29, %v23808_v56  ;;  %v10054_v58 = vrot.slane %v10053_v20, 4  ;;  %v10061_v31 = vrot.slane %v10060_v46, 4 }
 0x673   : > { %v10067_v57 = vsel %vm5068_vm14, %v9512_v45, -inf  ;;  %v10074_v25 = vsel %vm5068_vm14, %v9536_v26, -inf  ;;  %v10081_v63 = vsel %vm5068_vm14, %v9543_v2, -inf  ;;  %v10088_v47 = vsel %vm5068_vm14, %v9544_v14, -inf }
 0x674   : > { %v9576_v27 = vcombine.high %v9568_v53, %v9568_v53  ;;  %v10055_v19 = vmax.f32 %v10053_v20, %v10054_v58  ;;  %v10062_v5 = vmax.f32 %v10060_v46, %v10061_v31  ;;  %v10068_v44 = vrot.slane %v10067_v57, 4 }
 0x675   : > { %v10075_v59 = vrot.slane %v10074_v25, 4  ;;  %v10082_v50 = vrot.slane %v10081_v63, 4  ;;  %v10089_v28 = vrot.slane %v10088_v47, 4  ;;  %v10095_v34 = vsel %vm5068_vm14, %v9568_v53, -inf }
 0x676   : > { %v10056_v1 = vrot.slane %v10055_v19, 2  ;;  %v10063_v18 = vrot.slane %v10062_v5, 2  ;;  %v10069_v7 = vmax.f32 %v10067_v57, %v10068_v44  ;;  %v10096_v32 = vrot.slane %v10095_v34, 4 }
 0x677   : > { %v10076_v30 = vmax.f32 %v10074_v25, %v10075_v59  ;;  %v10083_v35 = vmax.f32 %v10081_v63, %v10082_v50  ;;  %v10090_v6 = vmax.f32 %v10088_v47, %v10089_v28  ;;  %v10102_v62 = vsel %vm5068_vm14, %v9575_v23, -inf }
 0x678   : > { %v10057_v45 = vmax.f32 %v10055_v19, %v10056_v1  ;;  %v10064_v38 = vmax.f32 %v10062_v5, %v10063_v18  ;;  %v10070_v9 = vrot.slane %v10069_v7, 2  ;;  %v10097_v15 = vmax.f32 %v10095_v34, %v10096_v32 }
 0x679   : > { %v10077_v49 = vrot.slane %v10076_v30, 2  ;;  %v10084_v10 = vrot.slane %v10083_v35, 2  ;;  %v10091_v8 = vrot.slane %v10090_v6, 2  ;;  %v10103_v48 = vrot.slane %v10102_v62, 4 }
 0x67a   : > { %v10058_v60 = vrot.slane %v10057_v45, 1  ;;  %v10065_v36 = vrot.slane %v10064_v38, 1  ;;  %v10071_v24 = vmax.f32 %v10069_v7, %v10070_v9  ;;  %v10098_v39 = vrot.slane %v10097_v15, 2 }
 0x67b   : > { %v10078_v42 = vmax.f32 %v10076_v30, %v10077_v49  ;;  %v10085_v4 = vmax.f32 %v10083_v35, %v10084_v10  ;;  %v10092_v51 = vmax.f32 %v10090_v6, %v10091_v8  ;;  %v10104_v54 = vmax.f32 %v10102_v62, %v10103_v48 }
 0x67c   : > { %v10059_v22 = vmax.f32 %v10057_v45, %v10058_v60  ;;  %v10066_v61 = vmax.f32 %v10064_v38, %v10065_v36  ;;  %v10072_v0 = vrot.slane %v10071_v24, 1  ;;  %v10099_v16 = vmax.f32 %v10097_v15, %v10098_v39  ;;  %v10156_v15 = vld [vmem:[#allocation3 + $0x20] sm:$0x8] }
 0x67d   : > { %v10079_v26 = vrot.slane %v10078_v42, 1  ;;  %v10086_v2 = vrot.slane %v10085_v4, 1  ;;  %v10093_v40 = vrot.slane %v10092_v51, 1  ;;  %v10105_v29 = vrot.slane %v10104_v54, 2 }
 0x67e   : > { %v10073_v14 = vmax.f32 %v10071_v24, %v10072_v0  ;;  %v10100_v20 = vrot.slane %v10099_v16, 1  ;;  %v10109_v46 = vsel %vm5068_vm14, %v9576_v27, -inf  ;;  %v21352_v53 = vpack.c.bf16 %v10066_v61, %v10059_v22 }
 0x67f   : > { %v10080_v23 = vmax.f32 %v10078_v42, %v10079_v26  ;;  %v10087_v58 = vmax.f32 %v10085_v4, %v10086_v2  ;;  %v10094_v31 = vmax.f32 %v10092_v51, %v10093_v40  ;;  %v10106_v57 = vmax.f32 %v10104_v54, %v10105_v29 }
 0x680   : > { %v10101_v25 = vmax.f32 %v10099_v16, %v10100_v20  ;;  %v10110_v63 = vrot.slane %v10109_v46, 4  ;;  %v21353_v47 = vpack.c.bf16 %v10073_v14, %v10073_v14  ;;  %v10455_v19 = vunpack.c.l.b16 %v21352_v53 }
 0x681   : > { %v10107_v5 = vrot.slane %v10106_v57, 1  ;;  %v21354_v44 = vpack.c.bf16 %v10087_v58, %v10080_v23  ;;  %v21355_v59 = vpack.c.bf16 %v10094_v31, %v10094_v31  ;;  %v10456_v50 = vunpack.c.h.b16 %v21352_v53 }
 0x682   : > { %v8881_v28 = vrot.slane %v25735_v17, %v23808_v56  ;;  %v10111_v34 = vmax.f32 %v10109_v46, %v10110_v63  ;;  %v10457_v1 = vunpack.c.l.b16 %v21353_v47  ;;  %v10508_v27 = vsel %vm6610_vm4, %v10455_v19, %v26480_v43 }
 0x683   : > { %v10108_v18 = vmax.f32 %v10106_v57, %v10107_v5  ;;  %v10458_v7 = vunpack.c.l.b16 %v21354_v44  ;;  %v10459_v32 = vunpack.c.h.b16 %v21354_v44  ;;  %v10460_v30 = vunpack.c.l.b16 %v21355_v59 }
 0x684   : > { %v10112_v35 = vrot.slane %v10111_v34, 2  ;;  %v10514_v6 = vsel %vm6610_vm4, %v10456_v50, %v26483_v11  ;;  %v10520_v62 = vsel %vm6610_vm4, %v10457_v1, %v26486_v33  ;;  %v8888_v17 = vrot.slane %v8310_v21, %v23808_v56 }
 0x685   : > { %v21356_v45 = vpack.c.bf16 %v10108_v18, %v10101_v25  ;;  %v10509_v38 = vsel %vm6612_vm8, %v10458_v7, %v10508_v27  ;;  %v10515_v43 = vsel %vm6612_vm8, %v10459_v32, %v10514_v6  ;;  %v10521_v9 = vsel %vm6612_vm8, %v10460_v30, %v10520_v62  ;;  %v10557_v7 = vld [vmem:[#allocation3] sm:$0xff] }
 0x686   : > { %v10113_v49 = vmax.f32 %v10111_v34, %v10112_v35  ;;  %v8889_v10 = vcombine.low %v8881_v28, %v8888_v17  ;;  %v8890_v8 = vcombine.high %v8881_v28, %v8888_v17  ;;  %vm10147_vm2 = vsmask.f32 7950  ;;  %v22483_v6 = vld [vmem:[%s29454_s7 + $0x870] ss:$24 sps:$4 sm:$0xff]  }
 0x687   : > { %v10461_v11 = vunpack.c.l.b16 %v21356_v45  ;;  %v10462_v48 = vunpack.c.h.b16 %v21356_v45  ;;  %v8873_v33 = vcombine.high %v26450_v52, %v26450_v52  ;;  %vm10148_vm3 = vmand %vm6610_vm4, %vm10147_vm2  ;;  %vm10150_vm10 = vsmask.f32 7966  ;;  %v22486_v17 = vld [vmem:[%s29454_s7 + $0x878] ss:$24 sps:$4 sm:$0xff]  }
 0x688   : > { %v10114_v21 = vrot.slane %v10113_v49, 1  ;;  %v8897_v60 = vrot.slane %v8889_v10, %v23808_v56  ;;  %v8904_v36 = vrot.slane %v8890_v8, %v23808_v56  ;;  %vm10151_vm8 = vmand %vm6618_vm7, %vm10150_vm10  ;;  %v10157_v24 = vsel %vm10148_vm3, 0, %v10156_v15 }
 0x689   : > { %vm10152_vm12 = vmor %vm10151_vm8, %vm10148_vm3  ;;  %10158 = vst [vmem:[#allocation3 + $0x20] sm:$0x8] %v10157_v24  ;;  %v10510_v39 = vsel %vm6614_vm5, %v10461_v11, %v10509_v38  ;;  %v10516_v42 = vsel %vm6614_vm5, %v10462_v48, %v10515_v43  ;;  %vm10547_vm4 = vsmask.f32 3328  ;;  %v26530_v32 = vcombine.high %v10557_v7, %v26411_v3 }
 0x68a   : > { %v10115_v4 = vmax.f32 %v10113_v49, %v10114_v21  ;;  %v9577_v52 = vcombine.low %v8873_v33, %v8897_v60  ;;  %v10154_v51 = vsel %vm10152_vm12, 0, %v10153_v12  ;;  %v9591_v61 = vrot.slane %v8904_v36, %v23808_v56  ;;  %vm26542_vm11 = vmand %vm29535_vm1, %vm10547_vm4 }
 0x68b   : > { %10155 = vst [vmem:[#allocation3 + $0x18] sm:$0x88] %v10154_v51  ;;  %v26539_v62 = vcombine.low %v10557_v7, %v26411_v3  ;;  %v22488_v7 = vld [vmem:[%s29454_s7 + $0x87c] ss:$24 sps:$4 sm:$0xff]   ;;  %vm29541_vm13 = vcmask 1046528  }
 0x68c   : > { %v21357_v54 = vpack.c.bf16 %v10115_v4, %v10115_v4  ;;  %v9584_v22 = vrot.slane %v9577_v52, %v23808_v56  ;;  %v10888_v4 = vshrl.u32 %v26530_v32, 16  ;;  %vm29542_vm2 = vmmov %vm29541_vm13 }
 0x68d   : > { %v10878_v8 = vshll.u32 %v26539_v62, 16  ;;  %v10876_v51 = vshrl.u32 %v26539_v62, 16  ;;  %vm29543_vm3 = vmmov %vm29542_vm2 }
 0x68e   : > { %v10463_v0 = vunpack.c.l.b16 %v21357_v54  ;;  %v9592_v16 = vcombine.low %v9584_v22, %v9591_v61  ;;  %v9593_v26 = vcombine.high %v9584_v22, %v9591_v61 }
 0x690   : > { %v9600_v2 = vrot.slane %v9592_v16, %v23808_v56  ;;  %v9607_v40 = vrot.slane %v9593_v26, %v23808_v56  ;;  %v10522_v29 = vsel %vm6614_vm5, %v10463_v0, %v10521_v9  ;;  %vm29532_vm5 = vsmask.f32 7424  ;;  %v10554_v33 = vld [vmem:[#allocation3 + $0x20] sm:$0xf] }
 0x691   : > { %vm26534_vm7 = vmand %vm10536_vm9, %vm29532_vm5  ;;  %v10890_v9 = vshll.u32 %v26530_v32, 16 }
 0x692   : > { %v9608_v14 = vcombine.high %v9600_v2, %v9600_v2  ;;  %v10116_v20 = vsel %vm5068_vm14, %v9600_v2, -inf  ;;  %v10123_v46 = vsel %vm5068_vm14, %v9607_v40, -inf  ;;  %vm10550_vm0 = vmor %vm26534_vm7, %vm26542_vm11  ;;  %v10551_v3 = vld [vmem:[#allocation3 + $0x18] sm:$0xff] }
 0x693   : > { %v10117_v53 = vrot.slane %v10116_v20, 4  ;;  %v10124_v23 = vrot.slane %v10123_v46, 4  ;;  %v10892_v60 = vrot.slane %v10890_v9, 1  ;;  %v22453_v2 = vld [vmem:[%s29454_s7 + $0x780] ss:$24 sps:$4 sm:$0xff]   ;;  %vm29539_vm9 = vmmov %vm29532_vm5 }
 0x694   : > { %v10130_v58 = vsel %vm5068_vm14, %v9608_v14, -inf  ;;  %v22456_v40 = vld [vmem:[%s29454_s7 + $0x788] ss:$24 sps:$4 sm:$0xff]   ;;  %vm29540_vm15 = vmmov %vm29532_vm5 }
 0x695   : > { %v10118_v31 = vmax.f32 %v10116_v20, %v10117_v53  ;;  %v10125_v57 = vmax.f32 %v10123_v46, %v10124_v23  ;;  %v10131_v25 = vrot.slane %v10130_v58, 4  ;;  %v10893_v22 = vor.u32 %v10892_v60, %v10888_v4  ;;  %v22461_v46 = vld [vmem:[%s29454_s7 + $0x7b4] ss:$24 sps:$4 sm:$0xff]   ;;  %v22459_v23 = vld [vmem:[%s29454_s7 + $0x7b0] ss:$24 sps:$4 sm:$0xff]  }
 0x696   : > { %v22464_v53 = vld [vmem:[%s29454_s7 + $0x7bc] ss:$24 sps:$4 sm:$0xff]   ;;  %v22508_v60 = vld [vmem:[%s29454_s7 + $0xc] ss:$24 sps:$4 sm:$0xff]  }
 0x697   : > { %v10119_v63 = vrot.slane %v10118_v31, 2  ;;  %v10126_v47 = vrot.slane %v10125_v57, 2  ;;  %v10132_v19 = vmax.f32 %v10130_v58, %v10131_v25  ;;  %v22462_v58 = vld [vmem:[%s29454_s7 + $0x7b8] ss:$24 sps:$4 sm:$0xff]  }
 0x699   : > { %v10120_v5 = vmax.f32 %v10118_v31, %v10119_v63  ;;  %v10127_v44 = vmax.f32 %v10125_v57, %v10126_v47  ;;  %v10133_v59 = vrot.slane %v10132_v19, 2  ;;  %v22467_v31 = vld [vmem:[%s29454_s7 + $0x7e4] ss:$24 sps:$4 sm:$0xff]   ;;  %v22465_v63 = vld [vmem:[%s29454_s7 + $0x7e0] ss:$24 sps:$4 sm:$0xff]  }
 0x69a   : > { %v22470_v57 = vld [vmem:[%s29454_s7 + $0x7ec] ss:$24 sps:$4 sm:$0xff]   ;;  %v22468_v47 = vld [vmem:[%s29454_s7 + $0x7e8] ss:$24 sps:$4 sm:$0xff]  }
 0x69b   : > { %v10121_v50 = vrot.slane %v10120_v5, 1  ;;  %v10128_v28 = vrot.slane %v10127_v44, 1  ;;  %v10134_v34 = vmax.f32 %v10132_v19, %v10133_v59  ;;  %v22471_v59 = vld [vmem:[%s29454_s7 + $0x810] ss:$24 sps:$4 sm:$0xff]  }
 0x69d   : > { %v10122_v1 = vmax.f32 %v10120_v5, %v10121_v50  ;;  %v10129_v27 = vmax.f32 %v10127_v44, %v10128_v28  ;;  %v10135_v18 = vrot.slane %v10134_v34, 1  ;;  %v22473_v5 = vld [vmem:[%s29454_s7 + $0x814] ss:$24 sps:$4 sm:$0xff]   ;;  %v22474_v50 = vld [vmem:[%s29454_s7 + $0x818] ss:$24 sps:$4 sm:$0xff]  }
 0x69e   : > { %v22476_v44 = vld [vmem:[%s29454_s7 + $0x81c] ss:$24 sps:$4 sm:$0xff]  }
 0x69f   : > { %v10136_v30 = vmax.f32 %v10134_v34, %v10135_v18  ;;  %v21358_v35 = vpack.c.bf16 %v10129_v27, %v10122_v1  ;;  %v22479_v28 = vld [vmem:[%s29454_s7 + $0x844] ss:$24 sps:$4 sm:$0xff]   ;;  %v22477_v1 = vld [vmem:[%s29454_s7 + $0x840] ss:$24 sps:$4 sm:$0xff]   ;;  %v22485_v18 = vld [vmem:[%s29454_s7 + $0x874] ss:$24 sps:$4 sm:$0xff]  }
 0x6a0   : > { %v22482_v34 = vld [vmem:[%s29454_s7 + $0x84c] ss:$24 sps:$4 sm:$0xff]   ;;  %v22480_v27 = vld [vmem:[%s29454_s7 + $0x848] ss:$24 sps:$4 sm:$0xff]  }
 0x6a1   : > { %v21359_v45 = vpack.c.bf16 %v10136_v30, %v10136_v30  ;;  %v10464_v38 = vunpack.c.l.b16 %v21358_v35  ;;  %v10465_v43 = vunpack.c.h.b16 %v21358_v35  ;;  %v26647_v30 = vld [vmem:[#allocation3 + $0x14] sm:$0xf]  ;;  %v10558_v35 = vld [vmem:[#allocation3 + $0x8] sm:$0xf] }
 0x6a3   : > { %v10466_v15 = vunpack.c.l.b16 %v21359_v45  ;;  %v10511_v49 = vsel %vm6616_vm6, %v10464_v38, %v10510_v39  ;;  %v10517_v10 = vsel %vm6616_vm6, %v10465_v43, %v10516_v42  ;;  %v10880_v39 = vrot.slane %v10878_v8, 1  ;;  %v22491_v38 = vld [vmem:[%s29454_s7 + $0x8a4] ss:$24 sps:$4 sm:$0xff]  }
 0x6a4   : > { %v10528_v11 = vpack.c.b16 %v10517_v10, %v10511_v49  ;;  %v26656_v45 = vcombine.low %v10558_v35, %v26647_v30  ;;  %v22494_v43 = vld [vmem:[%s29454_s7 + $0x8ac] ss:$24 sps:$4 sm:$0xff]   ;;  %v22492_v49 = vld [vmem:[%s29454_s7 + $0x8a8] ss:$24 sps:$4 sm:$0xff]   ;;  %v22500_v8 = vld [vmem:[%s29454_s7 + $0x8dc] ss:$24 sps:$4 sm:$0xff]  }
 0x6a5   : > { %v10523_v48 = vsel %vm6616_vm6, %v10466_v15, %v10522_v29  ;;  %v10881_v0 = vor.u32 %v10880_v39, %v10876_v51  ;;  %vm29538_vm6 = vmmov %vm29532_vm5  ;;  %v22489_v15 = vld [vmem:[%s29454_s7 + $0x8a0] ss:$24 sps:$4 sm:$0xff]   ;;  %v22550_v35 = vld [vmem:[%s29454_s7 + $0x15c] ss:$24 sps:$4 sm:$0xff]  }
 0x6a6   : > { %v10529_v12 = vpack.c.b16 %v10523_v48, %v10523_v48  ;;  %v10552_v21 = vsel %vm10550_vm0, %v10528_v11, %v10551_v3  ;;  %v10902_v10 = vshll.u32 %v26656_v45, 16  ;;  %v22497_v3 = vld [vmem:[%s29454_s7 + $0x8d4] ss:$24 sps:$4 sm:$0xff]   ;;  %v22495_v48 = vld [vmem:[%s29454_s7 + $0x8d0] ss:$24 sps:$4 sm:$0xff]   ;;  %v10900_v39 = vshrl.u32 %v26656_v45, 16 }
 0x6a7   : > { %10553 = vst [vmem:[#allocation3 + $0x18] sm:$0xff] %v10552_v21  ;;  %v26555_v36 = vcombine.low %v10552_v21, %v10552_v21  ;;  %v26557_v24 = vcombine.high %v10552_v21, %v10552_v21  ;;  %v22505_v21 = vld [vmem:[%s29454_s7 + $0x494] ss:$24 sps:$4 sm:$0xff]   ;;  %v22506_v51 = vld [vmem:[%s29454_s7 + $0x8] ss:$24 sps:$4 sm:$0xff]  }
 0x6a8   : > { %v10555_v42 = vsel %vm26542_vm11, %v10529_v12, %v10554_v33  ;;  %v22498_v33 = vld [vmem:[%s29454_s7 + $0x8d8] ss:$24 sps:$4 sm:$0xff]   ;;  %v10904_v12 = vrot.slane %v10902_v10, 1  ;;  %v22559_v10 = vld [vmem:[%s29454_s7 + $0x644] ss:$24 sps:$4 sm:$0xff]  }
 0x6a9   : > { %10556 = vst [vmem:[#allocation3 + $0x20] sm:$0xf] %v10555_v42  ;;  %v10895_v52 = vshll.u32 %v26557_v24, 16  ;;  %v10883_v54 = vshll.u32 %v26555_v36, 16  ;;  %v10914_v26 = vshrl.u32 %v26557_v24, 16  ;;  %v10911_v25 = vshrl.u32 %v26555_v36, 16 }
 0x6aa   : > { %v10905_v4 = vor.u32 %v10904_v12, %v10900_v39  ;;  %v22563_v12 = vld [vmem:[%s29454_s7 + $0x670] ss:$24 sps:$4 sm:$0xff]   ;;  %v22574_v39 = vld [vmem:[%s29454_s7 + $0x21c] ss:$24 sps:$4 sm:$0xff]  }
 0x6ab   : > { %v10897_v61 = vrot.slane %v10895_v52, 1  ;;  %v10885_v16 = vrot.slane %v10883_v54, 1  ;;  %v22503_v52 = vld [vmem:[%s29454_s7 + $0x490] ss:$24 sps:$4 sm:$0xff]   ;;  %v22511_v54 = vld [vmem:[%s29454_s7 + $0x4c4] ss:$24 sps:$4 sm:$0xff]  }
 0x6ad   : > { %v26573_v29 = vsel %vm29538_vm6, %v10893_v22, %v10897_v61  ;;  %v26576_v14 = vsel %vm29539_vm9, %v10881_v0, %v10885_v16  ;;  %v26578_v20 = vor.u32 %v10914_v26, %v10897_v61  ;;  %v26611_v19 = vor.u32 %v10911_v25, %v10885_v16  ;;  %v22514_v22 = vld [vmem:[%s29454_s7 + $0x3c] ss:$24 sps:$4 sm:$0xff]   ;;  %v22509_v0 = vld [vmem:[%s29454_s7 + $0x4c0] ss:$24 sps:$4 sm:$0xff]  }
 0x6ae   : > { %11678 = vmatprep.mubr.bf16.mxu0 %v26573_v29  ;;  %11780 = vmatprep.mubr.bf16.mxu1 %v26573_v29  ;;  %v22512_v16 = vld [vmem:[%s29454_s7 + $0x38] ss:$24 sps:$4 sm:$0xff]   ;;  %v22517_v26 = vld [vmem:[%s29454_s7 + $0x4f4] ss:$24 sps:$4 sm:$0xff]  }
 0x6af   : > { %11679 = vmatmul.mubr.bf16.vlgmr.msra.gmra.mrb[52].mxu0 %v26576_v14  ;;  %11781 = vmatmul.mubr.bf16.vlgmr.msra.gmra.mrb[60].mxu1 %v26576_v14  ;;  %v22524_v25 = vld [vmem:[%s29454_s7 + $0x98] ss:$24 sps:$4 sm:$0xff]  }
 0x6b0   : > { %11698 = vmatpush1.bf16.msra.mxu0 %v22453_v2  ;;  %11800 = vmatpush1.bf16.msra.mxu1 %v22456_v40  ;;  %v26664_v9 = vld [vmem:[#allocation3 + $0x20] ss:$0 sps:$4 sm:$0xff]   ;;  %v22520_v2 = vld [vmem:[%s29454_s7 + $0x6c] ss:$24 sps:$4 sm:$0xff]  }
 0x6b1   : > { %11688 = vmatprep.mubr.bf16.mxu0 %v26578_v20  ;;  %11790 = vmatprep.mubr.bf16.mxu1 %v26578_v20  ;;  %v10907_v11 = vshll.u32 %v26664_v9, 16  ;;  %v10917_v40 = vshrl.u32 %v26664_v9, 16 }
 0x6b2   : > { %11699 = vmatprep.subr.bf16.mxu0 %v22461_v46  ;;  %11801 = vmatprep.subr.bf16.mxu1 %v22464_v53  ;;  %v22515_v46 = vld [vmem:[%s29454_s7 + $0x4f0] ss:$24 sps:$4 sm:$0xff]  }
 0x6b3   : > { %v10909_v42 = vrot.slane %v10907_v11, 1  ;;  %v22560_v11 = vld [vmem:[%s29454_s7 + $0x1b8] ss:$24 sps:$4 sm:$0xff]  }
 0x6b4   : > { %11700 = vmatpush1.bf16.msra.mxu0 %v22459_v23  ;;  %11802 = vmatpush1.bf16.msra.mxu1 %v22462_v58  ;;  %v22518_v23 = vld [vmem:[%s29454_s7 + $0x68] ss:$24 sps:$4 sm:$0xff]   ;;  %v22523_v58 = vld [vmem:[%s29454_s7 + $0x524] ss:$24 sps:$4 sm:$0xff]  }
 0x6b5   : > { %11701 = vmatprep.subr.bf16.mxu0 %v22467_v31  ;;  %11803 = vmatprep.subr.bf16.mxu1 %v22470_v57  ;;  %v26706_v61 = vsel %vm29540_vm15, %v10905_v4, %v10909_v42  ;;  %v26728_v53 = vor.u32 %v10917_v40, %v10909_v42  ;;  %v22526_v31 = vld [vmem:[%s29454_s7 + $0x9c] ss:$24 sps:$4 sm:$0xff]   ;;  %v22521_v57 = vld [vmem:[%s29454_s7 + $0x520] ss:$24 sps:$4 sm:$0xff]  }
 0x6b6   : > { %v22569_v42 = vld [vmem:[%s29454_s7 + $0x6a0] ss:$24 sps:$4 sm:$0xff]   ;;  %v22589_v40 = vld [vmem:[%s29454_s7 + $0x734] ss:$24 sps:$4 sm:$0xff]  }
 0x6b7   : > { %11689 = vmatmul.mubr.bf16.gmra.mrb[56].mxu0 %v26611_v19  ;;  %11791 = vmatmul.mubr.bf16.gmra.mrb[64].mxu1 %v26611_v19  ;;  %v22572_v4 = vld [vmem:[%s29454_s7 + $0x218] ss:$24 sps:$4 sm:$0xff]  }
 0x6b8   : > { %11702 = vmatpush1.bf16.msra.mxu0 %v22465_v63  ;;  %11804 = vmatpush1.bf16.msra.mxu1 %v22468_v47  ;;  %v22529_v63 = vld [vmem:[%s29454_s7 + $0x554] ss:$24 sps:$4 sm:$0xff]   ;;  %v22527_v47 = vld [vmem:[%s29454_s7 + $0x550] ss:$24 sps:$4 sm:$0xff]  }
 0x6b9   : > { %11703 = vmatprep.subr.bf16.mxu0 %v22473_v5  ;;  %11805 = vmatprep.subr.bf16.mxu1 %v22476_v44  ;;  %v22530_v5 = vld [vmem:[%s29454_s7 + $0xc8] ss:$24 sps:$4 sm:$0xff]   ;;  %v22535_v44 = vld [vmem:[%s29454_s7 + $0x584] ss:$24 sps:$4 sm:$0xff]  }
 0x6ba   : > { %11729 = vmatprep.mubr.bf16.mxu0 %v29511_v55  ;;  %11831 = vmatprep.mubr.bf16.mxu1 %v29511_v55 }
 0x6bc   : > { %11704 = vmatpush1.bf16.msra.mxu0 %v22471_v59  ;;  %11806 = vmatpush1.bf16.msra.mxu1 %v22474_v50  ;;  %v22538_v59 = vld [vmem:[%s29454_s7 + $0xfc] ss:$24 sps:$4 sm:$0xff]   ;;  %v22533_v50 = vld [vmem:[%s29454_s7 + $0x580] ss:$24 sps:$4 sm:$0xff]  }
 0x6bd   : > { %11705 = vmatprep.subr.bf16.mxu0 %v22479_v28  ;;  %11807 = vmatprep.subr.bf16.mxu1 %v22482_v34  ;;  %v22536_v28 = vld [vmem:[%s29454_s7 + $0xf8] ss:$24 sps:$4 sm:$0xff]   ;;  %v22541_v34 = vld [vmem:[%s29454_s7 + $0x5b4] ss:$24 sps:$4 sm:$0xff]  }
 0x6c0   : > { %11706 = vmatpush1.bf16.msra.mxu0 %v22477_v1  ;;  %11808 = vmatpush1.bf16.msra.mxu1 %v22480_v27  ;;  %v22544_v1 = vld [vmem:[%s29454_s7 + $0x12c] ss:$24 sps:$4 sm:$0xff]   ;;  %v22539_v27 = vld [vmem:[%s29454_s7 + $0x5b0] ss:$24 sps:$4 sm:$0xff]  }
 0x6c1   : > { %11707 = vmatprep.subr.bf16.mxu0 %v22485_v18  ;;  %11809 = vmatprep.subr.bf16.mxu1 %v22488_v7  ;;  %v22542_v18 = vld [vmem:[%s29454_s7 + $0x128] ss:$24 sps:$4 sm:$0xff]   ;;  %v22547_v7 = vld [vmem:[%s29454_s7 + $0x5e4] ss:$24 sps:$4 sm:$0xff]  }
 0x6c4   : > { %11708 = vmatpush1.bf16.msra.mxu0 %v22483_v6  ;;  %11810 = vmatpush1.bf16.msra.mxu1 %v22486_v17  ;;  %v22545_v6 = vld [vmem:[%s29454_s7 + $0x5e0] ss:$24 sps:$4 sm:$0xff]  }
 0x6c5   : > { %11709 = vmatprep.subr.bf16.mxu0 %v22491_v38  ;;  %11811 = vmatprep.subr.bf16.mxu1 %v22494_v43  ;;  %v22548_v17 = vld [vmem:[%s29454_s7 + $0x158] ss:$24 sps:$4 sm:$0xff]   ;;  %v22553_v38 = vld [vmem:[%s29454_s7 + $0x614] ss:$24 sps:$4 sm:$0xff]  }
 0x6c6   : > { %v22556_v43 = vld [vmem:[%s29454_s7 + $0x18c] ss:$24 sps:$4 sm:$0xff]  }
 0x6c8   : > { %11710 = vmatpush1.bf16.msra.mxu0 %v22489_v15  ;;  %11812 = vmatpush1.bf16.msra.mxu1 %v22492_v49  ;;  %v22551_v15 = vld [vmem:[%s29454_s7 + $0x610] ss:$24 sps:$4 sm:$0xff]  }
 0x6c9   : > { %11711 = vmatprep.subr.bf16.mxu0 %v22497_v3  ;;  %11813 = vmatprep.subr.bf16.mxu1 %v22500_v8  ;;  %v22554_v49 = vld [vmem:[%s29454_s7 + $0x188] ss:$24 sps:$4 sm:$0xff]   ;;  %v22562_v3 = vld [vmem:[%s29454_s7 + $0x1bc] ss:$24 sps:$4 sm:$0xff]  }
 0x6ca   : > { %v22557_v8 = vld [vmem:[%s29454_s7 + $0x640] ss:$24 sps:$4 sm:$0xff]  }
 0x6cc   : > { %11712 = vmatpush1.bf16.msra.mxu0 %v22495_v48  ;;  %11814 = vmatpush1.bf16.msra.mxu1 %v22498_v33  ;;  %v22565_v48 = vld [vmem:[%s29454_s7 + $0x674] ss:$24 sps:$4 sm:$0xff]  }
 0x6cd   : > { %11850 = vmatprep.subr.bf16.mxu0 %v22505_v21  ;;  %12788 = vmatprep.subr.bf16.mxu1 %v22508_v60  ;;  %v22568_v33 = vld [vmem:[%s29454_s7 + $0x1ec] ss:$24 sps:$4 sm:$0xff]   ;;  %v22566_v21 = vld [vmem:[%s29454_s7 + $0x1e8] ss:$24 sps:$4 sm:$0xff]  }
 0x6ce   : > { %v22571_v60 = vld [vmem:[%s29454_s7 + $0x6a4] ss:$24 sps:$4 sm:$0xff]  }
 0x6cf   : > { %11730 = vmatmul.mubr.bf16.vlgmr.msra.gmra.mrb[52].mxu0 %v26706_v61  ;;  %11832 = vmatmul.mubr.bf16.vlgmr.msra.gmra.mrb[60].mxu1 %v26706_v61 }
 0x6d0   : > { %11851 = vmatpush1.bf16.msra.mxu0 %v22503_v52  ;;  %12789 = vmatpush1.bf16.msra.mxu1 %v22506_v51  ;;  %v22577_v52 = vld [vmem:[%s29454_s7 + $0x6d4] ss:$24 sps:$4 sm:$0xff]  }
 0x6d1   : > { %11852 = vmatprep.subr.bf16.mxu0 %v22511_v54  ;;  %12790 = vmatprep.subr.bf16.mxu1 %v22514_v22  ;;  %v22580_v51 = vld [vmem:[%s29454_s7 + $0x24c] ss:$24 sps:$4 sm:$0xff]   ;;  %v22575_v54 = vld [vmem:[%s29454_s7 + $0x6d0] ss:$24 sps:$4 sm:$0xff]  }
 0x6d2   : > { %11739 = vmatprep.mubr.bf16.mxu0 %v29511_v55  ;;  %11841 = vmatprep.mubr.bf16.mxu1 %v29511_v55  ;;  %v22578_v22 = vld [vmem:[%s29454_s7 + $0x248] ss:$24 sps:$4 sm:$0xff]  }
 0x6d4   : > { %11853 = vmatpush1.bf16.msra.mxu0 %v22509_v0  ;;  %12791 = vmatpush1.bf16.msra.mxu1 %v22512_v16  ;;  %v22583_v0 = vld [vmem:[%s29454_s7 + $0x704] ss:$24 sps:$4 sm:$0xff]  }
 0x6d5   : > { %11854 = vmatprep.subr.bf16.mxu0 %v22517_v26  ;;  %12792 = vmatprep.subr.bf16.mxu1 %v22520_v2  ;;  %v22586_v16 = vld [vmem:[%s29454_s7 + $0x27c] ss:$24 sps:$4 sm:$0xff]   ;;  %v22581_v26 = vld [vmem:[%s29454_s7 + $0x700] ss:$24 sps:$4 sm:$0xff]  }
 0x6d6   : > { %v22584_v2 = vld [vmem:[%s29454_s7 + $0x278] ss:$24 sps:$4 sm:$0xff]  }
 0x6d7   : > { %11740 = vmatmul.mubr.bf16.gmra.mrb[56].mxu0 %v26728_v53  ;;  %11842 = vmatmul.mubr.bf16.gmra.mrb[64].mxu1 %v26728_v53 }
 0x6d8   : > { %11855 = vmatpush1.bf16.msra.mxu0 %v22515_v46  ;;  %11882 = vmatprep.mubr.bf16.mxu0 %v26573_v29  ;;  %v22532_v29 = vld [vmem:[%s29454_s7 + $0xcc] ss:$24 sps:$4 sm:$0xff]  }
 0x6d9   : > { %12793 = vmatpush1.bf16.msra.mxu1 %v22518_v23  ;;  %12820 = vmatprep.mubr.bf16.mxu1 %v26530_v32  ;;  %v22592_v46 = vld [vmem:[%s29454_s7 + $0x2ac] ss:$24 sps:$4 sm:$0xff]   ;;  %v22587_v23 = vld [vmem:[%s29454_s7 + $0x730] ss:$24 sps:$4 sm:$0xff]  }
 0x6da   : > { %11856 = vmatprep.subr.bf16.mxu0 %v22523_v58  ;;  %12794 = vmatprep.subr.bf16.mxu1 %v22526_v31  ;;  %v22590_v58 = vld [vmem:[%s29454_s7 + $0x2a8] ss:$24 sps:$4 sm:$0xff]   ;;  %v22595_v31 = vld [vmem:[%s29454_s7 + $0x764] ss:$24 sps:$4 sm:$0xff]  }
 0x6dc   : > { %11857 = vmatpush1.bf16.msra.mxu0 %v22521_v57  ;;  %v22598_v57 = vld [vmem:[%s29454_s7 + $0x2dc] ss:$24 sps:$4 sm:$0xff]  }
 0x6dd   : > { %12795 = vmatpush1.bf16.msra.mxu1 %v22524_v25  ;;  %11858 = vmatprep.subr.bf16.mxu0 %v22529_v63  ;;  %v22593_v25 = vld [vmem:[%s29454_s7 + $0x760] ss:$24 sps:$4 sm:$0xff]  }
 0x6de   : > { %12796 = vmatprep.subr.bf16.mxu1 %v22532_v29  ;;  %v22596_v63 = vld [vmem:[%s29454_s7 + $0x2d8] ss:$24 sps:$4 sm:$0xff]   ;;  %v22601_v29 = vld [vmem:[%s29454_s7 + $0x794] ss:$24 sps:$4 sm:$0xff]  }
 0x6e0   : > { %11859 = vmatpush1.bf16.msra.mxu0 %v22527_v47  ;;  %v22604_v47 = vld [vmem:[%s29454_s7 + $0x30c] ss:$24 sps:$4 sm:$0xff]  }
 0x6e1   : > { %12797 = vmatpush1.bf16.msra.mxu1 %v22530_v5  ;;  %11860 = vmatprep.subr.bf16.mxu0 %v22535_v44  ;;  %v10561_v5 = vld [vmem:[#allocation3 + $0x18] sm:$0x77]  ;;  %v22599_v44 = vld [vmem:[%s29454_s7 + $0x790] ss:$24 sps:$4 sm:$0xff]  }
 0x6e2   : > { %12798 = vmatprep.subr.bf16.mxu1 %v22538_v59  ;;  %v22602_v59 = vld [vmem:[%s29454_s7 + $0x308] ss:$24 sps:$4 sm:$0xff]  }
 0x6e4   : > { %11861 = vmatpush1.bf16.msra.mxu0 %v22533_v50  ;;  %v22608_v50 = vld [vmem:[%s29454_s7 + $0x7c4] ss:$24 sps:$4 sm:$0xff]  }
 0x6e5   : > { %12799 = vmatpush1.bf16.msra.mxu1 %v22536_v28  ;;  %11862 = vmatprep.subr.bf16.mxu0 %v22541_v34  ;;  %v26909_v28 = vcombine.high %v10561_v5, %v10561_v5  ;;  %v22611_v34 = vld [vmem:[%s29454_s7 + $0x33c] ss:$24 sps:$4 sm:$0xff]  }
 0x6e6   : > { %12800 = vmatprep.subr.bf16.mxu1 %v22544_v1  ;;  %v22606_v1 = vld [vmem:[%s29454_s7 + $0x7c0] ss:$24 sps:$4 sm:$0xff]  }
 0x6e8   : > { %11863 = vmatpush1.bf16.msra.mxu0 %v22539_v27  ;;  %v22614_v27 = vld [vmem:[%s29454_s7 + $0x7f4] ss:$24 sps:$4 sm:$0xff]  }
 0x6e9   : > { %12801 = vmatpush1.bf16.msra.mxu1 %v22542_v18  ;;  %11864 = vmatprep.subr.bf16.mxu0 %v22547_v7  ;;  %v22612_v18 = vld [vmem:[%s29454_s7 + $0x7f0] ss:$24 sps:$4 sm:$0xff]   ;;  %v26932_v7 = vcombine.low %v10561_v5, %v10561_v5 }
 0x6ea   : > { %12802 = vmatprep.subr.bf16.mxu1 %v22550_v35  ;;  %v22616_v35 = vld [vmem:[%s29454_s7 + $0x368] ss:$24 sps:$4 sm:$0xff]  }
 0x6ec   : > { %11865 = vmatpush1.bf16.msra.mxu0 %v22545_v6  ;;  %v22621_v6 = vld [vmem:[%s29454_s7 + $0x824] ss:$24 sps:$4 sm:$0xff]  }
 0x6ed   : > { %12803 = vmatpush1.bf16.msra.mxu1 %v22548_v17  ;;  %11866 = vmatprep.subr.bf16.mxu0 %v22553_v38  ;;  %v22624_v17 = vld [vmem:[%s29454_s7 + $0x39c] ss:$24 sps:$4 sm:$0xff]   ;;  %v22619_v38 = vld [vmem:[%s29454_s7 + $0x820] ss:$24 sps:$4 sm:$0xff]  }
 0x6ee   : > { %12804 = vmatprep.subr.bf16.mxu1 %v22556_v43  ;;  %v22627_v43 = vld [vmem:[%s29454_s7 + $0x854] ss:$24 sps:$4 sm:$0xff]  }
 0x6f0   : > { %11867 = vmatpush1.bf16.msra.mxu0 %v22551_v15  ;;  %v22630_v15 = vld [vmem:[%s29454_s7 + $0x3cc] ss:$24 sps:$4 sm:$0xff]  }
 0x6f1   : > { %12805 = vmatpush1.bf16.msra.mxu1 %v22554_v49  ;;  %11868 = vmatprep.subr.bf16.mxu0 %v22559_v10  ;;  %v22625_v49 = vld [vmem:[%s29454_s7 + $0x850] ss:$24 sps:$4 sm:$0xff]  }
 0x6f2   : > { %12806 = vmatprep.subr.bf16.mxu1 %v22562_v3  ;;  %v22628_v10 = vld [vmem:[%s29454_s7 + $0x3c8] ss:$24 sps:$4 sm:$0xff]   ;;  %v22633_v3 = vld [vmem:[%s29454_s7 + $0x884] ss:$24 sps:$4 sm:$0xff]  }
 0x6f4   : > { %11869 = vmatpush1.bf16.msra.mxu0 %v22557_v8  ;;  %v22636_v8 = vld [vmem:[%s29454_s7 + $0x3fc] ss:$24 sps:$4 sm:$0xff]  }
 0x6f5   : > { %12807 = vmatpush1.bf16.msra.mxu1 %v22560_v11  ;;  %11870 = vmatprep.subr.bf16.mxu0 %v22565_v48  ;;  %v22631_v11 = vld [vmem:[%s29454_s7 + $0x880] ss:$24 sps:$4 sm:$0xff]  }
 0x6f6   : > { %12808 = vmatprep.subr.bf16.mxu1 %v22568_v33  ;;  %v22634_v48 = vld [vmem:[%s29454_s7 + $0x3f8] ss:$24 sps:$4 sm:$0xff]   ;;  %v22639_v33 = vld [vmem:[%s29454_s7 + $0x8b4] ss:$24 sps:$4 sm:$0xff]  }
 0x6f8   : > { %11871 = vmatpush1.bf16.msra.mxu0 %v22563_v12  ;;  %v22642_v12 = vld [vmem:[%s29454_s7 + $0x42c] ss:$24 sps:$4 sm:$0xff]  }
 0x6f9   : > { %12809 = vmatpush1.bf16.msra.mxu1 %v22566_v21  ;;  %11872 = vmatprep.subr.bf16.mxu0 %v22571_v60  ;;  %v22637_v21 = vld [vmem:[%s29454_s7 + $0x8b0] ss:$24 sps:$4 sm:$0xff]  }
 0x6fa   : > { %12810 = vmatprep.subr.bf16.mxu1 %v22574_v39  ;;  %v22640_v60 = vld [vmem:[%s29454_s7 + $0x428] ss:$24 sps:$4 sm:$0xff]   ;;  %v22645_v39 = vld [vmem:[%s29454_s7 + $0x8e4] ss:$24 sps:$4 sm:$0xff]  }
 0x6fc   : > { %11873 = vmatpush1.bf16.msra.mxu0 %v22569_v42  ;;  %v22648_v42 = vld [vmem:[%s29454_s7 + $0x45c] ss:$24 sps:$4 sm:$0xff]  }
 0x6fd   : > { %12811 = vmatpush1.bf16.msra.mxu1 %v22572_v4  ;;  %11874 = vmatprep.subr.bf16.mxu0 %v22577_v52  ;;  %v22643_v4 = vld [vmem:[%s29454_s7 + $0x8e0] ss:$24 sps:$4 sm:$0xff]  }
 0x6fe   : > { %12812 = vmatprep.subr.bf16.mxu1 %v22580_v51  ;;  %v22646_v52 = vld [vmem:[%s29454_s7 + $0x458] ss:$24 sps:$4 sm:$0xff]   ;;  %v22651_v51 = vld [vmem:[%s29454_s7 + $0x4] ss:$24 sps:$4 sm:$0xff]  }
 0x700   : > { %11875 = vmatpush1.bf16.msra.mxu0 %v22575_v54  ;;  %v22654_v54 = vld [vmem:[%s29454_s7 + $0x90c] ss:$24 sps:$4 sm:$0xff]  }
 0x701   : > { %12813 = vmatpush1.bf16.msra.mxu1 %v22578_v22  ;;  %11876 = vmatprep.subr.bf16.mxu0 %v22583_v0  ;;  %v22649_v22 = vld [vmem:[%s29454_s7] ss:$24 sps:$4 sm:$0xff]  }
 0x702   : > { %12814 = vmatprep.subr.bf16.mxu1 %v22586_v16  ;;  %v22652_v0 = vld [vmem:[%s29454_s7 + $0x908] ss:$24 sps:$4 sm:$0xff]   ;;  %v22657_v16 = vld [vmem:[%s29454_s7 + $0x34] ss:$24 sps:$4 sm:$0xff]  }
 0x704   : > { %11877 = vmatpush1.bf16.msra.mxu0 %v22581_v26  ;;  %v22660_v26 = vld [vmem:[%s29454_s7 + $0x93c] ss:$24 sps:$4 sm:$0xff]  }
 0x705   : > { %12815 = vmatpush1.bf16.msra.mxu1 %v22584_v2  ;;  %11878 = vmatprep.subr.bf16.mxu0 %v22589_v40  ;;  %v22655_v2 = vld [vmem:[%s29454_s7 + $0x30] ss:$24 sps:$4 sm:$0xff]  }
 0x706   : > { %12816 = vmatprep.subr.bf16.mxu1 %v22592_v46  ;;  %v22658_v40 = vld [vmem:[%s29454_s7 + $0x938] ss:$24 sps:$4 sm:$0xff]   ;;  %v22663_v46 = vld [vmem:[%s29454_s7 + $0x64] ss:$24 sps:$4 sm:$0xff]  }
 0x708   : > { %11879 = vmatpush1.bf16.msra.mxu0 %v22587_v23  ;;  %v27034_v23 = vld [vmem:[#allocation3] sm:$0xee] }
 0x709   : > { %12817 = vmatpush1.bf16.msra.mxu1 %v22590_v58  ;;  %11880 = vmatprep.subr.bf16.mxu0 %v22595_v31  ;;  %v27037_v58 = vld [vmem:[#allocation3 + $0xc] sm:$0xff] }
 0x70a   : > { %12818 = vmatprep.subr.bf16.mxu1 %v22598_v57  ;;  %v20168_v31 = vcombine.high %v27034_v23, %v27037_v58  ;;  %v22661_v57 = vld [vmem:[%s29454_s7 + $0x60] ss:$24 sps:$4 sm:$0xff]  }
 0x70c   : > { %11881 = vmatpush1.bf16.msra.mxu0 %v22593_v25  ;;  %v22665_v25 = vld [vmem:[%s29454_s7 + $0x968] ss:$24 sps:$4 sm:$0xff]   ;;  %v13150_v5 = vrot.slane %v20168_v31, 1 }
 0x70d   : > { %12819 = vmatpush1.bf16.msra.mxu1 %v22596_v63  ;;  %11901 = vmatprep.subr.bf16.mxu0 %v22601_v29  ;;  %v27048_v63 = vrot.slane %v26557_v24, 1  ;;  %v27050_v29 = vld [vmem:[#allocation3 + $0x20] ss:$0 sps:$4 sm:$0x77]  }
 0x70e   : > { %12839 = vmatprep.subr.bf16.mxu1 %v22604_v47  ;;  %v22670_v47 = vld [vmem:[%s29454_s7 + $0x94] ss:$24 sps:$4 sm:$0xff]   ;;  %v22668_v24 = vld [vmem:[%s29454_s7 + $0x90] ss:$24 sps:$4 sm:$0xff]  }
 0x70f   : > { %11883 = vmatmul.mubr.bf16.vlgmr.msra.gmra.mrb[60].mxu0 %v26576_v14  ;;  %v22609_v14 = vld [vmem:[%s29454_s7 + $0x338] ss:$24 sps:$4 sm:$0xff]  }
 0x710   : > { %12821 = vmatmul.mubr.bf16.vlgmr.msra.gmra.mrb[60].mxu1 %v26539_v62  ;;  %11892 = vmatprep.mubr.bf16.mxu0 %v26578_v20  ;;  %v22618_v20 = vld [vmem:[%s29454_s7 + $0x36c] ss:$24 sps:$4 sm:$0xff]   ;;  %v22728_v31 = vld [vmem:[%s29454_s7 + $0x270] ss:$24 sps:$4 sm:$0xff]  }
 0x711   : > { %11902 = vmatpush1.bf16.msra.mxu0 %v22599_v44  ;;  %12830 = vmatprep.mubr.bf16.mxu1 %v26909_v28  ;;  %v22673_v44 = vld [vmem:[%s29454_s7 + $0x99c] ss:$24 sps:$4 sm:$0xff]  }
 0x712   : > { %12840 = vmatpush1.bf16.msra.mxu1 %v22602_v59  ;;  %11903 = vmatprep.subr.bf16.mxu0 %v22608_v50  ;;  %v27066_v59 = vsel %vm29541_vm13, %v13150_v5, %v27048_v63  ;;  %v22676_v50 = vld [vmem:[%s29454_s7 + $0xc4] ss:$24 sps:$4 sm:$0xff]   ;;  %v22734_v5 = vld [vmem:[%s29454_s7 + $0x2a0] ss:$24 sps:$4 sm:$0xff]  }
 0x713   : > { %12841 = vmatprep.subr.bf16.mxu1 %v22611_v34  ;;  %v22679_v34 = vld [vmem:[%s29454_s7 + $0x9cc] ss:$24 sps:$4 sm:$0xff]  }
 0x715   : > { %11904 = vmatpush1.bf16.msra.mxu0 %v22606_v1  ;;  %v22674_v1 = vld [vmem:[%s29454_s7 + $0xc0] ss:$24 sps:$4 sm:$0xff]  }
 0x716   : > { %12842 = vmatpush1.bf16.msra.mxu1 %v22609_v14  ;;  %11905 = vmatprep.subr.bf16.mxu0 %v22614_v27  ;;  %v22677_v14 = vld [vmem:[%s29454_s7 + $0x9c8] ss:$24 sps:$4 sm:$0xff]   ;;  %v22682_v27 = vld [vmem:[%s29454_s7 + $0xf4] ss:$24 sps:$4 sm:$0xff]  }
 0x717   : > { %11893 = vmatmul.mubr.bf16.gmra.mrb[64].mxu0 %v26611_v19  ;;  %12843 = vmatprep.subr.bf16.mxu1 %v22618_v20  ;;  %v22622_v19 = vld [vmem:[%s29454_s7 + $0x398] ss:$24 sps:$4 sm:$0xff]   ;;  %v22685_v20 = vld [vmem:[%s29454_s7 + $0x9fc] ss:$24 sps:$4 sm:$0xff]  }
 0x718   : > { %12831 = vmatmul.mubr.bf16.gmra.mrb[64].mxu1 %v26932_v7  ;;  %11933 = vmatprep.mubr.bf16.mxu0 %v29511_v55 }
 0x719   : > { %11906 = vmatpush1.bf16.msra.mxu0 %v22612_v18  ;;  %12871 = vmatprep.mubr.bf16.mxu1 %v29511_v55  ;;  %v22680_v18 = vld [vmem:[%s29454_s7 + $0xf0] ss:$24 sps:$4 sm:$0xff]  }
 0x71a   : > { %12844 = vmatpush1.bf16.msra.mxu1 %v22616_v35  ;;  %11907 = vmatprep.subr.bf16.mxu0 %v22621_v6  ;;  %v22683_v35 = vld [vmem:[%s29454_s7 + $0x9f8] ss:$24 sps:$4 sm:$0xff]   ;;  %v22688_v6 = vld [vmem:[%s29454_s7 + $0x124] ss:$24 sps:$4 sm:$0xff]  }
 0x71b   : > { %12845 = vmatprep.subr.bf16.mxu1 %v22624_v17  ;;  %v22691_v17 = vld [vmem:[%s29454_s7 + $0xa2c] ss:$24 sps:$4 sm:$0xff]  }
 0x71d   : > { %11908 = vmatpush1.bf16.msra.mxu0 %v22619_v38  ;;  %v22686_v38 = vld [vmem:[%s29454_s7 + $0x120] ss:$24 sps:$4 sm:$0xff]  }
 0x71e   : > { %12846 = vmatpush1.bf16.msra.mxu1 %v22622_v19  ;;  %11909 = vmatprep.subr.bf16.mxu0 %v22627_v43  ;;  %v22689_v19 = vld [vmem:[%s29454_s7 + $0xa28] ss:$24 sps:$4 sm:$0xff]   ;;  %v22694_v43 = vld [vmem:[%s29454_s7 + $0x154] ss:$24 sps:$4 sm:$0xff]  }
 0x71f   : > { %12847 = vmatprep.subr.bf16.mxu1 %v22630_v15  ;;  %v22697_v15 = vld [vmem:[%s29454_s7 + $0xa5c] ss:$24 sps:$4 sm:$0xff]  }
 0x721   : > { %11910 = vmatpush1.bf16.msra.mxu0 %v22625_v49  ;;  %v22692_v49 = vld [vmem:[%s29454_s7 + $0x150] ss:$24 sps:$4 sm:$0xff]  }
 0x722   : > { %12848 = vmatpush1.bf16.msra.mxu1 %v22628_v10  ;;  %11911 = vmatprep.subr.bf16.mxu0 %v22633_v3  ;;  %v22695_v10 = vld [vmem:[%s29454_s7 + $0xa58] ss:$24 sps:$4 sm:$0xff]   ;;  %v22700_v3 = vld [vmem:[%s29454_s7 + $0x184] ss:$24 sps:$4 sm:$0xff]  }
 0x723   : > { %12849 = vmatprep.subr.bf16.mxu1 %v22636_v8  ;;  %v22703_v8 = vld [vmem:[%s29454_s7 + $0xa8c] ss:$24 sps:$4 sm:$0xff]  }
 0x725   : > { %11912 = vmatpush1.bf16.msra.mxu0 %v22631_v11  ;;  %v22698_v11 = vld [vmem:[%s29454_s7 + $0x180] ss:$24 sps:$4 sm:$0xff]  }
 0x726   : > { %12850 = vmatpush1.bf16.msra.mxu1 %v22634_v48  ;;  %11913 = vmatprep.subr.bf16.mxu0 %v22639_v33  ;;  %v22701_v48 = vld [vmem:[%s29454_s7 + $0xa88] ss:$24 sps:$4 sm:$0xff]   ;;  %v22706_v33 = vld [vmem:[%s29454_s7 + $0x1b4] ss:$24 sps:$4 sm:$0xff]  }
 0x727   : > { %12851 = vmatprep.subr.bf16.mxu1 %v22642_v12  ;;  %v22709_v12 = vld [vmem:[%s29454_s7 + $0xabc] ss:$24 sps:$4 sm:$0xff]  }
 0x729   : > { %11914 = vmatpush1.bf16.msra.mxu0 %v22637_v21  ;;  %v22704_v21 = vld [vmem:[%s29454_s7 + $0x1b0] ss:$24 sps:$4 sm:$0xff]  }
 0x72a   : > { %12852 = vmatpush1.bf16.msra.mxu1 %v22640_v60  ;;  %11915 = vmatprep.subr.bf16.mxu0 %v22645_v39  ;;  %v22707_v60 = vld [vmem:[%s29454_s7 + $0xab8] ss:$24 sps:$4 sm:$0xff]   ;;  %v22712_v39 = vld [vmem:[%s29454_s7 + $0x1e4] ss:$24 sps:$4 sm:$0xff]  }
 0x72b   : > { %12853 = vmatprep.subr.bf16.mxu1 %v22648_v42  ;;  %v22715_v42 = vld [vmem:[%s29454_s7 + $0xaec] ss:$24 sps:$4 sm:$0xff]  }
 0x72d   : > { %11916 = vmatpush1.bf16.msra.mxu0 %v22643_v4  ;;  %v22710_v4 = vld [vmem:[%s29454_s7 + $0x1e0] ss:$24 sps:$4 sm:$0xff]  }
 0x72e   : > { %12854 = vmatpush1.bf16.msra.mxu1 %v22646_v52  ;;  %12686 = vmatprep.subr.bf16.mxu0 %v22651_v51  ;;  %v22713_v52 = vld [vmem:[%s29454_s7 + $0xae8] ss:$24 sps:$4 sm:$0xff]   ;;  %v22718_v51 = vld [vmem:[%s29454_s7 + $0x214] ss:$24 sps:$4 sm:$0xff]  }
 0x72f   : > { %13984 = vmatprep.subr.bf16.mxu1 %v22654_v54  ;;  %v22721_v54 = vld [vmem:[%s29454_s7 + $0xb1c] ss:$24 sps:$4 sm:$0xff]  }
 0x730   : > { %11934 = vmatmul.mubr.bf16.vlgmr.msra.gmra.mrb[60].mxu0 %v26706_v61  ;;  %v22667_v61 = vld [vmem:[%s29454_s7 + $0x96c] ss:$24 sps:$4 sm:$0xff]  }
 0x731   : > { %12872 = vmatmul.mubr.bf16.vlgmr.msra.gmra.mrb[60].mxu1 %v26656_v45  ;;  %12687 = vmatpush1.bf16.msra.mxu0 %v22649_v22  ;;  %v22716_v22 = vld [vmem:[%s29454_s7 + $0x210] ss:$24 sps:$4 sm:$0xff]  }
 0x732   : > { %13985 = vmatpush1.bf16.msra.mxu1 %v22652_v0  ;;  %12688 = vmatprep.subr.bf16.mxu0 %v22657_v16  ;;  %v22719_v0 = vld [vmem:[%s29454_s7 + $0xb18] ss:$24 sps:$4 sm:$0xff]   ;;  %v22724_v16 = vld [vmem:[%s29454_s7 + $0x244] ss:$24 sps:$4 sm:$0xff]  }
 0x733   : > { %13986 = vmatprep.subr.bf16.mxu1 %v22660_v26  ;;  %11943 = vmatprep.mubr.bf16.mxu0 %v29511_v55  ;;  %v22727_v26 = vld [vmem:[%s29454_s7 + $0xb4c] ss:$24 sps:$4 sm:$0xff]  }
 0x734   : > { %12881 = vmatprep.mubr.bf16.mxu1 %v29511_v55 }
 0x735   : > { %12689 = vmatpush1.bf16.msra.mxu0 %v22655_v2  ;;  %v22722_v2 = vld [vmem:[%s29454_s7 + $0x240] ss:$24 sps:$4 sm:$0xff]  }
 0x736   : > { %13987 = vmatpush1.bf16.msra.mxu1 %v22658_v40  ;;  %12690 = vmatprep.subr.bf16.mxu0 %v22663_v46  ;;  %v22725_v40 = vld [vmem:[%s29454_s7 + $0xb48] ss:$24 sps:$4 sm:$0xff]   ;;  %v22730_v46 = vld [vmem:[%s29454_s7 + $0x274] ss:$24 sps:$4 sm:$0xff]  }
 0x737   : > { %13988 = vmatprep.subr.bf16.mxu1 %v22667_v61  ;;  %v22733_v61 = vld [vmem:[%s29454_s7 + $0xb7c] ss:$24 sps:$4 sm:$0xff]  }
 0x738   : > { %11944 = vmatmul.mubr.bf16.gmra.mrb[64].mxu0 %v26728_v53  ;;  %v22671_v53 = vld [vmem:[%s29454_s7 + $0x998] ss:$24 sps:$4 sm:$0xff]  }
 0x739   : > { %12882 = vmatmul.mubr.bf16.gmra.mrb[64].mxu1 %v27050_v29  ;;  %12691 = vmatpush1.bf16.msra.mxu0 %v22661_v57  ;;  %v22731_v57 = vld [vmem:[%s29454_s7 + $0xb78] ss:$24 sps:$4 sm:$0xff]  }
 0x73a   : > { %12718 = vmatprep.mubr.bf16.mxu0 %v26530_v32  ;;  %13989 = vmatpush1.bf16.msra.mxu1 %v22665_v25  ;;  %v22736_v25 = vld [vmem:[%s29454_s7 + $0x2a4] ss:$24 sps:$4 sm:$0xff]  }
 0x73b   : > { %14016 = vmatprep.mubr.bf16.mxu1 %v27066_v59  ;;  %12692 = vmatprep.subr.bf16.mxu0 %v22670_v47  ;;  %v22739_v47 = vld [vmem:[%s29454_s7 + $0xbac] ss:$24 sps:$4 sm:$0xff]  }
 0x73c   : > { %13990 = vmatprep.subr.bf16.mxu1 %v22673_v44  ;;  %v22737_v44 = vld [vmem:[%s29454_s7 + $0xba8] ss:$24 sps:$4 sm:$0xff]  }
 0x73d   : > { %12693 = vmatpush1.bf16.msra.mxu0 %v22668_v24  ;;  %v22742_v24 = vld [vmem:[%s29454_s7 + $0x2d4] ss:$24 sps:$4 sm:$0xff]  }
 0x73e   : > { %13991 = vmatpush1.bf16.msra.mxu1 %v22671_v53  ;;  %12694 = vmatprep.subr.bf16.mxu0 %v22676_v50  ;;  %v22745_v53 = vld [vmem:[%s29454_s7 + $0xbdc] ss:$24 sps:$4 sm:$0xff]   ;;  %v22740_v50 = vld [vmem:[%s29454_s7 + $0x2d0] ss:$24 sps:$4 sm:$0xff]  }
 0x73f   : > { %13992 = vmatprep.subr.bf16.mxu1 %v22679_v34  ;;  %v20167_v34 = vcombine.low %v27034_v23, %v27037_v58  ;;  %v22746_v58 = vld [vmem:[%s29454_s7 + $0x300] ss:$24 sps:$4 sm:$0xff]  }
 0x741   : > { %12695 = vmatpush1.bf16.msra.mxu0 %v22674_v1  ;;  %v22743_v1 = vld [vmem:[%s29454_s7 + $0xbd8] ss:$24 sps:$4 sm:$0xff]   ;;  %v13147_v23 = vrot.slane %v20167_v34, 1 }
 0x742   : > { %13993 = vmatpush1.bf16.msra.mxu1 %v22677_v14  ;;  %12696 = vmatprep.subr.bf16.mxu0 %v22682_v27  ;;  %v22748_v14 = vld [vmem:[%s29454_s7 + $0x304] ss:$24 sps:$4 sm:$0xff]   ;;  %v22807_v34 = vld [vmem:[%s29454_s7 + $0xd0] ss:$24 sps:$4 sm:$0xff]  }
 0x743   : > { %13994 = vmatprep.subr.bf16.mxu1 %v22685_v20  ;;  %v22751_v27 = vld [vmem:[%s29454_s7 + $0xc0c] ss:$24 sps:$4 sm:$0xff]   ;;  %v27225_v20 = vrot.slane %v26555_v36, 1 }
 0x745   : > { %12697 = vmatpush1.bf16.msra.mxu0 %v22680_v18  ;;  %v22749_v18 = vld [vmem:[%s29454_s7 + $0xc08] ss:$24 sps:$4 sm:$0xff]   ;;  %v27239_v36 = vsel %vm29542_vm2, %v13147_v23, %v27225_v20  ;;  %v22818_v23 = vld [vmem:[%s29454_s7 + $0x164] ss:$24 sps:$4 sm:$0xff]  }
 0x746   : > { %13995 = vmatpush1.bf16.msra.mxu1 %v22683_v35  ;;  %12698 = vmatprep.subr.bf16.mxu0 %v22688_v6  ;;  %v22754_v35 = vld [vmem:[%s29454_s7 + $0x334] ss:$24 sps:$4 sm:$0xff]  }
 0x747   : > { %13996 = vmatprep.subr.bf16.mxu1 %v22691_v17  ;;  %v22757_v6 = vld [vmem:[%s29454_s7 + $0xc3c] ss:$24 sps:$4 sm:$0xff]   ;;  %v22752_v17 = vld [vmem:[%s29454_s7 + $0x330] ss:$24 sps:$4 sm:$0xff]  }
 0x749   : > { %12699 = vmatpush1.bf16.msra.mxu0 %v22686_v38  ;;  %v22755_v38 = vld [vmem:[%s29454_s7 + $0xc38] ss:$24 sps:$4 sm:$0xff]  }
 0x74a   : > { %13997 = vmatpush1.bf16.msra.mxu1 %v22689_v19  ;;  %12700 = vmatprep.subr.bf16.mxu0 %v22694_v43  ;;  %v22760_v19 = vld [vmem:[%s29454_s7 + $0x364] ss:$24 sps:$4 sm:$0xff]  }
 0x74b   : > { %13998 = vmatprep.subr.bf16.mxu1 %v22697_v15  ;;  %v22763_v43 = vld [vmem:[%s29454_s7 + $0xc6c] ss:$24 sps:$4 sm:$0xff]   ;;  %v22758_v15 = vld [vmem:[%s29454_s7 + $0x360] ss:$24 sps:$4 sm:$0xff]  }
 0x74d   : > { %12701 = vmatpush1.bf16.msra.mxu0 %v22692_v49  ;;  %v22761_v49 = vld [vmem:[%s29454_s7 + $0xc68] ss:$24 sps:$4 sm:$0xff]  }
 0x74e   : > { %13999 = vmatpush1.bf16.msra.mxu1 %v22695_v10  ;;  %12702 = vmatprep.subr.bf16.mxu0 %v22700_v3  ;;  %v22766_v10 = vld [vmem:[%s29454_s7 + $0x394] ss:$24 sps:$4 sm:$0xff]  }
 0x74f   : > { %14000 = vmatprep.subr.bf16.mxu1 %v22703_v8  ;;  %v22769_v3 = vld [vmem:[%s29454_s7 + $0xc9c] ss:$24 sps:$4 sm:$0xff]   ;;  %v22764_v8 = vld [vmem:[%s29454_s7 + $0x390] ss:$24 sps:$4 sm:$0xff]  }
 0x751   : > { %12703 = vmatpush1.bf16.msra.mxu0 %v22698_v11  ;;  %v22767_v11 = vld [vmem:[%s29454_s7 + $0xc98] ss:$24 sps:$4 sm:$0xff]  }
 0x752   : > { %14001 = vmatpush1.bf16.msra.mxu1 %v22701_v48  ;;  %12704 = vmatprep.subr.bf16.mxu0 %v22706_v33  ;;  %v22772_v48 = vld [vmem:[%s29454_s7 + $0x3c4] ss:$24 sps:$4 sm:$0xff]  }
 0x753   : > { %14002 = vmatprep.subr.bf16.mxu1 %v22709_v12  ;;  %v22775_v33 = vld [vmem:[%s29454_s7 + $0xccc] ss:$24 sps:$4 sm:$0xff]   ;;  %v22770_v12 = vld [vmem:[%s29454_s7 + $0x3c0] ss:$24 sps:$4 sm:$0xff]  }
 0x755   : > { %12705 = vmatpush1.bf16.msra.mxu0 %v22704_v21  ;;  %v22773_v21 = vld [vmem:[%s29454_s7 + $0xcc8] ss:$24 sps:$4 sm:$0xff]  }
 0x756   : > { %14003 = vmatpush1.bf16.msra.mxu1 %v22707_v60  ;;  %12706 = vmatprep.subr.bf16.mxu0 %v22712_v39  ;;  %v22778_v60 = vld [vmem:[%s29454_s7 + $0x3f4] ss:$24 sps:$4 sm:$0xff]  }
 0x757   : > { %14004 = vmatprep.subr.bf16.mxu1 %v22715_v42  ;;  %v22781_v39 = vld [vmem:[%s29454_s7 + $0xcfc] ss:$24 sps:$4 sm:$0xff]   ;;  %v22776_v42 = vld [vmem:[%s29454_s7 + $0x3f0] ss:$24 sps:$4 sm:$0xff]  }
 0x759   : > { %12707 = vmatpush1.bf16.msra.mxu0 %v22710_v4  ;;  %v22779_v4 = vld [vmem:[%s29454_s7 + $0xcf8] ss:$24 sps:$4 sm:$0xff]  }
 0x75a   : > { %14005 = vmatpush1.bf16.msra.mxu1 %v22713_v52  ;;  %12708 = vmatprep.subr.bf16.mxu0 %v22718_v51  ;;  %v22784_v52 = vld [vmem:[%s29454_s7 + $0x424] ss:$24 sps:$4 sm:$0xff]  }
 0x75b   : > { %14006 = vmatprep.subr.bf16.mxu1 %v22721_v54  ;;  %v22787_v51 = vld [vmem:[%s29454_s7 + $0xd2c] ss:$24 sps:$4 sm:$0xff]   ;;  %v22782_v54 = vld [vmem:[%s29454_s7 + $0x420] ss:$24 sps:$4 sm:$0xff]  }
 0x75d   : > { %12709 = vmatpush1.bf16.msra.mxu0 %v22716_v22  ;;  %v22785_v22 = vld [vmem:[%s29454_s7 + $0xd28] ss:$24 sps:$4 sm:$0xff]  }
 0x75e   : > { %14007 = vmatpush1.bf16.msra.mxu1 %v22719_v0  ;;  %12710 = vmatprep.subr.bf16.mxu0 %v22724_v16  ;;  %v22790_v0 = vld [vmem:[%s29454_s7 + $0x454] ss:$24 sps:$4 sm:$0xff]  }
 0x75f   : > { %14008 = vmatprep.subr.bf16.mxu1 %v22727_v26  ;;  %v22793_v16 = vld [vmem:[%s29454_s7 + $0xd5c] ss:$24 sps:$4 sm:$0xff]   ;;  %v22788_v26 = vld [vmem:[%s29454_s7 + $0x450] ss:$24 sps:$4 sm:$0xff]  }
 0x761   : > { %12711 = vmatpush1.bf16.msra.mxu0 %v22722_v2  ;;  %v12993_v2 = vld [vmem:[#allocation3 + $0x8] sm:$0xe] }
 0x762   : > { %14009 = vmatpush1.bf16.msra.mxu1 %v22725_v40  ;;  %12712 = vmatprep.subr.bf16.mxu0 %v22730_v46  ;;  %v22791_v40 = vld [vmem:[%s29454_s7 + $0xd58] ss:$24 sps:$4 sm:$0xff]   ;;  %v22796_v46 = vld [vmem:[%s29454_s7 + $0x14] ss:$24 sps:$4 sm:$0xff]  }
 0x763   : > { %14010 = vmatprep.subr.bf16.mxu1 %v22733_v61  ;;  %v20169_v61 = vcombine.low %v12993_v2, %v26647_v30  ;;  %v22864_v2 = vld [vmem:[%s29454_s7 + $0x460] ss:$24 sps:$4 sm:$0xff]  }
 0x765   : > { %12713 = vmatpush1.bf16.msra.mxu0 %v22728_v31  ;;  %v27334_v31 = vrot.slane %v26664_v9, 1  ;;  %v22798_v9 = vld [vmem:[%s29454_s7 + $0x40] ss:$24 sps:$4 sm:$0xff]  }
 0x766   : > { %14011 = vmatpush1.bf16.msra.mxu1 %v22731_v57  ;;  %12714 = vmatprep.subr.bf16.mxu0 %v22736_v25  ;;  %v22794_v57 = vld [vmem:[%s29454_s7 + $0x10] ss:$24 sps:$4 sm:$0xff]   ;;  %v13153_v25 = vrot.slane %v20169_v61, 1  ;;  %v22872_v61 = vld [vmem:[%s29454_s7 + $0x934] ss:$24 sps:$4 sm:$0xff]  }
 0x767   : > { %14012 = vmatprep.subr.bf16.mxu1 %v22739_v47  ;;  %v22800_v47 = vld [vmem:[%s29454_s7 + $0x44] ss:$24 sps:$4 sm:$0xff]  }
 0x768   : > { %v27345_v30 = vsel %vm29543_vm3, %v13153_v25, %v27334_v31  ;;  %v22875_v25 = vld [vmem:[%s29454_s7 + $0x964] ss:$24 sps:$4 sm:$0xff]  }
 0x769   : > { %12715 = vmatpush1.bf16.msra.mxu0 %v22734_v5  ;;  %v22803_v5 = vld [vmem:[%s29454_s7 + $0x74] ss:$24 sps:$4 sm:$0xff]  }
 0x76a   : > { %14013 = vmatpush1.bf16.msra.mxu1 %v22737_v44  ;;  %12716 = vmatprep.subr.bf16.mxu0 %v22742_v24  ;;  %v22801_v44 = vld [vmem:[%s29454_s7 + $0x70] ss:$24 sps:$4 sm:$0xff]   ;;  %v22806_v24 = vld [vmem:[%s29454_s7 + $0xa4] ss:$24 sps:$4 sm:$0xff]  }
 0x76b   : > { %14014 = vmatprep.subr.bf16.mxu1 %v22745_v53  ;;  %v22804_v53 = vld [vmem:[%s29454_s7 + $0xa0] ss:$24 sps:$4 sm:$0xff]  }
 0x76d   : > { %12717 = vmatpush1.bf16.msra.mxu0 %v22740_v50  ;;  %v22809_v50 = vld [vmem:[%s29454_s7 + $0xd4] ss:$24 sps:$4 sm:$0xff]  }
 0x76e   : > { %14015 = vmatpush1.bf16.msra.mxu1 %v22743_v1  ;;  %12737 = vmatprep.subr.bf16.mxu0 %v22748_v14  ;;  %v22812_v1 = vld [vmem:[%s29454_s7 + $0x104] ss:$24 sps:$4 sm:$0xff]   ;;  %v22815_v14 = vld [vmem:[%s29454_s7 + $0x134] ss:$24 sps:$4 sm:$0xff]  }
 0x76f   : > { %14035 = vmatprep.subr.bf16.mxu1 %v22751_v27  ;;  %v22813_v27 = vld [vmem:[%s29454_s7 + $0x130] ss:$24 sps:$4 sm:$0xff]  }
 0x770   : > { %12719 = vmatmul.mubr.bf16.vlgmr.msra.gmra.mrb[52].mxu0 %v26539_v62 }
 0x771   : > { %14017 = vmatmul.mubr.bf16.vlgmr.msra.gmra.mrb[60].mxu1 %v27239_v36  ;;  %12728 = vmatprep.mubr.bf16.mxu0 %v26909_v28 }
 0x772   : > { %12738 = vmatpush1.bf16.msra.mxu0 %v22746_v58  ;;  %14026 = vmatprep.mubr.bf16.mxu1 %v27048_v63  ;;  %v22816_v58 = vld [vmem:[%s29454_s7 + $0x160] ss:$24 sps:$4 sm:$0xff]  }
 0x773   : > { %14036 = vmatpush1.bf16.msra.mxu1 %v22749_v18  ;;  %12739 = vmatprep.subr.bf16.mxu0 %v22754_v35  ;;  %v22821_v18 = vld [vmem:[%s29454_s7 + $0x194] ss:$24 sps:$4 sm:$0xff]   ;;  %v22819_v35 = vld [vmem:[%s29454_s7 + $0x190] ss:$24 sps:$4 sm:$0xff]  }
 0x774   : > { %14037 = vmatprep.subr.bf16.mxu1 %v22757_v6  ;;  %v22824_v6 = vld [vmem:[%s29454_s7 + $0x1c4] ss:$24 sps:$4 sm:$0xff]  }
 0x776   : > { %12740 = vmatpush1.bf16.msra.mxu0 %v22752_v17  ;;  %v22822_v17 = vld [vmem:[%s29454_s7 + $0x1c0] ss:$24 sps:$4 sm:$0xff]  }
 0x777   : > { %14038 = vmatpush1.bf16.msra.mxu1 %v22755_v38  ;;  %12741 = vmatprep.subr.bf16.mxu0 %v22760_v19  ;;  %v22827_v38 = vld [vmem:[%s29454_s7 + $0x1f4] ss:$24 sps:$4 sm:$0xff]   ;;  %v22825_v19 = vld [vmem:[%s29454_s7 + $0x1f0] ss:$24 sps:$4 sm:$0xff]  }
 0x778   : > { %12729 = vmatmul.mubr.bf16.gmra.mrb[56].mxu0 %v26932_v7  ;;  %14039 = vmatprep.subr.bf16.mxu1 %v22763_v43  ;;  %v22830_v43 = vld [vmem:[%s29454_s7 + $0x224] ss:$24 sps:$4 sm:$0xff]  }
 0x779   : > { %14027 = vmatmul.mubr.bf16.gmra.mrb[64].mxu1 %v27225_v20  ;;  %12769 = vmatprep.mubr.bf16.mxu0 %v29511_v55 }
 0x77a   : > { %12742 = vmatpush1.bf16.msra.mxu0 %v22758_v15  ;;  %14067 = vmatprep.mubr.bf16.mxu1 %v29511_v55  ;;  %v22828_v15 = vld [vmem:[%s29454_s7 + $0x220] ss:$24 sps:$4 sm:$0xff]  }
 0x77b   : > { %14040 = vmatpush1.bf16.msra.mxu1 %v22761_v49  ;;  %12743 = vmatprep.subr.bf16.mxu0 %v22766_v10  ;;  %v22833_v49 = vld [vmem:[%s29454_s7 + $0x254] ss:$24 sps:$4 sm:$0xff]   ;;  %v22831_v10 = vld [vmem:[%s29454_s7 + $0x250] ss:$24 sps:$4 sm:$0xff]  }
 0x77c   : > { %14041 = vmatprep.subr.bf16.mxu1 %v22769_v3  ;;  %v22836_v3 = vld [vmem:[%s29454_s7 + $0x284] ss:$24 sps:$4 sm:$0xff]  }
 0x77e   : > { %12744 = vmatpush1.bf16.msra.mxu0 %v22764_v8  ;;  %v22834_v8 = vld [vmem:[%s29454_s7 + $0x280] ss:$24 sps:$4 sm:$0xff]  }
 0x77f   : > { %14042 = vmatpush1.bf16.msra.mxu1 %v22767_v11  ;;  %12745 = vmatprep.subr.bf16.mxu0 %v22772_v48  ;;  %v22839_v11 = vld [vmem:[%s29454_s7 + $0x2b4] ss:$24 sps:$4 sm:$0xff]   ;;  %v22837_v48 = vld [vmem:[%s29454_s7 + $0x2b0] ss:$24 sps:$4 sm:$0xff]  }
 0x780   : > { %14043 = vmatprep.subr.bf16.mxu1 %v22775_v33  ;;  %v22842_v33 = vld [vmem:[%s29454_s7 + $0x2e4] ss:$24 sps:$4 sm:$0xff]  }
 0x782   : > { %12746 = vmatpush1.bf16.msra.mxu0 %v22770_v12  ;;  %v22840_v12 = vld [vmem:[%s29454_s7 + $0x2e0] ss:$24 sps:$4 sm:$0xff]  }
 0x783   : > { %14044 = vmatpush1.bf16.msra.mxu1 %v22773_v21  ;;  %12747 = vmatprep.subr.bf16.mxu0 %v22778_v60  ;;  %v22845_v21 = vld [vmem:[%s29454_s7 + $0x314] ss:$24 sps:$4 sm:$0xff]   ;;  %v22843_v60 = vld [vmem:[%s29454_s7 + $0x310] ss:$24 sps:$4 sm:$0xff]  }
 0x784   : > { %14045 = vmatprep.subr.bf16.mxu1 %v22781_v39  ;;  %v22848_v39 = vld [vmem:[%s29454_s7 + $0x344] ss:$24 sps:$4 sm:$0xff]  }
 0x786   : > { %12748 = vmatpush1.bf16.msra.mxu0 %v22776_v42  ;;  %v22846_v42 = vld [vmem:[%s29454_s7 + $0x340] ss:$24 sps:$4 sm:$0xff]  }
 0x787   : > { %14046 = vmatpush1.bf16.msra.mxu1 %v22779_v4  ;;  %12749 = vmatprep.subr.bf16.mxu0 %v22784_v52  ;;  %v22851_v4 = vld [vmem:[%s29454_s7 + $0x374] ss:$24 sps:$4 sm:$0xff]   ;;  %v22849_v52 = vld [vmem:[%s29454_s7 + $0x370] ss:$24 sps:$4 sm:$0xff]  }
 0x788   : > { %14047 = vmatprep.subr.bf16.mxu1 %v22787_v51  ;;  %v22857_v51 = vld [vmem:[%s29454_s7 + $0x3d4] ss:$24 sps:$4 sm:$0xff]  }
 0x78a   : > { %12750 = vmatpush1.bf16.msra.mxu0 %v22782_v54  ;;  %v22855_v54 = vld [vmem:[%s29454_s7 + $0x3d0] ss:$24 sps:$4 sm:$0xff]  }
 0x78b   : > { %14048 = vmatpush1.bf16.msra.mxu1 %v22785_v22  ;;  %12751 = vmatprep.subr.bf16.mxu0 %v22790_v0  ;;  %v22858_v22 = vld [vmem:[%s29454_s7 + $0x400] ss:$24 sps:$4 sm:$0xff]   ;;  %v22863_v0 = vld [vmem:[%s29454_s7 + $0x434] ss:$24 sps:$4 sm:$0xff]  }
 0x78c   : > { %14049 = vmatprep.subr.bf16.mxu1 %v22793_v16  ;;  %v22861_v16 = vld [vmem:[%s29454_s7 + $0x430] ss:$24 sps:$4 sm:$0xff]  }
 0x78e   : > { %12752 = vmatpush1.bf16.msra.mxu0 %v22788_v26  ;;  %v22866_v26 = vld [vmem:[%s29454_s7 + $0x464] ss:$24 sps:$4 sm:$0xff]  }
 0x78f   : > { %14050 = vmatpush1.bf16.msra.mxu1 %v22791_v40  ;;  %12890 = vmatprep.subr.bf16.mxu0 %v22796_v46  ;;  %v22869_v40 = vld [vmem:[%s29454_s7 + $0x904] ss:$24 sps:$4 sm:$0xff]   ;;  %v22867_v46 = vld [vmem:[%s29454_s7 + $0x900] ss:$24 sps:$4 sm:$0xff]  }
 0x791   : > { %12770 = vmatmul.mubr.bf16.vlgmr.msra.gmra.mrb[52].mxu0 %v26656_v45 }
 0x792   : > { %14068 = vmatmul.mubr.bf16.vlgmr.msra.gmra.mrb[60].mxu1 %v27345_v30  ;;  %12891 = vmatpush1.bf16.msra.mxu0 %v22794_v57  ;;  %v22870_v57 = vld [vmem:[%s29454_s7 + $0x930] ss:$24 sps:$4 sm:$0xff]  }
 0x793   : > { %12892 = vmatprep.subr.bf16.mxu0 %v22800_v47  ;;  %12779 = vmatprep.mubr.bf16.mxu0 %v29511_v55  ;;  %v22873_v47 = vld [vmem:[%s29454_s7 + $0x960] ss:$24 sps:$4 sm:$0xff]  }
 0x794   : > { %14077 = vmatprep.mubr.bf16.mxu1 %v29511_v55 }
 0x796   : > { %12893 = vmatpush1.bf16.msra.mxu0 %v22798_v9  ;;  %v22876_v9 = vld [vmem:[%s29454_s7 + $0x990] ss:$24 sps:$4 sm:$0xff]  }
 0x797   : > { %12894 = vmatprep.subr.bf16.mxu0 %v22803_v5  ;;  %v22881_v5 = vld [vmem:[%s29454_s7 + $0x9c4] ss:$24 sps:$4 sm:$0xff]  }
 0x799   : > { %12780 = vmatmul.mubr.bf16.gmra.mrb[56].mxu0 %v27050_v29 }
 0x79a   : > { %14078 = vmatmul.mubr.bf16.gmra.mrb[64].mxu1 %v27334_v31  ;;  %12895 = vmatpush1.bf16.msra.mxu0 %v22801_v44  ;;  %v22879_v44 = vld [vmem:[%s29454_s7 + $0x9c0] ss:$24 sps:$4 sm:$0xff]  }
 0x79b   : > { %12922 = vmatprep.mubr.bf16.mxu0 %v26530_v32  ;;  %12896 = vmatprep.subr.bf16.mxu0 %v22806_v24  ;;  %v22810_v32 = vld [vmem:[%s29454_s7 + $0x100] ss:$24 sps:$4 sm:$0xff]   ;;  %v22882_v24 = vld [vmem:[%s29454_s7 + $0x9f0] ss:$24 sps:$4 sm:$0xff]  }
 0x79e   : > { %12897 = vmatpush1.bf16.msra.mxu0 %v22804_v53  ;;  %v22887_v53 = vld [vmem:[%s29454_s7 + $0xa24] ss:$24 sps:$4 sm:$0xff]  }
 0x79f   : > { %12898 = vmatprep.subr.bf16.mxu0 %v22809_v50  ;;  %v22885_v50 = vld [vmem:[%s29454_s7 + $0xa20] ss:$24 sps:$4 sm:$0xff]  }
 0x7a2   : > { %12899 = vmatpush1.bf16.msra.mxu0 %v22807_v34  ;;  %v22890_v34 = vld [vmem:[%s29454_s7 + $0xa54] ss:$24 sps:$4 sm:$0xff]  }
 0x7a3   : > { %12900 = vmatprep.subr.bf16.mxu0 %v22812_v1  ;;  %v22888_v1 = vld [vmem:[%s29454_s7 + $0xa50] ss:$24 sps:$4 sm:$0xff]  }
 0x7a6   : > { %12901 = vmatpush1.bf16.msra.mxu0 %v22810_v32  ;;  %v22893_v32 = vld [vmem:[%s29454_s7 + $0xa84] ss:$24 sps:$4 sm:$0xff]  }
 0x7a7   : > { %12902 = vmatprep.subr.bf16.mxu0 %v22815_v14  ;;  %v22891_v14 = vld [vmem:[%s29454_s7 + $0xa80] ss:$24 sps:$4 sm:$0xff]  }
 0x7aa   : > { %12903 = vmatpush1.bf16.msra.mxu0 %v22813_v27  ;;  %v22896_v27 = vld [vmem:[%s29454_s7 + $0xab4] ss:$24 sps:$4 sm:$0xff]  }
 0x7ab   : > { %12904 = vmatprep.subr.bf16.mxu0 %v22818_v23  ;;  %v22894_v23 = vld [vmem:[%s29454_s7 + $0xab0] ss:$24 sps:$4 sm:$0xff]  }
 0x7ae   : > { %12905 = vmatpush1.bf16.msra.mxu0 %v22816_v58  ;;  %v22899_v58 = vld [vmem:[%s29454_s7 + $0xae4] ss:$24 sps:$4 sm:$0xff]  }
 0x7af   : > { %12906 = vmatprep.subr.bf16.mxu0 %v22821_v18  ;;  %v22897_v18 = vld [vmem:[%s29454_s7 + $0xae0] ss:$24 sps:$4 sm:$0xff]  }
 0x7b2   : > { %12907 = vmatpush1.bf16.msra.mxu0 %v22819_v35  ;;  %v22902_v35 = vld [vmem:[%s29454_s7 + $0xb14] ss:$24 sps:$4 sm:$0xff]  }
 0x7b3   : > { %12908 = vmatprep.subr.bf16.mxu0 %v22824_v6  ;;  %v22900_v6 = vld [vmem:[%s29454_s7 + $0xb10] ss:$24 sps:$4 sm:$0xff]  }
 0x7b6   : > { %12909 = vmatpush1.bf16.msra.mxu0 %v22822_v17  ;;  %v22905_v17 = vld [vmem:[%s29454_s7 + $0xb44] ss:$24 sps:$4 sm:$0xff]  }
 0x7b7   : > { %12910 = vmatprep.subr.bf16.mxu0 %v22827_v38  ;;  %v22903_v38 = vld [vmem:[%s29454_s7 + $0xb40] ss:$24 sps:$4 sm:$0xff]  }
 0x7ba   : > { %12911 = vmatpush1.bf16.msra.mxu0 %v22825_v19  ;;  %v22908_v19 = vld [vmem:[%s29454_s7 + $0xb74] ss:$24 sps:$4 sm:$0xff]  }
 0x7bb   : > { %12912 = vmatprep.subr.bf16.mxu0 %v22830_v43  ;;  %v22906_v43 = vld [vmem:[%s29454_s7 + $0xb70] ss:$24 sps:$4 sm:$0xff]  }
 0x7be   : > { %12913 = vmatpush1.bf16.msra.mxu0 %v22828_v15  ;;  %v22911_v15 = vld [vmem:[%s29454_s7 + $0xba4] ss:$24 sps:$4 sm:$0xff]  }
 0x7bf   : > { %12914 = vmatprep.subr.bf16.mxu0 %v22833_v49  ;;  %v22909_v49 = vld [vmem:[%s29454_s7 + $0xba0] ss:$24 sps:$4 sm:$0xff]  }
 0x7c2   : > { %12915 = vmatpush1.bf16.msra.mxu0 %v22831_v10  ;;  %v22914_v10 = vld [vmem:[%s29454_s7 + $0xbd4] ss:$24 sps:$4 sm:$0xff]  }
 0x7c3   : > { %12916 = vmatprep.subr.bf16.mxu0 %v22836_v3  ;;  %v22912_v3 = vld [vmem:[%s29454_s7 + $0xbd0] ss:$24 sps:$4 sm:$0xff]  }
 0x7c6   : > { %12917 = vmatpush1.bf16.msra.mxu0 %v22834_v8  ;;  %v22917_v8 = vld [vmem:[%s29454_s7 + $0xc04] ss:$24 sps:$4 sm:$0xff]  }
 0x7c7   : > { %12918 = vmatprep.subr.bf16.mxu0 %v22839_v11  ;;  %v22915_v11 = vld [vmem:[%s29454_s7 + $0xc00] ss:$24 sps:$4 sm:$0xff]  }
 0x7ca   : > { %12919 = vmatpush1.bf16.msra.mxu0 %v22837_v48  ;;  %v22920_v48 = vld [vmem:[%s29454_s7 + $0xc34] ss:$24 sps:$4 sm:$0xff]  }
 0x7cb   : > { %12920 = vmatprep.subr.bf16.mxu0 %v22842_v33  ;;  %v22918_v33 = vld [vmem:[%s29454_s7 + $0xc30] ss:$24 sps:$4 sm:$0xff]  }
 0x7ce   : > { %12921 = vmatpush1.bf16.msra.mxu0 %v22840_v12  ;;  %v22923_v12 = vld [vmem:[%s29454_s7 + $0xc64] ss:$24 sps:$4 sm:$0xff]  }
 0x7cf   : > { %12941 = vmatprep.subr.bf16.mxu0 %v22845_v21  ;;  %v22921_v21 = vld [vmem:[%s29454_s7 + $0xc60] ss:$24 sps:$4 sm:$0xff]  }
 0x7d1   : > { %12923 = vmatmul.mubr.bf16.vlgmr.msra.gmra.mrb[60].mxu0 %v26539_v62  ;;  %v22854_v62 = vld [vmem:[%s29454_s7 + $0x3a4] ss:$24 sps:$4 sm:$0xff]  }
 0x7d2   : > { %12932 = vmatprep.mubr.bf16.mxu0 %v26909_v28  ;;  %12942 = vmatpush1.bf16.msra.mxu0 %v22843_v60  ;;  %v22852_v28 = vld [vmem:[%s29454_s7 + $0x3a0] ss:$24 sps:$4 sm:$0xff]   ;;  %v22926_v60 = vld [vmem:[%s29454_s7 + $0xc94] ss:$24 sps:$4 sm:$0xff]  }
 0x7d3   : > { %12943 = vmatprep.subr.bf16.mxu0 %v22848_v39  ;;  %v22924_v39 = vld [vmem:[%s29454_s7 + $0xc90] ss:$24 sps:$4 sm:$0xff]  }
 0x7d6   : > { %12944 = vmatpush1.bf16.msra.mxu0 %v22846_v42  ;;  %v22929_v42 = vld [vmem:[%s29454_s7 + $0xcc4] ss:$24 sps:$4 sm:$0xff]  }
 0x7d7   : > { %12945 = vmatprep.subr.bf16.mxu0 %v22851_v4  ;;  %v22927_v4 = vld [vmem:[%s29454_s7 + $0xcc0] ss:$24 sps:$4 sm:$0xff]  }
 0x7d9   : > { %12933 = vmatmul.mubr.bf16.gmra.mrb[64].mxu0 %v26932_v7  ;;  %v22860_v7 = vld [vmem:[%s29454_s7 + $0x404] ss:$24 sps:$4 sm:$0xff]  }
 0x7da   : > { %12946 = vmatpush1.bf16.msra.mxu0 %v22849_v52  ;;  %12973 = vmatprep.mubr.bf16.mxu0 %v29511_v55  ;;  %v22932_v52 = vld [vmem:[%s29454_s7 + $0xcf4] ss:$24 sps:$4 sm:$0xff]  }
 0x7db   : > { %12947 = vmatprep.subr.bf16.mxu0 %v22854_v62  ;;  %v22930_v62 = vld [vmem:[%s29454_s7 + $0xcf0] ss:$24 sps:$4 sm:$0xff]  }
 0x7de   : > { %12948 = vmatpush1.bf16.msra.mxu0 %v22852_v28  ;;  %v22935_v28 = vld [vmem:[%s29454_s7 + $0xd24] ss:$24 sps:$4 sm:$0xff]  }
 0x7df   : > { %12949 = vmatprep.subr.bf16.mxu0 %v22857_v51  ;;  %v22933_v51 = vld [vmem:[%s29454_s7 + $0xd20] ss:$24 sps:$4 sm:$0xff]  }
 0x7e2   : > { %12950 = vmatpush1.bf16.msra.mxu0 %v22855_v54  ;;  %v22938_v54 = vld [vmem:[%s29454_s7 + $0xd54] ss:$24 sps:$4 sm:$0xff]  }
 0x7e3   : > { %12951 = vmatprep.subr.bf16.mxu0 %v22860_v7  ;;  %v22936_v7 = vld [vmem:[%s29454_s7 + $0xd50] ss:$24 sps:$4 sm:$0xff]  }
 0x7e6   : > { %12952 = vmatpush1.bf16.msra.mxu0 %v22858_v22  ;;  %v22941_v22 = vld [vmem:[%s29454_s7 + $0x914] ss:$24 sps:$4 sm:$0xff]  }
 0x7e7   : > { %12953 = vmatprep.subr.bf16.mxu0 %v22863_v0  ;;  %v22939_v0 = vld [vmem:[%s29454_s7 + $0x910] ss:$24 sps:$4 sm:$0xff]  }
 0x7ea   : > { %12954 = vmatpush1.bf16.msra.mxu0 %v22861_v16  ;;  %v22944_v16 = vld [vmem:[%s29454_s7 + $0x944] ss:$24 sps:$4 sm:$0xff]  }
 0x7eb   : > { %12955 = vmatprep.subr.bf16.mxu0 %v22866_v26  ;;  %v22942_v26 = vld [vmem:[%s29454_s7 + $0x940] ss:$24 sps:$4 sm:$0xff]  }
 0x7ee   : > { %12956 = vmatpush1.bf16.msra.mxu0 %v22864_v2  ;;  %v22947_v2 = vld [vmem:[%s29454_s7 + $0x974] ss:$24 sps:$4 sm:$0xff]  }
 0x7ef   : > { %13882 = vmatprep.subr.bf16.mxu0 %v22869_v40  ;;  %v22945_v40 = vld [vmem:[%s29454_s7 + $0x970] ss:$24 sps:$4 sm:$0xff]  }
 0x7f1   : > { %12974 = vmatmul.mubr.bf16.vlgmr.msra.gmra.mrb[60].mxu0 %v26656_v45  ;;  %v22878_v45 = vld [vmem:[%s29454_s7 + $0x994] ss:$24 sps:$4 sm:$0xff]  }
 0x7f2   : > { %13883 = vmatpush1.bf16.msra.mxu0 %v22867_v46  ;;  %12983 = vmatprep.mubr.bf16.mxu0 %v29511_v55  ;;  %v22950_v46 = vld [vmem:[%s29454_s7 + $0x9a4] ss:$24 sps:$4 sm:$0xff]  }
 0x7f3   : > { %13884 = vmatprep.subr.bf16.mxu0 %v22872_v61  ;;  %v22948_v61 = vld [vmem:[%s29454_s7 + $0x9a0] ss:$24 sps:$4 sm:$0xff]  }
 0x7f6   : > { %13885 = vmatpush1.bf16.msra.mxu0 %v22870_v57  ;;  %v22953_v57 = vld [vmem:[%s29454_s7 + $0x9d4] ss:$24 sps:$4 sm:$0xff]  }
 0x7f7   : > { %13886 = vmatprep.subr.bf16.mxu0 %v22875_v25  ;;  %v22951_v25 = vld [vmem:[%s29454_s7 + $0x9d0] ss:$24 sps:$4 sm:$0xff]  }
 0x7f9   : > { %12984 = vmatmul.mubr.bf16.gmra.mrb[64].mxu0 %v27050_v29  ;;  %v22884_v29 = vld [vmem:[%s29454_s7 + $0x9f4] ss:$24 sps:$4 sm:$0xff]  }
 0x7fa   : > { %13887 = vmatpush1.bf16.msra.mxu0 %v22873_v47  ;;  %13914 = vmatprep.mubr.bf16.mxu0 %v27066_v59  ;;  %v27681_v47 = vld [vmem:[%s29455_s8] sm:$0x3f] }
 0x7fb   : > { %13888 = vmatprep.subr.bf16.mxu0 %v22878_v45  ;;  %v22956_v45 = vld [vmem:[%s29454_s7 + $0xa04] ss:$24 sps:$4 sm:$0xff]  }
 0x7fe   : > { %13889 = vmatpush1.bf16.msra.mxu0 %v22876_v9  ;;  %v27690_v9 = vld [vmem:[%s29456_s9] sm:$0x3f] }
 0x7ff   : > { %13890 = vmatprep.subr.bf16.mxu0 %v22881_v5  ;;  %v14219_v5 = vrot.slane %v27681_v47, %v25738_v41 }
 0x802   : > { %13891 = vmatpush1.bf16.msra.mxu0 %v22879_v44  ;;  %v22954_v44 = vld [vmem:[%s29454_s7 + $0xa00] ss:$24 sps:$4 sm:$0xff]  }
 0x803   : > { %13892 = vmatprep.subr.bf16.mxu0 %v22884_v29 }
 0x806   : > { %13893 = vmatpush1.bf16.msra.mxu0 %v22882_v24  ;;  %v22959_v24 = vld [vmem:[%s29454_s7 + $0xa34] ss:$24 sps:$4 sm:$0xff]  }
 0x807   : > { %13894 = vmatprep.subr.bf16.mxu0 %v22887_v53  ;;  %v14269_v53 = vrot.slane %v27690_v9, %v25738_v41 }
 0x80a   : > { %13895 = vmatpush1.bf16.msra.mxu0 %v22885_v50 }
 0x80b   : > { %13896 = vmatprep.subr.bf16.mxu0 %v22890_v34 }
 0x80e   : > { %13897 = vmatpush1.bf16.msra.mxu0 %v22888_v1 }
 0x80f   : > { %13898 = vmatprep.subr.bf16.mxu0 %v22893_v32 }
 0x812   : > { %13899 = vmatpush1.bf16.msra.mxu0 %v22891_v14  ;;  %v22957_v14 = vld [vmem:[%s29454_s7 + $0xa30] ss:$24 sps:$4 sm:$0xff]  }
 0x813   : > { %13900 = vmatprep.subr.bf16.mxu0 %v22896_v27 }
 0x816   : > { %13901 = vmatpush1.bf16.msra.mxu0 %v22894_v23 }
 0x817   : > { %13902 = vmatprep.subr.bf16.mxu0 %v22899_v58  ;;  %v22962_v58 = vld [vmem:[%s29454_s7 + $0xa64] ss:$24 sps:$4 sm:$0xff]  }
 0x81a   : > { %13903 = vmatpush1.bf16.msra.mxu0 %v22897_v18 }
 0x81b   : > { %13904 = vmatprep.subr.bf16.mxu0 %v22902_v35 }
 0x81e   : > { %13905 = vmatpush1.bf16.msra.mxu0 %v22900_v6 }
 0x81f   : > { %13906 = vmatprep.subr.bf16.mxu0 %v22905_v17 }
 0x822   : > { %13907 = vmatpush1.bf16.msra.mxu0 %v22903_v38 }
 0x823   : > { %13908 = vmatprep.subr.bf16.mxu0 %v22908_v19 }
 0x826   : > { %13909 = vmatpush1.bf16.msra.mxu0 %v22906_v43  ;;  %v22960_v43 = vld [vmem:[%s29454_s7 + $0xa60] ss:$24 sps:$4 sm:$0xff]  }
 0x827   : > { %13910 = vmatprep.subr.bf16.mxu0 %v22911_v15 }
 0x82a   : > { %13911 = vmatpush1.bf16.msra.mxu0 %v22909_v49 }
 0x82b   : > { %13912 = vmatprep.subr.bf16.mxu0 %v22914_v10  ;;  %v22965_v10 = vld [vmem:[%s29454_s7 + $0xa94] ss:$24 sps:$4 sm:$0xff]  }
 0x82e   : > { %13913 = vmatpush1.bf16.msra.mxu0 %v22912_v3 }
 0x82f   : > { %13933 = vmatprep.subr.bf16.mxu0 %v22917_v8 }
 0x831   : > { %13915 = vmatmul.mubr.bf16.vlgmr.msra.gmra.mrb[52].mxu0 %v27239_v36 }
 0x832   : > { %13924 = vmatprep.mubr.bf16.mxu0 %v27048_v63  ;;  %13934 = vmatpush1.bf16.msra.mxu0 %v22915_v11 }
 0x833   : > { %13935 = vmatprep.subr.bf16.mxu0 %v22920_v48 }
 0x836   : > { %13936 = vmatpush1.bf16.msra.mxu0 %v22918_v33 }
 0x837   : > { %13937 = vmatprep.subr.bf16.mxu0 %v22923_v12 }
 0x839   : > { %13925 = vmatmul.mubr.bf16.gmra.mrb[56].mxu0 %v27225_v20 }
 0x83a   : > { %13938 = vmatpush1.bf16.msra.mxu0 %v22921_v21  ;;  %13965 = vmatprep.mubr.bf16.mxu0 %v29511_v55 }
 0x83b   : > { %13939 = vmatprep.subr.bf16.mxu0 %v22926_v60  ;;  %v22963_v60 = vld [vmem:[%s29454_s7 + $0xa90] ss:$24 sps:$4 sm:$0xff]  }
 0x83e   : > { %13940 = vmatpush1.bf16.msra.mxu0 %v22924_v39 }
 0x83f   : > { %13941 = vmatprep.subr.bf16.mxu0 %v22929_v42 }
 0x842   : > { %13942 = vmatpush1.bf16.msra.mxu0 %v22927_v4 }
 0x843   : > { %13943 = vmatprep.subr.bf16.mxu0 %v22932_v52  ;;  %v22968_v52 = vld [vmem:[%s29454_s7 + $0xac4] ss:$24 sps:$4 sm:$0xff]  }
 0x846   : > { %13944 = vmatpush1.bf16.msra.mxu0 %v22930_v62 }
 0x847   : > { %13945 = vmatprep.subr.bf16.mxu0 %v22935_v28 }
 0x84a   : > { %13946 = vmatpush1.bf16.msra.mxu0 %v22933_v51 }
 0x84b   : > { %13947 = vmatprep.subr.bf16.mxu0 %v22938_v54 }
 0x84e   : > { %13948 = vmatpush1.bf16.msra.mxu0 %v22936_v7 }
 0x84f   : > { %14086 = vmatprep.subr.bf16.mxu0 %v22941_v22  ;;  %v22966_v22 = vld [vmem:[%s29454_s7 + $0xac0] ss:$24 sps:$4 sm:$0xff]  }
 0x851   : > { %13966 = vmatmul.mubr.bf16.vlgmr.msra.gmra.mrb[52].mxu0 %v27345_v30 }
 0x852   : > { %14087 = vmatpush1.bf16.msra.mxu0 %v22939_v0  ;;  %13975 = vmatprep.mubr.bf16.mxu0 %v29511_v55  ;;  %v22971_v0 = vld [vmem:[%s29454_s7 + $0xaf4] ss:$24 sps:$4 sm:$0xff]  }
 0x853   : > { %14088 = vmatprep.subr.bf16.mxu0 %v22944_v16 }
 0x856   : > { %14089 = vmatpush1.bf16.msra.mxu0 %v22942_v26 }
 0x857   : > { %14090 = vmatprep.subr.bf16.mxu0 %v22947_v2 }
 0x859   : > { %13976 = vmatmul.mubr.bf16.gmra.mrb[56].mxu0 %v27334_v31 }
 0x85a   : > { %14091 = vmatpush1.bf16.msra.mxu0 %v22945_v40  ;;  %14118 = vmatprep.mubr.bf16.mxu0 %v27066_v59  ;;  %v14222_v59 = vsub.s32 3, %v29529_v37  ;;  %v22969_v40 = vld [vmem:[%s29454_s7 + $0xaf0] ss:$24 sps:$4 sm:$0xff]  }
 0x85b   : > { %14092 = vmatprep.subr.bf16.mxu0 %v22950_v46  ;;  %v22974_v46 = vld [vmem:[%s29454_s7 + $0xb24] ss:$24 sps:$4 sm:$0xff]  }
 0x85c   : > { %v14223_v29 = vrot.slane %v27681_v47, %v14222_v59  ;;  %v14273_v34 = vrot.slane %v27690_v9, %v14222_v59  ;;  %v22980_v59 = vld [vmem:[%s29454_s7 + $0xb84] ss:$24 sps:$4 sm:$0xff]  }
 0x85e   : > { %14093 = vmatpush1.bf16.msra.mxu0 %v22948_v61  ;;  %v22972_v61 = vld [vmem:[%s29454_s7 + $0xb20] ss:$24 sps:$4 sm:$0xff]  }
 0x85f   : > { %14094 = vmatprep.subr.bf16.mxu0 %v22953_v57  ;;  %v22977_v57 = vld [vmem:[%s29454_s7 + $0xb54] ss:$24 sps:$4 sm:$0xff]  }
 0x862   : > { %14095 = vmatpush1.bf16.msra.mxu0 %v22951_v25  ;;  %v22975_v25 = vld [vmem:[%s29454_s7 + $0xb50] ss:$24 sps:$4 sm:$0xff]  }
 0x863   : > { %14096 = vmatprep.subr.bf16.mxu0 %v22956_v45  ;;  %v22978_v45 = vld [vmem:[%s29454_s7 + $0xb80] ss:$24 sps:$4 sm:$0xff]  }
 0x865   : > { %v14069_v50 = vpop.f32.mrb[60].mxu1 }
 0x866   : > { %v14240_v1 = vmul.f32 %v14219_v5, %v14069_v50  ;;  %v14071_v32 = vpop.f32.mrb[61].mxu1  ;;  %14097 = vmatpush1.bf16.msra.mxu0 %v22954_v44  ;;  %v22981_v44 = vld [vmem:[%s29454_s7 + $0xbb0] ss:$24 sps:$4 sm:$0xff]  }
 0x867   : > { %v14241_v27 = vmul.f32 %v14223_v29, %v14071_v32  ;;  %v14073_v23 = vpop.f32.mrb[62].mxu1  ;;  %14098 = vmatprep.subr.bf16.mxu0 %v22959_v24  ;;  %v22984_v24 = vld [vmem:[%s29454_s7 + $0xbe0] ss:$24 sps:$4 sm:$0xff]   ;;  %v22987_v50 = vld [vmem:[%s29454_s7 + $0xc10] ss:$24 sps:$4 sm:$0xff]  }
 0x868   : > { %v14290_v18 = vadd.f32 %v14269_v53, %v14240_v1  ;;  %v14246_v35 = vmul.f32 %v14219_v5, %v14073_v23  ;;  %v14075_v41 = vpop.f32.mrb[63].mxu1  ;;  %v22990_v1 = vld [vmem:[%s29454_s7 + $0xc40] ss:$24 sps:$4 sm:$0xff]   ;;  %v22995_v32 = vld [vmem:[%s29454_s7 + $0xc74] ss:$24 sps:$4 sm:$0xff]  }
 0x869   : > { %v14291_v6 = vadd.f32 %v14273_v34, %v14241_v27  ;;  %v14247_v17 = vmul.f32 %v14223_v29, %v14075_v41  ;;  %v23001_v27 = vld [vmem:[%s29454_s7 + $0xcd4] ss:$24 sps:$4 sm:$0xff]   ;;  %v22999_v23 = vld [vmem:[%s29454_s7 + $0xcd0] ss:$24 sps:$4 sm:$0xff]   ;;  %v23010_v41 = vld [vmem:[%s29454_s7 + $0xd64] ss:$24 sps:$4 sm:$0xff]  }
 0x86a   : > { %v14308_v38 = vmax.f32 %v14290_v18, 0.0  ;;  %v14296_v19 = vadd.f32 %v14269_v53, %v14246_v35  ;;  %14099 = vmatpush1.bf16.msra.mxu0 %v22957_v14  ;;  %v22993_v14 = vld [vmem:[%s29454_s7 + $0xc70] ss:$24 sps:$4 sm:$0xff]   ;;  %v23007_v18 = vld [vmem:[%s29454_s7 + $0xd34] ss:$24 sps:$4 sm:$0xff]  }
 0x86b   : > { %v14309_v15 = vmax.f32 %v14291_v6, 0.0  ;;  %v14297_v49 = vadd.f32 %v14273_v34, %v14247_v17  ;;  %14100 = vmatprep.subr.bf16.mxu0 %v22962_v58  ;;  %v23002_v58 = vld [vmem:[%s29454_s7 + $0xd00] ss:$24 sps:$4 sm:$0xff]   ;;  %v23005_v35 = vld [vmem:[%s29454_s7 + $0xd30] ss:$24 sps:$4 sm:$0xff]  }
 0x86c   : > { %v14314_v3 = vmax.f32 %v14296_v19, 0.0  ;;  %v23008_v6 = vld [vmem:[%s29454_s7 + $0xd60] ss:$24 sps:$4 sm:$0xff]  }
 0x86d   : > { %v27716_v8 = vcombine.low %v14308_v38, %v14309_v15  ;;  %v27718_v11 = vcombine.high %v14308_v38, %v14309_v15  ;;  %v14315_v48 = vmax.f32 %v14297_v49, 0.0  ;;  %v14079_v33 = vpop.f32.mrb[64].mxu1  ;;  %v23011_v17 = vld [vmem:[%s29457_s10 + $0x440] sm:$0xff]   ;;  %v23018_v15 = vld [vmem:[%s29457_s10 + $0x188] sm:$0xff]   ;;  %v23019_v49 = vld [vmem:[%s29457_s10 + $0x450] sm:$0xff]  }
 0x86e   : > { %v14252_v12 = vmul.f32 %v14219_v5, %v14079_v33  ;;  %v14081_v21 = vpop.f32.mrb[65].mxu1  ;;  %14101 = vmatpush1.bf16.msra.mxu0 %v22960_v43  ;;  %v22983_v5 = vld [vmem:[%s29454_s7 + $0xbb4] ss:$24 sps:$4 sm:$0xff]   ;;  %v23012_v38 = vld [vmem:[%s29457_s10 + $0x400] sm:$0xff]   ;;  %v23023_v33 = vld [vmem:[%s29457_s10 + $0x458] sm:$0xff]  }
 0x86f   : > { %v27723_v39 = vcombine.low %v14314_v3, %v14315_v48  ;;  %v27725_v42 = vcombine.high %v14314_v3, %v14315_v48  ;;  %v14083_v4 = vpop.f32.mrb[66].mxu1  ;;  %14102 = vmatprep.subr.bf16.mxu0 %v22965_v10  ;;  %v14253_v28 = vmul.f32 %v14223_v29, %v14081_v21  ;;  %v22986_v29 = vld [vmem:[%s29454_s7 + $0xbe4] ss:$24 sps:$4 sm:$0xff]   ;;  %v23017_v43 = vld [vmem:[%s29457_s10 + $0x1c8] sm:$0xff]   ;;  %v23020_v10 = vld [vmem:[%s29457_s10 + $0x410] sm:$0xff]  }
 0x870   : > { %v14302_v62 = vadd.f32 %v14269_v53, %v14252_v12  ;;  %v14084_v51 = vpop.f32.mrb[67].mxu1  ;;  %v22989_v53 = vld [vmem:[%s29454_s7 + $0xc14] ss:$24 sps:$4 sm:$0xff]   ;;  %v23013_v19 = vld [vmem:[%s29457_s10 + $0x1c0] sm:$0xff]   ;;  %v23024_v12 = vld [vmem:[%s29457_s10 + $0x418] sm:$0xff]   ;;  %v14211_v4 = vrot.slane %v27681_v47, %v29527_v13 }
 0x871   : > { %v14303_v7 = vadd.f32 %v14273_v34, %v14253_v28  ;;  %v22992_v34 = vld [vmem:[%s29454_s7 + $0xc44] ss:$24 sps:$4 sm:$0xff]   ;;  %21360 = vmatprep.subr.bf16.mxu1 %v23013_v19  ;;  %v23021_v3 = vld [vmem:[%s29457_s10 + $0x1d0] sm:$0xff]   ;;  %v27939_v19 = vrot.slane %v27718_v11, %v23808_v56  ;;  %v27952_v11 = vrot.slane %v27723_v39, %v23808_v56 }
 0x872   : > { %v14320_v54 = vmax.f32 %v14302_v62, 0.0  ;;  %14103 = vmatpush1.bf16.msra.mxu0 %v22963_v60  ;;  %v23022_v48 = vld [vmem:[%s29457_s10 + $0x190] sm:$0xff]   ;;  %v23025_v21 = vld [vmem:[%s29457_s10 + $0x1d8] sm:$0xff]   ;;  %v23028_v51 = vld [vmem:[%s29457_s10 + $0x420] sm:$0xff]  }
 0x873   : > { %14104 = vmatprep.subr.bf16.mxu0 %v22968_v52  ;;  %v14321_v16 = vmax.f32 %v14303_v7, 0.0  ;;  %v23026_v60 = vld [vmem:[%s29457_s10 + $0x198] sm:$0xff]   ;;  %v23027_v52 = vld [vmem:[%s29457_s10 + $0x460] sm:$0xff]  }
 0x874   : > { %v29544_v62 = vld [vmem:[#allocation9_spill] sm:$0xff] }
 0x875   : > { %v27736_v26 = vcombine.low %v14320_v54, %v14321_v16  ;;  %v27738_v2 = vcombine.high %v14320_v54, %v14321_v16  ;;  %v14215_v28 = vrot.slane %v27681_v47, %v29544_v62  ;;  %v14261_v54 = vrot.slane %v27690_v9, %v29527_v13  ;;  %v23029_v7 = vld [vmem:[%s29457_s10 + $0x1e0] sm:$0xff]   ;;  %v23031_v13 = vld [vmem:[%s29457_s10 + $0x468] sm:$0xff]  }
 0x876   : > { %14105 = vmatpush1.bf16.msra.mxu0 %v22966_v22  ;;  %v23030_v16 = vld [vmem:[%s29457_s10 + $0x1a0] sm:$0xff]  }
 0x877   : > { %14106 = vmatprep.subr.bf16.mxu0 %v22971_v0  ;;  %v27893_v0 = vrot.slane %v27690_v9, %v29544_v62  ;;  %v23043_v39 = vld [vmem:[%s29457_s10 + $0x540] sm:$0xff]  }
 0x87a   : > { %14107 = vmatpush1.bf16.msra.mxu0 %v22969_v40 }
 0x87b   : > { %14108 = vmatprep.subr.bf16.mxu0 %v22974_v46 }
 0x87e   : > { %14109 = vmatpush1.bf16.msra.mxu0 %v22972_v61 }
 0x87f   : > { %14110 = vmatprep.subr.bf16.mxu0 %v22977_v57 }
 0x882   : > { %14111 = vmatpush1.bf16.msra.mxu0 %v22975_v25  ;;  %v23032_v25 = vld [vmem:[%s29457_s10 + $0x428] sm:$0xff]  }
 0x883   : > { %14112 = vmatprep.subr.bf16.mxu0 %v22980_v59 }
 0x886   : > { %14113 = vmatpush1.bf16.msra.mxu0 %v22978_v45 }
 0x887   : > { %14114 = vmatprep.subr.bf16.mxu0 %v22983_v5 }
 0x88a   : > { %14115 = vmatpush1.bf16.msra.mxu0 %v22981_v44  ;;  %v23033_v44 = vld [vmem:[%s29457_s10 + $0x1e8] sm:$0xff]  }
 0x88b   : > { %14116 = vmatprep.subr.bf16.mxu0 %v22986_v29  ;;  %v23034_v29 = vld [vmem:[%s29457_s10 + $0x1a8] sm:$0xff]  }
 0x88e   : > { %14117 = vmatpush1.bf16.msra.mxu0 %v22984_v24  ;;  %v23035_v24 = vld [vmem:[%s29457_s10 + $0x470] sm:$0xff]  }
 0x88f   : > { %14137 = vmatprep.subr.bf16.mxu0 %v22989_v53 }
 0x891   : > { %14119 = vmatmul.mubr.bf16.vlgmr.msra.gmra.mrb[60].mxu0 %v27239_v36  ;;  %v22996_v36 = vld [vmem:[%s29454_s7 + $0xca0] ss:$24 sps:$4 sm:$0xff]  }
 0x892   : > { %14128 = vmatprep.mubr.bf16.mxu0 %v27048_v63  ;;  %14138 = vmatpush1.bf16.msra.mxu0 %v22987_v50  ;;  %v22998_v63 = vld [vmem:[%s29454_s7 + $0xca4] ss:$24 sps:$4 sm:$0xff]  }
 0x893   : > { %14139 = vmatprep.subr.bf16.mxu0 %v22992_v34  ;;  %v23036_v34 = vld [vmem:[%s29457_s10 + $0x430] sm:$0xff]  }
 0x896   : > { %14140 = vmatpush1.bf16.msra.mxu0 %v22990_v1  ;;  %v23037_v1 = vld [vmem:[%s29457_s10 + $0x1f0] sm:$0xff]  }
 0x897   : > { %14141 = vmatprep.subr.bf16.mxu0 %v22995_v32 }
 0x899   : > { %14129 = vmatmul.mubr.bf16.gmra.mrb[64].mxu0 %v27225_v20  ;;  %v23004_v20 = vld [vmem:[%s29454_s7 + $0xd04] ss:$24 sps:$4 sm:$0xff]  }
 0x89a   : > { %14142 = vmatpush1.bf16.msra.mxu0 %v22993_v14  ;;  %14169 = vmatprep.mubr.bf16.mxu0 %v29511_v55 }
 0x89b   : > { %14143 = vmatprep.subr.bf16.mxu0 %v22998_v63  ;;  %v23039_v63 = vld [vmem:[%s29457_s10 + $0x478] sm:$0xff]  }
 0x89e   : > { %14144 = vmatpush1.bf16.msra.mxu0 %v22996_v36 }
 0x89f   : > { %14145 = vmatprep.subr.bf16.mxu0 %v23001_v27 }
 0x8a2   : > { %14146 = vmatpush1.bf16.msra.mxu0 %v22999_v23  ;;  %v23038_v23 = vld [vmem:[%s29457_s10 + $0x1b0] sm:$0xff]  }
 0x8a3   : > { %14147 = vmatprep.subr.bf16.mxu0 %v23004_v20 }
 0x8a6   : > { %14148 = vmatpush1.bf16.msra.mxu0 %v23002_v58  ;;  %v23041_v58 = vld [vmem:[%s29457_s10 + $0x1f8] sm:$0xff]  }
 0x8a7   : > { %14149 = vmatprep.subr.bf16.mxu0 %v23007_v18 }
 0x8aa   : > { %14150 = vmatpush1.bf16.msra.mxu0 %v23005_v35 }
 0x8ab   : > { %14151 = vmatprep.subr.bf16.mxu0 %v23010_v41 }
 0x8ae   : > { %14152 = vmatpush1.bf16.msra.mxu0 %v23008_v6 }
 0x8af   : > { %21536 = vmatprep.subr.bf16.mxu0 %v23011_v17  ;;  %v23040_v17 = vld [vmem:[%s29457_s10 + $0x438] sm:$0xff]  }
 0x8b1   : > { %14170 = vmatmul.mubr.bf16.vlgmr.msra.gmra.mrb[60].mxu0 %v27345_v30  ;;  %v23016_v30 = vld [vmem:[%s29457_s10 + $0x408] sm:$0xff]  }
 0x8b2   : > { %14179 = vmatprep.mubr.bf16.mxu0 %v29511_v55  ;;  %21537 = vmatpush3.bf16.msra.mxu0 %v23012_v38  ;;  %v23014_v55 = vld [vmem:[%s29457_s10 + $0x180] sm:$0xff]   ;;  %v27935_v38 = vrot.slane %v27716_v8, %v23808_v56  ;;  %v23042_v8 = vld [vmem:[%s29457_s10 + $0x1b8] sm:$0xff]  }
 0x8b3   : > { %21361 = vmatpush3.bf16.msra.mxu1 %v23014_v55 }
 0x8b4   : > { %21362 = vmatprep.subr.bf16.mxu1 %v23017_v43 }
 0x8b7   : > { %21363 = vmatpush3.bf16.msra.mxu1 %v23018_v15 }
 0x8b8   : > { %21364 = vmatprep.subr.bf16.mxu1 %v23021_v3 }
 0x8b9   : > { %14180 = vmatmul.mubr.bf16.gmra.mrb[64].mxu0 %v27334_v31  ;;  %v23015_v31 = vld [vmem:[%s29457_s10 + $0x448] sm:$0xff]  }
 0x8ba   : > { %21538 = vmatprep.subr.bf16.mxu0 %v23015_v31 }
 0x8bb   : > { %21539 = vmatpush3.bf16.msra.mxu0 %v23016_v30  ;;  %21365 = vmatpush3.bf16.msra.mxu1 %v23022_v48 }
 0x8bc   : > { %21540 = vmatprep.subr.bf16.mxu0 %v23019_v49  ;;  %21366 = vmatprep.subr.bf16.mxu1 %v23025_v21 }
 0x8bf   : > { %21541 = vmatpush3.bf16.msra.mxu0 %v23020_v10  ;;  %21367 = vmatpush3.bf16.msra.mxu1 %v23026_v60 }
 0x8c0   : > { %21542 = vmatprep.subr.bf16.mxu0 %v23023_v33  ;;  %21368 = vmatprep.subr.bf16.mxu1 %v23029_v7 }
 0x8c3   : > { %21543 = vmatpush3.bf16.msra.mxu0 %v23024_v12  ;;  %21369 = vmatpush3.bf16.msra.mxu1 %v23030_v16 }
 0x8c4   : > { %21544 = vmatprep.subr.bf16.mxu0 %v23027_v52  ;;  %21370 = vmatprep.subr.bf16.mxu1 %v23033_v44  ;;  %v14493_v52 = vrot.slane %v27725_v42, %v23808_v56  ;;  %v23045_v42 = vld [vmem:[%s29457_s10 + $0x240] sm:$0xff]  }
 0x8c7   : > { %21545 = vmatpush3.bf16.msra.mxu0 %v23028_v51  ;;  %21371 = vmatpush3.bf16.msra.mxu1 %v23034_v29 }
 0x8c8   : > { %21546 = vmatprep.subr.bf16.mxu0 %v23031_v13  ;;  %21372 = vmatprep.subr.bf16.mxu1 %v23037_v1 }
 0x8cb   : > { %21547 = vmatpush3.bf16.msra.mxu0 %v23032_v25  ;;  %21373 = vmatpush3.bf16.msra.mxu1 %v23038_v23 }
 0x8cc   : > { %21548 = vmatprep.subr.bf16.mxu0 %v23035_v24  ;;  %21374 = vmatprep.subr.bf16.mxu1 %v23041_v58 }
 0x8cf   : > { %21549 = vmatpush3.bf16.msra.mxu0 %v23036_v34  ;;  %21375 = vmatpush3.bf16.msra.mxu1 %v23042_v8  ;;  %v14230_v34 = vsub.s32 5, %v29529_v37 }
 0x8d0   : > { %21550 = vmatprep.subr.bf16.mxu0 %v23039_v63  ;;  %21382 = vmatprep.subr.bf16.mxu1 %v23045_v42 }
 0x8d1   : > { %v14231_v1 = vrot.slane %v27681_v47, %v14230_v34 }
 0x8d3   : > { %21551 = vmatpush3.bf16.msra.mxu0 %v23040_v17 }
 0x8d4   : > { %21580 = vmatprep.subr.bf16.mxu0 %v23043_v39 }
 0x924   : > { %v13967_v22 = vpop.f32.mrb[52].mxu0 }
 0x925   : > { %v14238_v40 = vmul.f32 %v14211_v4, %v13967_v22  ;;  %v13969_v46 = vpop.f32.mrb[53].mxu0 }
 0x926   : > { %v14239_v61 = vmul.f32 %v14215_v28, %v13969_v46  ;;  %v13971_v57 = vpop.f32.mrb[54].mxu0 }
 0x927   : > { %v14288_v59 = vadd.f32 %v14261_v54, %v14238_v40  ;;  %v14244_v45 = vmul.f32 %v14211_v4, %v13971_v57  ;;  %v13973_v5 = vpop.f32.mrb[55].mxu0 }
 0x928   : > { %v14289_v53 = vadd.f32 %v27893_v0, %v14239_v61  ;;  %v14245_v50 = vmul.f32 %v14215_v28, %v13973_v5 }
 0x929   : > { %v14306_v32 = vmax.f32 %v14288_v59, 0.0  ;;  %v14294_v14 = vadd.f32 %v14261_v54, %v14244_v45  ;;  %v27989_v59 = vrot.slane %v27736_v26, %v23808_v56  ;;  %v14611_v45 = vrot.slane %v27738_v2, %v23808_v56 }
 0x92a   : > { %v14307_v36 = vmax.f32 %v14289_v53, 0.0  ;;  %v14295_v27 = vadd.f32 %v27893_v0, %v14245_v50  ;;  %v14226_v50 = vsub.s32 4, %v29529_v37 }
 0x92b   : > { %v14312_v20 = vmax.f32 %v14294_v14, 0.0  ;;  %v14281_v14 = vrot.slane %v27690_v9, %v14230_v34 }
 0x92c   : > { %v14342_v18 = vcombine.low %v14306_v32, %v14307_v36  ;;  %v14343_v35 = vcombine.high %v14306_v32, %v14307_v36  ;;  %v14313_v41 = vmax.f32 %v14295_v27, 0.0  ;;  %v13977_v6 = vpop.f32.mrb[56].mxu0  ;;  %v14227_v26 = vrot.slane %v27681_v47, %v14226_v50 }
 0x92d   : > { %v14250_v55 = vmul.f32 %v14211_v4, %v13977_v6  ;;  %v13979_v31 = vpop.f32.mrb[57].mxu0  ;;  %v14277_v2 = vrot.slane %v27690_v9, %v14226_v50 }
 0x92e   : > { %v27942_v30 = vrot.slane %v14342_v18, %v23808_v56  ;;  %v27945_v43 = vrot.slane %v14343_v35, %v23808_v56  ;;  %v14460_v15 = vcombine.low %v14312_v20, %v14313_v41  ;;  %v14461_v49 = vcombine.high %v14312_v20, %v14313_v41  ;;  %v13981_v10 = vpop.f32.mrb[58].mxu0 }
 0x92f   : > { %v14300_v3 = vadd.f32 %v14261_v54, %v14250_v55  ;;  %v14251_v48 = vmul.f32 %v14215_v28, %v13979_v31  ;;  %v13982_v33 = vpop.f32.mrb[59].mxu0 }
 0x930   : > { %v14390_v12 = vcombine.low %v27942_v30, %v27935_v38  ;;  %v14391_v21 = vcombine.high %v27942_v30, %v27935_v38  ;;  %v14392_v60 = vcombine.low %v27945_v43, %v27939_v19  ;;  %v14393_v4 = vcombine.high %v27945_v43, %v27939_v19 }
 0x931   : > { %v27968_v62 = vrot.slane %v14460_v15, %v23808_v56  ;;  %v14479_v28 = vrot.slane %v14461_v49, %v23808_v56  ;;  %v14301_v51 = vadd.f32 %v27893_v0, %v14251_v48  ;;  %v14318_v54 = vmax.f32 %v14300_v3, 0.0 }
 0x932   : > { %v28006_v9 = vrot.slane %v14390_v12, %v23808_v56  ;;  %v28009_v8 = vrot.slane %v14392_v60, %v23808_v56  ;;  %v28023_v12 = vrot.slane %v14393_v4, %v23808_v56 }
 0x933   : > { %v14508_v7 = vcombine.low %v27968_v62, %v27952_v11  ;;  %v14509_v22 = vcombine.high %v27968_v62, %v27952_v11  ;;  %v14510_v16 = vcombine.low %v14479_v28, %v14493_v52  ;;  %v14511_v40 = vcombine.high %v14479_v28, %v14493_v52 }
 0x934   : > { %v14319_v46 = vmax.f32 %v14301_v51, 0.0 }
 0x935   : > { %v27980_v13 = vrot.slane %v14510_v16, %v23808_v56  ;;  %v27983_v0 = vrot.slane %v14511_v40, %v23808_v56  ;;  %v28033_v38 = vrot.slane %v14508_v7, %v23808_v56  ;;  %v14534_v7 = vrot.slane %v14509_v22, %v23808_v56 }
 0x936   : > { %v14578_v61 = vcombine.low %v14318_v54, %v14319_v46  ;;  %v14579_v57 = vcombine.high %v14318_v54, %v14319_v46  ;;  %v28017_v54 = vrot.slane %v14391_v21, %v23808_v56 }
 0x937   : > { %v20326_v25 = vcombine.low %v27980_v13, %v27983_v0 }
 0x938   : > { %v14590_v5 = vrot.slane %v14578_v61, %v23808_v56  ;;  %v14597_v44 = vrot.slane %v14579_v57, %v23808_v56 }
 0x93a   : > { %v14626_v29 = vcombine.low %v14590_v5, %v27989_v59  ;;  %v14627_v24 = vcombine.high %v14590_v5, %v27989_v59  ;;  %v27997_v53 = vcombine.low %v14597_v44, %v14611_v45 }
 0x93c   : > { %v28054_v34 = vrot.slane %v14626_v29, %v23808_v56 }
 0x984   : > { %v14171_v32 = vpop.f32.mrb[60].mxu0 }
 0x985   : > { %v14242_v63 = vmul.f32 %v14227_v26, %v14171_v32  ;;  %v14173_v36 = vpop.f32.mrb[61].mxu0 }
 0x986   : > { %v14243_v27 = vmul.f32 %v14231_v1, %v14173_v36  ;;  %v14175_v23 = vpop.f32.mrb[62].mxu0 }
 0x987   : > { %v14292_v20 = vadd.f32 %v14277_v2, %v14242_v63  ;;  %v14248_v58 = vmul.f32 %v14227_v26, %v14175_v23  ;;  %v14177_v18 = vpop.f32.mrb[63].mxu0 }
 0x988   : > { %v14293_v35 = vadd.f32 %v14281_v14, %v14243_v27  ;;  %v14249_v41 = vmul.f32 %v14231_v1, %v14177_v18 }
 0x989   : > { %v14310_v6 = vmax.f32 %v14292_v20, 0.0  ;;  %v14298_v37 = vadd.f32 %v14277_v2, %v14248_v58 }
 0x98a   : > { %v14311_v17 = vmax.f32 %v14293_v35, 0.0  ;;  %v14299_v55 = vadd.f32 %v14281_v14, %v14249_v41 }
 0x98b   : > { %v14316_v31 = vmax.f32 %v14298_v37, 0.0 }
 0x98c   : > { %v14346_v47 = vcombine.low %v14310_v6, %v14311_v17  ;;  %v14347_v15 = vcombine.high %v14310_v6, %v14311_v17  ;;  %v14317_v49 = vmax.f32 %v14299_v55, 0.0  ;;  %v14181_v10 = vpop.f32.mrb[64].mxu0  ;;  %v14643_v17 = vrot.slane %v27997_v53, %v23808_v56 }
 0x98d   : > { %v14254_v3 = vmul.f32 %v14227_v26, %v14181_v10  ;;  %v14183_v48 = vpop.f32.mrb[65].mxu0  ;;  %v28057_v26 = vrot.slane %v14627_v24, %v23808_v56 }
 0x98e   : > { %v14382_v33 = vrot.slane %v14346_v47, %v23808_v56  ;;  %v14389_v39 = vrot.slane %v14347_v15, %v23808_v56  ;;  %v14464_v52 = vcombine.low %v14316_v31, %v14317_v49  ;;  %v14465_v28 = vcombine.high %v14316_v31, %v14317_v49  ;;  %v14185_v51 = vpop.f32.mrb[66].mxu0 }
 0x98f   : > { %v14304_v60 = vadd.f32 %v14277_v2, %v14254_v3  ;;  %v14255_v16 = vmul.f32 %v14231_v1, %v14183_v48  ;;  %v14186_v40 = vpop.f32.mrb[67].mxu0  ;;  %v20332_v55 = vcombine.high %v28054_v34, %v28057_v26 }
 0x990   : > { %v14394_v42 = vcombine.high %v14382_v33, %v14382_v33  ;;  %v14395_v46 = vcombine.high %v14389_v39, %v14389_v39  ;;  %v28026_v61 = vrot.slane %v14382_v33, %v23808_v56  ;;  %v14437_v57 = vrot.slane %v14389_v39, %v23808_v56 }
 0x991   : > { %v14500_v19 = vrot.slane %v14464_v52, %v23808_v56  ;;  %v14507_v30 = vrot.slane %v14465_v28, %v23808_v56  ;;  %v14305_v43 = vadd.f32 %v14281_v14, %v14255_v16  ;;  %v14322_v32 = vmax.f32 %v14304_v60, 0.0 }
 0x992   : > { %v28038_v21 = vrot.slane %v14394_v42, %v23808_v56  ;;  %v28041_v4 = vrot.slane %v14395_v46, %v23808_v56  ;;  %v14453_v59 = vcombine.high %v28006_v9, %v28026_v61  ;;  %v14454_v45 = vcombine.low %v28009_v8, %v14437_v57 }
 0x993   : > { %v14512_v5 = vcombine.high %v14500_v19, %v14500_v19  ;;  %v14513_v44 = vcombine.high %v14507_v30, %v14507_v30  ;;  %v28051_v50 = vrot.slane %v14500_v19, %v23808_v56  ;;  %v28066_v62 = vrot.slane %v14507_v30, %v23808_v56 }
 0x994   : > { %v20315_v1 = vcombine.low %v28026_v61, %v28038_v21  ;;  %v28062_v2 = vcombine.high %v28038_v21, %v14454_v45  ;;  %v20321_v11 = vcombine.high %v14437_v57, %v28041_v4  ;;  %v14457_v29 = vcombine.high %v28017_v54, %v28038_v21 }
 0x995   : > { %v28069_v22 = vrot.slane %v14512_v5, %v23808_v56  ;;  %v28074_v24 = vrot.slane %v14513_v44, %v23808_v56  ;;  %v14570_v14 = vcombine.low %v28033_v38, %v28051_v50  ;;  %v14571_v63 = vcombine.high %v28033_v38, %v28051_v50  ;;  %v23173_v38 = vld [vmem:[%s29457_s10 + $0x140] sm:$0xff]  }
 0x996   : > { %v14458_v36 = vcombine.low %v28023_v12, %v28041_v4  ;;  %v14573_v27 = vcombine.high %v27980_v13, %v28066_v62  ;;  %v14823_v58 = vrot.slane %v20321_v11, %v23808_v56  ;;  %v20322_v35 = vcombine.low %v28051_v50, %v28051_v50 }
 0x997   : > { %v14574_v23 = vcombine.low %v14534_v7, %v28069_v22  ;;  %v14575_v20 = vcombine.high %v14534_v7, %v28069_v22  ;;  %v14577_v18 = vcombine.high %v27983_v0, %v28074_v24  ;;  %v20323_v41 = vcombine.low %v14534_v7, %v14571_v63 }
 0x998   : > { %v14323_v37 = vmax.f32 %v14305_v43, 0.0  ;;  %v14837_v31 = vrot.slane %v20322_v35, %v23808_v56  ;;  %v20317_v47 = vcombine.low %v14457_v29, %v28009_v8  ;;  %v14765_v53 = vrot.slane %v14458_v36, %v23808_v56 }
 0x999   : > { %v28092_v6 = vcombine.high %v14574_v23, %v28051_v50  ;;  %v28101_v10 = vrot.slane %v20323_v41, %v23808_v56  ;;  %v28104_v3 = vrot.slane %v14575_v20, %v23808_v56  ;;  %v28117_v57 = vrot.slane %v20332_v55, %v23808_v56 }
 0x99a   : > { %v14582_v15 = vcombine.low %v14322_v32, %v14323_v37  ;;  %v14583_v49 = vcombine.high %v14322_v32, %v14323_v37  ;;  %v14840_v48 = vcombine.low %v14823_v58, %v14837_v31  ;;  %v14841_v33 = vcombine.high %v14823_v58, %v14837_v31 }
 0x99b   : > { %v14751_v39 = vrot.slane %v20317_v47, %v23808_v56  ;;  %v14904_v51 = vcombine.high %v28101_v10, %v28104_v3  ;;  %v14903_v60 = vcombine.low %v28101_v10, %v28104_v3 }
 0x99c   : > { %v14618_v52 = vrot.slane %v14582_v15, %v23808_v56  ;;  %v14625_v28 = vrot.slane %v14583_v49, %v23808_v56  ;;  %v14869_v16 = vrot.slane %v14841_v33, %v23808_v56  ;;  %v14855_v40 = vrot.slane %v14840_v48, %v23808_v56 }
 0x99d   : > { %v14773_v42 = vcombine.low %v14751_v39, %v14765_v53  ;;  %v14774_v46 = vcombine.high %v14751_v39, %v14765_v53  ;;  %v28141_v55 = vrot.slane %v14904_v51, %v23808_v56  ;;  %v28147_v15 = vrot.slane %v14573_v27, %v23808_v56 }
 0x99e   : > { %v14629_v19 = vcombine.high %v14618_v52, %v14618_v52  ;;  %v14657_v30 = vrot.slane %v14618_v52, %v23808_v56  ;;  %v14664_v43 = vrot.slane %v14625_v28, %v23808_v56  ;;  %v15293_v45 = vsel %vm5068_vm14, %v14869_v16, -inf }
 0x99f   : > { %v15286_v7 = vsel %vm5068_vm14, %v14855_v40, -inf  ;;  %v14797_v5 = vrot.slane %v14774_v46, %v23808_v56  ;;  %v28125_v44 = vrot.slane %v14773_v42, %v23808_v56  ;;  %v15294_v36 = vrot.slane %v15293_v45, 4 }
 0x9a0   : > { %v28128_v11 = vrot.slane %v14629_v19, %v23808_v56  ;;  %v14672_v32 = vcombine.low %v28054_v34, %v14657_v30  ;;  %v14674_v29 = vcombine.low %v14643_v17, %v14664_v43  ;;  %v20334_v63 = vcombine.low %v14664_v43, %v14664_v43 }
 0x9a1   : > { %v15287_v23 = vrot.slane %v15286_v7, 4  ;;  %v15223_v20 = vsel %vm5068_vm14, %v14797_v5, -inf  ;;  %v15216_v58 = vsel %vm5068_vm14, %v28125_v44, -inf  ;;  %v15295_v31 = vmax.f32 %v15293_v45, %v15294_v36 }
 0x9a2   : > { %v14675_v35 = vcombine.low %v28057_v26, %v28128_v11  ;;  %v28137_v41 = vcombine.high %v28074_v24, %v14672_v32  ;;  %v20333_v37 = vcombine.high %v14657_v30, %v28128_v11  ;;  %v28144_v17 = vrot.slane %v14674_v29, %v23808_v56  ;;  %v23066_v26 = vld [vmem:[%s29457_s10 + $0x228] sm:$0xff]  }
 0x9a3   : > { %v15288_v47 = vmax.f32 %v15286_v7, %v15287_v23  ;;  %v28153_v10 = vrot.slane %v20334_v63, %v23808_v56  ;;  %v15224_v3 = vrot.slane %v15223_v20, 4  ;;  %v15217_v48 = vrot.slane %v15216_v58, 4 }
 0x9a4   : > { %v28150_v49 = vrot.slane %v20333_v37, %v23808_v56  ;;  %v15098_v33 = vcombine.low %v28117_v57, %v28144_v17  ;;  %v15296_v39 = vrot.slane %v15295_v31, 2  ;;  %v14806_v52 = vcombine.high %v14797_v5, %v14797_v5 }
 0x9a5   : > { %v15289_v53 = vrot.slane %v15288_v47, 2  ;;  %v15225_v51 = vmax.f32 %v15223_v20, %v15224_v3  ;;  %v15218_v27 = vmax.f32 %v15216_v58, %v15217_v48  ;;  %v14936_v16 = vcombine.high %v28141_v55, %v28141_v55 }
 0x9a6   : > { %v15100_v28 = vcombine.low %v28150_v49, %v28153_v10  ;;  %v28165_v40 = vrot.slane %v20326_v25, %v23808_v56  ;;  %v15297_v42 = vmax.f32 %v15295_v31, %v15296_v39  ;;  %v15237_v19 = vsel %vm5068_vm14, %v14806_v52, -inf  ;;  %v23044_v52 = vld [vmem:[%s29457_s10 + $0x500] sm:$0xff]  }
 0x9a7   : > { %v15290_v46 = vmax.f32 %v15288_v47, %v15289_v53  ;;  %v15226_v30 = vrot.slane %v15225_v51, 2  ;;  %v15219_v43 = vrot.slane %v15218_v27, 2  ;;  %v15238_v45 = vrot.slane %v15237_v19, 4 }
 0x9a8   : > { %v15321_v7 = vsel %vm5068_vm14, %v14936_v16, -inf  ;;  %v20319_v5 = vcombine.low %v28041_v4, %v28041_v4  ;;  %v15298_v32 = vrot.slane %v15297_v42, 1  ;;  %v14969_v25 = vcombine.high %v28165_v40, %v28147_v15 }
 0x9a9   : > { %v15291_v29 = vrot.slane %v15290_v46, 1  ;;  %v15322_v63 = vrot.slane %v15321_v7, 4  ;;  %v15227_v36 = vmax.f32 %v15225_v51, %v15226_v30  ;;  %v15220_v23 = vmax.f32 %v15218_v27, %v15219_v43 }
 0x9aa   : > { %v15239_v13 = vmax.f32 %v15237_v19, %v15238_v45  ;;  %v15299_v20 = vmax.f32 %v15297_v42, %v15298_v32  ;;  %v28174_v31 = vrot.slane %v14903_v60, %v23808_v56  ;;  %v28178_v4 = vrot.slane %v28062_v2, %v23808_v56  ;;  %v23047_v60 = vld [vmem:[%s29457_s10 + $0x548] sm:$0xff]   ;;  %v23046_v45 = vld [vmem:[%s29457_s10 + $0x200] sm:$0xff]  }
 0x9ab   : > { %v15292_v58 = vmax.f32 %v15290_v46, %v15291_v29  ;;  %v15323_v37 = vmax.f32 %v15321_v7, %v15322_v63  ;;  %v15228_v47 = vrot.slane %v15227_v36, 1  ;;  %v15221_v3 = vrot.slane %v15220_v23, 1  ;;  %v23048_v63 = vld [vmem:[%s29457_s10 + $0x508] sm:$0xff]  }
 0x9ac   : > { %v15240_v48 = vrot.slane %v15239_v13, 2  ;;  %v15485_v39 = vpack.c.bf16 %v15299_v20, %v15299_v20  ;;  %v14935_v2 = vcombine.high %v28174_v31, %v28174_v31  ;;  %v28189_v19 = vrot.slane %v20319_v5, %v23808_v56  ;;  %v23049_v5 = vld [vmem:[%s29457_s10 + $0x248] sm:$0xff]  }
 0x9ad   : > { %v15484_v53 = vpack.c.bf16 %v15292_v58, %v15292_v58  ;;  %v15324_v51 = vrot.slane %v15323_v37, 2  ;;  %v15229_v27 = vmax.f32 %v15227_v36, %v15228_v47  ;;  %v15222_v16 = vmax.f32 %v15220_v23, %v15221_v3 }
 0x9ae   : > { %v15241_v42 = vmax.f32 %v15239_v13, %v15240_v48  ;;  %17016 = vmatprep.mubr.bf16.mxu0 %v15485_v39  ;;  %v28195_v32 = vrot.slane %v14969_v25, %v23808_v56  ;;  %v14776_v36 = vcombine.high %v28178_v4, %v28189_v19  ;;  %v23051_v13 = vld [vmem:[%s29457_s10 + $0x550] sm:$0xff]   ;;  %v14805_v25 = vcombine.high %v28125_v44, %v28125_v44  ;;  %v23050_v39 = vld [vmem:[%s29457_s10 + $0x208] sm:$0xff]  }
 0x9af   : > { %v15325_v46 = vmax.f32 %v15323_v37, %v15324_v51  ;;  %17017 = vmatmul.mubr.bf16.vlgmr.msra.gmra.mrb[68].mxu0 %v15484_v53  ;;  %v15475_v30 = vpack.c.bf16 %v15229_v27, %v15229_v27  ;;  %v15474_v43 = vpack.c.bf16 %v15222_v16, %v15222_v16  ;;  %v14968_v20 = vcombine.low %v28165_v40, %v28147_v15  ;;  %v23055_v51 = vld [vmem:[%s29457_s10 + $0x558] sm:$0xff]   ;;  %v23080_v15 = vld [vmem:[%s29457_s10 + $0x608] sm:$0xff]   ;;  %v23083_v40 = vld [vmem:[%s29457_s10 + $0x650] sm:$0xff]  }
 0x9b0   : > { %v15242_v7 = vrot.slane %v15241_v42, 1  ;;  %21581 = vmatpush3.bf16.msra.mxu0 %v23044_v52  ;;  %v15314_v37 = vsel %vm5068_vm14, %v14935_v2, -inf  ;;  %v14804_v47 = vrot.slane %v14776_v36, %v23808_v56  ;;  %v20314_v3 = vcombine.low %v28006_v9, %v28017_v54  ;;  %v23052_v52 = vld [vmem:[%s29457_s10 + $0x510] sm:$0xff]  }
 0x9b1   : > { %v15326_v29 = vrot.slane %v15325_v46, 1  ;;  %16023 = vmatprep.mubr.bf16.mxu1 %v15475_v30  ;;  %21582 = vmatprep.subr.bf16.mxu0 %v23047_v60  ;;  %v15349_v44 = vsel %vm5068_vm14, %v28195_v32, -inf  ;;  %v23053_v54 = vld [vmem:[%s29457_s10 + $0x250] sm:$0xff]   ;;  %v15315_v27 = vrot.slane %v15314_v37, 4  ;;  %v15230_v16 = vsel %vm5068_vm14, %v14805_v25, -inf  ;;  %v23060_v25 = vld [vmem:[%s29457_s10 + $0x520] sm:$0xff]  }
 0x9b2   : > { %v15243_v23 = vmax.f32 %v15241_v42, %v15242_v7  ;;  %16024 = vmatmul.mubr.bf16.vlgmr.msra.gmra.mrb[68].mxu1 %v15474_v43  ;;  %v15350_v42 = vrot.slane %v15349_v44, 4  ;;  %v15251_v60 = vsel %vm5068_vm14, %v14804_v47, -inf  ;;  %v28235_v2 = vrot.slane %v20314_v3, %v23808_v56  ;;  %v23054_v30 = vld [vmem:[%s29457_s10 + $0x210] sm:$0xff]   ;;  %v23057_v7 = vld [vmem:[%s29457_s10 + $0x258] sm:$0xff]   ;;  %v23063_v47 = vld [vmem:[%s29457_s10 + $0x568] sm:$0xff]  }
 0x9b3   : > { %v15327_v58 = vmax.f32 %v15325_v46, %v15326_v29  ;;  %21383 = vmatpush3.bf16.msra.mxu1 %v23046_v45  ;;  %v14775_v46 = vcombine.low %v28178_v4, %v28189_v19  ;;  %v28244_v43 = vrot.slane %v14453_v59, %v23808_v56  ;;  %v23056_v45 = vld [vmem:[%s29457_s10 + $0x518] sm:$0xff]   ;;  %v15231_v29 = vrot.slane %v15230_v16, 4  ;;  %v23082_v4 = vld [vmem:[%s29457_s10 + $0x288] sm:$0xff]  }
 0x9b4   : > { %v15477_v48 = vpack.c.bf16 %v15243_v23, %v15243_v23  ;;  %21583 = vmatpush3.bf16.msra.mxu0 %v23048_v63  ;;  %21384 = vmatprep.subr.bf16.mxu1 %v23049_v5  ;;  %v23059_v63 = vld [vmem:[%s29457_s10 + $0x560] sm:$0xff]   ;;  %v15316_v5 = vmax.f32 %v15314_v37, %v15315_v27  ;;  %v15252_v9 = vrot.slane %v15251_v60, 4  ;;  %v15351_v36 = vmax.f32 %v15349_v44, %v15350_v42  ;;  %v23058_v23 = vld [vmem:[%s29457_s10 + $0x218] sm:$0xff]  }
 0x9b5   : > { %v15489_v53 = vpack.c.bf16 %v15327_v58, %v15327_v58  ;;  %21584 = vmatprep.subr.bf16.mxu0 %v23051_v13  ;;  %v14709_v59 = vcombine.high %v28235_v2, %v28244_v43  ;;  %v20329_v13 = vcombine.low %v14577_v18, %v28054_v34  ;;  %v23061_v58 = vld [vmem:[%s29457_s10 + $0x260] sm:$0xff]   ;;  %v15232_v37 = vmax.f32 %v15230_v16, %v15231_v29  ;;  %v23064_v18 = vld [vmem:[%s29457_s10 + $0x528] sm:$0xff]  }
 0x9b6   : > { %16063 = vmatprep.mubr.bf16.mxu1 %v15477_v48  ;;  %v15317_v3 = vrot.slane %v15316_v5, 2  ;;  %v15253_v48 = vmax.f32 %v15251_v60, %v15252_v9  ;;  %v15352_v0 = vrot.slane %v15351_v36, 2  ;;  %v23062_v34 = vld [vmem:[%s29457_s10 + $0x220] sm:$0xff]  }
 0x9b7   : > { %17482 = vmatprep.mubr.bf16.mxu0 %v15489_v53  ;;  %21385 = vmatpush3.bf16.msra.mxu1 %v23050_v39  ;;  %v23065_v39 = vld [vmem:[%s29457_s10 + $0x268] sm:$0xff]   ;;  %v15233_v44 = vrot.slane %v15232_v37, 2  ;;  %v28283_v53 = vrot.slane %v20329_v13, %v23808_v56 }
 0x9b8   : > { %21585 = vmatpush3.bf16.msra.mxu0 %v23052_v52  ;;  %21386 = vmatprep.subr.bf16.mxu1 %v23053_v54  ;;  %v28289_v52 = vrot.slane %v14675_v35, %v23808_v56  ;;  %v14708_v54 = vcombine.low %v28235_v2, %v28244_v43  ;;  %v15318_v27 = vmax.f32 %v15316_v5, %v15317_v3  ;;  %v15254_v16 = vrot.slane %v15253_v48, 2  ;;  %v23068_v35 = vld [vmem:[%s29457_s10 + $0x530] sm:$0xff]  }
 0x9b9   : > { %21586 = vmatprep.subr.bf16.mxu0 %v23055_v51  ;;  %v23067_v51 = vld [vmem:[%s29457_s10 + $0x570] sm:$0xff]   ;;  %v15353_v42 = vmax.f32 %v15351_v36, %v15352_v0  ;;  %v15099_v0 = vcombine.high %v28117_v57, %v28144_v17  ;;  %v23176_v57 = vld [vmem:[%s29457_s10 + $0x908] sm:$0xff]  }
 0x9ba   : > { %v15034_v60 = vcombine.high %v28283_v53, %v28289_v52  ;;  %v15033_v29 = vcombine.low %v28283_v53, %v28289_v52  ;;  %v15319_v5 = vrot.slane %v15318_v27, 1  ;;  %v15255_v9 = vmax.f32 %v15253_v48, %v15254_v16  ;;  %v23117_v43 = vld [vmem:[%s29457_s10 + $0x50] sm:$0xff]   ;;  %v23141_v53 = vld [vmem:[%s29457_s10 + $0xc0] sm:$0xff]   ;;  %v23177_v17 = vld [vmem:[%s29457_s10 + $0x148] sm:$0xff]  }
 0x9bb   : > { %21387 = vmatpush3.bf16.msra.mxu1 %v23054_v30  ;;  %v20327_v30 = vcombine.low %v28066_v62, %v28074_v24  ;;  %v20328_v24 = vcombine.high %v28066_v62, %v28066_v62  ;;  %v15354_v36 = vrot.slane %v15353_v42, 1  ;;  %v23072_v62 = vld [vmem:[%s29457_s10 + $0x538] sm:$0xff]  }
 0x9bc   : > { %21587 = vmatpush3.bf16.msra.mxu0 %v23056_v45  ;;  %21388 = vmatprep.subr.bf16.mxu1 %v23057_v7  ;;  %v23069_v45 = vld [vmem:[%s29457_s10 + $0x270] sm:$0xff]   ;;  %v15234_v7 = vmax.f32 %v15232_v37, %v15233_v44  ;;  %v15320_v37 = vmax.f32 %v15318_v27, %v15319_v5  ;;  %v15256_v3 = vrot.slane %v15255_v9, 1  ;;  %v20316_v44 = vcombine.high %v28026_v61, %v28026_v61  ;;  %v23081_v61 = vld [vmem:[%s29457_s10 + $0x2c8] sm:$0xff]  }
 0x9bd   : > { %21588 = vmatprep.subr.bf16.mxu0 %v23059_v63  ;;  %v23071_v63 = vld [vmem:[%s29457_s10 + $0x578] sm:$0xff]   ;;  %v28320_v13 = vrot.slane %v20327_v30, %v23808_v56  ;;  %v28332_v48 = vrot.slane %v20328_v24, %v23808_v56  ;;  %v23078_v24 = vld [vmem:[%s29457_s10 + $0x280] sm:$0xff]  }
 0x9be   : > { %v15488_v16 = vpack.c.bf16 %v15320_v37, %v15320_v37  ;;  %v15257_v30 = vmax.f32 %v15255_v9, %v15256_v3  ;;  %v28375_v21 = vrot.slane %v20316_v44, %v23808_v56  ;;  %v15101_v3 = vcombine.high %v28150_v49, %v28153_v10  ;;  %v23089_v44 = vld [vmem:[%s29457_s10 + $0x2d8] sm:$0xff]   ;;  %v23211_v10 = vld [vmem:[%s29457_s10 + $0xa50] sm:$0xff]  }
 0x9bf   : > { %21389 = vmatpush3.bf16.msra.mxu1 %v23058_v23  ;;  %v23070_v23 = vld [vmem:[%s29457_s10 + $0x230] sm:$0xff]  }
 0x9c0   : > { %21589 = vmatpush3.bf16.msra.mxu0 %v23060_v25  ;;  %21390 = vmatprep.subr.bf16.mxu1 %v23061_v58  ;;  %v23073_v25 = vld [vmem:[%s29457_s10 + $0x278] sm:$0xff]   ;;  %v15235_v58 = vrot.slane %v15234_v7, 1 }
 0x9c1   : > { %21590 = vmatprep.subr.bf16.mxu0 %v23063_v47  ;;  %v23075_v47 = vld [vmem:[%s29457_s10 + $0x640] sm:$0xff]  }
 0x9c2   : > { %v15236_v27 = vmax.f32 %v15234_v7, %v15235_v58  ;;  %v28362_v7 = vrot.slane %v20315_v1, %v23808_v56  ;;  %v15479_v1 = vpack.c.bf16 %v15257_v30, %v15257_v30 }
 0x9c3   : > { %21391 = vmatpush3.bf16.msra.mxu1 %v23062_v34  ;;  %v15355_v34 = vmax.f32 %v15353_v42, %v15354_v36  ;;  %v23077_v42 = vld [vmem:[%s29457_s10 + $0x2c0] sm:$0xff]   ;;  %v28390_v36 = vrot.slane %v14709_v59, %v23808_v56  ;;  %v23085_v59 = vld [vmem:[%s29457_s10 + $0x2d0] sm:$0xff]  }
 0x9c4   : > { %21591 = vmatpush3.bf16.msra.mxu0 %v23064_v18  ;;  %21392 = vmatprep.subr.bf16.mxu1 %v23065_v39  ;;  %v23074_v18 = vld [vmem:[%s29457_s10 + $0x238] sm:$0xff]   ;;  %v14971_v39 = vcombine.high %v28320_v13, %v28332_v48  ;;  %v15476_v5 = vpack.c.bf16 %v15236_v27, %v15236_v27  ;;  %v23091_v27 = vld [vmem:[%s29457_s10 + $0x660] sm:$0xff]  }
 0x9c5   : > { %21592 = vmatprep.subr.bf16.mxu0 %v23067_v51  ;;  %v23076_v51 = vld [vmem:[%s29457_s10 + $0x600] sm:$0xff]  }
 0x9c7   : > { %21393 = vmatpush3.bf16.msra.mxu1 %v23066_v26  ;;  %v23079_v26 = vld [vmem:[%s29457_s10 + $0x648] sm:$0xff]  }
 0x9c8   : > { %21593 = vmatpush3.bf16.msra.mxu0 %v23068_v35  ;;  %21394 = vmatprep.subr.bf16.mxu1 %v23069_v45  ;;  %v15493_v35 = vpack.c.bf16 %v15355_v34, %v15355_v34  ;;  %v28356_v45 = vrot.slane %v14968_v20, %v23808_v56  ;;  %v14790_v20 = vrot.slane %v14775_v46, %v23808_v56  ;;  %v23084_v46 = vld [vmem:[%s29457_s10 + $0x610] sm:$0xff]  }
 0x9c9   : > { %21594 = vmatprep.subr.bf16.mxu0 %v23071_v63  ;;  %v14999_v63 = vrot.slane %v14971_v39, %v23808_v56  ;;  %v14710_v34 = vcombine.low %v28362_v7, %v28375_v21  ;;  %v23088_v39 = vld [vmem:[%s29457_s10 + $0x618] sm:$0xff]  }
 0x9ca   : > { %v15342_v9 = vsel %vm5068_vm14, %v28356_v45, -inf  ;;  %v15244_v58 = vsel %vm5068_vm14, %v14790_v20, -inf  ;;  %v23096_v20 = vld [vmem:[%s29457_s10 + $0x628] sm:$0xff]  }
 0x9cb   : > { %21395 = vmatpush3.bf16.msra.mxu1 %v23070_v23  ;;  %v14711_v23 = vcombine.high %v28362_v7, %v28375_v21  ;;  %v15377_v19 = vsel %vm5068_vm14, %v14999_v63, -inf  ;;  %v23180_v7 = vld [vmem:[%s29457_s10 + $0x910] sm:$0xff]  }
 0x9cc   : > { %21595 = vmatpush3.bf16.msra.mxu0 %v23072_v62  ;;  %21396 = vmatprep.subr.bf16.mxu1 %v23073_v25  ;;  %v23087_v62 = vld [vmem:[%s29457_s10 + $0x658] sm:$0xff]   ;;  %v15343_v25 = vrot.slane %v15342_v9, 4  ;;  %v15378_v37 = vrot.slane %v15377_v19, 4  ;;  %v23181_v21 = vld [vmem:[%s29457_s10 + $0x150] sm:$0xff]  }
 0x9cd   : > { %21624 = vmatprep.subr.bf16.mxu0 %v23075_v47  ;;  %v15181_v47 = vsel %vm5068_vm14, %v28390_v36, -inf }
 0x9ce   : > { %v15379_v30 = vmax.f32 %v15377_v19, %v15378_v37  ;;  %v23099_v19 = vld [vmem:[%s29457_s10 + $0x670] sm:$0xff]  }
 0x9cf   : > { %21397 = vmatpush3.bf16.msra.mxu1 %v23074_v18  ;;  %17483 = vmatmul.mubr.bf16.vlgmr.msra.gmra.mrb[72].mxu0 %v15488_v16  ;;  %v23086_v18 = vld [vmem:[%s29457_s10 + $0x290] sm:$0xff]   ;;  %v15344_v16 = vmax.f32 %v15342_v9, %v15343_v25  ;;  %v23097_v9 = vld [vmem:[%s29457_s10 + $0x2e8] sm:$0xff]  }
 0x9d0   : > { %21625 = vmatpush3.bf16.msra.mxu0 %v23076_v51  ;;  %17948 = vmatprep.mubr.bf16.mxu0 %v15493_v35  ;;  %v15245_v51 = vrot.slane %v15244_v58, 4  ;;  %v23092_v35 = vld [vmem:[%s29457_s10 + $0x620] sm:$0xff]   ;;  %v23098_v25 = vld [vmem:[%s29457_s10 + $0x2a8] sm:$0xff]   ;;  %v23101_v37 = vld [vmem:[%s29457_s10 + $0x2f0] sm:$0xff]  }
 0x9d1   : > { %21404 = vmatprep.subr.bf16.mxu1 %v23077_v42  ;;  %21626 = vmatprep.subr.bf16.mxu0 %v23079_v26  ;;  %v15182_v42 = vrot.slane %v15181_v47, 4  ;;  %v23090_v26 = vld [vmem:[%s29457_s10 + $0x298] sm:$0xff]  }
 0x9d2   : > { %16064 = vmatmul.mubr.bf16.vlgmr.msra.gmra.mrb[72].mxu1 %v15476_v5  ;;  %v15246_v63 = vmax.f32 %v15244_v58, %v15245_v51  ;;  %v23095_v5 = vld [vmem:[%s29457_s10 + $0x668] sm:$0xff]   ;;  %v23100_v58 = vld [vmem:[%s29457_s10 + $0x630] sm:$0xff]  }
 0x9d3   : > { %21405 = vmatpush3.bf16.msra.mxu1 %v23078_v24  ;;  %16103 = vmatprep.mubr.bf16.mxu1 %v15479_v1  ;;  %v23093_v24 = vld [vmem:[%s29457_s10 + $0x2e0] sm:$0xff]   ;;  %v15380_v1 = vrot.slane %v15379_v30, 2 }
 0x9d4   : > { %21627 = vmatpush3.bf16.msra.mxu0 %v23080_v15  ;;  %21406 = vmatprep.subr.bf16.mxu1 %v23081_v61  ;;  %v15345_v15 = vrot.slane %v15344_v16, 2  ;;  %v15183_v61 = vmax.f32 %v15181_v47, %v15182_v42  ;;  %v23104_v42 = vld [vmem:[%s29457_s10 + $0x638] sm:$0xff]  }
 0x9d5   : > { %21628 = vmatprep.subr.bf16.mxu0 %v23083_v40  ;;  %v23094_v40 = vld [vmem:[%s29457_s10 + $0x2a0] sm:$0xff]  }
 0x9d7   : > { %21407 = vmatpush3.bf16.msra.mxu1 %v23082_v4  ;;  %v15247_v4 = vrot.slane %v15246_v63, 2 }
 0x9d8   : > { %21629 = vmatpush3.bf16.msra.mxu0 %v23084_v46  ;;  %21408 = vmatprep.subr.bf16.mxu1 %v23085_v59  ;;  %v15346_v46 = vmax.f32 %v15344_v16, %v15345_v15  ;;  %v15184_v59 = vrot.slane %v15183_v61, 2  ;;  %v23102_v16 = vld [vmem:[%s29457_s10 + $0x2b0] sm:$0xff]   ;;  %v28480_v15 = vrot.slane %v28092_v6, %v23808_v56  ;;  %v23108_v6 = vld [vmem:[%s29457_s10 + $0x700] sm:$0xff]  }
 0x9d9   : > { %21630 = vmatprep.subr.bf16.mxu0 %v23087_v62  ;;  %v15381_v62 = vmax.f32 %v15379_v30, %v15380_v1  ;;  %v15248_v47 = vmax.f32 %v15246_v63, %v15247_v4  ;;  %v23105_v30 = vld [vmem:[%s29457_s10 + $0x2f8] sm:$0xff]   ;;  %v28489_v1 = vrot.slane %v15034_v60, %v23808_v56  ;;  %v23111_v60 = vld [vmem:[%s29457_s10 + $0x748] sm:$0xff]  }
 0x9db   : > { %21409 = vmatpush3.bf16.msra.mxu1 %v23086_v18  ;;  %v23103_v18 = vld [vmem:[%s29457_s10 + $0x678] sm:$0xff]   ;;  %v15382_v51 = vrot.slane %v15381_v62, 1 }
 0x9dc   : > { %21631 = vmatpush3.bf16.msra.mxu0 %v23088_v39  ;;  %21410 = vmatprep.subr.bf16.mxu1 %v23089_v44  ;;  %v15347_v39 = vrot.slane %v15346_v46, 1  ;;  %v15185_v44 = vmax.f32 %v15183_v61, %v15184_v59  ;;  %v23106_v61 = vld [vmem:[%s29457_s10 + $0x2b8] sm:$0xff]  }
 0x9dd   : > { %21632 = vmatprep.subr.bf16.mxu0 %v23091_v27  ;;  %v20325_v27 = vcombine.high %v28069_v22, %v28069_v22  ;;  %v23107_v22 = vld [vmem:[%s29457_s10 + $0x740] sm:$0xff]   ;;  %v15383_v63 = vmax.f32 %v15381_v62, %v15382_v51  ;;  %v28532_v51 = vrot.slane %v28137_v41, %v23808_v56  ;;  %v23116_v41 = vld [vmem:[%s29457_s10 + $0x710] sm:$0xff]  }
 0x9de   : > { %v23110_v62 = vld [vmem:[%s29457_s10] sm:$0xff]  }
 0x9df   : > { %21411 = vmatpush3.bf16.msra.mxu1 %v23090_v26  ;;  %v15249_v26 = vrot.slane %v15248_v47, 1 }
 0x9e0   : > { %21633 = vmatpush3.bf16.msra.mxu0 %v23092_v35  ;;  %21412 = vmatprep.subr.bf16.mxu1 %v23093_v24  ;;  %v15348_v35 = vmax.f32 %v15346_v46, %v15347_v39  ;;  %v15186_v24 = vrot.slane %v15185_v44, 1 }
 0x9e1   : > { %21634 = vmatprep.subr.bf16.mxu0 %v23095_v5  ;;  %v14970_v5 = vcombine.low %v28320_v13, %v28332_v48  ;;  %v15250_v13 = vmax.f32 %v15248_v47, %v15249_v26  ;;  %v23112_v47 = vld [vmem:[%s29457_s10 + $0x708] sm:$0xff]  }
 0x9e2   : > { %v15492_v48 = vpack.c.bf16 %v15348_v35, %v15348_v35 }
 0x9e3   : > { %21413 = vmatpush3.bf16.msra.mxu1 %v23094_v40  ;;  %v28492_v40 = vrot.slane %v20325_v27, %v23808_v56  ;;  %v14985_v46 = vrot.slane %v14970_v5, %v23808_v56 }
 0x9e4   : > { %21635 = vmatpush3.bf16.msra.mxu0 %v23096_v20  ;;  %21414 = vmatprep.subr.bf16.mxu1 %v23097_v9  ;;  %v23109_v20 = vld [vmem:[%s29457_s10 + $0x40] sm:$0xff]   ;;  %v15187_v9 = vmax.f32 %v15185_v44, %v15186_v24  ;;  %v23115_v44 = vld [vmem:[%s29457_s10 + $0x750] sm:$0xff]  }
 0x9e5   : > { %21636 = vmatprep.subr.bf16.mxu0 %v23099_v19  ;;  %v14906_v4 = vcombine.high %v28480_v15, %v28492_v40  ;;  %v15497_v19 = vpack.c.bf16 %v15383_v63, %v15383_v63  ;;  %v14905_v59 = vcombine.low %v28480_v15, %v28492_v40  ;;  %v15370_v27 = vsel %vm5068_vm14, %v14985_v46, -inf  ;;  %v23118_v63 = vld [vmem:[%s29457_s10 + $0x10] sm:$0xff]   ;;  %v23124_v46 = vld [vmem:[%s29457_s10 + $0x720] sm:$0xff]   ;;  %v23273_v40 = vld [vmem:[%s29457_s10 + $0x5d8] sm:$0xff]  }
 0x9e6   : > { %v15469_v39 = vpack.c.bf16 %v15187_v9, %v15187_v9 }
 0x9e7   : > { %21415 = vmatpush3.bf16.msra.mxu1 %v23098_v25  ;;  %v15066_v25 = vcombine.high %v28489_v1, %v28489_v1 }
 0x9e8   : > { %21637 = vmatpush3.bf16.msra.mxu0 %v23100_v58  ;;  %21416 = vmatprep.subr.bf16.mxu1 %v23101_v37  ;;  %v20331_v58 = vcombine.low %v28128_v11, %v28128_v11  ;;  %v15478_v37 = vpack.c.bf16 %v15250_v13, %v15250_v13  ;;  %v28528_v11 = vrot.slane %v14708_v54, %v23808_v56 }
 0x9e9   : > { %21638 = vmatprep.subr.bf16.mxu0 %v23103_v18  ;;  %v23113_v18 = vld [vmem:[%s29457_s10 + $0x48] sm:$0xff]   ;;  %v15405_v2 = vsel %vm5068_vm14, %v15066_v25, -inf }
 0x9ea   : > { %v28548_v54 = vrot.slane %v20331_v58, %v23808_v56  ;;  %v15174_v26 = vsel %vm5068_vm14, %v28528_v11, -inf  ;;  %v15406_v35 = vrot.slane %v15405_v2, 4  ;;  %v23127_v58 = vld [vmem:[%s29457_s10 + $0x768] sm:$0xff]  }
 0x9eb   : > { %21417 = vmatpush3.bf16.msra.mxu1 %v23102_v16  ;;  %v14741_v16 = vcombine.high %v28390_v36, %v28390_v36  ;;  %v23119_v36 = vld [vmem:[%s29457_s10 + $0x758] sm:$0xff]   ;;  %v15175_v13 = vrot.slane %v15174_v26, 4 }
 0x9ec   : > { %21639 = vmatpush3.bf16.msra.mxu0 %v23104_v42  ;;  %21418 = vmatprep.subr.bf16.mxu1 %v23105_v30  ;;  %v23114_v42 = vld [vmem:[%s29457_s10 + $0x8] sm:$0xff]   ;;  %v15371_v30 = vrot.slane %v15370_v27, 4  ;;  %v15036_v24 = vcombine.high %v28532_v51, %v28548_v54  ;;  %v15035_v5 = vcombine.low %v28532_v51, %v28548_v54  ;;  %v23321_v54 = vld [vmem:[%s29457_s10 + $0x8d8] sm:$0xff]  }
 0x9ed   : > { %21668 = vmatprep.subr.bf16.mxu0 %v23107_v22  ;;  %v15195_v22 = vsel %vm5068_vm14, %v14741_v16, -inf  ;;  %v15176_v25 = vmax.f32 %v15174_v26, %v15175_v13  ;;  %v23133_v26 = vld [vmem:[%s29457_s10 + $0x70] sm:$0xff]  }
 0x9ee   : > { %v15196_v9 = vrot.slane %v15195_v22, 4  ;;  %v23134_v13 = vld [vmem:[%s29457_s10 + $0x30] sm:$0xff]  }
 0x9ef   : > { %21419 = vmatpush3.bf16.msra.mxu1 %v23106_v61  ;;  %17949 = vmatmul.mubr.bf16.vlgmr.msra.gmra.mrb[76].mxu0 %v15492_v48  ;;  %v23120_v61 = vld [vmem:[%s29457_s10 + $0x718] sm:$0xff]   ;;  %v23123_v48 = vld [vmem:[%s29457_s10 + $0x760] sm:$0xff]   ;;  %v15177_v16 = vrot.slane %v15176_v25, 2 }
 0x9f0   : > { %21669 = vmatpush3.bf16.msra.mxu0 %v23108_v6  ;;  %18028 = vmatprep.mubr.bf16.mxu0 %v15497_v19  ;;  %v23121_v6 = vld [vmem:[%s29457_s10 + $0x58] sm:$0xff]  }
 0x9f1   : > { %21426 = vmatprep.subr.bf16.mxu1 %v23109_v20  ;;  %21670 = vmatprep.subr.bf16.mxu0 %v23111_v60  ;;  %v15372_v20 = vmax.f32 %v15370_v27, %v15371_v30  ;;  %v15407_v60 = vmax.f32 %v15405_v2, %v15406_v35  ;;  %v23122_v19 = vld [vmem:[%s29457_s10 + $0x18] sm:$0xff]   ;;  %v23129_v27 = vld [vmem:[%s29457_s10 + $0x68] sm:$0xff]   ;;  %v23132_v30 = vld [vmem:[%s29457_s10 + $0x730] sm:$0xff]   ;;  %v15178_v35 = vmax.f32 %v15176_v25, %v15177_v16 }
 0x9f2   : > { %16104 = vmatmul.mubr.bf16.vlgmr.msra.gmra.mrb[76].mxu1 %v15478_v37  ;;  %v28624_v25 = vrot.slane %v15033_v29, %v23808_v56  ;;  %v23143_v29 = vld [vmem:[%s29457_s10 + $0x848] sm:$0xff]   ;;  %v28647_v16 = vrot.slane %v15099_v0, %v23808_v56  ;;  %v14740_v0 = vcombine.high %v28528_v11, %v28528_v11  ;;  %v23148_v11 = vld [vmem:[%s29457_s10 + $0x810] sm:$0xff]  }
 0x9f3   : > { %21427 = vmatpush3.bf16.msra.mxu1 %v23110_v62  ;;  %16431 = vmatprep.mubr.bf16.mxu1 %v15469_v39  ;;  %v23125_v62 = vld [vmem:[%s29457_s10 + $0x60] sm:$0xff]   ;;  %v15373_v37 = vrot.slane %v15372_v20, 2 }
 0x9f4   : > { %21671 = vmatpush3.bf16.msra.mxu0 %v23112_v47  ;;  %21428 = vmatprep.subr.bf16.mxu1 %v23113_v18  ;;  %v15197_v47 = vmax.f32 %v15195_v22, %v15196_v9  ;;  %v15408_v18 = vrot.slane %v15407_v60, 2  ;;  %v23126_v39 = vld [vmem:[%s29457_s10 + $0x20] sm:$0xff]   ;;  %v23135_v22 = vld [vmem:[%s29457_s10 + $0x778] sm:$0xff]   ;;  %v15179_v9 = vrot.slane %v15178_v35, 1 }
 0x9f5   : > { %21672 = vmatprep.subr.bf16.mxu0 %v23115_v44  ;;  %v23128_v44 = vld [vmem:[%s29457_s10 + $0x728] sm:$0xff]   ;;  %v15374_v2 = vmax.f32 %v15372_v20, %v15373_v37  ;;  %v23137_v20 = vld [vmem:[%s29457_s10 + $0x78] sm:$0xff]   ;;  %v23140_v37 = vld [vmem:[%s29457_s10 + $0x800] sm:$0xff]  }
 0x9f7   : > { %21429 = vmatpush3.bf16.msra.mxu1 %v23114_v42  ;;  %v23131_v42 = vld [vmem:[%s29457_s10 + $0x770] sm:$0xff]  }
 0x9f8   : > { %21673 = vmatpush3.bf16.msra.mxu0 %v23116_v41  ;;  %21430 = vmatprep.subr.bf16.mxu1 %v23117_v43  ;;  %v15198_v41 = vrot.slane %v15197_v47, 2  ;;  %v15409_v43 = vmax.f32 %v15407_v60, %v15408_v18 }
 0x9f9   : > { %21674 = vmatprep.subr.bf16.mxu0 %v23119_v36  ;;  %v23130_v36 = vld [vmem:[%s29457_s10 + $0x28] sm:$0xff]  }
 0x9fb   : > { %21431 = vmatpush3.bf16.msra.mxu1 %v23118_v63  ;;  %v15375_v63 = vrot.slane %v15374_v2, 1 }
 0x9fc   : > { %21675 = vmatpush3.bf16.msra.mxu0 %v23120_v61  ;;  %21432 = vmatprep.subr.bf16.mxu1 %v23121_v6  ;;  %v15199_v61 = vmax.f32 %v15197_v47, %v15198_v41  ;;  %v15410_v6 = vrot.slane %v15409_v43, 1  ;;  %v15180_v47 = vmax.f32 %v15178_v35, %v15179_v9  ;;  %v23145_v41 = vld [vmem:[%s29457_s10 + $0xc8] sm:$0xff]   ;;  %v23152_v9 = vld [vmem:[%s29457_s10 + $0x818] sm:$0xff]  }
 0x9fd   : > { %21676 = vmatprep.subr.bf16.mxu0 %v23123_v48  ;;  %v23136_v48 = vld [vmem:[%s29457_s10 + $0x738] sm:$0xff]   ;;  %v15376_v60 = vmax.f32 %v15374_v2, %v15375_v63  ;;  %v23144_v2 = vld [vmem:[%s29457_s10 + $0x808] sm:$0xff]   ;;  %v23149_v63 = vld [vmem:[%s29457_s10 + $0xd0] sm:$0xff]  }
 0x9fe   : > { %v23146_v35 = vld [vmem:[%s29457_s10 + $0x88] sm:$0xff]  }
 0x9ff   : > { %21433 = vmatpush3.bf16.msra.mxu1 %v23122_v19  ;;  %v23139_v19 = vld [vmem:[%s29457_s10 + $0x840] sm:$0xff]   ;;  %v15496_v18 = vpack.c.bf16 %v15376_v60, %v15376_v60  ;;  %v23153_v60 = vld [vmem:[%s29457_s10 + $0xd8] sm:$0xff]  }
 0xa00   : > { %21677 = vmatpush3.bf16.msra.mxu0 %v23124_v46  ;;  %21434 = vmatprep.subr.bf16.mxu1 %v23125_v62  ;;  %v15200_v46 = vrot.slane %v15199_v61, 1  ;;  %v15411_v62 = vmax.f32 %v15409_v43, %v15410_v6  ;;  %v15188_v6 = vsel %vm5068_vm14, %v14740_v0, -inf }
 0xa01   : > { %21678 = vmatprep.subr.bf16.mxu0 %v23127_v58  ;;  %v23138_v58 = vld [vmem:[%s29457_s10 + $0x38] sm:$0xff]  }
 0xa02   : > { %v15201_v52 = vmax.f32 %v15199_v61, %v15200_v46  ;;  %v23155_v46 = vld [vmem:[%s29457_s10 + $0x860] sm:$0xff]  }
 0xa03   : > { %21435 = vmatpush3.bf16.msra.mxu1 %v23126_v39  ;;  %v15501_v39 = vpack.c.bf16 %v15411_v62, %v15411_v62 }
 0xa04   : > { %21679 = vmatpush3.bf16.msra.mxu0 %v23128_v44  ;;  %21436 = vmatprep.subr.bf16.mxu1 %v23129_v27  ;;  %v15065_v44 = vcombine.high %v28624_v25, %v28624_v25  ;;  %v23142_v27 = vld [vmem:[%s29457_s10 + $0x80] sm:$0xff]   ;;  %v15471_v43 = vpack.c.bf16 %v15201_v52, %v15201_v52 }
 0xa05   : > { %21680 = vmatprep.subr.bf16.mxu0 %v23131_v42  ;;  %v15468_v42 = vpack.c.bf16 %v15180_v47, %v15180_v47  ;;  %v23154_v47 = vld [vmem:[%s29457_s10 + $0x98] sm:$0xff]  }
 0xa07   : > { %21437 = vmatpush3.bf16.msra.mxu1 %v23130_v36  ;;  %v23147_v36 = vld [vmem:[%s29457_s10 + $0x850] sm:$0xff]  }
 0xa08   : > { %21681 = vmatpush3.bf16.msra.mxu0 %v23132_v30  ;;  %21438 = vmatprep.subr.bf16.mxu1 %v23133_v26  ;;  %v15398_v30 = vsel %vm5068_vm14, %v15065_v44, -inf  ;;  %v14739_v26 = vrot.slane %v14711_v23, %v23808_v56  ;;  %v23151_v23 = vld [vmem:[%s29457_s10 + $0x858] sm:$0xff]  }
 0xa09   : > { %21682 = vmatprep.subr.bf16.mxu0 %v23135_v22  ;;  %v15433_v22 = vsel %vm5068_vm14, %v28647_v16, -inf  ;;  %v15399_v61 = vrot.slane %v15398_v30, 4 }
 0xa0b   : > { %21439 = vmatpush3.bf16.msra.mxu1 %v23134_v13  ;;  %v15434_v13 = vrot.slane %v15433_v22, 4  ;;  %v15400_v62 = vmax.f32 %v15398_v30, %v15399_v61 }
 0xa0c   : > { %21683 = vmatpush3.bf16.msra.mxu0 %v23136_v48  ;;  %21440 = vmatprep.subr.bf16.mxu1 %v23137_v20  ;;  %v15209_v48 = vsel %vm5068_vm14, %v14739_v26, -inf  ;;  %v23150_v20 = vld [vmem:[%s29457_s10 + $0x90] sm:$0xff]  }
 0xa0d   : > { %21712 = vmatprep.subr.bf16.mxu0 %v23139_v19  ;;  %v15189_v19 = vrot.slane %v15188_v6, 4 }
 0xa0f   : > { %21441 = vmatpush3.bf16.msra.mxu1 %v23138_v58  ;;  %18029 = vmatmul.mubr.bf16.vlgmr.msra.gmra.mrb[80].mxu0 %v15496_v18  ;;  %v15210_v58 = vrot.slane %v15209_v48, 4  ;;  %v23156_v18 = vld [vmem:[%s29457_s10 + $0x820] sm:$0xff]   ;;  %v15190_v52 = vmax.f32 %v15188_v6, %v15189_v19 }
 0xa10   : > { %21713 = vmatpush3.bf16.msra.mxu0 %v23140_v37  ;;  %18494 = vmatprep.mubr.bf16.mxu0 %v15501_v39  ;;  %v15435_v37 = vmax.f32 %v15433_v22, %v15434_v13  ;;  %v15401_v39 = vrot.slane %v15400_v62, 2  ;;  %v23164_v22 = vld [vmem:[%s29457_s10 + $0x830] sm:$0xff]  }
 0xa11   : > { %21448 = vmatprep.subr.bf16.mxu1 %v23141_v53  ;;  %21714 = vmatprep.subr.bf16.mxu0 %v23143_v29  ;;  %v23157_v53 = vld [vmem:[%s29457_s10 + $0xe0] sm:$0xff]   ;;  %v23159_v29 = vld [vmem:[%s29457_s10 + $0x868] sm:$0xff]   ;;  %v15211_v44 = vmax.f32 %v15209_v48, %v15210_v58  ;;  %v23166_v48 = vld [vmem:[%s29457_s10 + $0xb0] sm:$0xff]  }
 0xa12   : > { %16432 = vmatmul.mubr.bf16.vlgmr.msra.gmra.mrb[80].mxu1 %v15468_v42  ;;  %v23158_v42 = vld [vmem:[%s29457_s10 + $0xa0] sm:$0xff]   ;;  %v15402_v0 = vmax.f32 %v15400_v62, %v15401_v39  ;;  %v28768_v39 = vrot.slane %v15098_v33, %v23808_v56 }
 0xa13   : > { %21449 = vmatpush3.bf16.msra.mxu1 %v23142_v27  ;;  %16471 = vmatprep.mubr.bf16.mxu1 %v15471_v43  ;;  %v15436_v27 = vrot.slane %v15435_v37, 2  ;;  %v15191_v43 = vrot.slane %v15190_v52, 2  ;;  %v15212_v30 = vrot.slane %v15211_v44, 2  ;;  %v23171_v62 = vld [vmem:[%s29457_s10 + $0x940] sm:$0xff]  }
 0xa14   : > { %21715 = vmatpush3.bf16.msra.mxu0 %v23144_v2  ;;  %21450 = vmatprep.subr.bf16.mxu1 %v23145_v41  ;;  %v23160_v2 = vld [vmem:[%s29457_s10 + $0x828] sm:$0xff]   ;;  %v15403_v61 = vrot.slane %v15402_v0, 1 }
 0xa15   : > { %21716 = vmatprep.subr.bf16.mxu0 %v23147_v36  ;;  %v23161_v41 = vld [vmem:[%s29457_s10 + $0xe8] sm:$0xff]   ;;  %v23163_v36 = vld [vmem:[%s29457_s10 + $0x870] sm:$0xff]   ;;  %v15437_v26 = vmax.f32 %v15435_v37, %v15436_v27  ;;  %v15213_v6 = vmax.f32 %v15211_v44, %v15212_v30  ;;  %v23174_v27 = vld [vmem:[%s29457_s10 + $0x100] sm:$0xff]  }
 0xa17   : > { %21451 = vmatpush3.bf16.msra.mxu1 %v23146_v35  ;;  %v23162_v35 = vld [vmem:[%s29457_s10 + $0xa8] sm:$0xff]   ;;  %v15438_v13 = vrot.slane %v15437_v26, 1  ;;  %v15214_v58 = vrot.slane %v15213_v6, 1 }
 0xa18   : > { %21717 = vmatpush3.bf16.msra.mxu0 %v23148_v11  ;;  %21452 = vmatprep.subr.bf16.mxu1 %v23149_v63  ;;  %v23165_v11 = vld [vmem:[%s29457_s10 + $0xf0] sm:$0xff]   ;;  %v15192_v63 = vmax.f32 %v15190_v52, %v15191_v43  ;;  %v15426_v43 = vsel %vm5068_vm14, %v28768_v39, -inf }
 0xa19   : > { %21718 = vmatprep.subr.bf16.mxu0 %v23151_v23  ;;  %v23167_v23 = vld [vmem:[%s29457_s10 + $0x878] sm:$0xff]   ;;  %v15439_v37 = vmax.f32 %v15437_v26, %v15438_v13  ;;  %v15215_v50 = vmax.f32 %v15213_v6, %v15214_v58  ;;  %v15427_v26 = vrot.slane %v15426_v43, 4  ;;  %v23187_v13 = vld [vmem:[%s29457_s10 + $0x960] sm:$0xff]   ;;  %v23191_v58 = vld [vmem:[%s29457_s10 + $0x968] sm:$0xff]  }
 0xa1a   : > { %v15193_v19 = vrot.slane %v15192_v63, 1 }
 0xa1b   : > { %21453 = vmatpush3.bf16.msra.mxu1 %v23150_v20  ;;  %v20320_v20 = vcombine.high %v28009_v8, %v28023_v12  ;;  %v28747_v8 = vrot.slane %v14570_v14, %v23808_v56  ;;  %v23170_v12 = vld [vmem:[%s29457_s10 + $0xb8] sm:$0xff]   ;;  %v23175_v14 = vld [vmem:[%s29457_s10 + $0x948] sm:$0xff]   ;;  %v15473_v33 = vpack.c.bf16 %v15215_v50, %v15215_v50 }
 0xa1c   : > { %21719 = vmatpush3.bf16.msra.mxu0 %v23152_v9  ;;  %21454 = vmatprep.subr.bf16.mxu1 %v23153_v60  ;;  %v23168_v9 = vld [vmem:[%s29457_s10 + $0x838] sm:$0xff]  }
 0xa1d   : > { %21720 = vmatprep.subr.bf16.mxu0 %v23155_v46  ;;  %v23169_v60 = vld [vmem:[%s29457_s10 + $0xf8] sm:$0xff]   ;;  %v15404_v46 = vmax.f32 %v15402_v0, %v15403_v61  ;;  %v23178_v0 = vld [vmem:[%s29457_s10 + $0x108] sm:$0xff]  }
 0xa1e   : > { %v23185_v61 = vld [vmem:[%s29457_s10 + $0x158] sm:$0xff]  }
 0xa1f   : > { %21455 = vmatpush3.bf16.msra.mxu1 %v23154_v47  ;;  %v28753_v47 = vrot.slane %v20320_v20, %v23808_v56  ;;  %v15500_v52 = vpack.c.bf16 %v15404_v46, %v15404_v46  ;;  %v23189_v46 = vld [vmem:[%s29457_s10 + $0x160] sm:$0xff]  }
 0xa20   : > { %21721 = vmatpush3.bf16.msra.mxu0 %v23156_v18  ;;  %21456 = vmatprep.subr.bf16.mxu1 %v23157_v53  ;;  %v23172_v18 = vld [vmem:[%s29457_s10 + $0x900] sm:$0xff]   ;;  %v15194_v53 = vmax.f32 %v15192_v63, %v15193_v19  ;;  %v23182_v63 = vld [vmem:[%s29457_s10 + $0x110] sm:$0xff]  }
 0xa21   : > { %21722 = vmatprep.subr.bf16.mxu0 %v23159_v29  ;;  %v15505_v29 = vpack.c.bf16 %v15439_v37, %v15439_v37  ;;  %v14839_v44 = vcombine.high %v28753_v47, %v28747_v8  ;;  %v23188_v19 = vld [vmem:[%s29457_s10 + $0x920] sm:$0xff]  }
 0xa23   : > { %21457 = vmatpush3.bf16.msra.mxu1 %v23158_v42  ;;  %v15129_v42 = vrot.slane %v15101_v3, %v23808_v56  ;;  %v14725_v3 = vrot.slane %v14710_v34, %v23808_v56  ;;  %v23183_v34 = vld [vmem:[%s29457_s10 + $0x958] sm:$0xff]  }
 0xa24   : > { %21723 = vmatpush3.bf16.msra.mxu0 %v23160_v2  ;;  %21458 = vmatprep.subr.bf16.mxu1 %v23161_v41  ;;  %v15470_v2 = vpack.c.bf16 %v15194_v53, %v15194_v53  ;;  %v23179_v41 = vld [vmem:[%s29457_s10 + $0x950] sm:$0xff]   ;;  %v23190_v53 = vld [vmem:[%s29457_s10 + $0x120] sm:$0xff]  }
 0xa25   : > { %21724 = vmatprep.subr.bf16.mxu0 %v23163_v36  ;;  %v28795_v36 = vrot.slane %v14839_v44, %v23808_v56  ;;  %v15461_v30 = vsel %vm5068_vm14, %v15129_v42, -inf  ;;  %v23194_v42 = vld [vmem:[%s29457_s10 + $0x128] sm:$0xff]  }
 0xa27   : > { %21459 = vmatpush3.bf16.msra.mxu1 %v23162_v35  ;;  %v15202_v35 = vsel %vm5068_vm14, %v14725_v3, -inf }
 0xa28   : > { %21725 = vmatpush3.bf16.msra.mxu0 %v23164_v22  ;;  %21460 = vmatprep.subr.bf16.mxu1 %v23165_v11  ;;  %v15462_v22 = vrot.slane %v15461_v30, 4  ;;  %v15265_v11 = vsel %vm5068_vm14, %v28795_v36, -inf  ;;  %v15203_v6 = vrot.slane %v15202_v35, 4 }
 0xa29   : > { %21726 = vmatprep.subr.bf16.mxu0 %v23167_v23  ;;  %v23184_v23 = vld [vmem:[%s29457_s10 + $0x918] sm:$0xff]   ;;  %v15266_v20 = vrot.slane %v15265_v11, 4 }
 0xa2b   : > { %21461 = vmatpush3.bf16.msra.mxu1 %v23166_v48  ;;  %v15428_v48 = vmax.f32 %v15426_v43, %v15427_v26  ;;  %v23203_v26 = vld [vmem:[%s29457_s10 + $0xa40] sm:$0xff]  }
 0xa2c   : > { %21727 = vmatpush3.bf16.msra.mxu0 %v23168_v9  ;;  %21462 = vmatprep.subr.bf16.mxu1 %v23169_v60  ;;  %v15463_v9 = vmax.f32 %v15461_v30, %v15462_v22  ;;  %v23186_v60 = vld [vmem:[%s29457_s10 + $0x118] sm:$0xff]  }
 0xa2d   : > { %21756 = vmatprep.subr.bf16.mxu0 %v23171_v62  ;;  %v15204_v62 = vmax.f32 %v15202_v35, %v15203_v6  ;;  %v15429_v37 = vrot.slane %v15428_v48, 2  ;;  %v23200_v30 = vld [vmem:[%s29457_s10 + $0x938] sm:$0xff]   ;;  %v23205_v6 = vld [vmem:[%s29457_s10 + $0x340] sm:$0xff]  }
 0xa2f   : > { %21463 = vmatpush3.bf16.msra.mxu1 %v23170_v12  ;;  %18495 = vmatmul.mubr.bf16.vlgmr.msra.gmra.mrb[84].mxu0 %v15500_v52  ;;  %v15267_v12 = vmax.f32 %v15265_v11, %v15266_v20  ;;  %v23192_v52 = vld [vmem:[%s29457_s10 + $0x928] sm:$0xff]   ;;  %v15205_v50 = vrot.slane %v15204_v62, 2  ;;  %v23202_v11 = vld [vmem:[%s29457_s10 + $0x138] sm:$0xff]   ;;  %v14838_v20 = vcombine.low %v28753_v47, %v28747_v8 }
 0xa30   : > { %21757 = vmatpush3.bf16.msra.mxu0 %v23172_v18  ;;  %18960 = vmatprep.mubr.bf16.mxu0 %v15505_v29  ;;  %v15464_v18 = vrot.slane %v15463_v9, 2  ;;  %v15430_v29 = vmax.f32 %v15428_v48, %v15429_v37  ;;  %v23207_v48 = vld [vmem:[%s29457_s10 + $0xa48] sm:$0xff]  }
 0xa31   : > { %21470 = vmatprep.subr.bf16.mxu1 %v23173_v38  ;;  %21758 = vmatprep.subr.bf16.mxu0 %v23175_v14  ;;  %v23193_v38 = vld [vmem:[%s29457_s10 + $0x168] sm:$0xff]   ;;  %v23195_v14 = vld [vmem:[%s29457_s10 + $0x970] sm:$0xff]   ;;  %v15268_v44 = vrot.slane %v15267_v12, 2 }
 0xa32   : > { %16472 = vmatmul.mubr.bf16.vlgmr.msra.gmra.mrb[84].mxu1 %v15470_v2  ;;  %v23196_v2 = vld [vmem:[%s29457_s10 + $0x930] sm:$0xff]   ;;  %v23209_v8 = vld [vmem:[%s29457_s10 + $0x348] sm:$0xff]  }
 0xa33   : > { %21471 = vmatpush3.bf16.msra.mxu1 %v23174_v27  ;;  %16511 = vmatprep.mubr.bf16.mxu1 %v15473_v33  ;;  %v15465_v27 = vmax.f32 %v15463_v9, %v15464_v18  ;;  %v23199_v33 = vld [vmem:[%s29457_s10 + $0x978] sm:$0xff]   ;;  %v15269_v3 = vmax.f32 %v15267_v12, %v15268_v44  ;;  %v23210_v37 = vld [vmem:[%s29457_s10 + $0x308] sm:$0xff]   ;;  %v23212_v12 = vld [vmem:[%s29457_s10 + $0xa10] sm:$0xff]  }
 0xa34   : > { %21759 = vmatpush3.bf16.msra.mxu0 %v23176_v57  ;;  %21472 = vmatprep.subr.bf16.mxu1 %v23177_v17  ;;  %v23197_v57 = vld [vmem:[%s29457_s10 + $0x170] sm:$0xff]   ;;  %v15206_v17 = vmax.f32 %v15204_v62, %v15205_v50  ;;  %v23208_v62 = vld [vmem:[%s29457_s10 + $0xa08] sm:$0xff]  }
 0xa35   : > { %21760 = vmatprep.subr.bf16.mxu0 %v23179_v41  ;;  %v15431_v41 = vrot.slane %v15430_v29, 1  ;;  %v15466_v43 = vrot.slane %v15465_v27, 1  ;;  %v15270_v35 = vrot.slane %v15269_v3, 1  ;;  %v23213_v18 = vld [vmem:[%s29457_s10 + $0x350] sm:$0xff]  }
 0xa36   : > { %v23214_v50 = vld [vmem:[%s29457_s10 + $0x310] sm:$0xff]  }
 0xa37   : > { %21473 = vmatpush3.bf16.msra.mxu1 %v23178_v0  ;;  %v23198_v0 = vld [vmem:[%s29457_s10 + $0x130] sm:$0xff]   ;;  %v15467_v22 = vmax.f32 %v15465_v27, %v15466_v43  ;;  %v23219_v27 = vld [vmem:[%s29457_s10 + $0xa60] sm:$0xff]  }
 0xa38   : > { %21761 = vmatpush3.bf16.msra.mxu0 %v23180_v7  ;;  %21474 = vmatprep.subr.bf16.mxu1 %v23181_v21  ;;  %v23201_v7 = vld [vmem:[%s29457_s10 + $0x178] sm:$0xff]   ;;  %v15207_v21 = vrot.slane %v15206_v17, 1 }
 0xa39   : > { %21762 = vmatprep.subr.bf16.mxu0 %v23183_v34  ;;  %v15432_v34 = vmax.f32 %v15430_v29, %v15431_v41  ;;  %v15509_v9 = vpack.c.bf16 %v15467_v22, %v15467_v22  ;;  %v23217_v29 = vld [vmem:[%s29457_s10 + $0x358] sm:$0xff]  }
 0xa3b   : > { %21475 = vmatpush3.bf16.msra.mxu1 %v23182_v63  ;;  %v23204_v63 = vld [vmem:[%s29457_s10 + $0xa00] sm:$0xff]  }
 0xa3c   : > { %21763 = vmatpush3.bf16.msra.mxu0 %v23184_v23  ;;  %21476 = vmatprep.subr.bf16.mxu1 %v23185_v61  ;;  %v15208_v23 = vmax.f32 %v15206_v17, %v15207_v21  ;;  %v15504_v61 = vpack.c.bf16 %v15432_v34, %v15432_v34  ;;  %v23220_v17 = vld [vmem:[%s29457_s10 + $0xa20] sm:$0xff]   ;;  %v23225_v21 = vld [vmem:[%s29457_s10 + $0x368] sm:$0xff]  }
 0xa3d   : > { %21764 = vmatprep.subr.bf16.mxu0 %v23187_v13  ;;  %v15271_v13 = vmax.f32 %v15269_v3, %v15270_v35  ;;  %v23223_v3 = vld [vmem:[%s29457_s10 + $0xa68] sm:$0xff]  }
 0xa3f   : > { %21477 = vmatpush3.bf16.msra.mxu1 %v23186_v60  ;;  %v15115_v60 = vrot.slane %v15100_v28, %v23808_v56  ;;  %v15481_v49 = vpack.c.bf16 %v15271_v13, %v15271_v13  ;;  %v28904_v28 = vrot.slane %v14838_v20, %v23808_v56  ;;  %v23230_v20 = vld [vmem:[%s29457_s10 + $0x330] sm:$0xff]  }
 0xa40   : > { %21765 = vmatpush3.bf16.msra.mxu0 %v23188_v19  ;;  %21478 = vmatprep.subr.bf16.mxu1 %v23189_v46  ;;  %v23206_v19 = vld [vmem:[%s29457_s10 + $0x300] sm:$0xff]   ;;  %v15472_v46 = vpack.c.bf16 %v15208_v23, %v15208_v23  ;;  %v23229_v23 = vld [vmem:[%s29457_s10 + $0x370] sm:$0xff]  }
 0xa41   : > { %21766 = vmatprep.subr.bf16.mxu0 %v23191_v58  ;;  %v15454_v47 = vsel %vm5068_vm14, %v15115_v60, -inf  ;;  %v14871_v58 = vcombine.high %v28795_v36, %v28795_v36  ;;  %v23215_v36 = vld [vmem:[%s29457_s10 + $0xa58] sm:$0xff]  }
 0xa42   : > { %v23233_v60 = vld [vmem:[%s29457_s10 + $0x378] sm:$0xff]  }
 0xa43   : > { %21479 = vmatpush3.bf16.msra.mxu1 %v23190_v53  ;;  %v15455_v53 = vrot.slane %v15454_v47, 4 }
 0xa44   : > { %21767 = vmatpush3.bf16.msra.mxu0 %v23192_v52  ;;  %21480 = vmatprep.subr.bf16.mxu1 %v23193_v38  ;;  %v15258_v52 = vsel %vm5068_vm14, %v28904_v28, -inf  ;;  %v15279_v38 = vsel %vm5068_vm14, %v14871_v58, -inf }
 0xa45   : > { %21768 = vmatprep.subr.bf16.mxu0 %v23195_v14  ;;  %v23216_v14 = vld [vmem:[%s29457_s10 + $0xa18] sm:$0xff]   ;;  %v15259_v44 = vrot.slane %v15258_v52, 4 }
 0xa47   : > { %21481 = vmatpush3.bf16.msra.mxu1 %v23194_v42  ;;  %v15456_v42 = vmax.f32 %v15454_v47, %v15455_v53  ;;  %v15260_v41 = vmax.f32 %v15258_v52, %v15259_v44  ;;  %v14870_v53 = vcombine.high %v28904_v28, %v28904_v28  ;;  %v23238_v52 = vld [vmem:[%s29457_s10 + $0x388] sm:$0xff]   ;;  %v23240_v28 = vld [vmem:[%s29457_s10 + $0x390] sm:$0xff]  }
 0xa48   : > { %21769 = vmatpush3.bf16.msra.mxu0 %v23196_v2  ;;  %21482 = vmatprep.subr.bf16.mxu1 %v23197_v57  ;;  %v15280_v2 = vrot.slane %v15279_v38, 4  ;;  %v23218_v57 = vld [vmem:[%s29457_s10 + $0x318] sm:$0xff]  }
 0xa49   : > { %21770 = vmatprep.subr.bf16.mxu0 %v23199_v33  ;;  %v23221_v33 = vld [vmem:[%s29457_s10 + $0x360] sm:$0xff]   ;;  %v15457_v43 = vrot.slane %v15456_v42, 2  ;;  %v15261_v34 = vrot.slane %v15260_v41, 2 }
 0xa4b   : > { %21483 = vmatpush3.bf16.msra.mxu1 %v23198_v0  ;;  %v15281_v0 = vmax.f32 %v15279_v38, %v15280_v2  ;;  %v15458_v35 = vmax.f32 %v15456_v42, %v15457_v43  ;;  %v23239_v38 = vld [vmem:[%s29457_s10 + $0x3d0] sm:$0xff]   ;;  %v23242_v42 = vld [vmem:[%s29457_s10 + $0x398] sm:$0xff]  }
 0xa4c   : > { %21771 = vmatpush3.bf16.msra.mxu0 %v23200_v30  ;;  %21484 = vmatprep.subr.bf16.mxu1 %v23201_v7  ;;  %v23222_v30 = vld [vmem:[%s29457_s10 + $0x320] sm:$0xff]   ;;  %v23224_v7 = vld [vmem:[%s29457_s10 + $0xa28] sm:$0xff]  }
 0xa4d   : > { %21800 = vmatprep.subr.bf16.mxu0 %v23203_v26  ;;  %v23227_v26 = vld [vmem:[%s29457_s10 + $0xa70] sm:$0xff]   ;;  %v15282_v22 = vrot.slane %v15281_v0, 2  ;;  %v15459_v13 = vrot.slane %v15458_v35, 1 }
 0xa4f   : > { %21485 = vmatpush3.bf16.msra.mxu1 %v23202_v11  ;;  %18961 = vmatmul.mubr.bf16.vlgmr.msra.gmra.mrb[88].mxu0 %v15504_v61  ;;  %v23226_v11 = vld [vmem:[%s29457_s10 + $0x328] sm:$0xff]   ;;  %v15262_v61 = vmax.f32 %v15260_v41, %v15261_v34  ;;  %v23247_v34 = vld [vmem:[%s29457_s10 + $0x3f0] sm:$0xff]  }
 0xa50   : > { %21801 = vmatpush3.bf16.msra.mxu0 %v23204_v63  ;;  %19040 = vmatprep.mubr.bf16.mxu0 %v15509_v9  ;;  %v23228_v63 = vld [vmem:[%s29457_s10 + $0xa30] sm:$0xff]   ;;  %v23232_v9 = vld [vmem:[%s29457_s10 + $0xa38] sm:$0xff]  }
 0xa51   : > { %21492 = vmatprep.subr.bf16.mxu1 %v23205_v6  ;;  %21802 = vmatprep.subr.bf16.mxu0 %v23207_v48  ;;  %v23231_v6 = vld [vmem:[%s29457_s10 + $0xa78] sm:$0xff]   ;;  %v15283_v48 = vmax.f32 %v15281_v0, %v15282_v22 }
 0xa52   : > { %16512 = vmatmul.mubr.bf16.vlgmr.msra.gmra.mrb[88].mxu1 %v15472_v46  ;;  %v15460_v46 = vmax.f32 %v15458_v35, %v15459_v13 }
 0xa53   : > { %21493 = vmatpush3.bf16.msra.mxu1 %v23206_v19  ;;  %16936 = vmatprep.mubr.bf16.mxu1 %v15481_v49  ;;  %v15263_v19 = vrot.slane %v15262_v61, 1 }
 0xa54   : > { %21803 = vmatpush3.bf16.msra.mxu0 %v23208_v62  ;;  %21494 = vmatprep.subr.bf16.mxu1 %v23209_v8  ;;  %v15284_v62 = vrot.slane %v15283_v48, 1  ;;  %v23234_v8 = vld [vmem:[%s29457_s10 + $0x338] sm:$0xff]   ;;  %v15508_v47 = vpack.c.bf16 %v15460_v46, %v15460_v46  ;;  %v23251_v46 = vld [vmem:[%s29457_s10 + $0x4c0] sm:$0xff]  }
 0xa55   : > { %21804 = vmatprep.subr.bf16.mxu0 %v23211_v10  ;;  %v15264_v49 = vmax.f32 %v15262_v61, %v15263_v19  ;;  %v23235_v10 = vld [vmem:[%s29457_s10 + $0x3c0] sm:$0xff]  }
 0xa56   : > { %v15285_v58 = vmax.f32 %v15283_v48, %v15284_v62  ;;  %v23249_v48 = vld [vmem:[%s29457_s10 + $0x3f8] sm:$0xff]  }
 0xa57   : > { %21495 = vmatpush3.bf16.msra.mxu1 %v23210_v37  ;;  %v23236_v37 = vld [vmem:[%s29457_s10 + $0x380] sm:$0xff]  }
 0xa58   : > { %21805 = vmatpush3.bf16.msra.mxu0 %v23212_v12  ;;  %21496 = vmatprep.subr.bf16.mxu1 %v23213_v18  ;;  %v15480_v12 = vpack.c.bf16 %v15264_v49, %v15264_v49  ;;  %v23237_v18 = vld [vmem:[%s29457_s10 + $0x3c8] sm:$0xff]  }
 0xa59   : > { %21806 = vmatprep.subr.bf16.mxu0 %v23215_v36  ;;  %v15483_v36 = vpack.c.bf16 %v15285_v58, %v15285_v58  ;;  %v14934_v58 = vrot.slane %v14906_v4, %v23808_v56  ;;  %v23256_v4 = vld [vmem:[%s29457_s10 + $0x490] sm:$0xff]  }
 0xa5b   : > { %21497 = vmatpush3.bf16.msra.mxu1 %v23214_v50  ;;  %v15272_v50 = vsel %vm5068_vm14, %v14870_v53, -inf  ;;  %v23257_v53 = vld [vmem:[%s29457_s10 + $0x4d8] sm:$0xff]  }
 0xa5c   : > { %21807 = vmatpush3.bf16.msra.mxu0 %v23216_v14  ;;  %21498 = vmatprep.subr.bf16.mxu1 %v23217_v29  ;;  %v15307_v14 = vsel %vm5068_vm14, %v28141_v55, -inf  ;;  %v23241_v29 = vld [vmem:[%s29457_s10 + $0x3d8] sm:$0xff]   ;;  %v15273_v44 = vrot.slane %v15272_v50, 4  ;;  %v23243_v55 = vld [vmem:[%s29457_s10 + $0x3e0] sm:$0xff]  }
 0xa5d   : > { %21808 = vmatprep.subr.bf16.mxu0 %v23219_v27  ;;  %v15308_v27 = vrot.slane %v15307_v14, 4 }
 0xa5e   : > { %v15274_v2 = vmax.f32 %v15272_v50, %v15273_v44  ;;  %v23258_v50 = vld [vmem:[%s29457_s10 + $0x498] sm:$0xff]   ;;  %v23261_v44 = vld [vmem:[%s29457_s10 + $0x4e8] sm:$0xff]  }
 0xa5f   : > { %21499 = vmatpush3.bf16.msra.mxu1 %v23218_v57  ;;  %v15309_v57 = vmax.f32 %v15307_v14, %v15308_v27 }
 0xa60   : > { %21809 = vmatpush3.bf16.msra.mxu0 %v23220_v17  ;;  %21500 = vmatprep.subr.bf16.mxu1 %v23221_v33  ;;  %v23244_v17 = vld [vmem:[%s29457_s10 + $0x3a0] sm:$0xff]   ;;  %v23245_v33 = vld [vmem:[%s29457_s10 + $0x3e8] sm:$0xff]   ;;  %v15275_v41 = vrot.slane %v15274_v2, 2 }
 0xa61   : > { %21810 = vmatprep.subr.bf16.mxu0 %v23223_v3  ;;  %v15310_v3 = vrot.slane %v15309_v57, 2 }
 0xa63   : > { %21501 = vmatpush3.bf16.msra.mxu1 %v23222_v30  ;;  %v23246_v30 = vld [vmem:[%s29457_s10 + $0x3a8] sm:$0xff]  }
 0xa64   : > { %21811 = vmatpush3.bf16.msra.mxu0 %v23224_v7  ;;  %21502 = vmatprep.subr.bf16.mxu1 %v23225_v21 }
 0xa65   : > { %21812 = vmatprep.subr.bf16.mxu0 %v23227_v26  ;;  %v15276_v26 = vmax.f32 %v15274_v2, %v15275_v41  ;;  %v23263_v41 = vld [vmem:[%s29457_s10 + $0x4f0] sm:$0xff]  }
 0xa67   : > { %21503 = vmatpush3.bf16.msra.mxu1 %v23226_v11  ;;  %v15311_v11 = vmax.f32 %v15309_v57, %v15310_v3  ;;  %v23262_v57 = vld [vmem:[%s29457_s10 + $0x4a8] sm:$0xff]  }
 0xa68   : > { %21813 = vmatpush3.bf16.msra.mxu0 %v23228_v63  ;;  %21504 = vmatprep.subr.bf16.mxu1 %v23229_v23 }
 0xa69   : > { %21814 = vmatprep.subr.bf16.mxu0 %v23231_v6  ;;  %v23248_v6 = vld [vmem:[%s29457_s10 + $0x3b0] sm:$0xff]  }
 0xa6b   : > { %21505 = vmatpush3.bf16.msra.mxu1 %v23230_v20  ;;  %v15277_v20 = vrot.slane %v15276_v26, 1 }
 0xa6c   : > { %21815 = vmatpush3.bf16.msra.mxu0 %v23232_v9  ;;  %21506 = vmatprep.subr.bf16.mxu1 %v23233_v60  ;;  %v15312_v9 = vrot.slane %v15311_v11, 1  ;;  %v23250_v60 = vld [vmem:[%s29457_s10 + $0x3b8] sm:$0xff]  }
 0xa6d   : > { %v15278_v19 = vmax.f32 %v15276_v26, %v15277_v20  ;;  %v23267_v20 = vld [vmem:[%s29457_s10 + $0x5c0] sm:$0xff]  }
 0xa6e   : > { %v15313_v62 = vmax.f32 %v15311_v11, %v15312_v9  ;;  %v23265_v11 = vld [vmem:[%s29457_s10 + $0x4f8] sm:$0xff]  }
 0xa6f   : > { %21507 = vmatpush3.bf16.msra.mxu1 %v23234_v8  ;;  %19041 = vmatmul.mubr.bf16.vlgmr.msra.gmra.mrb[92].mxu0 %v15508_v47  ;;  %v23252_v8 = vld [vmem:[%s29457_s10 + $0x480] sm:$0xff]   ;;  %v15482_v49 = vpack.c.bf16 %v15278_v19, %v15278_v19  ;;  %v23269_v19 = vld [vmem:[%s29457_s10 + $0x5c8] sm:$0xff]  }
 0xa70   : > { %21514 = vmatprep.subr.bf16.mxu1 %v23235_v10  ;;  %v23253_v10 = vld [vmem:[%s29457_s10 + $0x4c8] sm:$0xff]   ;;  %v15487_v47 = vpack.c.bf16 %v15313_v62, %v15313_v62  ;;  %v14920_v62 = vrot.slane %v14905_v59, %v23808_v56 }
 0xa72   : > { %16937 = vmatmul.mubr.bf16.vlgmr.msra.gmra.mrb[92].mxu1 %v15480_v12  ;;  %v23255_v12 = vld [vmem:[%s29457_s10 + $0x4d0] sm:$0xff]  }
 0xa73   : > { %21515 = vmatpush3.bf16.msra.mxu1 %v23236_v37  ;;  %16976 = vmatprep.mubr.bf16.mxu1 %v15483_v36  ;;  %v23254_v37 = vld [vmem:[%s29457_s10 + $0x488] sm:$0xff]   ;;  %v15335_v36 = vsel %vm5068_vm14, %v14934_v58, -inf }
 0xa74   : > { %21516 = vmatprep.subr.bf16.mxu1 %v23237_v18  ;;  %v15300_v18 = vsel %vm5068_vm14, %v28174_v31, -inf  ;;  %v23259_v31 = vld [vmem:[%s29457_s10 + $0x4e0] sm:$0xff]  }
 0xa77   : > { %21517 = vmatpush3.bf16.msra.mxu1 %v23238_v52  ;;  %v15301_v52 = vrot.slane %v15300_v18, 4 }
 0xa78   : > { %21518 = vmatprep.subr.bf16.mxu1 %v23239_v38  ;;  %v15336_v38 = vrot.slane %v15335_v36, 4 }
 0xa79   : > { %v15302_v14 = vmax.f32 %v15300_v18, %v15301_v52 }
 0xa7b   : > { %21519 = vmatpush3.bf16.msra.mxu1 %v23240_v28  ;;  %v15337_v28 = vmax.f32 %v15335_v36, %v15336_v38  ;;  %v15303_v27 = vrot.slane %v15302_v14, 2 }
 0xa7c   : > { %21520 = vmatprep.subr.bf16.mxu1 %v23241_v29  ;;  %v23260_v29 = vld [vmem:[%s29457_s10 + $0x4a0] sm:$0xff]  }
 0xa7d   : > { %v15304_v3 = vmax.f32 %v15302_v14, %v15303_v27  ;;  %v23278_v14 = vld [vmem:[%s29457_s10 + $0x5a8] sm:$0xff]  }
 0xa7f   : > { %21521 = vmatpush3.bf16.msra.mxu1 %v23242_v42  ;;  %v15338_v42 = vrot.slane %v15337_v28, 2 }
 0xa80   : > { %21522 = vmatprep.subr.bf16.mxu1 %v23243_v55 }
 0xa82   : > { %v21552_v43 = vpop.f32.mrb[68].mxu0 }
 0xa83   : > { %21523 = vmatpush3.bf16.msra.mxu1 %v23244_v17  ;;  %v21553_v0 = vpop.f32.mrb[69].mxu0 }
 0xa84   : > { %v29025_v7 = vadd.f32 %v21553_v0, %v21552_v43  ;;  %21524 = vmatprep.subr.bf16.mxu1 %v23245_v33  ;;  %v21555_v21 = vpop.f32.mrb[70].mxu0 }
 0xa85   : > { %v21376_v35 = vpop.f32.mrb[68].mxu1  ;;  %v21556_v22 = vpop.f32.mrb[71].mxu0 }
 0xa86   : > { %v21377_v63 = vpop.f32.mrb[69].mxu1 }
 0xa87   : > { %v29030_v23 = vadd.f32 %v21377_v63, %v21376_v35  ;;  %21525 = vmatpush3.bf16.msra.mxu1 %v23246_v30  ;;  %v21379_v61 = vpop.f32.mrb[70].mxu1  ;;  %v15339_v30 = vmax.f32 %v15337_v28, %v15338_v42  ;;  %v23264_v35 = vld [vmem:[%s29457_s10 + $0x4b0] sm:$0xff]   ;;  %v15305_v63 = vrot.slane %v15304_v3, 1 }
 0xa88   : > { %v21380_v13 = vpop.f32.mrb[71].mxu1  ;;  %21526 = vmatprep.subr.bf16.mxu1 %v23247_v34 }
 0xa89   : > { %v23266_v13 = vld [vmem:[%s29457_s10 + $0x4b8] sm:$0xff]  }
 0xa8b   : > { %21527 = vmatpush3.bf16.msra.mxu1 %v23248_v6  ;;  %v15340_v6 = vrot.slane %v15339_v30, 1 }
 0xa8c   : > { %21528 = vmatprep.subr.bf16.mxu1 %v23249_v48  ;;  %v15306_v48 = vmax.f32 %v15304_v3, %v15305_v63  ;;  %v23280_v3 = vld [vmem:[%s29457_s10 + $0x5b0] sm:$0xff]   ;;  %v23284_v63 = vld [vmem:[%s29457_s10 + $0x680] sm:$0xff]  }
 0xa8d   : > { %v15341_v9 = vmax.f32 %v15339_v30, %v15340_v6 }
 0xa8f   : > { %21529 = vmatpush3.bf16.msra.mxu1 %v23250_v60  ;;  %v23268_v60 = vld [vmem:[%s29457_s10 + $0x580] sm:$0xff]  }
 0xa90   : > { %21558 = vmatprep.subr.bf16.mxu1 %v23251_v46  ;;  %v15491_v46 = vpack.c.bf16 %v15341_v9, %v15341_v9  ;;  %v23287_v9 = vld [vmem:[%s29457_s10 + $0x6d0] sm:$0xff]  }
 0xa92   : > { %16977 = vmatmul.mubr.bf16.vlgmr.msra.gmra.mrb[96].mxu1 %v15482_v49  ;;  %v23270_v49 = vld [vmem:[%s29457_s10 + $0x588] sm:$0xff]  }
 0xa93   : > { %21559 = vmatpush3.bf16.msra.mxu1 %v23252_v8  ;;  %17442 = vmatprep.mubr.bf16.mxu1 %v15487_v47  ;;  %v15001_v8 = vcombine.high %v28195_v32, %v28195_v32  ;;  %v15328_v47 = vsel %vm5068_vm14, %v14920_v62, -inf  ;;  %v23272_v32 = vld [vmem:[%s29457_s10 + $0x590] sm:$0xff]  }
 0xa94   : > { %21560 = vmatprep.subr.bf16.mxu1 %v23253_v10  ;;  %v23271_v10 = vld [vmem:[%s29457_s10 + $0x5d0] sm:$0xff]   ;;  %v15329_v59 = vrot.slane %v15328_v47, 4 }
 0xa95   : > { %v15363_v15 = vsel %vm5068_vm14, %v15001_v8, -inf  ;;  %v23290_v8 = vld [vmem:[%s29457_s10 + $0x698] sm:$0xff]  }
 0xa96   : > { %v15364_v58 = vrot.slane %v15363_v15, 4  ;;  %v15330_v18 = vmax.f32 %v15328_v47, %v15329_v59  ;;  %v23292_v47 = vld [vmem:[%s29457_s10 + $0x6a0] sm:$0xff]  }
 0xa97   : > { %21561 = vmatpush3.bf16.msra.mxu1 %v23254_v37  ;;  %v23274_v37 = vld [vmem:[%s29457_s10 + $0x598] sm:$0xff]  }
 0xa98   : > { %21562 = vmatprep.subr.bf16.mxu1 %v23255_v12  ;;  %v23275_v12 = vld [vmem:[%s29457_s10 + $0x5e0] sm:$0xff]   ;;  %v15365_v36 = vmax.f32 %v15363_v15, %v15364_v58  ;;  %v15331_v52 = vrot.slane %v15330_v18, 2  ;;  %v23293_v15 = vld [vmem:[%s29457_s10 + $0x6e8] sm:$0xff]  }
 0xa9a   : > { %v15366_v38 = vrot.slane %v15365_v36, 2  ;;  %v15332_v27 = vmax.f32 %v15330_v18, %v15331_v52 }
 0xa9b   : > { %21563 = vmatpush3.bf16.msra.mxu1 %v23256_v4  ;;  %v23276_v4 = vld [vmem:[%s29457_s10 + $0x5a0] sm:$0xff]  }
 0xa9c   : > { %21564 = vmatprep.subr.bf16.mxu1 %v23257_v53  ;;  %v23277_v53 = vld [vmem:[%s29457_s10 + $0x5e8] sm:$0xff]   ;;  %v15333_v30 = vrot.slane %v15332_v27, 1 }
 0xa9f   : > { %21565 = vmatpush3.bf16.msra.mxu1 %v23258_v50 }
 0xaa0   : > { %21566 = vmatprep.subr.bf16.mxu1 %v23259_v31 }
 0xaa2   : > { %v21596_v55 = vpop.f32.mrb[72].mxu0 }
 0xaa3   : > { %21567 = vmatpush3.bf16.msra.mxu1 %v23260_v29  ;;  %v21597_v2 = vpop.f32.mrb[73].mxu0 }
 0xaa4   : > { %v29084_v17 = vadd.f32 %v21597_v2, %v21596_v55  ;;  %v21599_v33 = vpop.f32.mrb[74].mxu0  ;;  %21568 = vmatprep.subr.bf16.mxu1 %v23261_v44  ;;  %v23279_v44 = vld [vmem:[%s29457_s10 + $0x5f0] sm:$0xff]   ;;  %v15367_v2 = vmax.f32 %v15365_v36, %v15366_v38 }
 0xaa5   : > { %v21398_v43 = vpop.f32.mrb[72].mxu1  ;;  %v21600_v0 = vpop.f32.mrb[75].mxu0  ;;  %v23295_v36 = vld [vmem:[%s29457_s10 + $0x6f0] sm:$0xff]  }
 0xaa6   : > { %v21399_v21 = vpop.f32.mrb[73].mxu1  ;;  %v23281_v0 = vld [vmem:[%s29457_s10 + $0x5f8] sm:$0xff]  }
 0xaa7   : > { %v21400_v34 = vadd.f32 %v21399_v21, %v21398_v43  ;;  %v21401_v26 = vpop.f32.mrb[74].mxu1  ;;  %21569 = vmatpush3.bf16.msra.mxu1 %v23262_v57 }
 0xaa8   : > { %v21402_v22 = vpop.f32.mrb[75].mxu1  ;;  %21570 = vmatprep.subr.bf16.mxu1 %v23263_v41  ;;  %v23282_v26 = vld [vmem:[%s29457_s10 + $0x5b8] sm:$0xff]  }
 0xaa9   : > { %v29096_v61 = vadd.f32 %v21400_v34, %v29030_v23  ;;  %v15486_v23 = vpack.c.bf16 %v15306_v48, %v15306_v48  ;;  %v15368_v34 = vrot.slane %v15367_v2, 1  ;;  %v23283_v22 = vld [vmem:[%s29457_s10 + $0x6c0] sm:$0xff]   ;;  %v15000_v48 = vcombine.high %v28356_v45, %v28356_v45  ;;  %v23288_v45 = vld [vmem:[%s29457_s10 + $0x690] sm:$0xff]  }
 0xaab   : > { %21571 = vmatpush3.bf16.msra.mxu1 %v23264_v35  ;;  %v15334_v35 = vmax.f32 %v15332_v27, %v15333_v30  ;;  %v23297_v27 = vld [vmem:[%s29457_s10 + $0x6f8] sm:$0xff]   ;;  %v23301_v30 = vld [vmem:[%s29457_s10 + $0x7c8] sm:$0xff]  }
 0xaac   : > { %21572 = vmatprep.subr.bf16.mxu1 %v23265_v11  ;;  %v15369_v11 = vmax.f32 %v15367_v2, %v15368_v34  ;;  %v15064_v34 = vrot.slane %v15036_v24, %v23808_v56  ;;  %v23304_v24 = vld [vmem:[%s29457_s10 + $0x790] sm:$0xff]  }
 0xaad   : > { %v15490_v6 = vpack.c.bf16 %v15334_v35, %v15334_v35  ;;  %v23303_v35 = vld [vmem:[%s29457_s10 + $0x7d0] sm:$0xff]  }
 0xaaf   : > { %21573 = vmatpush3.bf16.msra.mxu1 %v23266_v13  ;;  %v15495_v13 = vpack.c.bf16 %v15369_v11, %v15369_v11  ;;  %v15419_v11 = vsel %vm5068_vm14, %v15064_v34, -inf  ;;  %v23325_v34 = vld [vmem:[%s29457_s10 + $0x8e8] sm:$0xff]  }
 0xab0   : > { %21602 = vmatprep.subr.bf16.mxu1 %v23267_v20  ;;  %v23286_v20 = vld [vmem:[%s29457_s10 + $0x688] sm:$0xff]  }
 0xab2   : > { %17443 = vmatmul.mubr.bf16.vlgmr.msra.gmra.mrb[100].mxu1 %v15486_v23  ;;  %v15391_v23 = vsel %vm5068_vm14, %v28489_v1, -inf  ;;  %v23291_v1 = vld [vmem:[%s29457_s10 + $0x6e0] sm:$0xff]  }
 0xab3   : > { %21603 = vmatpush3.bf16.msra.mxu1 %v23268_v60  ;;  %17522 = vmatprep.mubr.bf16.mxu1 %v15491_v46  ;;  %v15356_v60 = vsel %vm5068_vm14, %v15000_v48, -inf  ;;  %v15392_v62 = vrot.slane %v15391_v23, 4 }
 0xab4   : > { %21604 = vmatprep.subr.bf16.mxu1 %v23269_v19  ;;  %v23289_v19 = vld [vmem:[%s29457_s10 + $0x6d8] sm:$0xff]   ;;  %v15357_v46 = vrot.slane %v15356_v60, 4 }
 0xab7   : > { %21605 = vmatpush3.bf16.msra.mxu1 %v23270_v49  ;;  %v15358_v49 = vmax.f32 %v15356_v60, %v15357_v46  ;;  %v23309_v60 = vld [vmem:[%s29457_s10 + $0x7e8] sm:$0xff]  }
 0xab8   : > { %21606 = vmatprep.subr.bf16.mxu1 %v23271_v10  ;;  %v15393_v10 = vmax.f32 %v15391_v23, %v15392_v62  ;;  %v23310_v62 = vld [vmem:[%s29457_s10 + $0x7a8] sm:$0xff]  }
 0xabb   : > { %21607 = vmatpush3.bf16.msra.mxu1 %v23272_v32  ;;  %v15359_v32 = vrot.slane %v15358_v49, 2 }
 0xabc   : > { %21608 = vmatprep.subr.bf16.mxu1 %v23273_v40  ;;  %v15394_v40 = vrot.slane %v15393_v10, 2 }
 0xabe   : > { %v15395_v38 = vmax.f32 %v15393_v10, %v15394_v40 }
 0xabf   : > { %21609 = vmatpush3.bf16.msra.mxu1 %v23274_v37  ;;  %v23294_v37 = vld [vmem:[%s29457_s10 + $0x6a8] sm:$0xff]  }
 0xac0   : > { %21610 = vmatprep.subr.bf16.mxu1 %v23275_v12  ;;  %v15396_v2 = vrot.slane %v15395_v38, 1 }
 0xac2   : > { %v21640_v50 = vpop.f32.mrb[76].mxu0 }
 0xac3   : > { %21611 = vmatpush3.bf16.msra.mxu1 %v23276_v4  ;;  %v21641_v31 = vpop.f32.mrb[77].mxu0  ;;  %v15360_v4 = vmax.f32 %v15358_v49, %v15359_v32  ;;  %v23311_v49 = vld [vmem:[%s29457_s10 + $0x7f0] sm:$0xff]  }
 0xac4   : > { %v29145_v28 = vadd.f32 %v21641_v31, %v21640_v50  ;;  %v21643_v29 = vpop.f32.mrb[78].mxu0  ;;  %21612 = vmatprep.subr.bf16.mxu1 %v23277_v53 }
 0xac5   : > { %v21420_v42 = vpop.f32.mrb[76].mxu1  ;;  %v21644_v55 = vpop.f32.mrb[79].mxu0  ;;  %v23296_v29 = vld [vmem:[%s29457_s10 + $0x6b0] sm:$0xff]  }
 0xac6   : > { %v21421_v57 = vpop.f32.mrb[77].mxu1 }
 0xac7   : > { %v21422_v33 = vadd.f32 %v21421_v57, %v21420_v42  ;;  %v21423_v41 = vpop.f32.mrb[78].mxu1  ;;  %21613 = vmatpush3.bf16.msra.mxu1 %v23278_v14  ;;  %v15361_v42 = vrot.slane %v15360_v4, 1  ;;  %v23298_v57 = vld [vmem:[%s29457_s10 + $0x6b8] sm:$0xff]  }
 0xac8   : > { %v21424_v43 = vpop.f32.mrb[79].mxu1  ;;  %21614 = vmatprep.subr.bf16.mxu1 %v23279_v44  ;;  %v23299_v41 = vld [vmem:[%s29457_s10 + $0x7c0] sm:$0xff]  }
 0xac9   : > { %v16106_v21 = vadd.f32 %v21422_v33, %v29096_v61  ;;  %v23285_v61 = vld [vmem:[%s29457_s10 + $0x6c8] sm:$0xff]   ;;  %v15362_v33 = vmax.f32 %v15360_v4, %v15361_v42  ;;  %v23300_v43 = vld [vmem:[%s29457_s10 + $0x780] sm:$0xff]  }
 0xacb   : > { %21615 = vmatpush3.bf16.msra.mxu1 %v23280_v3  ;;  %v15397_v3 = vmax.f32 %v15395_v38, %v15396_v2  ;;  %v23314_v38 = vld [vmem:[%s29457_s10 + $0x7b8] sm:$0xff]   ;;  %v15131_v2 = vcombine.high %v28647_v16, %v28647_v16 }
 0xacc   : > { %21616 = vmatprep.subr.bf16.mxu1 %v23281_v0  ;;  %v15494_v0 = vpack.c.bf16 %v15362_v33, %v15362_v33  ;;  %v23319_v33 = vld [vmem:[%s29457_s10 + $0x8d0] sm:$0xff]  }
 0xacd   : > { %v15447_v51 = vsel %vm5068_vm14, %v15131_v2, -inf  ;;  %v23342_v2 = vld [vmem:[%s29457_s10 + $0x9a8] sm:$0xff]  }
 0xace   : > { %v15448_v16 = vrot.slane %v15447_v51, 4 }
 0xacf   : > { %21617 = vmatpush3.bf16.msra.mxu1 %v23282_v26  ;;  %v23302_v26 = vld [vmem:[%s29457_s10 + $0x788] sm:$0xff]  }
 0xad0   : > { %21646 = vmatprep.subr.bf16.mxu1 %v23283_v22  ;;  %v15384_v22 = vsel %vm5068_vm14, %v28624_v25, -inf  ;;  %v23307_v25 = vld [vmem:[%s29457_s10 + $0x7e0] sm:$0xff]  }
 0xad2   : > { %17523 = vmatmul.mubr.bf16.vlgmr.msra.gmra.mrb[104].mxu1 %v15490_v6  ;;  %v15385_v6 = vrot.slane %v15384_v22, 4 }
 0xad3   : > { %21647 = vmatpush3.bf16.msra.mxu1 %v23284_v63  ;;  %17988 = vmatprep.mubr.bf16.mxu1 %v15495_v13  ;;  %v23305_v63 = vld [vmem:[%s29457_s10 + $0x7d8] sm:$0xff]  }
 0xad4   : > { %21648 = vmatprep.subr.bf16.mxu1 %v23285_v61  ;;  %v15420_v61 = vrot.slane %v15419_v11, 4  ;;  %v23306_v13 = vld [vmem:[%s29457_s10 + $0x798] sm:$0xff]   ;;  %v15386_v48 = vmax.f32 %v15384_v22, %v15385_v6 }
 0xad6   : > { %v15387_v23 = vrot.slane %v15386_v48, 2 }
 0xad7   : > { %21649 = vmatpush3.bf16.msra.mxu1 %v23286_v20  ;;  %v15421_v20 = vmax.f32 %v15419_v11, %v15420_v61  ;;  %v23327_v61 = vld [vmem:[%s29457_s10 + $0x8f0] sm:$0xff]  }
 0xad8   : > { %21650 = vmatprep.subr.bf16.mxu1 %v23287_v9  ;;  %v23308_v9 = vld [vmem:[%s29457_s10 + $0x7a0] sm:$0xff]   ;;  %v15388_v10 = vmax.f32 %v15386_v48, %v15387_v23 }
 0xada   : > { %v15389_v4 = vrot.slane %v15388_v10, 1 }
 0xadb   : > { %21651 = vmatpush3.bf16.msra.mxu1 %v23288_v45  ;;  %v15422_v45 = vrot.slane %v15421_v20, 2 }
 0xadc   : > { %21652 = vmatprep.subr.bf16.mxu1 %v23289_v19 }
 0xadd   : > { %v15423_v32 = vmax.f32 %v15421_v20, %v15422_v45  ;;  %v23328_v45 = vld [vmem:[%s29457_s10 + $0x8b0] sm:$0xff]  }
 0xadf   : > { %21653 = vmatpush3.bf16.msra.mxu1 %v23290_v8 }
 0xae0   : > { %21654 = vmatprep.subr.bf16.mxu1 %v23291_v1 }
 0xae2   : > { %v21684_v59 = vpop.f32.mrb[80].mxu0 }
 0xae3   : > { %21655 = vmatpush3.bf16.msra.mxu1 %v23292_v47  ;;  %v21685_v58 = vpop.f32.mrb[81].mxu0 }
 0xae4   : > { %v29201_v12 = vadd.f32 %v21685_v58, %v21684_v59  ;;  %v21687_v18 = vpop.f32.mrb[82].mxu0  ;;  %21656 = vmatprep.subr.bf16.mxu1 %v23293_v15 }
 0xae5   : > { %v21442_v53 = vpop.f32.mrb[80].mxu1  ;;  %v21688_v52 = vpop.f32.mrb[83].mxu0 }
 0xae6   : > { %v21443_v50 = vpop.f32.mrb[81].mxu1  ;;  %v15424_v52 = vrot.slane %v15423_v32, 1 }
 0xae7   : > { %v21444_v31 = vadd.f32 %v21443_v50, %v21442_v53  ;;  %v21445_v14 = vpop.f32.mrb[82].mxu1  ;;  %21657 = vmatpush3.bf16.msra.mxu1 %v23294_v37  ;;  %v23312_v37 = vld [vmem:[%s29457_s10 + $0x7b0] sm:$0xff]   ;;  %v15390_v50 = vmax.f32 %v15388_v10, %v15389_v4  ;;  %v23330_v10 = vld [vmem:[%s29457_s10 + $0x8b8] sm:$0xff]  }
 0xae8   : > { %v21446_v44 = vpop.f32.mrb[83].mxu1  ;;  %21658 = vmatprep.subr.bf16.mxu1 %v23295_v36  ;;  %v23313_v36 = vld [vmem:[%s29457_s10 + $0x7f8] sm:$0xff]   ;;  %v15425_v14 = vmax.f32 %v15423_v32, %v15424_v52  ;;  %v23335_v4 = vld [vmem:[%s29457_s10 + $0x9d0] sm:$0xff]  }
 0xae9   : > { %v16434_v55 = vadd.f32 %v21444_v31, %v16106_v21  ;;  %v15499_v21 = vpack.c.bf16 %v15397_v3, %v15397_v3  ;;  %v23315_v31 = vld [vmem:[%s29457_s10 + $0x8c0] sm:$0xff]   ;;  %v15498_v44 = vpack.c.bf16 %v15390_v50, %v15390_v50  ;;  %v23322_v3 = vld [vmem:[%s29457_s10 + $0x898] sm:$0xff]   ;;  %v23336_v52 = vld [vmem:[%s29457_s10 + $0x990] sm:$0xff]  }
 0xaea   : > { %v15503_v42 = vpack.c.bf16 %v15425_v14, %v15425_v14  ;;  %v23338_v50 = vld [vmem:[%s29457_s10 + $0x998] sm:$0xff]  }
 0xaeb   : > { %21659 = vmatpush3.bf16.msra.mxu1 %v23296_v29  ;;  %v23316_v29 = vld [vmem:[%s29457_s10 + $0x880] sm:$0xff]  }
 0xaec   : > { %21660 = vmatprep.subr.bf16.mxu1 %v23297_v27  ;;  %v23317_v27 = vld [vmem:[%s29457_s10 + $0x8c8] sm:$0xff]  }
 0xaef   : > { %21661 = vmatpush3.bf16.msra.mxu1 %v23298_v57  ;;  %v23318_v57 = vld [vmem:[%s29457_s10 + $0x888] sm:$0xff]  }
 0xaf0   : > { %21690 = vmatprep.subr.bf16.mxu1 %v23299_v41 }
 0xaf2   : > { %17989 = vmatmul.mubr.bf16.vlgmr.msra.gmra.mrb[108].mxu1 %v15494_v0 }
 0xaf3   : > { %21691 = vmatpush3.bf16.msra.mxu1 %v23300_v43  ;;  %18454 = vmatprep.mubr.bf16.mxu1 %v15499_v21  ;;  %v23323_v43 = vld [vmem:[%s29457_s10 + $0x8e0] sm:$0xff]  }
 0xaf4   : > { %21692 = vmatprep.subr.bf16.mxu1 %v23301_v30  ;;  %v15449_v30 = vmax.f32 %v15447_v51, %v15448_v16  ;;  %v23324_v21 = vld [vmem:[%s29457_s10 + $0x8a0] sm:$0xff]  }
 0xaf7   : > { %21693 = vmatpush3.bf16.msra.mxu1 %v23302_v26 }
 0xaf8   : > { %21694 = vmatprep.subr.bf16.mxu1 %v23303_v35  ;;  %v15450_v35 = vrot.slane %v15449_v30, 2 }
 0xafa   : > { %v15451_v20 = vmax.f32 %v15449_v30, %v15450_v35  ;;  %v23345_v30 = vld [vmem:[%s29457_s10 + $0x9f8] sm:$0xff]  }
 0xafb   : > { %21695 = vmatpush3.bf16.msra.mxu1 %v23304_v24  ;;  %v23326_v24 = vld [vmem:[%s29457_s10 + $0x8a8] sm:$0xff]  }
 0xafc   : > { %21696 = vmatprep.subr.bf16.mxu1 %v23305_v63 }
 0xaff   : > { %21697 = vmatpush3.bf16.msra.mxu1 %v23306_v13 }
 0xb00   : > { %21698 = vmatprep.subr.bf16.mxu1 %v23307_v25 }
 0xb02   : > { %v21728_v19 = vpop.f32.mrb[84].mxu0 }
 0xb03   : > { %21699 = vmatpush3.bf16.msra.mxu1 %v23308_v9  ;;  %v21729_v46 = vpop.f32.mrb[85].mxu0 }
 0xb04   : > { %v29258_v8 = vadd.f32 %v21729_v46, %v21728_v19  ;;  %v21731_v1 = vpop.f32.mrb[86].mxu0  ;;  %21700 = vmatprep.subr.bf16.mxu1 %v23309_v60  ;;  %v23329_v46 = vld [vmem:[%s29457_s10 + $0x8f8] sm:$0xff]  }
 0xb05   : > { %v21464_v47 = vpop.f32.mrb[84].mxu1  ;;  %v21732_v15 = vpop.f32.mrb[87].mxu0 }
 0xb06   : > { %v21465_v40 = vpop.f32.mrb[85].mxu1  ;;  %v23331_v15 = vld [vmem:[%s29457_s10 + $0x9c0] sm:$0xff]  }
 0xb07   : > { %v21466_v59 = vadd.f32 %v21465_v40, %v21464_v47  ;;  %v21467_v58 = vpop.f32.mrb[86].mxu1  ;;  %21701 = vmatpush3.bf16.msra.mxu1 %v23310_v62  ;;  %v23332_v40 = vld [vmem:[%s29457_s10 + $0x980] sm:$0xff]  }
 0xb08   : > { %v21468_v18 = vpop.f32.mrb[87].mxu1  ;;  %21702 = vmatprep.subr.bf16.mxu1 %v23311_v49  ;;  %v15452_v49 = vrot.slane %v15451_v20, 1  ;;  %v23333_v58 = vld [vmem:[%s29457_s10 + $0x9c8] sm:$0xff]  }
 0xb09   : > { %v29269_v53 = vadd.f32 %v21466_v59, %v16434_v55  ;;  %v15050_v55 = vrot.slane %v15035_v5, %v23808_v56  ;;  %v23320_v56 = vld [vmem:[%s29457_s10 + $0x890] sm:$0xff]   ;;  %v15130_v18 = vcombine.high %v28768_v39, %v28768_v39  ;;  %v23337_v39 = vld [vmem:[%s29457_s10 + $0x9d8] sm:$0xff]  }
 0xb0a   : > { %v15453_v32 = vmax.f32 %v15451_v20, %v15452_v49 }
 0xb0b   : > { %21703 = vmatpush3.bf16.msra.mxu1 %v23312_v37  ;;  %v15412_v41 = vsel %vm5068_vm14, %v15050_v55, -inf }
 0xb0c   : > { %21704 = vmatprep.subr.bf16.mxu1 %v23313_v36  ;;  %v15413_v5 = vrot.slane %v15412_v41, 4  ;;  %v15507_v37 = vpack.c.bf16 %v15453_v32, %v15453_v32  ;;  %v23334_v36 = vld [vmem:[%s29457_s10 + $0x988] sm:$0xff]  }
 0xb0e   : > { %v15414_v0 = vmax.f32 %v15412_v41, %v15413_v5  ;;  %v23343_v41 = vld [vmem:[%s29457_s10 + $0x9f0] sm:$0xff]  }
 0xb0f   : > { %21705 = vmatpush3.bf16.msra.mxu1 %v23314_v38 }
 0xb10   : > { %21734 = vmatprep.subr.bf16.mxu1 %v23315_v31  ;;  %v15415_v26 = vrot.slane %v15414_v0, 2  ;;  %v23339_v31 = vld [vmem:[%s29457_s10 + $0x9e0] sm:$0xff]  }
 0xb12   : > { %18455 = vmatmul.mubr.bf16.vlgmr.msra.gmra.mrb[112].mxu1 %v15498_v44  ;;  %v15416_v13 = vmax.f32 %v15414_v0, %v15415_v26  ;;  %v23341_v44 = vld [vmem:[%s29457_s10 + $0x9e8] sm:$0xff]  }
 0xb13   : > { %21735 = vmatpush3.bf16.msra.mxu1 %v23316_v29  ;;  %18534 = vmatprep.mubr.bf16.mxu1 %v15503_v42  ;;  %v23340_v29 = vld [vmem:[%s29457_s10 + $0x9a0] sm:$0xff]  }
 0xb14   : > { %21736 = vmatprep.subr.bf16.mxu1 %v23317_v27  ;;  %v15417_v62 = vrot.slane %v15416_v13, 1 }
 0xb16   : > { %v15418_v47 = vmax.f32 %v15416_v13, %v15417_v62 }
 0xb17   : > { %21737 = vmatpush3.bf16.msra.mxu1 %v23318_v57 }
 0xb18   : > { %21738 = vmatprep.subr.bf16.mxu1 %v23319_v33  ;;  %v15502_v59 = vpack.c.bf16 %v15418_v47, %v15418_v47 }
 0xb1b   : > { %21739 = vmatpush3.bf16.msra.mxu1 %v23320_v56 }
 0xb1c   : > { %21740 = vmatprep.subr.bf16.mxu1 %v23321_v54 }
 0xb1f   : > { %21741 = vmatpush3.bf16.msra.mxu1 %v23322_v3 }
 0xb20   : > { %21742 = vmatprep.subr.bf16.mxu1 %v23323_v43  ;;  %v23344_v43 = vld [vmem:[%s29457_s10 + $0x9b0] sm:$0xff]  }
 0xb22   : > { %v21772_v22 = vpop.f32.mrb[88].mxu0 }
 0xb23   : > { %21743 = vmatpush3.bf16.msra.mxu1 %v23324_v21  ;;  %v21773_v11 = vpop.f32.mrb[89].mxu0 }
 0xb24   : > { %v29318_v63 = vadd.f32 %v21773_v11, %v21772_v22  ;;  %v21775_v6 = vpop.f32.mrb[90].mxu0  ;;  %21744 = vmatprep.subr.bf16.mxu1 %v23325_v34  ;;  %v23346_v34 = vld [vmem:[%s29457_s10 + $0x9b8] sm:$0xff]  }
 0xb25   : > { %v21486_v25 = vpop.f32.mrb[88].mxu1  ;;  %v21776_v48 = vpop.f32.mrb[91].mxu0 }
 0xb26   : > { %v21487_v9 = vpop.f32.mrb[89].mxu1 }
 0xb27   : > { %v21488_v60 = vadd.f32 %v21487_v9, %v21486_v25  ;;  %v21489_v23 = vpop.f32.mrb[90].mxu1  ;;  %21745 = vmatpush3.bf16.msra.mxu1 %v23326_v24 }
 0xb28   : > { %v21490_v19 = vpop.f32.mrb[91].mxu1  ;;  %21746 = vmatprep.subr.bf16.mxu1 %v23327_v61 }
 0xb29   : > { %v29330_v1 = vadd.f32 %v21488_v60, %v29269_v53  ;;  %v15440_v53 = vsel %vm5068_vm14, %v15130_v18, -inf  ;;  %vm29545_vm14 = vcmask 1040384  }
 0xb2a   : > { %v15441_v38 = vrot.slane %v15440_v53, 4 }
 0xb2b   : > { %21747 = vmatpush3.bf16.msra.mxu1 %v23328_v45 }
 0xb2c   : > { %21748 = vmatprep.subr.bf16.mxu1 %v23329_v46  ;;  %v15442_v14 = vmax.f32 %v15440_v53, %v15441_v38 }
 0xb2e   : > { %v15443_v27 = vrot.slane %v15442_v14, 2 }
 0xb2f   : > { %21749 = vmatpush3.bf16.msra.mxu1 %v23330_v10 }
 0xb30   : > { %21778 = vmatprep.subr.bf16.mxu1 %v23331_v15  ;;  %v15444_v51 = vmax.f32 %v15442_v14, %v15443_v27 }
 0xb32   : > { %18535 = vmatmul.mubr.bf16.vlgmr.msra.gmra.mrb[116].mxu1 %v15502_v59  ;;  %v15445_v21 = vrot.slane %v15444_v51, 1 }
 0xb33   : > { %21779 = vmatpush3.bf16.msra.mxu1 %v23332_v40  ;;  %19000 = vmatprep.mubr.bf16.mxu1 %v15507_v37 }
 0xb34   : > { %21780 = vmatprep.subr.bf16.mxu1 %v23333_v58  ;;  %v15446_v26 = vmax.f32 %v15444_v51, %v15445_v21 }
 0xb36   : > { %v15506_v35 = vpack.c.bf16 %v15446_v26, %v15446_v26 }
 0xb37   : > { %21781 = vmatpush3.bf16.msra.mxu1 %v23334_v36 }
 0xb38   : > { %21782 = vmatprep.subr.bf16.mxu1 %v23335_v4 }
 0xb3b   : > { %21783 = vmatpush3.bf16.msra.mxu1 %v23336_v52 }
 0xb3c   : > { %21784 = vmatprep.subr.bf16.mxu1 %v23337_v39 }
 0xb3f   : > { %21785 = vmatpush3.bf16.msra.mxu1 %v23338_v50 }
 0xb40   : > { %21786 = vmatprep.subr.bf16.mxu1 %v23339_v31 }
 0xb42   : > { %v21816_v42 = vpop.f32.mrb[92].mxu0 }
 0xb43   : > { %21787 = vmatpush3.bf16.msra.mxu1 %v23340_v29  ;;  %v21817_v55 = vpop.f32.mrb[93].mxu0 }
 0xb44   : > { %v29374_v57 = vadd.f32 %v21817_v55, %v21816_v42  ;;  %v21819_v33 = vpop.f32.mrb[94].mxu0  ;;  %21788 = vmatprep.subr.bf16.mxu1 %v23341_v44 }
 0xb45   : > { %v21508_v56 = vpop.f32.mrb[92].mxu1  ;;  %v21820_v54 = vpop.f32.mrb[95].mxu0 }
 0xb46   : > { %v21509_v5 = vpop.f32.mrb[93].mxu1 }
 0xb47   : > { %v21510_v16 = vadd.f32 %v21509_v5, %v21508_v56  ;;  %v21511_v3 = vpop.f32.mrb[94].mxu1  ;;  %21789 = vmatpush3.bf16.msra.mxu1 %v23342_v2 }
 0xb48   : > { %v21512_v0 = vpop.f32.mrb[95].mxu1  ;;  %21790 = vmatprep.subr.bf16.mxu1 %v23343_v41 }
 0xb4b   : > { %21791 = vmatpush3.bf16.msra.mxu1 %v23344_v43 }
 0xb4c   : > { %21792 = vmatprep.subr.bf16.mxu1 %v23345_v30 }
 0xb4f   : > { %21793 = vmatpush3.bf16.msra.mxu1 %v23346_v34 }
 0xb52   : > { %19001 = vmatmul.mubr.bf16.vlgmr.msra.gmra.mrb[120].mxu1 %v15506_v35 }
 0xb65   : > { %v21530_v22 = vpop.f32.mrb[96].mxu1 }
 0xb66   : > { %v21531_v11 = vpop.f32.mrb[97].mxu1 }
 0xb67   : > { %v21532_v24 = vadd.f32 %v21531_v11, %v21530_v22  ;;  %v21533_v6 = vpop.f32.mrb[98].mxu1 }
 0xb68   : > { %v21534_v61 = vpop.f32.mrb[99].mxu1 }
 0xb69   : > { %v16979_v13 = vadd.f32 %v21532_v24, %v21510_v16 }
 0xb6b   : > { %v17019_v25 = vadd.f32 %v29025_v7, %v16979_v13 }
 0xb6d   : > { %v17024_v48 = vadd.f32 %v17019_v25, %v29330_v1 }
 0xb85   : > { %v21574_v20 = vpop.f32.mrb[100].mxu1 }
 0xb86   : > { %v21575_v9 = vpop.f32.mrb[101].mxu1 }
 0xb87   : > { %v21576_v60 = vadd.f32 %v21575_v9, %v21574_v20  ;;  %v21577_v23 = vpop.f32.mrb[102].mxu1 }
 0xb88   : > { %v21578_v45 = vpop.f32.mrb[103].mxu1 }
 0xb89   : > { %v17485_v19 = vadd.f32 %v29084_v17, %v21576_v60 }
 0xba5   : > { %v21618_v46 = vpop.f32.mrb[104].mxu1 }
 0xba6   : > { %v21619_v62 = vpop.f32.mrb[105].mxu1 }
 0xba7   : > { %v21620_v49 = vadd.f32 %v21619_v62, %v21618_v46  ;;  %v21621_v10 = vpop.f32.mrb[106].mxu1 }
 0xba8   : > { %v21622_v47 = vpop.f32.mrb[107].mxu1 }
 0xba9   : > { %v17525_v15 = vadd.f32 %v21620_v49, %v17485_v19 }
 0xbab   : > { %v17530_v32 = vadd.f32 %v17525_v15, %v17024_v48 }
 0xbc5   : > { %v21662_v40 = vpop.f32.mrb[108].mxu1 }
 0xbc6   : > { %v21663_v59 = vpop.f32.mrb[109].mxu1 }
 0xbc7   : > { %v21664_v58 = vadd.f32 %v21663_v59, %v21662_v40  ;;  %v21665_v7 = vpop.f32.mrb[110].mxu1 }
 0xbc8   : > { %v21666_v37 = vpop.f32.mrb[111].mxu1 }
 0xbc9   : > { %v17991_v1 = vadd.f32 %v21664_v58, %v29145_v28 }
 0xbcb   : > { %v18031_v18 = vadd.f32 %v29201_v12, %v17991_v1 }
 0xbcd   : > { %v18036_v36 = vadd.f32 %v18031_v18, %v17530_v32 }
 0xbe5   : > { %v21706_v4 = vpop.f32.mrb[112].mxu1 }
 0xbe6   : > { %v21707_v53 = vpop.f32.mrb[113].mxu1 }
 0xbe7   : > { %v21708_v17 = vadd.f32 %v21707_v53, %v21706_v4  ;;  %v21709_v52 = vpop.f32.mrb[114].mxu1 }
 0xbe8   : > { %v21710_v39 = vpop.f32.mrb[115].mxu1 }
 0xbe9   : > { %v18497_v38 = vadd.f32 %v29258_v8, %v21708_v17  ;;  %v19049_v8 = vld [vmem:[%s29458_s11] sm:$0x1] }
 0xc05   : > { %v21750_v50 = vpop.f32.mrb[116].mxu1 }
 0xc06   : > { %v21751_v31 = vpop.f32.mrb[117].mxu1 }
 0xc07   : > { %v21752_v14 = vadd.f32 %v21751_v31, %v21750_v50  ;;  %v21753_v29 = vpop.f32.mrb[118].mxu1 }
 0xc08   : > { %v21754_v44 = vpop.f32.mrb[119].mxu1 }
 0xc09   : > { %v18537_v27 = vadd.f32 %v21752_v14, %v18497_v38 }
 0xc0b   : > { %v18542_v42 = vadd.f32 %v18537_v27, %v18036_v36 }
 0xc25   : > { %v21794_v55 = vpop.f32.mrb[120].mxu1 }
 0xc26   : > { %v21795_v28 = vpop.f32.mrb[121].mxu1 }
 0xc27   : > { %v21796_v12 = vadd.f32 %v21795_v28, %v21794_v55  ;;  %v21797_v2 = vpop.f32.mrb[122].mxu1 }
 0xc28   : > { %v21798_v33 = vpop.f32.mrb[123].mxu1 }
 0xc29   : > { %v19003_v41 = vadd.f32 %v21796_v12, %v29318_v63 }
 0xc2b   : > { %v19043_v51 = vadd.f32 %v29374_v57, %v19003_v41 }
 0xc2d   : > { %v19048_v56 = vadd.f32 %v19043_v51, %v18542_v42 }
 0xc2f   : > { %v19050_v54 = vadd.f32 %v19049_v8, %v19048_v56 }
 0xc31   : > { %v19051_v5 = vmul.f32 %v19050_v54, %v19050_v54 }
 0xc33   : > { %v19052_v16 = vsel %vm29545_vm14, %v19051_v5, 0.0 }
 0xc34   : > { %19053 = vadd.xlane.f32.xlu0 %v19052_v16 }
 0xcc1   : > { %v19054_v3 = vpop.xlane.xlu0 %19053 }
 0xcc2   : > { %v19055_v43 = vmax.f32 %v19054_v3, 1e-24 }
 0xcc4   : > { %23347 = vrsqrt.f32 %v19055_v43 }
 0xcce   : > { %v23348_v63 = vpop.eup %23347 }
 0xccf   : > { %v19057_v57 = vmul.f32 %v23348_v63, %v19050_v54 }
 0xcd1   : > { %19058 = vst [vmem:[%s405_s0] sm:$0x1] %v19057_v57 }
 0xcd2   : > { %23363 = shalt.err (!%p23360_p3)
}
 0xcd3   : > { %s23364_s16 = scalar_lea.hbm %s29405_s26, 16  ;;  %s23368_s19 = scalar_lea.hbm %s29459_s12, 32 }
 0xcd4   : > { %p23365_p4 = scmp.ne.s32.totalorder %s29405_s26, %s23364_s16  ;;  %p23369_p9 = scmp.lt.u32.totalorder %s29405_s26, %s29459_s12 }
 0xcd5   : > { %p23370_p10 = scmp.lt.u32.totalorder %s23368_s19, %s23364_s16  ;;  %p23372_p12 = scmp.lt.u32.totalorder %s23364_s16, %s29405_s26 }
 0xcd6   : > { %p23366_p7 = pnand %p23365_p4, %p23521_p5 }
 0xcd7   : > { %p23371_p11 = por %p23370_p10, %p23369_p9 }
 0xcd8   : > { %p23367_p8 = pneg %p23366_p7 }
 0xcd9   : > { %p23373_p13 = por %p23372_p12, %p23371_p11 }
 0xcdb   : > { %p23374_p0 = pnand %p23373_p13, %p23367_p8 }
 0xcdd   : > { %23377 = shalt.err (!%p23374_p0)
}
 0xcde   : > { %22127 = dma.vmem_to_hbm [thread:$0]  (%p23521_p5), %s29407_s18, 16, %s29405_s26, %s19060_s28  }
 0xcdf PF: > { %p22133_p1 = scmp.ge.s32.totalorder %s23412_s24, 2  ;;  %s19084_s1 = sand.u32 1, %s23400_s21  }
 0xce0   : > { %s19085_s29 = scalar_lea.sflag [#allocation5], %s19084_s1 }
 0xce1   : > { %p22130_p2 = pnand %p22133_p1, %p23525_p6 }
 0xce3   : > { %23395 = dma.done.wait (!%p22130_p2), %s19085_s29, 16  }
 0xce4   : > { %23397 = vsyncadd (!%p22130_p2), %s19085_s29, 4294967280  ;;  %p22_p3 = scmp.ge.s32.totalorder %s23508_s27, 4   ;;  %s29546_s21 = smov %s23404_s22 }
 0xce5   : > { %s29547_s22 = smov %s23408_s23  ;;  %s29548_s23 = smov %s23519_s30 }
 0xce6   : > { %s29549_s24 = smov %s23508_s27  ;;  %24 = sbr.rel (!%p22_p3) target bundleno = 6 (0x6), region = 115 }
 0xced   :  { %19089 = vsyncpa [#allocation5], 1 }
 0xcee   :  { %19091 = vsyncpa [#allocation5 + $0x1], 1 }

</bundles_post_ra>
